<compile_context>
chip_gen: v6e
topology: v6e:2x2x1
jax: 0.10.0
libtpu: 0.0.40
codegen_flags: <defaults>
</compile_context>

<pallas_src>
import functools

import jax
import jax.numpy as jnp
import numpy as np
from jax.experimental import pallas as pl
from jax.experimental.pallas import tpu as pltpu

OUT_PAD = 128  # lane-dense padded width of the fused head output


# ----------------------------------------------------------------------------
# Fused forward kernel: conv1 -> conv2 -> conv3 -> fused heads (all in VMEM)
# ----------------------------------------------------------------------------
def _fused_forward_kernel(p1_ref, w1_ref, b1_ref, w2_ref, b2_ref, w3_ref,
                          b3_ref, wh_ref, bh_ref, wo_ref, bo_ref, out_ref,
                          y1_ref, y2_ref, *, bb, dims):
    (h1, w1d, h2, w2d, h3, w3d, k2, s2, k3, s3, c1, c2, c3) = dims

    # ---- conv1: im2col matmul per input-row strip (bounded live range). ----
    # 1/255 scale is folded into w1 at prep time.
    w1m = w1_ref[...]
    b1 = b1_ref[...]
    strip = w1d * bb                                   # rows per strip, %16 == 0
    for h in range(h1):
        r0 = h * strip
        acc = jnp.dot(p1_ref[r0:r0 + strip, :], w1m,
                      preferred_element_type=jnp.float32)
        y1_ref[r0:r0 + strip, :] = jnp.maximum(acc + b1, 0.0).astype(y1_ref.dtype)

    # ---- generic conv layer via tap-accumulation -----------------------------
    # For each tap (di, dj): stack all output positions (rows, sublane concat
    # only -> free relabeling), one MXU dot against a contiguous weight slice,
    # accumulate in f32.  No lane shuffles anywhere.
    def conv_tap_accum(src_ref, w_ref, b_ref, wi, ho, wo_, k, s, cin):
        cout = w_ref.shape[1]
        acc = jnp.zeros((ho * wo_ * bb, cout), jnp.float32)
        for di in range(k):
            for dj in range(k):
                blocks = []
                for oh in range(ho):
                    for ow in range(wo_):
                        r = ((oh * s + di) * wi + (ow * s + dj)) * bb
                        blocks.append(src_ref[r:r + bb, :])
                slab = blocks[0] if len(blocks) == 1 else jnp.concatenate(blocks, axis=0)
                wr = (di * k + dj) * cin
                acc += jnp.dot(slab, w_ref[wr:wr + cin, :],
                               preferred_element_type=jnp.float32)
        return jnp.maximum(acc + b_ref[...], 0.0)

    # conv2: 16 taps, K=32 each, all 9 positions stacked (M = h2*w2*bb).
    y2_ref[...] = conv_tap_accum(y1_ref, w2_ref, b2_ref, w1d, h2, w2d,
                                 k2, s2, c1).astype(y2_ref.dtype)
    # conv3: 9 taps, K=64 each.
    feats = conv_tap_accum(y2_ref, w3_ref, b3_ref, w2d, h3, w3d,
                           k3, s3, c2).astype(jnp.bfloat16)   # [h3*w3*bb, c3]

    # ---- fused heads: flatten folded into wh row order (h3, w3, c) ---------
    hid_cols = wh_ref.shape[1]
    hid = jnp.zeros((bb, hid_cols), jnp.float32)
    for p in range(h3 * w3d):
        hid += jnp.dot(feats[p * bb:(p + 1) * bb, :],
                       wh_ref[p * c3:(p + 1) * c3, :],
                       preferred_element_type=jnp.float32)
    hid = jnp.maximum(hid + bh_ref[...], 0.0).astype(jnp.bfloat16)   # [bb, 1024]
    out_ref[...] = (jnp.dot(hid, wo_ref[...],
                            preferred_element_type=jnp.float32) + bo_ref[...])


# ----------------------------------------------------------------------------
# conv1 im2col glue (plain JAX); rows ordered (batch_group, h, w, b_in_group),
# features ordered (c, kh, kw).
# ----------------------------------------------------------------------------
def _im2col_hw_major(x_nhwc, k, s, bb):
    B, H, W, C = x_nhwc.shape
    Ho = (H - k) // s + 1
    Wo = (W - k) // s + 1
    rows = []
    for di in range(k):
        cols = [x_nhwc[:, di:di + s * Ho:s, dj:dj + s * Wo:s, :]
                for dj in range(k)]
        rows.append(jnp.stack(cols, axis=-1))              # [B,Ho,Wo,C,kw]
    pat = jnp.stack(rows, axis=-2)                         # [B,Ho,Wo,C,kh,kw]
    g = B // bb
    pat = pat.reshape(g, bb, Ho, Wo, C * k * k)
    pat = jnp.transpose(pat, (0, 2, 3, 1, 4))              # [g,Ho,Wo,bb,Ckk]
    return pat.reshape(g, Ho * Wo * bb, C * k * k), (Ho, Wo)


# ----------------------------------------------------------------------------
# Parameter construction (PyTorch-like layout) + one-time kernel-format prep
# ----------------------------------------------------------------------------
def init_params(key, input_shape, n_actions):
    c, h, w = input_shape

    def conv_size(size, kernel, stride):
        return (size - (kernel - 1) - 1) // stride + 1

    h1, w1 = conv_size(h, 8, 4), conv_size(w, 8, 4)
    h2, w2 = conv_size(h1, 4, 2), conv_size(w1, 4, 2)
    h3, w3 = conv_size(h2, 3, 1), conv_size(w2, 3, 1)
    fc_dim = h3 * w3 * 64

    keys = jax.random.split(key, 14)

    def u(k_, shape, fan_in):
        bound = 1.0 / np.sqrt(fan_in)
        return jax.random.uniform(k_, shape, jnp.float32, -bound, bound)

    params = {
        "conv1_w": u(keys[0], (32, c, 8, 8), c * 64),
        "conv1_b": u(keys[1], (32,), c * 64),
        "conv2_w": u(keys[2], (64, 32, 4, 4), 32 * 16),
        "conv2_b": u(keys[3], (64,), 32 * 16),
        "conv3_w": u(keys[4], (64, 64, 3, 3), 64 * 9),
        "conv3_b": u(keys[5], (64,), 64 * 9),
        "actor1_w": u(keys[6], (fc_dim, 512), fc_dim),
        "actor1_b": u(keys[7], (512,), fc_dim),
        "actor2_w": u(keys[8], (512, n_actions), 512),
        "actor2_b": u(keys[9], (n_actions,), 512),
        "critic1_w": u(keys[10], (fc_dim, 512), fc_dim),
        "critic1_b": u(keys[11], (512,), fc_dim),
        "critic2_w": u(keys[12], (512, 1), 512),
        "critic2_b": u(keys[13], (1,), 512),
    }
    return params, (h3, w3, fc_dim)


def prepare_kernel_params(params, conv_geom, n_actions, out_pad=OUT_PAD):
    """One-time weight re-layout: im2col/tap weight matrices (bf16), fused
    heads, 1/255 folded into w1, NCHW-flatten permutation folded into wh,
    lane-dense padded merged output layer."""
    h3, w3, fc_dim = conv_geom
    oc1 = params["conv1_w"].shape[0]
    oc2 = params["conv2_w"].shape[0]
    oc3 = params["conv3_w"].shape[0]
    hid = params["actor1_w"].shape[1]

    # conv1: rows ordered (c, kh, kw) to match XLA im2col; fold 1/255 scale.
    w1mat = params["conv1_w"].reshape(oc1, -1).T / 255.0
    # conv2/conv3: rows ordered (kh, kw, cin) to match in-kernel tap order.
    w2mat = jnp.transpose(params["conv2_w"], (2, 3, 1, 0)).reshape(-1, oc2)
    w3mat = jnp.transpose(params["conv3_w"], (2, 3, 1, 0)).reshape(-1, oc3)

    # fold nn.Flatten() (NCHW: c,h,w) -> kernel feats order (h,w,c) into rows
    perm = np.arange(fc_dim).reshape(oc3, h3, w3).transpose(1, 2, 0).reshape(-1)
    a1 = params["actor1_w"][perm, :]
    cr1 = params["critic1_w"][perm, :]
    wh = jnp.concatenate([a1, cr1], axis=1)                            # [fc,1024]
    bh = jnp.concatenate([params["actor1_b"], params["critic1_b"]])    # [1024]

    # merged, lane-dense padded output layer
    wo = jnp.zeros((2 * hid, out_pad), jnp.float32)
    wo = wo.at[:hid, :n_actions].set(params["actor2_w"])
    wo = wo.at[hid:, n_actions:n_actions + 1].set(params["critic2_w"])
    bo = jnp.zeros((out_pad,), jnp.float32)
    bo = bo.at[:n_actions].set(params["actor2_b"])
    bo = bo.at[n_actions].set(params["critic2_b"][0])

    bf16 = jnp.bfloat16
    return {
        "w1": w1mat.astype(bf16), "b1": params["conv1_b"].reshape(1, -1),
        "w2": w2mat.astype(bf16), "b2": params["conv2_b"].reshape(1, -1),
        "w3": w3mat.astype(bf16), "b3": params["conv3_b"].reshape(1, -1),
        "wh": wh.astype(bf16), "bh": bh.reshape(1, -1),
        "wo": wo.astype(bf16), "bo": bo.reshape(1, -1),
    }


# ----------------------------------------------------------------------------
# Forward pass (matches ActorCritic.forward)
# ----------------------------------------------------------------------------
def actor_critic_forward(kparams, x_nchw, n_actions, batch_block=16):
    # batch_block: multiple of 16 (bf16 sublane packing). For real RL batches
    # use 256 on v6e, 128 on v7x (with >=2 groups for both TCs), 128 on v5e.
    B, C, H, W = x_nchw.shape
    bb = batch_block
    b_pad = ((B + bb - 1) // bb) * bb
    g = b_pad // bb

    x = jnp.transpose(x_nchw, (0, 2, 3, 1)).astype(jnp.float32)        # NHWC
    if b_pad != B:
        x = jnp.concatenate(
            [x, jnp.zeros((b_pad - B, H, W, C), jnp.float32)], axis=0)

    patches, (h1, w1d) = _im2col_hw_major(x, 8, 4, bb)
    m1 = h1 * w1d * bb
    k1dim = C * 64
    patches2d = patches.reshape(g * m1, k1dim).astype(jnp.bfloat16)

    def conv_sz(sz, k, st):
        return (sz - k) // st + 1

    h2, w2d = conv_sz(h1, 4, 2), conv_sz(w1d, 4, 2)
    h3, w3d = conv_sz(h2, 3, 1), conv_sz(w2d, 3, 1)
    c1, c2, c3 = 32, 64, 64
    fc_dim = h3 * w3d * c3
    dims = (h1, w1d, h2, w2d, h3, w3d, 4, 2, 3, 1, c1, c2, c3)

    # VMEM budget: double-buffered patch block + weights + scratch + output,
    # 2x headroom, capped below v7x's 64 MiB per-core physical VMEM.
    def lane_pad(n):
        return ((n + 127) // 128) * 128
    vmem_bytes = (
        2 * m1 * lane_pad(k1dim) * 2                                 # patches x2
        + sum(2 * max(a.shape[0], 8) * lane_pad(a.shape[1]) * a.dtype.itemsize
              for a in kparams.values())                             # weights
        + m1 * lane_pad(c1) * 2 + h2 * w2d * bb * lane_pad(c2) * 2   # scratch
        + 2 * bb * OUT_PAD * 4)                                      # output
    vmem_limit = int(min(48 * 1024 * 1024,
                         max(16 * 1024 * 1024, 2 * vmem_bytes)))

    hid_cols = kparams["wh"].shape[1]
    flops = 2 * g * (m1 * k1dim * c1
                     + h2 * w2d * bb * (16 * c1) * c2
                     + h3 * w3d * bb * (9 * c2) * c3
                     + bb * fc_dim * hid_cols
                     + bb * hid_cols * OUT_PAD)
    bytes_accessed = (patches2d.size * 2
                      + sum(int(v.size) * v.dtype.itemsize
                            for v in kparams.values())
                      + b_pad * OUT_PAD * 4)

    kernel = functools.partial(_fused_forward_kernel, bb=bb, dims=dims)

    def full(a):
        return pl.BlockSpec(a.shape, lambda i: (0,) * a.ndim)

    out = pl.pallas_call(
        kernel,
        out_shape=jax.ShapeDtypeStruct((b_pad, OUT_PAD), jnp.float32),
        grid=(g,),
        in_specs=[
            pl.BlockSpec((m1, k1dim), lambda i: (i, 0)),   # conv1 patches (bf16)
            full(kparams["w1"]), full(kparams["b1"]),
            full(kparams["w2"]), full(kparams["b2"]),
            full(kparams["w3"]), full(kparams["b3"]),
            full(kparams["wh"]), full(kparams["bh"]),
            full(kparams["wo"]), full(kparams["bo"]),
        ],
        out_specs=pl.BlockSpec((bb, OUT_PAD), lambda i: (i, 0)),
        scratch_shapes=[
            pltpu.VMEM((m1, c1), jnp.bfloat16),            # conv1 activations
            pltpu.VMEM((h2 * w2d * bb, c2), jnp.bfloat16), # conv2 activations
        ],
        compiler_params=pltpu.CompilerParams(
            dimension_semantics=("parallel",),
            vmem_limit_bytes=vmem_limit),
        cost_estimate=pl.CostEstimate(flops=int(flops), transcendentals=0,
                                      bytes_accessed=int(bytes_accessed)),
    )(patches2d, kparams["w1"], kparams["b1"], kparams["w2"], kparams["b2"],
      kparams["w3"], kparams["b3"], kparams["wh"], kparams["bh"],
      kparams["wo"], kparams["bo"])

    logits = out[:B, :n_actions]
    value = out[:B, n_actions]
    return logits, value


# ----------------------------------------------------------------------------
# Pure-JAX reference (correctness check)
# ----------------------------------------------------------------------------
def _reference_forward(params, x_nchw):
    x = x_nchw / 255.0

    def conv(x_, w, b, s):
        y = jax.lax.conv_general_dilated(
            x_, w, window_strides=(s, s), padding="VALID",
            dimension_numbers=("NCHW", "OIHW", "NCHW"))
        return jax.nn.relu(y + b[None, :, None, None])

    y = conv(x, params["conv1_w"], params["conv1_b"], 4)
    y = conv(y, params["conv2_w"], params["conv2_b"], 2)
    y = conv(y, params["conv3_w"], params["conv3_b"], 1)
    feats = y.reshape(y.shape[0], -1)
    a = jax.nn.relu(feats @ params["actor1_w"] + params["actor1_b"])
    logits = a @ params["actor2_w"] + params["actor2_b"]
    c = jax.nn.relu(feats @ params["critic1_w"] + params["critic1_b"])
    value = c @ params["critic2_w"] + params["critic2_b"]
    return logits, jnp.squeeze(value, axis=-1)


if __name__ == "__main__":
    # 36x36 input gives the minimal valid conv pyramid: 36 -> 8 -> 3 -> 1.
    B, C, H, W = 2, 4, 36, 36
    N_ACTIONS = 6

    key = jax.random.PRNGKey(0)
    pkey, xkey = jax.random.split(key)
    params, (h3, w3, fc_dim) = init_params(pkey, (C, H, W), N_ACTIONS)
    kparams = prepare_kernel_params(params, (h3, w3, fc_dim), N_ACTIONS)

    x = jax.random.uniform(xkey, (B, C, H, W), jnp.float32, 0.0, 255.0)

    fwd = jax.jit(functools.partial(actor_critic_forward, n_actions=N_ACTIONS))
    logits, value = fwd(kparams, x)
    logits, value = jax.block_until_ready((logits, value))

    ref_logits, ref_value = _reference_forward(params, x)
    # bf16 weights/activations (f32 accumulation): loosened tolerance.
    np.testing.assert_allclose(np.asarray(logits), np.asarray(ref_logits),
                               rtol=2e-2, atol=2e-2)
    np.testing.assert_allclose(np.asarray(value), np.asarray(ref_value),
                               rtol=2e-2, atol=2e-2)

    assert logits.shape == (B, N_ACTIONS)
    assert value.shape == (B,)
    print("KERNEL_OK")
</pallas_src>

<mosaic_0001>
module attributes {stable_mosaic.version = 11 : i64} {
  func.func @_fused_forward_kernel(%arg0: i32, %arg1: memref<1024x256xbf16, #tpu.memory_space<vmem>>, %arg2: memref<256x32xbf16, #tpu.memory_space<vmem>>, %arg3: memref<1x32xf32, #tpu.memory_space<vmem>>, %arg4: memref<512x64xbf16, #tpu.memory_space<vmem>>, %arg5: memref<1x64xf32, #tpu.memory_space<vmem>>, %arg6: memref<576x64xbf16, #tpu.memory_space<vmem>>, %arg7: memref<1x64xf32, #tpu.memory_space<vmem>>, %arg8: memref<64x1024xbf16, #tpu.memory_space<vmem>>, %arg9: memref<1x1024xf32, #tpu.memory_space<vmem>>, %arg10: memref<1024x128xbf16, #tpu.memory_space<vmem>>, %arg11: memref<1x128xf32, #tpu.memory_space<vmem>>, %arg12: memref<16x128xf32, #tpu.memory_space<vmem>>, %arg13: memref<1024x32xbf16, #tpu.memory_space<vmem>>, %arg14: memref<144x64xbf16, #tpu.memory_space<vmem>>) attributes {dimension_semantics = [#tpu.dimension_semantics<parallel>], iteration_bounds = array<i64: 1>, scalar_prefetch = 0 : i64, scratch_operands = 2 : i64, tpu.core_type = #tpu.core_type<tc>, window_params = [{transform_indices = @transform_0, window_bounds = array<i64: 1024, 256>}, {pipeline_mode = #tpu.pipeline_mode<synchronous>, transform_indices = @transform_1, window_bounds = array<i64: 256, 32>}, {pipeline_mode = #tpu.pipeline_mode<synchronous>, transform_indices = @transform_2, window_bounds = array<i64: 1, 32>}, {pipeline_mode = #tpu.pipeline_mode<synchronous>, transform_indices = @transform_3, window_bounds = array<i64: 512, 64>}, {pipeline_mode = #tpu.pipeline_mode<synchronous>, transform_indices = @transform_4, window_bounds = array<i64: 1, 64>}, {pipeline_mode = #tpu.pipeline_mode<synchronous>, transform_indices = @transform_5, window_bounds = array<i64: 576, 64>}, {pipeline_mode = #tpu.pipeline_mode<synchronous>, transform_indices = @transform_6, window_bounds = array<i64: 1, 64>}, {pipeline_mode = #tpu.pipeline_mode<synchronous>, transform_indices = @transform_7, window_bounds = array<i64: 64, 1024>}, {pipeline_mode = #tpu.pipeline_mode<synchronous>, transform_indices = @transform_8, window_bounds = array<i64: 1, 1024>}, {pipeline_mode = #tpu.pipeline_mode<synchronous>, transform_indices = @transform_9, window_bounds = array<i64: 1024, 128>}, {pipeline_mode = #tpu.pipeline_mode<synchronous>, transform_indices = @transform_10, window_bounds = array<i64: 1, 128>}, {transform_indices = @transform_11, window_bounds = array<i64: 16, 128>}]} {
    %c0 = arith.constant 0 : index
    %c0_0 = arith.constant 0 : index
    %0 = vector.load %arg2[%c0, %c0_0] : memref<256x32xbf16, #tpu.memory_space<vmem>>, vector<256x32xbf16>
    %c0_1 = arith.constant 0 : index
    %c0_2 = arith.constant 0 : index
    %1 = vector.load %arg3[%c0_1, %c0_2] : memref<1x32xf32, #tpu.memory_space<vmem>>, vector<1x32xf32>
    %c0_3 = arith.constant 0 : index
    %c0_4 = arith.constant 0 : index
    %2 = vector.load %arg1[%c0_3, %c0_4] : memref<1024x256xbf16, #tpu.memory_space<vmem>>, vector<128x256xbf16>
    %cst = arith.constant dense<0.000000e+00> : vector<128x32xf32>
    %3 = tpu.matmul %2, %0, %cst {dimension_numbers = #tpu.dot_dimension_numbers<[1], [0], [0], [1], [0, 0, 1, 1], [], []>} : vector<128x256xbf16>, vector<256x32xbf16>, vector<128x32xf32> -> vector<128x32xf32>
    %4 = vector.broadcast %1 : vector<1x32xf32> to vector<128x32xf32>
    %5 = arith.addf %3, %4 : vector<128x32xf32>
    %cst_5 = arith.constant 0.000000e+00 : f32
    %6 = vector.broadcast %cst_5 : f32 to vector<128x32xf32>
    %7 = arith.maximumf %5, %6 : vector<128x32xf32>
    %8 = arith.truncf %7 : vector<128x32xf32> to vector<128x32xbf16>
    %c0_6 = arith.constant 0 : index
    %c0_7 = arith.constant 0 : index
    %9 = vector.load %arg13[%c0_6, %c0_7] : memref<1024x32xbf16, #tpu.memory_space<vmem>>, vector<128x32xbf16>
    tpu.vector_store %arg13[%c0_6, %c0_7], %8 {strides = array<i32>} : memref<1024x32xbf16, #tpu.memory_space<vmem>>, vector<128x32xbf16>,
    %c128 = arith.constant 128 : index
    %c0_8 = arith.constant 0 : index
    %10 = vector.load %arg1[%c128, %c0_8] : memref<1024x256xbf16, #tpu.memory_space<vmem>>, vector<128x256xbf16>
    %cst_9 = arith.constant dense<0.000000e+00> : vector<128x32xf32>
    %11 = tpu.matmul %10, %0, %cst_9 {dimension_numbers = #tpu.dot_dimension_numbers<[1], [0], [0], [1], [0, 0, 1, 1], [], []>} : vector<128x256xbf16>, vector<256x32xbf16>, vector<128x32xf32> -> vector<128x32xf32>
    %12 = vector.broadcast %1 : vector<1x32xf32> to vector<128x32xf32>
    %13 = arith.addf %11, %12 : vector<128x32xf32>
    %cst_10 = arith.constant 0.000000e+00 : f32
    %14 = vector.broadcast %cst_10 : f32 to vector<128x32xf32>
    %15 = arith.maximumf %13, %14 : vector<128x32xf32>
    %16 = arith.truncf %15 : vector<128x32xf32> to vector<128x32xbf16>
    %c128_11 = arith.constant 128 : index
    %c0_12 = arith.constant 0 : index
    %17 = vector.load %arg13[%c128_11, %c0_12] : memref<1024x32xbf16, #tpu.memory_space<vmem>>, vector<128x32xbf16>
    tpu.vector_store %arg13[%c128_11, %c0_12], %16 {strides = array<i32>} : memref<1024x32xbf16, #tpu.memory_space<vmem>>, vector<128x32xbf16>,
    %c256 = arith.constant 256 : index
    %c0_13 = arith.constant 0 : index
    %18 = vector.load %arg1[%c256, %c0_13] : memref<1024x256xbf16, #tpu.memory_space<vmem>>, vector<128x256xbf16>
    %cst_14 = arith.constant dense<0.000000e+00> : vector<128x32xf32>
    %19 = tpu.matmul %18, %0, %cst_14 {dimension_numbers = #tpu.dot_dimension_numbers<[1], [0], [0], [1], [0, 0, 1, 1], [], []>} : vector<128x256xbf16>, vector<256x32xbf16>, vector<128x32xf32> -> vector<128x32xf32>
    %20 = vector.broadcast %1 : vector<1x32xf32> to vector<128x32xf32>
    %21 = arith.addf %19, %20 : vector<128x32xf32>
    %cst_15 = arith.constant 0.000000e+00 : f32
    %22 = vector.broadcast %cst_15 : f32 to vector<128x32xf32>
    %23 = arith.maximumf %21, %22 : vector<128x32xf32>
    %24 = arith.truncf %23 : vector<128x32xf32> to vector<128x32xbf16>
    %c256_16 = arith.constant 256 : index
    %c0_17 = arith.constant 0 : index
    %25 = vector.load %arg13[%c256_16, %c0_17] : memref<1024x32xbf16, #tpu.memory_space<vmem>>, vector<128x32xbf16>
    tpu.vector_store %arg13[%c256_16, %c0_17], %24 {strides = array<i32>} : memref<1024x32xbf16, #tpu.memory_space<vmem>>, vector<128x32xbf16>,
    %c384 = arith.constant 384 : index
    %c0_18 = arith.constant 0 : index
    %26 = vector.load %arg1[%c384, %c0_18] : memref<1024x256xbf16, #tpu.memory_space<vmem>>, vector<128x256xbf16>
    %cst_19 = arith.constant dense<0.000000e+00> : vector<128x32xf32>
    %27 = tpu.matmul %26, %0, %cst_19 {dimension_numbers = #tpu.dot_dimension_numbers<[1], [0], [0], [1], [0, 0, 1, 1], [], []>} : vector<128x256xbf16>, vector<256x32xbf16>, vector<128x32xf32> -> vector<128x32xf32>
    %28 = vector.broadcast %1 : vector<1x32xf32> to vector<128x32xf32>
    %29 = arith.addf %27, %28 : vector<128x32xf32>
    %cst_20 = arith.constant 0.000000e+00 : f32
    %30 = vector.broadcast %cst_20 : f32 to vector<128x32xf32>
    %31 = arith.maximumf %29, %30 : vector<128x32xf32>
    %32 = arith.truncf %31 : vector<128x32xf32> to vector<128x32xbf16>
    %c384_21 = arith.constant 384 : index
    %c0_22 = arith.constant 0 : index
    %33 = vector.load %arg13[%c384_21, %c0_22] : memref<1024x32xbf16, #tpu.memory_space<vmem>>, vector<128x32xbf16>
    tpu.vector_store %arg13[%c384_21, %c0_22], %32 {strides = array<i32>} : memref<1024x32xbf16, #tpu.memory_space<vmem>>, vector<128x32xbf16>,
    %c512 = arith.constant 512 : index
    %c0_23 = arith.constant 0 : index
    %34 = vector.load %arg1[%c512, %c0_23] : memref<1024x256xbf16, #tpu.memory_space<vmem>>, vector<128x256xbf16>
    %cst_24 = arith.constant dense<0.000000e+00> : vector<128x32xf32>
    %35 = tpu.matmul %34, %0, %cst_24 {dimension_numbers = #tpu.dot_dimension_numbers<[1], [0], [0], [1], [0, 0, 1, 1], [], []>} : vector<128x256xbf16>, vector<256x32xbf16>, vector<128x32xf32> -> vector<128x32xf32>
    %36 = vector.broadcast %1 : vector<1x32xf32> to vector<128x32xf32>
    %37 = arith.addf %35, %36 : vector<128x32xf32>
    %cst_25 = arith.constant 0.000000e+00 : f32
    %38 = vector.broadcast %cst_25 : f32 to vector<128x32xf32>
    %39 = arith.maximumf %37, %38 : vector<128x32xf32>
    %40 = arith.truncf %39 : vector<128x32xf32> to vector<128x32xbf16>
    %c512_26 = arith.constant 512 : index
    %c0_27 = arith.constant 0 : index
    %41 = vector.load %arg13[%c512_26, %c0_27] : memref<1024x32xbf16, #tpu.memory_space<vmem>>, vector<128x32xbf16>
    tpu.vector_store %arg13[%c512_26, %c0_27], %40 {strides = array<i32>} : memref<1024x32xbf16, #tpu.memory_space<vmem>>, vector<128x32xbf16>,
    %c640 = arith.constant 640 : index
    %c0_28 = arith.constant 0 : index
    %42 = vector.load %arg1[%c640, %c0_28] : memref<1024x256xbf16, #tpu.memory_space<vmem>>, vector<128x256xbf16>
    %cst_29 = arith.constant dense<0.000000e+00> : vector<128x32xf32>
    %43 = tpu.matmul %42, %0, %cst_29 {dimension_numbers = #tpu.dot_dimension_numbers<[1], [0], [0], [1], [0, 0, 1, 1], [], []>} : vector<128x256xbf16>, vector<256x32xbf16>, vector<128x32xf32> -> vector<128x32xf32>
    %44 = vector.broadcast %1 : vector<1x32xf32> to vector<128x32xf32>
    %45 = arith.addf %43, %44 : vector<128x32xf32>
    %cst_30 = arith.constant 0.000000e+00 : f32
    %46 = vector.broadcast %cst_30 : f32 to vector<128x32xf32>
    %47 = arith.maximumf %45, %46 : vector<128x32xf32>
    %48 = arith.truncf %47 : vector<128x32xf32> to vector<128x32xbf16>
    %c640_31 = arith.constant 640 : index
    %c0_32 = arith.constant 0 : index
    %49 = vector.load %arg13[%c640_31, %c0_32] : memref<1024x32xbf16, #tpu.memory_space<vmem>>, vector<128x32xbf16>
    tpu.vector_store %arg13[%c640_31, %c0_32], %48 {strides = array<i32>} : memref<1024x32xbf16, #tpu.memory_space<vmem>>, vector<128x32xbf16>,
    %c768 = arith.constant 768 : index
    %c0_33 = arith.constant 0 : index
    %50 = vector.load %arg1[%c768, %c0_33] : memref<1024x256xbf16, #tpu.memory_space<vmem>>, vector<128x256xbf16>
    %cst_34 = arith.constant dense<0.000000e+00> : vector<128x32xf32>
    %51 = tpu.matmul %50, %0, %cst_34 {dimension_numbers = #tpu.dot_dimension_numbers<[1], [0], [0], [1], [0, 0, 1, 1], [], []>} : vector<128x256xbf16>, vector<256x32xbf16>, vector<128x32xf32> -> vector<128x32xf32>
    %52 = vector.broadcast %1 : vector<1x32xf32> to vector<128x32xf32>
    %53 = arith.addf %51, %52 : vector<128x32xf32>
    %cst_35 = arith.constant 0.000000e+00 : f32
    %54 = vector.broadcast %cst_35 : f32 to vector<128x32xf32>
    %55 = arith.maximumf %53, %54 : vector<128x32xf32>
    %56 = arith.truncf %55 : vector<128x32xf32> to vector<128x32xbf16>
    %c768_36 = arith.constant 768 : index
    %c0_37 = arith.constant 0 : index
    %57 = vector.load %arg13[%c768_36, %c0_37] : memref<1024x32xbf16, #tpu.memory_space<vmem>>, vector<128x32xbf16>
    tpu.vector_store %arg13[%c768_36, %c0_37], %56 {strides = array<i32>} : memref<1024x32xbf16, #tpu.memory_space<vmem>>, vector<128x32xbf16>,
    %c896 = arith.constant 896 : index
    %c0_38 = arith.constant 0 : index
    %58 = vector.load %arg1[%c896, %c0_38] : memref<1024x256xbf16, #tpu.memory_space<vmem>>, vector<128x256xbf16>
    %cst_39 = arith.constant dense<0.000000e+00> : vector<128x32xf32>
    %59 = tpu.matmul %58, %0, %cst_39 {dimension_numbers = #tpu.dot_dimension_numbers<[1], [0], [0], [1], [0, 0, 1, 1], [], []>} : vector<128x256xbf16>, vector<256x32xbf16>, vector<128x32xf32> -> vector<128x32xf32>
    %60 = vector.broadcast %1 : vector<1x32xf32> to vector<128x32xf32>
    %61 = arith.addf %59, %60 : vector<128x32xf32>
    %cst_40 = arith.constant 0.000000e+00 : f32
    %62 = vector.broadcast %cst_40 : f32 to vector<128x32xf32>
    %63 = arith.maximumf %61, %62 : vector<128x32xf32>
    %64 = arith.truncf %63 : vector<128x32xf32> to vector<128x32xbf16>
    %c896_41 = arith.constant 896 : index
    %c0_42 = arith.constant 0 : index
    %65 = vector.load %arg13[%c896_41, %c0_42] : memref<1024x32xbf16, #tpu.memory_space<vmem>>, vector<128x32xbf16>
    tpu.vector_store %arg13[%c896_41, %c0_42], %64 {strides = array<i32>} : memref<1024x32xbf16, #tpu.memory_space<vmem>>, vector<128x32xbf16>,
    %cst_43 = arith.constant 0.000000e+00 : f32
    %66 = vector.broadcast %cst_43 : f32 to vector<144x64xf32>
    %c0_44 = arith.constant 0 : index
    %c0_45 = arith.constant 0 : index
    %67 = vector.load %arg13[%c0_44, %c0_45] : memref<1024x32xbf16, #tpu.memory_space<vmem>>, vector<16x32xbf16>
    %c32 = arith.constant 32 : index
    %c0_46 = arith.constant 0 : index
    %68 = vector.load %arg13[%c32, %c0_46] : memref<1024x32xbf16, #tpu.memory_space<vmem>>, vector<16x32xbf16>
    %c64 = arith.constant 64 : index
    %c0_47 = arith.constant 0 : index
    %69 = vector.load %arg13[%c64, %c0_47] : memref<1024x32xbf16, #tpu.memory_space<vmem>>, vector<16x32xbf16>
    %c256_48 = arith.constant 256 : index
    %c0_49 = arith.constant 0 : index
    %70 = vector.load %arg13[%c256_48, %c0_49] : memref<1024x32xbf16, #tpu.memory_space<vmem>>, vector<16x32xbf16>
    %c288 = arith.constant 288 : index
    %c0_50 = arith.constant 0 : index
    %71 = vector.load %arg13[%c288, %c0_50] : memref<1024x32xbf16, #tpu.memory_space<vmem>>, vector<16x32xbf16>
    %c320 = arith.constant 320 : index
    %c0_51 = arith.constant 0 : index
    %72 = vector.load %arg13[%c320, %c0_51] : memref<1024x32xbf16, #tpu.memory_space<vmem>>, vector<16x32xbf16>
    %c512_52 = arith.constant 512 : index
    %c0_53 = arith.constant 0 : index
    %73 = vector.load %arg13[%c512_52, %c0_53] : memref<1024x32xbf16, #tpu.memory_space<vmem>>, vector<16x32xbf16>
    %c544 = arith.constant 544 : index
    %c0_54 = arith.constant 0 : index
    %74 = vector.load %arg13[%c544, %c0_54] : memref<1024x32xbf16, #tpu.memory_space<vmem>>, vector<16x32xbf16>
    %c576 = arith.constant 576 : index
    %c0_55 = arith.constant 0 : index
    %75 = vector.load %arg13[%c576, %c0_55] : memref<1024x32xbf16, #tpu.memory_space<vmem>>, vector<16x32xbf16>
    %76 = tpu.concatenate %67, %68, %69, %70, %71, %72, %73, %74, %75 in 0 : vector<16x32xbf16>, vector<16x32xbf16>, vector<16x32xbf16>, vector<16x32xbf16>, vector<16x32xbf16>, vector<16x32xbf16>, vector<16x32xbf16>, vector<16x32xbf16>, vector<16x32xbf16> -> vector<144x32xbf16>
    %c0_56 = arith.constant 0 : index
    %c0_57 = arith.constant 0 : index
    %77 = vector.load %arg4[%c0_56, %c0_57] : memref<512x64xbf16, #tpu.memory_space<vmem>>, vector<32x64xbf16>
    %cst_58 = arith.constant dense<0.000000e+00> : vector<144x64xf32>
    %78 = tpu.matmul %76, %77, %cst_58 {dimension_numbers = #tpu.dot_dimension_numbers<[1], [0], [0], [1], [0, 0, 1, 1], [], []>} : vector<144x32xbf16>, vector<32x64xbf16>, vector<144x64xf32> -> vector<144x64xf32>
    %79 = arith.addf %66, %78 : vector<144x64xf32>
    %c16 = arith.constant 16 : index
    %c0_59 = arith.constant 0 : index
    %80 = vector.load %arg13[%c16, %c0_59] : memref<1024x32xbf16, #tpu.memory_space<vmem>>, vector<16x32xbf16>
    %c48 = arith.constant 48 : index
    %c0_60 = arith.constant 0 : index
    %81 = vector.load %arg13[%c48, %c0_60] : memref<1024x32xbf16, #tpu.memory_space<vmem>>, vector<16x32xbf16>
    %c80 = arith.constant 80 : index
    %c0_61 = arith.constant 0 : index
    %82 = vector.load %arg13[%c80, %c0_61] : memref<1024x32xbf16, #tpu.memory_space<vmem>>, vector<16x32xbf16>
    %c272 = arith.constant 272 : index
    %c0_62 = arith.constant 0 : index
    %83 = vector.load %arg13[%c272, %c0_62] : memref<1024x32xbf16, #tpu.memory_space<vmem>>, vector<16x32xbf16>
    %c304 = arith.constant 304 : index
    %c0_63 = arith.constant 0 : index
    %84 = vector.load %arg13[%c304, %c0_63] : memref<1024x32xbf16, #tpu.memory_space<vmem>>, vector<16x32xbf16>
    %c336 = arith.constant 336 : index
    %c0_64 = arith.constant 0 : index
    %85 = vector.load %arg13[%c336, %c0_64] : memref<1024x32xbf16, #tpu.memory_space<vmem>>, vector<16x32xbf16>
    %c528 = arith.constant 528 : index
    %c0_65 = arith.constant 0 : index
    %86 = vector.load %arg13[%c528, %c0_65] : memref<1024x32xbf16, #tpu.memory_space<vmem>>, vector<16x32xbf16>
    %c560 = arith.constant 560 : index
    %c0_66 = arith.constant 0 : index
    %87 = vector.load %arg13[%c560, %c0_66] : memref<1024x32xbf16, #tpu.memory_space<vmem>>, vector<16x32xbf16>
    %c592 = arith.constant 592 : index
    %c0_67 = arith.constant 0 : index
    %88 = vector.load %arg13[%c592, %c0_67] : memref<1024x32xbf16, #tpu.memory_space<vmem>>, vector<16x32xbf16>
    %89 = tpu.concatenate %80, %81, %82, %83, %84, %85, %86, %87, %88 in 0 : vector<16x32xbf16>, vector<16x32xbf16>, vector<16x32xbf16>, vector<16x32xbf16>, vector<16x32xbf16>, vector<16x32xbf16>, vector<16x32xbf16>, vector<16x32xbf16>, vector<16x32xbf16> -> vector<144x32xbf16>
    %c32_68 = arith.constant 32 : index
    %c0_69 = arith.constant 0 : index
    %90 = vector.load %arg4[%c32_68, %c0_69] : memref<512x64xbf16, #tpu.memory_space<vmem>>, vector<32x64xbf16>
    %cst_70 = arith.constant dense<0.000000e+00> : vector<144x64xf32>
    %91 = tpu.matmul %89, %90, %cst_70 {dimension_numbers = #tpu.dot_dimension_numbers<[1], [0], [0], [1], [0, 0, 1, 1], [], []>} : vector<144x32xbf16>, vector<32x64xbf16>, vector<144x64xf32> -> vector<144x64xf32>
    %92 = arith.addf %79, %91 : vector<144x64xf32>
    %c32_71 = arith.constant 32 : index
    %c0_72 = arith.constant 0 : index
    %93 = vector.load %arg13[%c32_71, %c0_72] : memref<1024x32xbf16, #tpu.memory_space<vmem>>, vector<16x32xbf16>
    %c64_73 = arith.constant 64 : index
    %c0_74 = arith.constant 0 : index
    %94 = vector.load %arg13[%c64_73, %c0_74] : memref<1024x32xbf16, #tpu.memory_space<vmem>>, vector<16x32xbf16>
    %c96 = arith.constant 96 : index
    %c0_75 = arith.constant 0 : index
    %95 = vector.load %arg13[%c96, %c0_75] : memref<1024x32xbf16, #tpu.memory_space<vmem>>, vector<16x32xbf16>
    %c288_76 = arith.constant 288 : index
    %c0_77 = arith.constant 0 : index
    %96 = vector.load %arg13[%c288_76, %c0_77] : memref<1024x32xbf16, #tpu.memory_space<vmem>>, vector<16x32xbf16>
    %c320_78 = arith.constant 320 : index
    %c0_79 = arith.constant 0 : index
    %97 = vector.load %arg13[%c320_78, %c0_79] : memref<1024x32xbf16, #tpu.memory_space<vmem>>, vector<16x32xbf16>
    %c352 = arith.constant 352 : index
    %c0_80 = arith.constant 0 : index
    %98 = vector.load %arg13[%c352, %c0_80] : memref<1024x32xbf16, #tpu.memory_space<vmem>>, vector<16x32xbf16>
    %c544_81 = arith.constant 544 : index
    %c0_82 = arith.constant 0 : index
    %99 = vector.load %arg13[%c544_81, %c0_82] : memref<1024x32xbf16, #tpu.memory_space<vmem>>, vector<16x32xbf16>
    %c576_83 = arith.constant 576 : index
    %c0_84 = arith.constant 0 : index
    %100 = vector.load %arg13[%c576_83, %c0_84] : memref<1024x32xbf16, #tpu.memory_space<vmem>>, vector<16x32xbf16>
    %c608 = arith.constant 608 : index
    %c0_85 = arith.constant 0 : index
    %101 = vector.load %arg13[%c608, %c0_85] : memref<1024x32xbf16, #tpu.memory_space<vmem>>, vector<16x32xbf16>
    %102 = tpu.concatenate %93, %94, %95, %96, %97, %98, %99, %100, %101 in 0 : vector<16x32xbf16>, vector<16x32xbf16>, vector<16x32xbf16>, vector<16x32xbf16>, vector<16x32xbf16>, vector<16x32xbf16>, vector<16x32xbf16>, vector<16x32xbf16>, vector<16x32xbf16> -> vector<144x32xbf16>
    %c64_86 = arith.constant 64 : index
    %c0_87 = arith.constant 0 : index
    %103 = vector.load %arg4[%c64_86, %c0_87] : memref<512x64xbf16, #tpu.memory_space<vmem>>, vector<32x64xbf16>
    %cst_88 = arith.constant dense<0.000000e+00> : vector<144x64xf32>
    %104 = tpu.matmul %102, %103, %cst_88 {dimension_numbers = #tpu.dot_dimension_numbers<[1], [0], [0], [1], [0, 0, 1, 1], [], []>} : vector<144x32xbf16>, vector<32x64xbf16>, vector<144x64xf32> -> vector<144x64xf32>
    %105 = arith.addf %92, %104 : vector<144x64xf32>
    %c48_89 = arith.constant 48 : index
    %c0_90 = arith.constant 0 : index
    %106 = vector.load %arg13[%c48_89, %c0_90] : memref<1024x32xbf16, #tpu.memory_space<vmem>>, vector<16x32xbf16>
    %c80_91 = arith.constant 80 : index
    %c0_92 = arith.constant 0 : index
    %107 = vector.load %arg13[%c80_91, %c0_92] : memref<1024x32xbf16, #tpu.memory_space<vmem>>, vector<16x32xbf16>
    %c112 = arith.constant 112 : index
    %c0_93 = arith.constant 0 : index
    %108 = vector.load %arg13[%c112, %c0_93] : memref<1024x32xbf16, #tpu.memory_space<vmem>>, vector<16x32xbf16>
    %c304_94 = arith.constant 304 : index
    %c0_95 = arith.constant 0 : index
    %109 = vector.load %arg13[%c304_94, %c0_95] : memref<1024x32xbf16, #tpu.memory_space<vmem>>, vector<16x32xbf16>
    %c336_96 = arith.constant 336 : index
    %c0_97 = arith.constant 0 : index
    %110 = vector.load %arg13[%c336_96, %c0_97] : memref<1024x32xbf16, #tpu.memory_space<vmem>>, vector<16x32xbf16>
    %c368 = arith.constant 368 : index
    %c0_98 = arith.constant 0 : index
    %111 = vector.load %arg13[%c368, %c0_98] : memref<1024x32xbf16, #tpu.memory_space<vmem>>, vector<16x32xbf16>
    %c560_99 = arith.constant 560 : index
    %c0_100 = arith.constant 0 : index
    %112 = vector.load %arg13[%c560_99, %c0_100] : memref<1024x32xbf16, #tpu.memory_space<vmem>>, vector<16x32xbf16>
    %c592_101 = arith.constant 592 : index
    %c0_102 = arith.constant 0 : index
    %113 = vector.load %arg13[%c592_101, %c0_102] : memref<1024x32xbf16, #tpu.memory_space<vmem>>, vector<16x32xbf16>
    %c624 = arith.constant 624 : index
    %c0_103 = arith.constant 0 : index
    %114 = vector.load %arg13[%c624, %c0_103] : memref<1024x32xbf16, #tpu.memory_space<vmem>>, vector<16x32xbf16>
    %115 = tpu.concatenate %106, %107, %108, %109, %110, %111, %112, %113, %114 in 0 : vector<16x32xbf16>, vector<16x32xbf16>, vector<16x32xbf16>, vector<16x32xbf16>, vector<16x32xbf16>, vector<16x32xbf16>, vector<16x32xbf16>, vector<16x32xbf16>, vector<16x32xbf16> -> vector<144x32xbf16>
    %c96_104 = arith.constant 96 : index
    %c0_105 = arith.constant 0 : index
    %116 = vector.load %arg4[%c96_104, %c0_105] : memref<512x64xbf16, #tpu.memory_space<vmem>>, vector<32x64xbf16>
    %cst_106 = arith.constant dense<0.000000e+00> : vector<144x64xf32>
    %117 = tpu.matmul %115, %116, %cst_106 {dimension_numbers = #tpu.dot_dimension_numbers<[1], [0], [0], [1], [0, 0, 1, 1], [], []>} : vector<144x32xbf16>, vector<32x64xbf16>, vector<144x64xf32> -> vector<144x64xf32>
    %118 = arith.addf %105, %117 : vector<144x64xf32>
    %c128_107 = arith.constant 128 : index
    %c0_108 = arith.constant 0 : index
    %119 = vector.load %arg13[%c128_107, %c0_108] : memref<1024x32xbf16, #tpu.memory_space<vmem>>, vector<16x32xbf16>
    %c160 = arith.constant 160 : index
    %c0_109 = arith.constant 0 : index
    %120 = vector.load %arg13[%c160, %c0_109] : memref<1024x32xbf16, #tpu.memory_space<vmem>>, vector<16x32xbf16>
    %c192 = arith.constant 192 : index
    %c0_110 = arith.constant 0 : index
    %121 = vector.load %arg13[%c192, %c0_110] : memref<1024x32xbf16, #tpu.memory_space<vmem>>, vector<16x32xbf16>
    %c384_111 = arith.constant 384 : index
    %c0_112 = arith.constant 0 : index
    %122 = vector.load %arg13[%c384_111, %c0_112] : memref<1024x32xbf16, #tpu.memory_space<vmem>>, vector<16x32xbf16>
    %c416 = arith.constant 416 : index
    %c0_113 = arith.constant 0 : index
    %123 = vector.load %arg13[%c416, %c0_113] : memref<1024x32xbf16, #tpu.memory_space<vmem>>, vector<16x32xbf16>
    %c448 = arith.constant 448 : index
    %c0_114 = arith.constant 0 : index
    %124 = vector.load %arg13[%c448, %c0_114] : memref<1024x32xbf16, #tpu.memory_space<vmem>>, vector<16x32xbf16>
    %c640_115 = arith.constant 640 : index
    %c0_116 = arith.constant 0 : index
    %125 = vector.load %arg13[%c640_115, %c0_116] : memref<1024x32xbf16, #tpu.memory_space<vmem>>, vector<16x32xbf16>
    %c672 = arith.constant 672 : index
    %c0_117 = arith.constant 0 : index
    %126 = vector.load %arg13[%c672, %c0_117] : memref<1024x32xbf16, #tpu.memory_space<vmem>>, vector<16x32xbf16>
    %c704 = arith.constant 704 : index
    %c0_118 = arith.constant 0 : index
    %127 = vector.load %arg13[%c704, %c0_118] : memref<1024x32xbf16, #tpu.memory_space<vmem>>, vector<16x32xbf16>
    %128 = tpu.concatenate %119, %120, %121, %122, %123, %124, %125, %126, %127 in 0 : vector<16x32xbf16>, vector<16x32xbf16>, vector<16x32xbf16>, vector<16x32xbf16>, vector<16x32xbf16>, vector<16x32xbf16>, vector<16x32xbf16>, vector<16x32xbf16>, vector<16x32xbf16> -> vector<144x32xbf16>
    %c128_119 = arith.constant 128 : index
    %c0_120 = arith.constant 0 : index
    %129 = vector.load %arg4[%c128_119, %c0_120] : memref<512x64xbf16, #tpu.memory_space<vmem>>, vector<32x64xbf16>
    %cst_121 = arith.constant dense<0.000000e+00> : vector<144x64xf32>
    %130 = tpu.matmul %128, %129, %cst_121 {dimension_numbers = #tpu.dot_dimension_numbers<[1], [0], [0], [1], [0, 0, 1, 1], [], []>} : vector<144x32xbf16>, vector<32x64xbf16>, vector<144x64xf32> -> vector<144x64xf32>
    %131 = arith.addf %118, %130 : vector<144x64xf32>
    %c144 = arith.constant 144 : index
    %c0_122 = arith.constant 0 : index
    %132 = vector.load %arg13[%c144, %c0_122] : memref<1024x32xbf16, #tpu.memory_space<vmem>>, vector<16x32xbf16>
    %c176 = arith.constant 176 : index
    %c0_123 = arith.constant 0 : index
    %133 = vector.load %arg13[%c176, %c0_123] : memref<1024x32xbf16, #tpu.memory_space<vmem>>, vector<16x32xbf16>
    %c208 = arith.constant 208 : index
    %c0_124 = arith.constant 0 : index
    %134 = vector.load %arg13[%c208, %c0_124] : memref<1024x32xbf16, #tpu.memory_space<vmem>>, vector<16x32xbf16>
    %c400 = arith.constant 400 : index
    %c0_125 = arith.constant 0 : index
    %135 = vector.load %arg13[%c400, %c0_125] : memref<1024x32xbf16, #tpu.memory_space<vmem>>, vector<16x32xbf16>
    %c432 = arith.constant 432 : index
    %c0_126 = arith.constant 0 : index
    %136 = vector.load %arg13[%c432, %c0_126] : memref<1024x32xbf16, #tpu.memory_space<vmem>>, vector<16x32xbf16>
    %c464 = arith.constant 464 : index
    %c0_127 = arith.constant 0 : index
    %137 = vector.load %arg13[%c464, %c0_127] : memref<1024x32xbf16, #tpu.memory_space<vmem>>, vector<16x32xbf16>
    %c656 = arith.constant 656 : index
    %c0_128 = arith.constant 0 : index
    %138 = vector.load %arg13[%c656, %c0_128] : memref<1024x32xbf16, #tpu.memory_space<vmem>>, vector<16x32xbf16>
    %c688 = arith.constant 688 : index
    %c0_129 = arith.constant 0 : index
    %139 = vector.load %arg13[%c688, %c0_129] : memref<1024x32xbf16, #tpu.memory_space<vmem>>, vector<16x32xbf16>
    %c720 = arith.constant 720 : index
    %c0_130 = arith.constant 0 : index
    %140 = vector.load %arg13[%c720, %c0_130] : memref<1024x32xbf16, #tpu.memory_space<vmem>>, vector<16x32xbf16>
    %141 = tpu.concatenate %132, %133, %134, %135, %136, %137, %138, %139, %140 in 0 : vector<16x32xbf16>, vector<16x32xbf16>, vector<16x32xbf16>, vector<16x32xbf16>, vector<16x32xbf16>, vector<16x32xbf16>, vector<16x32xbf16>, vector<16x32xbf16>, vector<16x32xbf16> -> vector<144x32xbf16>
    %c160_131 = arith.constant 160 : index
    %c0_132 = arith.constant 0 : index
    %142 = vector.load %arg4[%c160_131, %c0_132] : memref<512x64xbf16, #tpu.memory_space<vmem>>, vector<32x64xbf16>
    %cst_133 = arith.constant dense<0.000000e+00> : vector<144x64xf32>
    %143 = tpu.matmul %141, %142, %cst_133 {dimension_numbers = #tpu.dot_dimension_numbers<[1], [0], [0], [1], [0, 0, 1, 1], [], []>} : vector<144x32xbf16>, vector<32x64xbf16>, vector<144x64xf32> -> vector<144x64xf32>
    %144 = arith.addf %131, %143 : vector<144x64xf32>
    %c160_134 = arith.constant 160 : index
    %c0_135 = arith.constant 0 : index
    %145 = vector.load %arg13[%c160_134, %c0_135] : memref<1024x32xbf16, #tpu.memory_space<vmem>>, vector<16x32xbf16>
    %c192_136 = arith.constant 192 : index
    %c0_137 = arith.constant 0 : index
    %146 = vector.load %arg13[%c192_136, %c0_137] : memref<1024x32xbf16, #tpu.memory_space<vmem>>, vector<16x32xbf16>
    %c224 = arith.constant 224 : index
    %c0_138 = arith.constant 0 : index
    %147 = vector.load %arg13[%c224, %c0_138] : memref<1024x32xbf16, #tpu.memory_space<vmem>>, vector<16x32xbf16>
    %c416_139 = arith.constant 416 : index
    %c0_140 = arith.constant 0 : index
    %148 = vector.load %arg13[%c416_139, %c0_140] : memref<1024x32xbf16, #tpu.memory_space<vmem>>, vector<16x32xbf16>
    %c448_141 = arith.constant 448 : index
    %c0_142 = arith.constant 0 : index
    %149 = vector.load %arg13[%c448_141, %c0_142] : memref<1024x32xbf16, #tpu.memory_space<vmem>>, vector<16x32xbf16>
    %c480 = arith.constant 480 : index
    %c0_143 = arith.constant 0 : index
    %150 = vector.load %arg13[%c480, %c0_143] : memref<1024x32xbf16, #tpu.memory_space<vmem>>, vector<16x32xbf16>
    %c672_144 = arith.constant 672 : index
    %c0_145 = arith.constant 0 : index
    %151 = vector.load %arg13[%c672_144, %c0_145] : memref<1024x32xbf16, #tpu.memory_space<vmem>>, vector<16x32xbf16>
    %c704_146 = arith.constant 704 : index
    %c0_147 = arith.constant 0 : index
    %152 = vector.load %arg13[%c704_146, %c0_147] : memref<1024x32xbf16, #tpu.memory_space<vmem>>, vector<16x32xbf16>
    %c736 = arith.constant 736 : index
    %c0_148 = arith.constant 0 : index
    %153 = vector.load %arg13[%c736, %c0_148] : memref<1024x32xbf16, #tpu.memory_space<vmem>>, vector<16x32xbf16>
    %154 = tpu.concatenate %145, %146, %147, %148, %149, %150, %151, %152, %153 in 0 : vector<16x32xbf16>, vector<16x32xbf16>, vector<16x32xbf16>, vector<16x32xbf16>, vector<16x32xbf16>, vector<16x32xbf16>, vector<16x32xbf16>, vector<16x32xbf16>, vector<16x32xbf16> -> vector<144x32xbf16>
    %c192_149 = arith.constant 192 : index
    %c0_150 = arith.constant 0 : index
    %155 = vector.load %arg4[%c192_149, %c0_150] : memref<512x64xbf16, #tpu.memory_space<vmem>>, vector<32x64xbf16>
    %cst_151 = arith.constant dense<0.000000e+00> : vector<144x64xf32>
    %156 = tpu.matmul %154, %155, %cst_151 {dimension_numbers = #tpu.dot_dimension_numbers<[1], [0], [0], [1], [0, 0, 1, 1], [], []>} : vector<144x32xbf16>, vector<32x64xbf16>, vector<144x64xf32> -> vector<144x64xf32>
    %157 = arith.addf %144, %156 : vector<144x64xf32>
    %c176_152 = arith.constant 176 : index
    %c0_153 = arith.constant 0 : index
    %158 = vector.load %arg13[%c176_152, %c0_153] : memref<1024x32xbf16, #tpu.memory_space<vmem>>, vector<16x32xbf16>
    %c208_154 = arith.constant 208 : index
    %c0_155 = arith.constant 0 : index
    %159 = vector.load %arg13[%c208_154, %c0_155] : memref<1024x32xbf16, #tpu.memory_space<vmem>>, vector<16x32xbf16>
    %c240 = arith.constant 240 : index
    %c0_156 = arith.constant 0 : index
    %160 = vector.load %arg13[%c240, %c0_156] : memref<1024x32xbf16, #tpu.memory_space<vmem>>, vector<16x32xbf16>
    %c432_157 = arith.constant 432 : index
    %c0_158 = arith.constant 0 : index
    %161 = vector.load %arg13[%c432_157, %c0_158] : memref<1024x32xbf16, #tpu.memory_space<vmem>>, vector<16x32xbf16>
    %c464_159 = arith.constant 464 : index
    %c0_160 = arith.constant 0 : index
    %162 = vector.load %arg13[%c464_159, %c0_160] : memref<1024x32xbf16, #tpu.memory_space<vmem>>, vector<16x32xbf16>
    %c496 = arith.constant 496 : index
    %c0_161 = arith.constant 0 : index
    %163 = vector.load %arg13[%c496, %c0_161] : memref<1024x32xbf16, #tpu.memory_space<vmem>>, vector<16x32xbf16>
    %c688_162 = arith.constant 688 : index
    %c0_163 = arith.constant 0 : index
    %164 = vector.load %arg13[%c688_162, %c0_163] : memref<1024x32xbf16, #tpu.memory_space<vmem>>, vector<16x32xbf16>
    %c720_164 = arith.constant 720 : index
    %c0_165 = arith.constant 0 : index
    %165 = vector.load %arg13[%c720_164, %c0_165] : memref<1024x32xbf16, #tpu.memory_space<vmem>>, vector<16x32xbf16>
    %c752 = arith.constant 752 : index
    %c0_166 = arith.constant 0 : index
    %166 = vector.load %arg13[%c752, %c0_166] : memref<1024x32xbf16, #tpu.memory_space<vmem>>, vector<16x32xbf16>
    %167 = tpu.concatenate %158, %159, %160, %161, %162, %163, %164, %165, %166 in 0 : vector<16x32xbf16>, vector<16x32xbf16>, vector<16x32xbf16>, vector<16x32xbf16>, vector<16x32xbf16>, vector<16x32xbf16>, vector<16x32xbf16>, vector<16x32xbf16>, vector<16x32xbf16> -> vector<144x32xbf16>
    %c224_167 = arith.constant 224 : index
    %c0_168 = arith.constant 0 : index
    %168 = vector.load %arg4[%c224_167, %c0_168] : memref<512x64xbf16, #tpu.memory_space<vmem>>, vector<32x64xbf16>
    %cst_169 = arith.constant dense<0.000000e+00> : vector<144x64xf32>
    %169 = tpu.matmul %167, %168, %cst_169 {dimension_numbers = #tpu.dot_dimension_numbers<[1], [0], [0], [1], [0, 0, 1, 1], [], []>} : vector<144x32xbf16>, vector<32x64xbf16>, vector<144x64xf32> -> vector<144x64xf32>
    %170 = arith.addf %157, %169 : vector<144x64xf32>
    %c256_170 = arith.constant 256 : index
    %c0_171 = arith.constant 0 : index
    %171 = vector.load %arg13[%c256_170, %c0_171] : memref<1024x32xbf16, #tpu.memory_space<vmem>>, vector<16x32xbf16>
    %c288_172 = arith.constant 288 : index
    %c0_173 = arith.constant 0 : index
    %172 = vector.load %arg13[%c288_172, %c0_173] : memref<1024x32xbf16, #tpu.memory_space<vmem>>, vector<16x32xbf16>
    %c320_174 = arith.constant 320 : index
    %c0_175 = arith.constant 0 : index
    %173 = vector.load %arg13[%c320_174, %c0_175] : memref<1024x32xbf16, #tpu.memory_space<vmem>>, vector<16x32xbf16>
    %c512_176 = arith.constant 512 : index
    %c0_177 = arith.constant 0 : index
    %174 = vector.load %arg13[%c512_176, %c0_177] : memref<1024x32xbf16, #tpu.memory_space<vmem>>, vector<16x32xbf16>
    %c544_178 = arith.constant 544 : index
    %c0_179 = arith.constant 0 : index
    %175 = vector.load %arg13[%c544_178, %c0_179] : memref<1024x32xbf16, #tpu.memory_space<vmem>>, vector<16x32xbf16>
    %c576_180 = arith.constant 576 : index
    %c0_181 = arith.constant 0 : index
    %176 = vector.load %arg13[%c576_180, %c0_181] : memref<1024x32xbf16, #tpu.memory_space<vmem>>, vector<16x32xbf16>
    %c768_182 = arith.constant 768 : index
    %c0_183 = arith.constant 0 : index
    %177 = vector.load %arg13[%c768_182, %c0_183] : memref<1024x32xbf16, #tpu.memory_space<vmem>>, vector<16x32xbf16>
    %c800 = arith.constant 800 : index
    %c0_184 = arith.constant 0 : index
    %178 = vector.load %arg13[%c800, %c0_184] : memref<1024x32xbf16, #tpu.memory_space<vmem>>, vector<16x32xbf16>
    %c832 = arith.constant 832 : index
    %c0_185 = arith.constant 0 : index
    %179 = vector.load %arg13[%c832, %c0_185] : memref<1024x32xbf16, #tpu.memory_space<vmem>>, vector<16x32xbf16>
    %180 = tpu.concatenate %171, %172, %173, %174, %175, %176, %177, %178, %179 in 0 : vector<16x32xbf16>, vector<16x32xbf16>, vector<16x32xbf16>, vector<16x32xbf16>, vector<16x32xbf16>, vector<16x32xbf16>, vector<16x32xbf16>, vector<16x32xbf16>, vector<16x32xbf16> -> vector<144x32xbf16>
    %c256_186 = arith.constant 256 : index
    %c0_187 = arith.constant 0 : index
    %181 = vector.load %arg4[%c256_186, %c0_187] : memref<512x64xbf16, #tpu.memory_space<vmem>>, vector<32x64xbf16>
    %cst_188 = arith.constant dense<0.000000e+00> : vector<144x64xf32>
    %182 = tpu.matmul %180, %181, %cst_188 {dimension_numbers = #tpu.dot_dimension_numbers<[1], [0], [0], [1], [0, 0, 1, 1], [], []>} : vector<144x32xbf16>, vector<32x64xbf16>, vector<144x64xf32> -> vector<144x64xf32>
    %183 = arith.addf %170, %182 : vector<144x64xf32>
    %c272_189 = arith.constant 272 : index
    %c0_190 = arith.constant 0 : index
    %184 = vector.load %arg13[%c272_189, %c0_190] : memref<1024x32xbf16, #tpu.memory_space<vmem>>, vector<16x32xbf16>
    %c304_191 = arith.constant 304 : index
    %c0_192 = arith.constant 0 : index
    %185 = vector.load %arg13[%c304_191, %c0_192] : memref<1024x32xbf16, #tpu.memory_space<vmem>>, vector<16x32xbf16>
    %c336_193 = arith.constant 336 : index
    %c0_194 = arith.constant 0 : index
    %186 = vector.load %arg13[%c336_193, %c0_194] : memref<1024x32xbf16, #tpu.memory_space<vmem>>, vector<16x32xbf16>
    %c528_195 = arith.constant 528 : index
    %c0_196 = arith.constant 0 : index
    %187 = vector.load %arg13[%c528_195, %c0_196] : memref<1024x32xbf16, #tpu.memory_space<vmem>>, vector<16x32xbf16>
    %c560_197 = arith.constant 560 : index
    %c0_198 = arith.constant 0 : index
    %188 = vector.load %arg13[%c560_197, %c0_198] : memref<1024x32xbf16, #tpu.memory_space<vmem>>, vector<16x32xbf16>
    %c592_199 = arith.constant 592 : index
    %c0_200 = arith.constant 0 : index
    %189 = vector.load %arg13[%c592_199, %c0_200] : memref<1024x32xbf16, #tpu.memory_space<vmem>>, vector<16x32xbf16>
    %c784 = arith.constant 784 : index
    %c0_201 = arith.constant 0 : index
    %190 = vector.load %arg13[%c784, %c0_201] : memref<1024x32xbf16, #tpu.memory_space<vmem>>, vector<16x32xbf16>
    %c816 = arith.constant 816 : index
    %c0_202 = arith.constant 0 : index
    %191 = vector.load %arg13[%c816, %c0_202] : memref<1024x32xbf16, #tpu.memory_space<vmem>>, vector<16x32xbf16>
    %c848 = arith.constant 848 : index
    %c0_203 = arith.constant 0 : index
    %192 = vector.load %arg13[%c848, %c0_203] : memref<1024x32xbf16, #tpu.memory_space<vmem>>, vector<16x32xbf16>
    %193 = tpu.concatenate %184, %185, %186, %187, %188, %189, %190, %191, %192 in 0 : vector<16x32xbf16>, vector<16x32xbf16>, vector<16x32xbf16>, vector<16x32xbf16>, vector<16x32xbf16>, vector<16x32xbf16>, vector<16x32xbf16>, vector<16x32xbf16>, vector<16x32xbf16> -> vector<144x32xbf16>
    %c288_204 = arith.constant 288 : index
    %c0_205 = arith.constant 0 : index
    %194 = vector.load %arg4[%c288_204, %c0_205] : memref<512x64xbf16, #tpu.memory_space<vmem>>, vector<32x64xbf16>
    %cst_206 = arith.constant dense<0.000000e+00> : vector<144x64xf32>
    %195 = tpu.matmul %193, %194, %cst_206 {dimension_numbers = #tpu.dot_dimension_numbers<[1], [0], [0], [1], [0, 0, 1, 1], [], []>} : vector<144x32xbf16>, vector<32x64xbf16>, vector<144x64xf32> -> vector<144x64xf32>
    %196 = arith.addf %183, %195 : vector<144x64xf32>
    %c288_207 = arith.constant 288 : index
    %c0_208 = arith.constant 0 : index
    %197 = vector.load %arg13[%c288_207, %c0_208] : memref<1024x32xbf16, #tpu.memory_space<vmem>>, vector<16x32xbf16>
    %c320_209 = arith.constant 320 : index
    %c0_210 = arith.constant 0 : index
    %198 = vector.load %arg13[%c320_209, %c0_210] : memref<1024x32xbf16, #tpu.memory_space<vmem>>, vector<16x32xbf16>
    %c352_211 = arith.constant 352 : index
    %c0_212 = arith.constant 0 : index
    %199 = vector.load %arg13[%c352_211, %c0_212] : memref<1024x32xbf16, #tpu.memory_space<vmem>>, vector<16x32xbf16>
    %c544_213 = arith.constant 544 : index
    %c0_214 = arith.constant 0 : index
    %200 = vector.load %arg13[%c544_213, %c0_214] : memref<1024x32xbf16, #tpu.memory_space<vmem>>, vector<16x32xbf16>
    %c576_215 = arith.constant 576 : index
    %c0_216 = arith.constant 0 : index
    %201 = vector.load %arg13[%c576_215, %c0_216] : memref<1024x32xbf16, #tpu.memory_space<vmem>>, vector<16x32xbf16>
    %c608_217 = arith.constant 608 : index
    %c0_218 = arith.constant 0 : index
    %202 = vector.load %arg13[%c608_217, %c0_218] : memref<1024x32xbf16, #tpu.memory_space<vmem>>, vector<16x32xbf16>
    %c800_219 = arith.constant 800 : index
    %c0_220 = arith.constant 0 : index
    %203 = vector.load %arg13[%c800_219, %c0_220] : memref<1024x32xbf16, #tpu.memory_space<vmem>>, vector<16x32xbf16>
    %c832_221 = arith.constant 832 : index
    %c0_222 = arith.constant 0 : index
    %204 = vector.load %arg13[%c832_221, %c0_222] : memref<1024x32xbf16, #tpu.memory_space<vmem>>, vector<16x32xbf16>
    %c864 = arith.constant 864 : index
    %c0_223 = arith.constant 0 : index
    %205 = vector.load %arg13[%c864, %c0_223] : memref<1024x32xbf16, #tpu.memory_space<vmem>>, vector<16x32xbf16>
    %206 = tpu.concatenate %197, %198, %199, %200, %201, %202, %203, %204, %205 in 0 : vector<16x32xbf16>, vector<16x32xbf16>, vector<16x32xbf16>, vector<16x32xbf16>, vector<16x32xbf16>, vector<16x32xbf16>, vector<16x32xbf16>, vector<16x32xbf16>, vector<16x32xbf16> -> vector<144x32xbf16>
    %c320_224 = arith.constant 320 : index
    %c0_225 = arith.constant 0 : index
    %207 = vector.load %arg4[%c320_224, %c0_225] : memref<512x64xbf16, #tpu.memory_space<vmem>>, vector<32x64xbf16>
    %cst_226 = arith.constant dense<0.000000e+00> : vector<144x64xf32>
    %208 = tpu.matmul %206, %207, %cst_226 {dimension_numbers = #tpu.dot_dimension_numbers<[1], [0], [0], [1], [0, 0, 1, 1], [], []>} : vector<144x32xbf16>, vector<32x64xbf16>, vector<144x64xf32> -> vector<144x64xf32>
    %209 = arith.addf %196, %208 : vector<144x64xf32>
    %c304_227 = arith.constant 304 : index
    %c0_228 = arith.constant 0 : index
    %210 = vector.load %arg13[%c304_227, %c0_228] : memref<1024x32xbf16, #tpu.memory_space<vmem>>, vector<16x32xbf16>
    %c336_229 = arith.constant 336 : index
    %c0_230 = arith.constant 0 : index
    %211 = vector.load %arg13[%c336_229, %c0_230] : memref<1024x32xbf16, #tpu.memory_space<vmem>>, vector<16x32xbf16>
    %c368_231 = arith.constant 368 : index
    %c0_232 = arith.constant 0 : index
    %212 = vector.load %arg13[%c368_231, %c0_232] : memref<1024x32xbf16, #tpu.memory_space<vmem>>, vector<16x32xbf16>
    %c560_233 = arith.constant 560 : index
    %c0_234 = arith.constant 0 : index
    %213 = vector.load %arg13[%c560_233, %c0_234] : memref<1024x32xbf16, #tpu.memory_space<vmem>>, vector<16x32xbf16>
    %c592_235 = arith.constant 592 : index
    %c0_236 = arith.constant 0 : index
    %214 = vector.load %arg13[%c592_235, %c0_236] : memref<1024x32xbf16, #tpu.memory_space<vmem>>, vector<16x32xbf16>
    %c624_237 = arith.constant 624 : index
    %c0_238 = arith.constant 0 : index
    %215 = vector.load %arg13[%c624_237, %c0_238] : memref<1024x32xbf16, #tpu.memory_space<vmem>>, vector<16x32xbf16>
    %c816_239 = arith.constant 816 : index
    %c0_240 = arith.constant 0 : index
    %216 = vector.load %arg13[%c816_239, %c0_240] : memref<1024x32xbf16, #tpu.memory_space<vmem>>, vector<16x32xbf16>
    %c848_241 = arith.constant 848 : index
    %c0_242 = arith.constant 0 : index
    %217 = vector.load %arg13[%c848_241, %c0_242] : memref<1024x32xbf16, #tpu.memory_space<vmem>>, vector<16x32xbf16>
    %c880 = arith.constant 880 : index
    %c0_243 = arith.constant 0 : index
    %218 = vector.load %arg13[%c880, %c0_243] : memref<1024x32xbf16, #tpu.memory_space<vmem>>, vector<16x32xbf16>
    %219 = tpu.concatenate %210, %211, %212, %213, %214, %215, %216, %217, %218 in 0 : vector<16x32xbf16>, vector<16x32xbf16>, vector<16x32xbf16>, vector<16x32xbf16>, vector<16x32xbf16>, vector<16x32xbf16>, vector<16x32xbf16>, vector<16x32xbf16>, vector<16x32xbf16> -> vector<144x32xbf16>
    %c352_244 = arith.constant 352 : index
    %c0_245 = arith.constant 0 : index
    %220 = vector.load %arg4[%c352_244, %c0_245] : memref<512x64xbf16, #tpu.memory_space<vmem>>, vector<32x64xbf16>
    %cst_246 = arith.constant dense<0.000000e+00> : vector<144x64xf32>
    %221 = tpu.matmul %219, %220, %cst_246 {dimension_numbers = #tpu.dot_dimension_numbers<[1], [0], [0], [1], [0, 0, 1, 1], [], []>} : vector<144x32xbf16>, vector<32x64xbf16>, vector<144x64xf32> -> vector<144x64xf32>
    %222 = arith.addf %209, %221 : vector<144x64xf32>
    %c384_247 = arith.constant 384 : index
    %c0_248 = arith.constant 0 : index
    %223 = vector.load %arg13[%c384_247, %c0_248] : memref<1024x32xbf16, #tpu.memory_space<vmem>>, vector<16x32xbf16>
    %c416_249 = arith.constant 416 : index
    %c0_250 = arith.constant 0 : index
    %224 = vector.load %arg13[%c416_249, %c0_250] : memref<1024x32xbf16, #tpu.memory_space<vmem>>, vector<16x32xbf16>
    %c448_251 = arith.constant 448 : index
    %c0_252 = arith.constant 0 : index
    %225 = vector.load %arg13[%c448_251, %c0_252] : memref<1024x32xbf16, #tpu.memory_space<vmem>>, vector<16x32xbf16>
    %c640_253 = arith.constant 640 : index
    %c0_254 = arith.constant 0 : index
    %226 = vector.load %arg13[%c640_253, %c0_254] : memref<1024x32xbf16, #tpu.memory_space<vmem>>, vector<16x32xbf16>
    %c672_255 = arith.constant 672 : index
    %c0_256 = arith.constant 0 : index
    %227 = vector.load %arg13[%c672_255, %c0_256] : memref<1024x32xbf16, #tpu.memory_space<vmem>>, vector<16x32xbf16>
    %c704_257 = arith.constant 704 : index
    %c0_258 = arith.constant 0 : index
    %228 = vector.load %arg13[%c704_257, %c0_258] : memref<1024x32xbf16, #tpu.memory_space<vmem>>, vector<16x32xbf16>
    %c896_259 = arith.constant 896 : index
    %c0_260 = arith.constant 0 : index
    %229 = vector.load %arg13[%c896_259, %c0_260] : memref<1024x32xbf16, #tpu.memory_space<vmem>>, vector<16x32xbf16>
    %c928 = arith.constant 928 : index
    %c0_261 = arith.constant 0 : index
    %230 = vector.load %arg13[%c928, %c0_261] : memref<1024x32xbf16, #tpu.memory_space<vmem>>, vector<16x32xbf16>
    %c960 = arith.constant 960 : index
    %c0_262 = arith.constant 0 : index
    %231 = vector.load %arg13[%c960, %c0_262] : memref<1024x32xbf16, #tpu.memory_space<vmem>>, vector<16x32xbf16>
    %232 = tpu.concatenate %223, %224, %225, %226, %227, %228, %229, %230, %231 in 0 : vector<16x32xbf16>, vector<16x32xbf16>, vector<16x32xbf16>, vector<16x32xbf16>, vector<16x32xbf16>, vector<16x32xbf16>, vector<16x32xbf16>, vector<16x32xbf16>, vector<16x32xbf16> -> vector<144x32xbf16>
    %c384_263 = arith.constant 384 : index
    %c0_264 = arith.constant 0 : index
    %233 = vector.load %arg4[%c384_263, %c0_264] : memref<512x64xbf16, #tpu.memory_space<vmem>>, vector<32x64xbf16>
    %cst_265 = arith.constant dense<0.000000e+00> : vector<144x64xf32>
    %234 = tpu.matmul %232, %233, %cst_265 {dimension_numbers = #tpu.dot_dimension_numbers<[1], [0], [0], [1], [0, 0, 1, 1], [], []>} : vector<144x32xbf16>, vector<32x64xbf16>, vector<144x64xf32> -> vector<144x64xf32>
    %235 = arith.addf %222, %234 : vector<144x64xf32>
    %c400_266 = arith.constant 400 : index
    %c0_267 = arith.constant 0 : index
    %236 = vector.load %arg13[%c400_266, %c0_267] : memref<1024x32xbf16, #tpu.memory_space<vmem>>, vector<16x32xbf16>
    %c432_268 = arith.constant 432 : index
    %c0_269 = arith.constant 0 : index
    %237 = vector.load %arg13[%c432_268, %c0_269] : memref<1024x32xbf16, #tpu.memory_space<vmem>>, vector<16x32xbf16>
    %c464_270 = arith.constant 464 : index
    %c0_271 = arith.constant 0 : index
    %238 = vector.load %arg13[%c464_270, %c0_271] : memref<1024x32xbf16, #tpu.memory_space<vmem>>, vector<16x32xbf16>
    %c656_272 = arith.constant 656 : index
    %c0_273 = arith.constant 0 : index
    %239 = vector.load %arg13[%c656_272, %c0_273] : memref<1024x32xbf16, #tpu.memory_space<vmem>>, vector<16x32xbf16>
    %c688_274 = arith.constant 688 : index
    %c0_275 = arith.constant 0 : index
    %240 = vector.load %arg13[%c688_274, %c0_275] : memref<1024x32xbf16, #tpu.memory_space<vmem>>, vector<16x32xbf16>
    %c720_276 = arith.constant 720 : index
    %c0_277 = arith.constant 0 : index
    %241 = vector.load %arg13[%c720_276, %c0_277] : memref<1024x32xbf16, #tpu.memory_space<vmem>>, vector<16x32xbf16>
    %c912 = arith.constant 912 : index
    %c0_278 = arith.constant 0 : index
    %242 = vector.load %arg13[%c912, %c0_278] : memref<1024x32xbf16, #tpu.memory_space<vmem>>, vector<16x32xbf16>
    %c944 = arith.constant 944 : index
    %c0_279 = arith.constant 0 : index
    %243 = vector.load %arg13[%c944, %c0_279] : memref<1024x32xbf16, #tpu.memory_space<vmem>>, vector<16x32xbf16>
    %c976 = arith.constant 976 : index
    %c0_280 = arith.constant 0 : index
    %244 = vector.load %arg13[%c976, %c0_280] : memref<1024x32xbf16, #tpu.memory_space<vmem>>, vector<16x32xbf16>
    %245 = tpu.concatenate %236, %237, %238, %239, %240, %241, %242, %243, %244 in 0 : vector<16x32xbf16>, vector<16x32xbf16>, vector<16x32xbf16>, vector<16x32xbf16>, vector<16x32xbf16>, vector<16x32xbf16>, vector<16x32xbf16>, vector<16x32xbf16>, vector<16x32xbf16> -> vector<144x32xbf16>
    %c416_281 = arith.constant 416 : index
    %c0_282 = arith.constant 0 : index
    %246 = vector.load %arg4[%c416_281, %c0_282] : memref<512x64xbf16, #tpu.memory_space<vmem>>, vector<32x64xbf16>
    %cst_283 = arith.constant dense<0.000000e+00> : vector<144x64xf32>
    %247 = tpu.matmul %245, %246, %cst_283 {dimension_numbers = #tpu.dot_dimension_numbers<[1], [0], [0], [1], [0, 0, 1, 1], [], []>} : vector<144x32xbf16>, vector<32x64xbf16>, vector<144x64xf32> -> vector<144x64xf32>
    %248 = arith.addf %235, %247 : vector<144x64xf32>
    %c416_284 = arith.constant 416 : index
    %c0_285 = arith.constant 0 : index
    %249 = vector.load %arg13[%c416_284, %c0_285] : memref<1024x32xbf16, #tpu.memory_space<vmem>>, vector<16x32xbf16>
    %c448_286 = arith.constant 448 : index
    %c0_287 = arith.constant 0 : index
    %250 = vector.load %arg13[%c448_286, %c0_287] : memref<1024x32xbf16, #tpu.memory_space<vmem>>, vector<16x32xbf16>
    %c480_288 = arith.constant 480 : index
    %c0_289 = arith.constant 0 : index
    %251 = vector.load %arg13[%c480_288, %c0_289] : memref<1024x32xbf16, #tpu.memory_space<vmem>>, vector<16x32xbf16>
    %c672_290 = arith.constant 672 : index
    %c0_291 = arith.constant 0 : index
    %252 = vector.load %arg13[%c672_290, %c0_291] : memref<1024x32xbf16, #tpu.memory_space<vmem>>, vector<16x32xbf16>
    %c704_292 = arith.constant 704 : index
    %c0_293 = arith.constant 0 : index
    %253 = vector.load %arg13[%c704_292, %c0_293] : memref<1024x32xbf16, #tpu.memory_space<vmem>>, vector<16x32xbf16>
    %c736_294 = arith.constant 736 : index
    %c0_295 = arith.constant 0 : index
    %254 = vector.load %arg13[%c736_294, %c0_295] : memref<1024x32xbf16, #tpu.memory_space<vmem>>, vector<16x32xbf16>
    %c928_296 = arith.constant 928 : index
    %c0_297 = arith.constant 0 : index
    %255 = vector.load %arg13[%c928_296, %c0_297] : memref<1024x32xbf16, #tpu.memory_space<vmem>>, vector<16x32xbf16>
    %c960_298 = arith.constant 960 : index
    %c0_299 = arith.constant 0 : index
    %256 = vector.load %arg13[%c960_298, %c0_299] : memref<1024x32xbf16, #tpu.memory_space<vmem>>, vector<16x32xbf16>
    %c992 = arith.constant 992 : index
    %c0_300 = arith.constant 0 : index
    %257 = vector.load %arg13[%c992, %c0_300] : memref<1024x32xbf16, #tpu.memory_space<vmem>>, vector<16x32xbf16>
    %258 = tpu.concatenate %249, %250, %251, %252, %253, %254, %255, %256, %257 in 0 : vector<16x32xbf16>, vector<16x32xbf16>, vector<16x32xbf16>, vector<16x32xbf16>, vector<16x32xbf16>, vector<16x32xbf16>, vector<16x32xbf16>, vector<16x32xbf16>, vector<16x32xbf16> -> vector<144x32xbf16>
    %c448_301 = arith.constant 448 : index
    %c0_302 = arith.constant 0 : index
    %259 = vector.load %arg4[%c448_301, %c0_302] : memref<512x64xbf16, #tpu.memory_space<vmem>>, vector<32x64xbf16>
    %cst_303 = arith.constant dense<0.000000e+00> : vector<144x64xf32>
    %260 = tpu.matmul %258, %259, %cst_303 {dimension_numbers = #tpu.dot_dimension_numbers<[1], [0], [0], [1], [0, 0, 1, 1], [], []>} : vector<144x32xbf16>, vector<32x64xbf16>, vector<144x64xf32> -> vector<144x64xf32>
    %261 = arith.addf %248, %260 : vector<144x64xf32>
    %c432_304 = arith.constant 432 : index
    %c0_305 = arith.constant 0 : index
    %262 = vector.load %arg13[%c432_304, %c0_305] : memref<1024x32xbf16, #tpu.memory_space<vmem>>, vector<16x32xbf16>
    %c464_306 = arith.constant 464 : index
    %c0_307 = arith.constant 0 : index
    %263 = vector.load %arg13[%c464_306, %c0_307] : memref<1024x32xbf16, #tpu.memory_space<vmem>>, vector<16x32xbf16>
    %c496_308 = arith.constant 496 : index
    %c0_309 = arith.constant 0 : index
    %264 = vector.load %arg13[%c496_308, %c0_309] : memref<1024x32xbf16, #tpu.memory_space<vmem>>, vector<16x32xbf16>
    %c688_310 = arith.constant 688 : index
    %c0_311 = arith.constant 0 : index
    %265 = vector.load %arg13[%c688_310, %c0_311] : memref<1024x32xbf16, #tpu.memory_space<vmem>>, vector<16x32xbf16>
    %c720_312 = arith.constant 720 : index
    %c0_313 = arith.constant 0 : index
    %266 = vector.load %arg13[%c720_312, %c0_313] : memref<1024x32xbf16, #tpu.memory_space<vmem>>, vector<16x32xbf16>
    %c752_314 = arith.constant 752 : index
    %c0_315 = arith.constant 0 : index
    %267 = vector.load %arg13[%c752_314, %c0_315] : memref<1024x32xbf16, #tpu.memory_space<vmem>>, vector<16x32xbf16>
    %c944_316 = arith.constant 944 : index
    %c0_317 = arith.constant 0 : index
    %268 = vector.load %arg13[%c944_316, %c0_317] : memref<1024x32xbf16, #tpu.memory_space<vmem>>, vector<16x32xbf16>
    %c976_318 = arith.constant 976 : index
    %c0_319 = arith.constant 0 : index
    %269 = vector.load %arg13[%c976_318, %c0_319] : memref<1024x32xbf16, #tpu.memory_space<vmem>>, vector<16x32xbf16>
    %c1008 = arith.constant 1008 : index
    %c0_320 = arith.constant 0 : index
    %270 = vector.load %arg13[%c1008, %c0_320] : memref<1024x32xbf16, #tpu.memory_space<vmem>>, vector<16x32xbf16>
    %271 = tpu.concatenate %262, %263, %264, %265, %266, %267, %268, %269, %270 in 0 : vector<16x32xbf16>, vector<16x32xbf16>, vector<16x32xbf16>, vector<16x32xbf16>, vector<16x32xbf16>, vector<16x32xbf16>, vector<16x32xbf16>, vector<16x32xbf16>, vector<16x32xbf16> -> vector<144x32xbf16>
    %c480_321 = arith.constant 480 : index
    %c0_322 = arith.constant 0 : index
    %272 = vector.load %arg4[%c480_321, %c0_322] : memref<512x64xbf16, #tpu.memory_space<vmem>>, vector<32x64xbf16>
    %cst_323 = arith.constant dense<0.000000e+00> : vector<144x64xf32>
    %273 = tpu.matmul %271, %272, %cst_323 {dimension_numbers = #tpu.dot_dimension_numbers<[1], [0], [0], [1], [0, 0, 1, 1], [], []>} : vector<144x32xbf16>, vector<32x64xbf16>, vector<144x64xf32> -> vector<144x64xf32>
    %274 = arith.addf %261, %273 : vector<144x64xf32>
    %c0_324 = arith.constant 0 : index
    %c0_325 = arith.constant 0 : index
    %275 = vector.load %arg5[%c0_324, %c0_325] : memref<1x64xf32, #tpu.memory_space<vmem>>, vector<1x64xf32>
    %276 = vector.broadcast %275 : vector<1x64xf32> to vector<144x64xf32>
    %277 = arith.addf %274, %276 : vector<144x64xf32>
    %cst_326 = arith.constant 0.000000e+00 : f32
    %278 = vector.broadcast %cst_326 : f32 to vector<144x64xf32>
    %279 = arith.maximumf %277, %278 : vector<144x64xf32>
    %280 = arith.truncf %279 : vector<144x64xf32> to vector<144x64xbf16>
    %c0_327 = arith.constant 0 : index
    %c0_328 = arith.constant 0 : index
    %281 = vector.load %arg14[%c0_327, %c0_328] : memref<144x64xbf16, #tpu.memory_space<vmem>>, vector<144x64xbf16>
    tpu.vector_store %arg14[%c0_327, %c0_328], %280 {strides = array<i32>} : memref<144x64xbf16, #tpu.memory_space<vmem>>, vector<144x64xbf16>,
    %cst_329 = arith.constant 0.000000e+00 : f32
    %282 = vector.broadcast %cst_329 : f32 to vector<16x64xf32>
    %c0_330 = arith.constant 0 : index
    %c0_331 = arith.constant 0 : index
    %283 = vector.load %arg14[%c0_330, %c0_331] : memref<144x64xbf16, #tpu.memory_space<vmem>>, vector<16x64xbf16>
    %c0_332 = arith.constant 0 : index
    %c0_333 = arith.constant 0 : index
    %284 = vector.load %arg6[%c0_332, %c0_333] : memref<576x64xbf16, #tpu.memory_space<vmem>>, vector<64x64xbf16>
    %cst_334 = arith.constant dense<0.000000e+00> : vector<16x64xf32>
    %285 = tpu.matmul %283, %284, %cst_334 {dimension_numbers = #tpu.dot_dimension_numbers<[1], [0], [0], [1], [0, 0, 1, 1], [], []>} : vector<16x64xbf16>, vector<64x64xbf16>, vector<16x64xf32> -> vector<16x64xf32>
    %286 = arith.addf %282, %285 : vector<16x64xf32>
    %c16_335 = arith.constant 16 : index
    %c0_336 = arith.constant 0 : index
    %287 = vector.load %arg14[%c16_335, %c0_336] : memref<144x64xbf16, #tpu.memory_space<vmem>>, vector<16x64xbf16>
    %c64_337 = arith.constant 64 : index
    %c0_338 = arith.constant 0 : index
    %288 = vector.load %arg6[%c64_337, %c0_338] : memref<576x64xbf16, #tpu.memory_space<vmem>>, vector<64x64xbf16>
    %cst_339 = arith.constant dense<0.000000e+00> : vector<16x64xf32>
    %289 = tpu.matmul %287, %288, %cst_339 {dimension_numbers = #tpu.dot_dimension_numbers<[1], [0], [0], [1], [0, 0, 1, 1], [], []>} : vector<16x64xbf16>, vector<64x64xbf16>, vector<16x64xf32> -> vector<16x64xf32>
    %290 = arith.addf %286, %289 : vector<16x64xf32>
    %c32_340 = arith.constant 32 : index
    %c0_341 = arith.constant 0 : index
    %291 = vector.load %arg14[%c32_340, %c0_341] : memref<144x64xbf16, #tpu.memory_space<vmem>>, vector<16x64xbf16>
    %c128_342 = arith.constant 128 : index
    %c0_343 = arith.constant 0 : index
    %292 = vector.load %arg6[%c128_342, %c0_343] : memref<576x64xbf16, #tpu.memory_space<vmem>>, vector<64x64xbf16>
    %cst_344 = arith.constant dense<0.000000e+00> : vector<16x64xf32>
    %293 = tpu.matmul %291, %292, %cst_344 {dimension_numbers = #tpu.dot_dimension_numbers<[1], [0], [0], [1], [0, 0, 1, 1], [], []>} : vector<16x64xbf16>, vector<64x64xbf16>, vector<16x64xf32> -> vector<16x64xf32>
    %294 = arith.addf %290, %293 : vector<16x64xf32>
    %c48_345 = arith.constant 48 : index
    %c0_346 = arith.constant 0 : index
    %295 = vector.load %arg14[%c48_345, %c0_346] : memref<144x64xbf16, #tpu.memory_space<vmem>>, vector<16x64xbf16>
    %c192_347 = arith.constant 192 : index
    %c0_348 = arith.constant 0 : index
    %296 = vector.load %arg6[%c192_347, %c0_348] : memref<576x64xbf16, #tpu.memory_space<vmem>>, vector<64x64xbf16>
    %cst_349 = arith.constant dense<0.000000e+00> : vector<16x64xf32>
    %297 = tpu.matmul %295, %296, %cst_349 {dimension_numbers = #tpu.dot_dimension_numbers<[1], [0], [0], [1], [0, 0, 1, 1], [], []>} : vector<16x64xbf16>, vector<64x64xbf16>, vector<16x64xf32> -> vector<16x64xf32>
    %298 = arith.addf %294, %297 : vector<16x64xf32>
    %c64_350 = arith.constant 64 : index
    %c0_351 = arith.constant 0 : index
    %299 = vector.load %arg14[%c64_350, %c0_351] : memref<144x64xbf16, #tpu.memory_space<vmem>>, vector<16x64xbf16>
    %c256_352 = arith.constant 256 : index
    %c0_353 = arith.constant 0 : index
    %300 = vector.load %arg6[%c256_352, %c0_353] : memref<576x64xbf16, #tpu.memory_space<vmem>>, vector<64x64xbf16>
    %cst_354 = arith.constant dense<0.000000e+00> : vector<16x64xf32>
    %301 = tpu.matmul %299, %300, %cst_354 {dimension_numbers = #tpu.dot_dimension_numbers<[1], [0], [0], [1], [0, 0, 1, 1], [], []>} : vector<16x64xbf16>, vector<64x64xbf16>, vector<16x64xf32> -> vector<16x64xf32>
    %302 = arith.addf %298, %301 : vector<16x64xf32>
    %c80_355 = arith.constant 80 : index
    %c0_356 = arith.constant 0 : index
    %303 = vector.load %arg14[%c80_355, %c0_356] : memref<144x64xbf16, #tpu.memory_space<vmem>>, vector<16x64xbf16>
    %c320_357 = arith.constant 320 : index
    %c0_358 = arith.constant 0 : index
    %304 = vector.load %arg6[%c320_357, %c0_358] : memref<576x64xbf16, #tpu.memory_space<vmem>>, vector<64x64xbf16>
    %cst_359 = arith.constant dense<0.000000e+00> : vector<16x64xf32>
    %305 = tpu.matmul %303, %304, %cst_359 {dimension_numbers = #tpu.dot_dimension_numbers<[1], [0], [0], [1], [0, 0, 1, 1], [], []>} : vector<16x64xbf16>, vector<64x64xbf16>, vector<16x64xf32> -> vector<16x64xf32>
    %306 = arith.addf %302, %305 : vector<16x64xf32>
    %c96_360 = arith.constant 96 : index
    %c0_361 = arith.constant 0 : index
    %307 = vector.load %arg14[%c96_360, %c0_361] : memref<144x64xbf16, #tpu.memory_space<vmem>>, vector<16x64xbf16>
    %c384_362 = arith.constant 384 : index
    %c0_363 = arith.constant 0 : index
    %308 = vector.load %arg6[%c384_362, %c0_363] : memref<576x64xbf16, #tpu.memory_space<vmem>>, vector<64x64xbf16>
    %cst_364 = arith.constant dense<0.000000e+00> : vector<16x64xf32>
    %309 = tpu.matmul %307, %308, %cst_364 {dimension_numbers = #tpu.dot_dimension_numbers<[1], [0], [0], [1], [0, 0, 1, 1], [], []>} : vector<16x64xbf16>, vector<64x64xbf16>, vector<16x64xf32> -> vector<16x64xf32>
    %310 = arith.addf %306, %309 : vector<16x64xf32>
    %c112_365 = arith.constant 112 : index
    %c0_366 = arith.constant 0 : index
    %311 = vector.load %arg14[%c112_365, %c0_366] : memref<144x64xbf16, #tpu.memory_space<vmem>>, vector<16x64xbf16>
    %c448_367 = arith.constant 448 : index
    %c0_368 = arith.constant 0 : index
    %312 = vector.load %arg6[%c448_367, %c0_368] : memref<576x64xbf16, #tpu.memory_space<vmem>>, vector<64x64xbf16>
    %cst_369 = arith.constant dense<0.000000e+00> : vector<16x64xf32>
    %313 = tpu.matmul %311, %312, %cst_369 {dimension_numbers = #tpu.dot_dimension_numbers<[1], [0], [0], [1], [0, 0, 1, 1], [], []>} : vector<16x64xbf16>, vector<64x64xbf16>, vector<16x64xf32> -> vector<16x64xf32>
    %314 = arith.addf %310, %313 : vector<16x64xf32>
    %c128_370 = arith.constant 128 : index
    %c0_371 = arith.constant 0 : index
    %315 = vector.load %arg14[%c128_370, %c0_371] : memref<144x64xbf16, #tpu.memory_space<vmem>>, vector<16x64xbf16>
    %c512_372 = arith.constant 512 : index
    %c0_373 = arith.constant 0 : index
    %316 = vector.load %arg6[%c512_372, %c0_373] : memref<576x64xbf16, #tpu.memory_space<vmem>>, vector<64x64xbf16>
    %cst_374 = arith.constant dense<0.000000e+00> : vector<16x64xf32>
    %317 = tpu.matmul %315, %316, %cst_374 {dimension_numbers = #tpu.dot_dimension_numbers<[1], [0], [0], [1], [0, 0, 1, 1], [], []>} : vector<16x64xbf16>, vector<64x64xbf16>, vector<16x64xf32> -> vector<16x64xf32>
    %318 = arith.addf %314, %317 : vector<16x64xf32>
    %c0_375 = arith.constant 0 : index
    %c0_376 = arith.constant 0 : index
    %319 = vector.load %arg7[%c0_375, %c0_376] : memref<1x64xf32, #tpu.memory_space<vmem>>, vector<1x64xf32>
    %320 = vector.broadcast %319 : vector<1x64xf32> to vector<16x64xf32>
    %321 = arith.addf %318, %320 : vector<16x64xf32>
    %cst_377 = arith.constant 0.000000e+00 : f32
    %322 = vector.broadcast %cst_377 : f32 to vector<16x64xf32>
    %323 = arith.maximumf %321, %322 : vector<16x64xf32>
    %324 = arith.truncf %323 : vector<16x64xf32> to vector<16x64xbf16>
    %cst_378 = arith.constant 0.000000e+00 : f32
    %325 = vector.broadcast %cst_378 : f32 to vector<16x1024xf32>
    %c0_379 = arith.constant 0 : index
    %c0_380 = arith.constant 0 : index
    %326 = vector.load %arg8[%c0_379, %c0_380] : memref<64x1024xbf16, #tpu.memory_space<vmem>>, vector<64x1024xbf16>
    %cst_381 = arith.constant dense<0.000000e+00> : vector<16x1024xf32>
    %327 = tpu.matmul %324, %326, %cst_381 {dimension_numbers = #tpu.dot_dimension_numbers<[1], [0], [0], [1], [0, 0, 1, 1], [], []>} : vector<16x64xbf16>, vector<64x1024xbf16>, vector<16x1024xf32> -> vector<16x1024xf32>
    %328 = arith.addf %325, %327 : vector<16x1024xf32>
    %c0_382 = arith.constant 0 : index
    %c0_383 = arith.constant 0 : index
    %329 = vector.load %arg9[%c0_382, %c0_383] : memref<1x1024xf32, #tpu.memory_space<vmem>>, vector<1x1024xf32>
    %330 = vector.broadcast %329 : vector<1x1024xf32> to vector<16x1024xf32>
    %331 = arith.addf %328, %330 : vector<16x1024xf32>
    %cst_384 = arith.constant 0.000000e+00 : f32
    %332 = vector.broadcast %cst_384 : f32 to vector<16x1024xf32>
    %333 = arith.maximumf %331, %332 : vector<16x1024xf32>
    %334 = arith.truncf %333 : vector<16x1024xf32> to vector<16x1024xbf16>
    %c0_385 = arith.constant 0 : index
    %c0_386 = arith.constant 0 : index
    %335 = vector.load %arg10[%c0_385, %c0_386] : memref<1024x128xbf16, #tpu.memory_space<vmem>>, vector<1024x128xbf16>
    %cst_387 = arith.constant dense<0.000000e+00> : vector<16x128xf32>
    %336 = tpu.matmul %334, %335, %cst_387 {dimension_numbers = #tpu.dot_dimension_numbers<[1], [0], [0], [1], [0, 0, 1, 1], [], []>} : vector<16x1024xbf16>, vector<1024x128xbf16>, vector<16x128xf32> -> vector<16x128xf32>
    %c0_388 = arith.constant 0 : index
    %c0_389 = arith.constant 0 : index
    %337 = vector.load %arg11[%c0_388, %c0_389] : memref<1x128xf32, #tpu.memory_space<vmem>>, vector<1x128xf32>
    %338 = vector.broadcast %337 : vector<1x128xf32> to vector<16x128xf32>
    %339 = arith.addf %336, %338 : vector<16x128xf32>
    %c0_390 = arith.constant 0 : index
    %c0_391 = arith.constant 0 : index
    %340 = vector.load %arg12[%c0_390, %c0_391] : memref<16x128xf32, #tpu.memory_space<vmem>>, vector<16x128xf32>
    tpu.vector_store %arg12[%c0_390, %c0_391], %339 {strides = array<i32>} : memref<16x128xf32, #tpu.memory_space<vmem>>, vector<16x128xf32>,
    return
  }
  func.func @transform_0(%arg0: i32) -> (i32, i32) {
    %c0_i32 = arith.constant 0 : i32
    %c0_i32_0 = arith.constant 0 : i32
    return %arg0, %c0_i32 : i32, i32
  }
  func.func @transform_1(%arg0: i32) -> (i32, i32) {
    %c0_i32 = arith.constant 0 : i32
    %c0_i32_0 = arith.constant 0 : i32
    %c0_i32_1 = arith.constant 0 : i32
    return %c0_i32, %c0_i32_0 : i32, i32
  }
  func.func @transform_2(%arg0: i32) -> (i32, i32) {
    %c0_i32 = arith.constant 0 : i32
    %c0_i32_0 = arith.constant 0 : i32
    %c0_i32_1 = arith.constant 0 : i32
    return %c0_i32, %c0_i32_0 : i32, i32
  }
  func.func @transform_3(%arg0: i32) -> (i32, i32) {
    %c0_i32 = arith.constant 0 : i32
    %c0_i32_0 = arith.constant 0 : i32
    %c0_i32_1 = arith.constant 0 : i32
    return %c0_i32, %c0_i32_0 : i32, i32
  }
  func.func @transform_4(%arg0: i32) -> (i32, i32) {
    %c0_i32 = arith.constant 0 : i32
    %c0_i32_0 = arith.constant 0 : i32
    %c0_i32_1 = arith.constant 0 : i32
    return %c0_i32, %c0_i32_0 : i32, i32
  }
  func.func @transform_5(%arg0: i32) -> (i32, i32) {
    %c0_i32 = arith.constant 0 : i32
    %c0_i32_0 = arith.constant 0 : i32
    %c0_i32_1 = arith.constant 0 : i32
    return %c0_i32, %c0_i32_0 : i32, i32
  }
  func.func @transform_6(%arg0: i32) -> (i32, i32) {
    %c0_i32 = arith.constant 0 : i32
    %c0_i32_0 = arith.constant 0 : i32
    %c0_i32_1 = arith.constant 0 : i32
    return %c0_i32, %c0_i32_0 : i32, i32
  }
  func.func @transform_7(%arg0: i32) -> (i32, i32) {
    %c0_i32 = arith.constant 0 : i32
    %c0_i32_0 = arith.constant 0 : i32
    %c0_i32_1 = arith.constant 0 : i32
    return %c0_i32, %c0_i32_0 : i32, i32
  }
  func.func @transform_8(%arg0: i32) -> (i32, i32) {
    %c0_i32 = arith.constant 0 : i32
    %c0_i32_0 = arith.constant 0 : i32
    %c0_i32_1 = arith.constant 0 : i32
    return %c0_i32, %c0_i32_0 : i32, i32
  }
  func.func @transform_9(%arg0: i32) -> (i32, i32) {
    %c0_i32 = arith.constant 0 : i32
    %c0_i32_0 = arith.constant 0 : i32
    %c0_i32_1 = arith.constant 0 : i32
    return %c0_i32, %c0_i32_0 : i32, i32
  }
  func.func @transform_10(%arg0: i32) -> (i32, i32) {
    %c0_i32 = arith.constant 0 : i32
    %c0_i32_0 = arith.constant 0 : i32
    %c0_i32_1 = arith.constant 0 : i32
    return %c0_i32, %c0_i32_0 : i32, i32
  }
  func.func @transform_11(%arg0: i32) -> (i32, i32) {
    %c0_i32 = arith.constant 0 : i32
    %c0_i32_0 = arith.constant 0 : i32
    return %arg0, %c0_i32 : i32, i32
  }
}

</mosaic_0001>

<bundles_post_ra>
// kernel: actor_critic_forward.1
= control target key start
LH: loop header
LB: loop body
LE: loop exit
PB: predicated region body
PF: predicated region fallthrough
CT: control target
= control target key end

     0   :  { %vm447_vm0 = vcmask 257024   ;;  %vm10201_vm1 = vmmov 0   ;;  %vm2633_vm2 = vcmask 261120   ;;  %vm5431_vm3 = vcmask 519168   ;;  %s12868_s1 = inlined_call_operand.vmem [shape: bf16[256,32], index: 1, kind: input, shape index: {}]   ;;  %s12869_s0 = inlined_call_operand.vmem [shape: bf16[1024,256], index: 0, kind: input, shape index: {}]   ;;  %s12870_s3 = inlined_call_operand.vmem [shape: bf16[512,64], index: 3, kind: input, shape index: {}]   ;;  %s12871_s2 = inlined_call_operand.vmem [shape: f32[1,32], index: 2, kind: input, shape index: {}]   ;;  %s12872_s5 = inlined_call_operand.vmem [shape: bf16[576,64], index: 5, kind: input, shape index: {}]   ;;  %s12873_s4 = inlined_call_operand.vmem [shape: f32[1,64], index: 4, kind: input, shape index: {}]   ;;  %s12874_s7 = inlined_call_operand.vmem [shape: bf16[64,1024], index: 7, kind: input, shape index: {}]   ;;  %s12875_s9 = inlined_call_operand.vmem [shape: bf16[1024,128], index: 9, kind: input, shape index: {}]   ;;  %s12876_s6 = inlined_call_operand.vmem [shape: f32[1,64], index: 6, kind: input, shape index: {}]   ;;  %s12877_s8 = inlined_call_operand.vmem [shape: f32[1,1024], index: 8, kind: input, shape index: {}]   ;;  %s12878_s10 = inlined_call_operand.vmem [shape: f32[1,128], index: 10, kind: input, shape index: {}]   ;;  %s12879_s11 = inlined_call_operand.vmem [shape: f32[16,128], index: 11, kind: output, shape index: {}]  }
   0x1   :  { %v10266_v0 = vld [vmem:[%s12868_s1 + $0x78] sm:$0xff]   ;;  %v10277_v2 = vld [vmem:[%s12868_s1 + $0x70] sm:$0xff]   ;;  %v10291_v4 = vld [vmem:[%s12868_s1 + $0x68] sm:$0xff]   ;;  %vm5499_vm4 = vcmask 523264  }
   0x2   :  { %v10271_v1 = vld [vmem:[%s12868_s1 + $0x38] sm:$0xff]   ;;  %8180 = vmatprep.subr.bf16.mxu0 %v10266_v0  ;;  %8244 = vmatprep.subr.bf16.mxu1 %v10266_v0  ;;  %v10284_v3 = vld [vmem:[%s12868_s1 + $0x30] sm:$0xff]   ;;  %v10298_v5 = vld [vmem:[%s12868_s1 + $0x28] sm:$0xff]  }
   0x3   :  { %8181 = vmatpush3.bf16.msra.mxu0 %v10271_v1  ;;  %8245 = vmatpush3.bf16.msra.mxu1 %v10271_v1  ;;  %v10305_v6 = vld [vmem:[%s12868_s1 + $0x60] sm:$0xff]   ;;  %v10319_v8 = vld [vmem:[%s12868_s1 + $0x58] sm:$0xff]   ;;  %v10333_v10 = vld [vmem:[%s12868_s1 + $0x50] sm:$0xff]  }
   0x4   :  { %8182 = vmatprep.subr.bf16.mxu0 %v10277_v2  ;;  %8246 = vmatprep.subr.bf16.mxu1 %v10277_v2  ;;  %v10312_v7 = vld [vmem:[%s12868_s1 + $0x20] sm:$0xff]   ;;  %v10326_v9 = vld [vmem:[%s12868_s1 + $0x18] sm:$0xff]   ;;  %v10343_v12 = vld [vmem:[%s12868_s1 + $0x10] sm:$0xff]  }
   0x5   :  { %v9774_v11 = vld [vmem:[%s12869_s0 + $0x4] ss:$8 sps:$4 sm:$0xff]   ;;  %v9772_v17 = vld [vmem:[%s12869_s0] ss:$8 sps:$4 sm:$0xff]   ;;  %v9775_v18 = vld [vmem:[%s12869_s0 + $0x14] ss:$8 sps:$4 sm:$0xff]  }
   0x6   :  { %302 = vmatprep.mubr.bf16.mxu0 %v9774_v11  ;;  %v10349_v13 = vld [vmem:[%s12868_s1 + $0x48] sm:$0xff]   ;;  %v10363_v15 = vld [vmem:[%s12868_s1 + $0x40] sm:$0xff]   ;;  %v9777_v19 = vld [vmem:[%s12869_s0 + $0x10] ss:$8 sps:$4 sm:$0xff]  }
   0x7   :  { %8183 = vmatpush3.bf16.msra.mxu0 %v10284_v3  ;;  %8247 = vmatpush3.bf16.msra.mxu1 %v10284_v3  ;;  %v10357_v14 = vld [vmem:[%s12868_s1 + $0x8] sm:$0xff]   ;;  %v10371_v16 = vld [vmem:[%s12868_s1] sm:$0xff]   ;;  %v9826_v23 = vld [vmem:[%s12869_s0 + $0x94] ss:$8 sps:$4 sm:$0xff]  }
   0x8   :  { %8184 = vmatprep.subr.bf16.mxu0 %v10291_v4  ;;  %8248 = vmatprep.subr.bf16.mxu1 %v10291_v4  ;;  %v9820_v20 = vld [vmem:[%s12869_s0 + $0x80] ss:$8 sps:$4 sm:$0xff]   ;;  %v9822_v21 = vld [vmem:[%s12869_s0 + $0x84] ss:$8 sps:$4 sm:$0xff]   ;;  %v9828_v25 = vld [vmem:[%s12869_s0 + $0x90] ss:$8 sps:$4 sm:$0xff]  }
   0x9   :  { %v9778_v22 = vld [vmem:[%s12869_s0 + $0x24] ss:$8 sps:$4 sm:$0xff]   ;;  %592 = vmatprep.mubr.bf16.mxu1 %v9822_v21  ;;  %v9780_v24 = vld [vmem:[%s12869_s0 + $0x20] ss:$8 sps:$4 sm:$0xff]   ;;  %v9781_v26 = vld [vmem:[%s12869_s0 + $0x34] ss:$8 sps:$4 sm:$0xff]  }
   0xa   :  { %v9832_v27 = vld [vmem:[%s12869_s0 + $0xa4] ss:$8 sps:$4 sm:$0xff]   ;;  %v9834_v28 = vld [vmem:[%s12869_s0 + $0xa0] ss:$8 sps:$4 sm:$0xff]   ;;  %v9783_v29 = vld [vmem:[%s12869_s0 + $0x30] ss:$8 sps:$4 sm:$0xff]  }
   0xb   :  { %8185 = vmatpush3.bf16.msra.mxu0 %v10298_v5  ;;  %8249 = vmatpush3.bf16.msra.mxu1 %v10298_v5  ;;  %v9838_v30 = vld [vmem:[%s12869_s0 + $0xb4] ss:$8 sps:$4 sm:$0xff]   ;;  %v9784_v31 = vld [vmem:[%s12869_s0 + $0x44] ss:$8 sps:$4 sm:$0xff]   ;;  %v9840_v32 = vld [vmem:[%s12869_s0 + $0xb0] ss:$8 sps:$4 sm:$0xff]  }
   0xc   :  { %8186 = vmatprep.subr.bf16.mxu0 %v10305_v6  ;;  %8250 = vmatprep.subr.bf16.mxu1 %v10305_v6  ;;  %v9786_v33 = vld [vmem:[%s12869_s0 + $0x40] ss:$8 sps:$4 sm:$0xff]   ;;  %v9844_v34 = vld [vmem:[%s12869_s0 + $0xc4] ss:$8 sps:$4 sm:$0xff]   ;;  %v9787_v35 = vld [vmem:[%s12869_s0 + $0x54] ss:$8 sps:$4 sm:$0xff]  }
   0xd   :  { %v9846_v36 = vld [vmem:[%s12869_s0 + $0xc0] ss:$8 sps:$4 sm:$0xff]   ;;  %v9789_v37 = vld [vmem:[%s12869_s0 + $0x50] ss:$8 sps:$4 sm:$0xff]   ;;  %v9850_v38 = vld [vmem:[%s12869_s0 + $0xd4] ss:$8 sps:$4 sm:$0xff]  }
   0xe   :  { %v9790_v39 = vld [vmem:[%s12869_s0 + $0x64] ss:$8 sps:$4 sm:$0xff]   ;;  %v9852_v40 = vld [vmem:[%s12869_s0 + $0xd0] ss:$8 sps:$4 sm:$0xff]   ;;  %v9792_v41 = vld [vmem:[%s12869_s0 + $0x60] ss:$8 sps:$4 sm:$0xff]  }
   0xf   :  { %8187 = vmatpush3.bf16.msra.mxu0 %v10312_v7  ;;  %8251 = vmatpush3.bf16.msra.mxu1 %v10312_v7  ;;  %v9856_v42 = vld [vmem:[%s12869_s0 + $0xe4] ss:$8 sps:$4 sm:$0xff]   ;;  %v9793_v43 = vld [vmem:[%s12869_s0 + $0x74] ss:$8 sps:$4 sm:$0xff]   ;;  %v9858_v44 = vld [vmem:[%s12869_s0 + $0xe0] ss:$8 sps:$4 sm:$0xff]  }
  0x10   :  { %8188 = vmatprep.subr.bf16.mxu0 %v10319_v8  ;;  %8252 = vmatprep.subr.bf16.mxu1 %v10319_v8  ;;  %v9795_v45 = vld [vmem:[%s12869_s0 + $0x70] ss:$8 sps:$4 sm:$0xff]   ;;  %v9862_v46 = vld [vmem:[%s12869_s0 + $0xf4] ss:$8 sps:$4 sm:$0xff]   ;;  %v9798_v47 = vld [vmem:[%s12869_s0 + $0x104] ss:$8 sps:$4 sm:$0xff]  }
  0x11   :  { %v9864_v48 = vld [vmem:[%s12869_s0 + $0xf0] ss:$8 sps:$4 sm:$0xff]   ;;  %v9796_v49 = vld [vmem:[%s12869_s0 + $0x100] ss:$8 sps:$4 sm:$0xff]   ;;  %v9870_v50 = vld [vmem:[%s12869_s0 + $0x184] ss:$8 sps:$4 sm:$0xff]  }
  0x12   :  { %v9799_v51 = vld [vmem:[%s12869_s0 + $0x114] ss:$8 sps:$4 sm:$0xff]   ;;  %v9868_v52 = vld [vmem:[%s12869_s0 + $0x180] ss:$8 sps:$4 sm:$0xff]   ;;  %v9801_v53 = vld [vmem:[%s12869_s0 + $0x110] ss:$8 sps:$4 sm:$0xff]  }
  0x13   :  { %8189 = vmatpush3.bf16.msra.mxu0 %v10326_v9  ;;  %8253 = vmatpush3.bf16.msra.mxu1 %v10326_v9  ;;  %v9802_v54 = vld [vmem:[%s12869_s0 + $0x124] ss:$8 sps:$4 sm:$0xff]   ;;  %v9874_v55 = vld [vmem:[%s12869_s0 + $0x194] ss:$8 sps:$4 sm:$0xff]   ;;  %v9876_v56 = vld [vmem:[%s12869_s0 + $0x190] ss:$8 sps:$4 sm:$0xff]  }
  0x14   :  { %8190 = vmatprep.subr.bf16.mxu0 %v10333_v10  ;;  %8254 = vmatprep.subr.bf16.mxu1 %v10333_v10  ;;  %v9804_v57 = vld [vmem:[%s12869_s0 + $0x120] ss:$8 sps:$4 sm:$0xff]   ;;  %v9880_v58 = vld [vmem:[%s12869_s0 + $0x1a4] ss:$8 sps:$4 sm:$0xff]   ;;  %v9805_v59 = vld [vmem:[%s12869_s0 + $0x134] ss:$8 sps:$4 sm:$0xff]  }
  0x15   :  { %v9882_v60 = vld [vmem:[%s12869_s0 + $0x1a0] ss:$8 sps:$4 sm:$0xff]   ;;  %v9807_v61 = vld [vmem:[%s12869_s0 + $0x130] ss:$8 sps:$4 sm:$0xff]   ;;  %v9886_v62 = vld [vmem:[%s12869_s0 + $0x1b4] ss:$8 sps:$4 sm:$0xff]  }
  0x16   :  { %v9808_v63 = vld [vmem:[%s12869_s0 + $0x144] ss:$8 sps:$4 sm:$0xff]   ;;  %v9888_v11 = vld [vmem:[%s12869_s0 + $0x1b0] ss:$8 sps:$4 sm:$0xff]  }
  0x17   :  { %8191 = vmatpush3.bf16.msra.mxu0 %v10343_v12  ;;  %8255 = vmatpush3.bf16.msra.mxu1 %v10343_v12  ;;  %v9813_v21 = vld [vmem:[%s12869_s0 + $0x150] ss:$8 sps:$4 sm:$0xff]  }
  0x18   :  { %8192 = vmatprep.subr.bf16.mxu0 %v10349_v13  ;;  %8256 = vmatprep.subr.bf16.mxu1 %v10349_v13 }
  0x1b   :  { %8193 = vmatpush3.bf16.msra.mxu0 %v10357_v14  ;;  %8257 = vmatpush3.bf16.msra.mxu1 %v10357_v14 }
  0x1c   :  { %8194 = vmatprep.subr.bf16.mxu0 %v10363_v15  ;;  %8258 = vmatprep.subr.bf16.mxu1 %v10363_v15 }
  0x1f   :  { %8195 = vmatpush3.bf16.msra.mxu0 %v10371_v16  ;;  %8259 = vmatpush3.bf16.msra.mxu1 %v10371_v16 }
  0x20   :  { %8308 = vmatprep.subr.bf16.mxu0 %v10266_v0  ;;  %8372 = vmatprep.subr.bf16.mxu1 %v10266_v0 }
  0x22   :  { %303 = vmatmul.mubr.bf16.vlgmr.msra.gmra.mxu0 %v9772_v17  ;;  %593 = vmatmul.mubr.bf16.vlgmr.msra.gmra.mxu1 %v9820_v20  ;;  %v9810_v17 = vld [vmem:[%s12869_s0 + $0x140] ss:$8 sps:$4 sm:$0xff]  }
  0x23   :  { %8309 = vmatpush3.bf16.msra.mxu0 %v10271_v1  ;;  %310 = vmatprep.mubr.bf16.mxu0 %v9775_v18  ;;  %v9892_v18 = vld [vmem:[%s12869_s0 + $0x1c4] ss:$8 sps:$4 sm:$0xff]   ;;  %v9894_v20 = vld [vmem:[%s12869_s0 + $0x1c0] ss:$8 sps:$4 sm:$0xff]  }
  0x24   :  { %8310 = vmatprep.subr.bf16.mxu0 %v10277_v2  ;;  %8373 = vmatpush3.bf16.msra.mxu1 %v10271_v1 }
  0x25   :  { %600 = vmatprep.mubr.bf16.mxu1 %v9826_v23  ;;  %8374 = vmatprep.subr.bf16.mxu1 %v10277_v2  ;;  %v9814_v23 = vld [vmem:[%s12869_s0 + $0x164] ss:$8 sps:$4 sm:$0xff]  }
  0x27   :  { %8311 = vmatpush3.bf16.msra.mxu0 %v10284_v3 }
  0x28   :  { %8312 = vmatprep.subr.bf16.mxu0 %v10291_v4  ;;  %8375 = vmatpush3.bf16.msra.mxu1 %v10284_v3 }
  0x29   :  { %8376 = vmatprep.subr.bf16.mxu1 %v10291_v4 }
  0x2a   :  { %311 = vmatmul.mubr.bf16.gmra.mxu0 %v9777_v19  ;;  %601 = vmatmul.mubr.bf16.gmra.mxu1 %v9828_v25  ;;  %v9811_v19 = vld [vmem:[%s12869_s0 + $0x154] ss:$8 sps:$4 sm:$0xff]   ;;  %v9816_v25 = vld [vmem:[%s12869_s0 + $0x160] ss:$8 sps:$4 sm:$0xff]  }
  0x2b   :  { %318 = vmatprep.mubr.bf16.mxu0 %v9778_v22  ;;  %8313 = vmatpush3.bf16.msra.mxu0 %v10298_v5  ;;  %v9898_v22 = vld [vmem:[%s12869_s0 + $0x1d4] ss:$8 sps:$4 sm:$0xff]  }
  0x2c   :  { %8314 = vmatprep.subr.bf16.mxu0 %v10305_v6  ;;  %608 = vmatprep.mubr.bf16.mxu1 %v9832_v27  ;;  %v9817_v27 = vld [vmem:[%s12869_s0 + $0x174] ss:$8 sps:$4 sm:$0xff]  }
  0x2d   :  { %8377 = vmatpush3.bf16.msra.mxu1 %v10298_v5 }
  0x2e   :  { %8378 = vmatprep.subr.bf16.mxu1 %v10305_v6 }
  0x2f   :  { %8315 = vmatpush3.bf16.msra.mxu0 %v10312_v7 }
  0x30   :  { %8316 = vmatprep.subr.bf16.mxu0 %v10319_v8 }
  0x31   :  { %8379 = vmatpush3.bf16.msra.mxu1 %v10312_v7 }
  0x32   :  { %319 = vmatmul.mubr.bf16.gmra.mxu0 %v9780_v24  ;;  %609 = vmatmul.mubr.bf16.gmra.mxu1 %v9834_v28  ;;  %v9900_v24 = vld [vmem:[%s12869_s0 + $0x1d0] ss:$8 sps:$4 sm:$0xff]  }
  0x33   :  { %326 = vmatprep.mubr.bf16.mxu0 %v9781_v26  ;;  %8317 = vmatpush3.bf16.msra.mxu0 %v10326_v9  ;;  %v9904_v26 = vld [vmem:[%s12869_s0 + $0x1e4] ss:$8 sps:$4 sm:$0xff]   ;;  %v9819_v28 = vld [vmem:[%s12869_s0 + $0x170] ss:$8 sps:$4 sm:$0xff]  }
  0x34   :  { %8318 = vmatprep.subr.bf16.mxu0 %v10333_v10  ;;  %8380 = vmatprep.subr.bf16.mxu1 %v10319_v8 }
  0x35   :  { %616 = vmatprep.mubr.bf16.mxu1 %v9838_v30  ;;  %8381 = vmatpush3.bf16.msra.mxu1 %v10326_v9  ;;  %v9825_v30 = vld [vmem:[%s12869_s0 + $0x204] ss:$8 sps:$4 sm:$0xff]  }
  0x36   :  { %8382 = vmatprep.subr.bf16.mxu1 %v10333_v10 }
  0x37   :  { %8319 = vmatpush3.bf16.msra.mxu0 %v10343_v12 }
  0x38   :  { %8320 = vmatprep.subr.bf16.mxu0 %v10349_v13 }
  0x39   :  { %8383 = vmatpush3.bf16.msra.mxu1 %v10343_v12 }
  0x3a   :  { %327 = vmatmul.mubr.bf16.gmra.mxu0 %v9783_v29  ;;  %617 = vmatmul.mubr.bf16.gmra.mxu1 %v9840_v32  ;;  %v9910_v29 = vld [vmem:[%s12869_s0 + $0x1f4] ss:$8 sps:$4 sm:$0xff]   ;;  %v9823_v32 = vld [vmem:[%s12869_s0 + $0x200] ss:$8 sps:$4 sm:$0xff]  }
  0x3b   :  { %334 = vmatprep.mubr.bf16.mxu0 %v9784_v31  ;;  %8321 = vmatpush3.bf16.msra.mxu0 %v10357_v14  ;;  %v9912_v31 = vld [vmem:[%s12869_s0 + $0x1f0] ss:$8 sps:$4 sm:$0xff]  }
  0x3c   :  { %8322 = vmatprep.subr.bf16.mxu0 %v10363_v15  ;;  %8384 = vmatprep.subr.bf16.mxu1 %v10349_v13 }
  0x3d   :  { %624 = vmatprep.mubr.bf16.mxu1 %v9844_v34  ;;  %8385 = vmatpush3.bf16.msra.mxu1 %v10357_v14  ;;  %v9919_v34 = vld [vmem:[%s12869_s0 + $0x284] ss:$8 sps:$4 sm:$0xff]  }
  0x3e   :  { %8386 = vmatprep.subr.bf16.mxu1 %v10363_v15 }
  0x3f   :  { %8323 = vmatpush3.bf16.msra.mxu0 %v10371_v16 }
  0x40   :  { %8436 = vmatprep.subr.bf16.mxu0 %v10266_v0 }
  0x41   :  { %8387 = vmatpush3.bf16.msra.mxu1 %v10371_v16 }
  0x42   :  { %335 = vmatmul.mubr.bf16.gmra.mxu0 %v9786_v33  ;;  %625 = vmatmul.mubr.bf16.gmra.mxu1 %v9846_v36  ;;  %v9829_v33 = vld [vmem:[%s12869_s0 + $0x214] ss:$8 sps:$4 sm:$0xff]   ;;  %v9831_v36 = vld [vmem:[%s12869_s0 + $0x210] ss:$8 sps:$4 sm:$0xff]  }
  0x43   :  { %342 = vmatprep.mubr.bf16.mxu0 %v9787_v35  ;;  %8500 = vmatprep.subr.bf16.mxu1 %v10266_v0  ;;  %v9917_v35 = vld [vmem:[%s12869_s0 + $0x280] ss:$8 sps:$4 sm:$0xff]  }
  0x44   :  { %632 = vmatprep.mubr.bf16.mxu1 %v9850_v38  ;;  %v9922_v38 = vld [vmem:[%s12869_s0 + $0x294] ss:$8 sps:$4 sm:$0xff]  }
  0x4a   :  { %343 = vmatmul.mubr.bf16.gmra.mxu0 %v9789_v37  ;;  %633 = vmatmul.mubr.bf16.gmra.mxu1 %v9852_v40  ;;  %v9835_v37 = vld [vmem:[%s12869_s0 + $0x224] ss:$8 sps:$4 sm:$0xff]   ;;  %v9837_v40 = vld [vmem:[%s12869_s0 + $0x220] ss:$8 sps:$4 sm:$0xff]  }
  0x4b   :  { %350 = vmatprep.mubr.bf16.mxu0 %v9790_v39  ;;  %640 = vmatprep.mubr.bf16.mxu1 %v9856_v42  ;;  %v9924_v39 = vld [vmem:[%s12869_s0 + $0x290] ss:$8 sps:$4 sm:$0xff]   ;;  %v9847_v42 = vld [vmem:[%s12869_s0 + $0x244] ss:$8 sps:$4 sm:$0xff]  }
  0x52   :  { %351 = vmatmul.mubr.bf16.gmra.mxu0 %v9792_v41  ;;  %641 = vmatmul.mubr.bf16.gmra.mxu1 %v9858_v44  ;;  %v9926_v41 = vld [vmem:[%s12869_s0 + $0x2a4] ss:$8 sps:$4 sm:$0xff]  }
  0x53   :  { %358 = vmatprep.mubr.bf16.mxu0 %v9793_v43  ;;  %648 = vmatprep.mubr.bf16.mxu1 %v9862_v46  ;;  %v9855_v43 = vld [vmem:[%s12869_s0 + $0x250] ss:$8 sps:$4 sm:$0xff]   ;;  %v9940_v44 = vld [vmem:[%s12869_s0 + $0x2e4] ss:$8 sps:$4 sm:$0xff]  }
  0x54   :  { %v9867_v46 = vld [vmem:[%s12869_s0 + $0x270] ss:$8 sps:$4 sm:$0xff]  }
  0x5a   :  { %359 = vmatmul.mubr.bf16.gmra.mxu0 %v9795_v45  ;;  %649 = vmatmul.mubr.bf16.gmra.mxu1 %v9864_v48  ;;  %v9942_v45 = vld [vmem:[%s12869_s0 + $0x2e0] ss:$8 sps:$4 sm:$0xff]   ;;  %v9873_v48 = vld [vmem:[%s12869_s0 + $0x304] ss:$8 sps:$4 sm:$0xff]  }
  0x5b   :  { %881 = vmatprep.mubr.bf16.mxu0 %v9798_v47  ;;  %1170 = vmatprep.mubr.bf16.mxu1 %v9870_v50  ;;  %v9944_v47 = vld [vmem:[%s12869_s0 + $0x2f4] ss:$8 sps:$4 sm:$0xff]   ;;  %v9871_v50 = vld [vmem:[%s12869_s0 + $0x300] ss:$8 sps:$4 sm:$0xff]  }
  0x62   :  { %882 = vmatmul.mubr.bf16.vlgmr.msra.gmra.mxu0 %v9796_v49  ;;  %1171 = vmatmul.mubr.bf16.vlgmr.msra.gmra.mxu1 %v9868_v52  ;;  %v9946_v49 = vld [vmem:[%s12869_s0 + $0x2f0] ss:$8 sps:$4 sm:$0xff]   ;;  %v9877_v52 = vld [vmem:[%s12869_s0 + $0x314] ss:$8 sps:$4 sm:$0xff]  }
  0x63   :  { %8437 = vmatpush3.bf16.msra.mxu0 %v10271_v1  ;;  %889 = vmatprep.mubr.bf16.mxu0 %v9799_v51  ;;  %v9949_v51 = vld [vmem:[%s12869_s0 + $0x384] ss:$8 sps:$4 sm:$0xff]  }
  0x64   :  { %8438 = vmatprep.subr.bf16.mxu0 %v10277_v2  ;;  %8501 = vmatpush3.bf16.msra.mxu1 %v10271_v1 }
  0x65   :  { %1178 = vmatprep.mubr.bf16.mxu1 %v9874_v55  ;;  %8502 = vmatprep.subr.bf16.mxu1 %v10277_v2  ;;  %v9920_v55 = vld [vmem:[%s12870_s3 + $0x10] sm:$0xff]  }
  0x67   :  { %8439 = vmatpush3.bf16.msra.mxu0 %v10284_v3 }
  0x68   :  { %8440 = vmatprep.subr.bf16.mxu0 %v10291_v4  ;;  %8503 = vmatpush3.bf16.msra.mxu1 %v10284_v3 }
  0x69   :  { %8504 = vmatprep.subr.bf16.mxu1 %v10291_v4 }
  0x6a   :  { %890 = vmatmul.mubr.bf16.gmra.mxu0 %v9801_v53  ;;  %1179 = vmatmul.mubr.bf16.gmra.mxu1 %v9876_v56  ;;  %v9916_v53 = vld [vmem:[%s12870_s3 + $0x18] sm:$0xff]   ;;  %v10782_v56 = vld [vmem:[%s12871_s2] ss:$0 sm:$0xff] }
  0x6b   :  { %897 = vmatprep.mubr.bf16.mxu0 %v9802_v54  ;;  %8441 = vmatpush3.bf16.msra.mxu0 %v10298_v5 }
  0x6c   :  { %8442 = vmatprep.subr.bf16.mxu0 %v10305_v6  ;;  %1186 = vmatprep.mubr.bf16.mxu1 %v9880_v58 }
  0x6d   :  { %8505 = vmatpush3.bf16.msra.mxu1 %v10298_v5 }
  0x6e   :  { %8506 = vmatprep.subr.bf16.mxu1 %v10305_v6 }
  0x6f   :  { %8443 = vmatpush3.bf16.msra.mxu0 %v10312_v7 }
  0x70   :  { %8444 = vmatprep.subr.bf16.mxu0 %v10319_v8 }
  0x71   :  { %8507 = vmatpush3.bf16.msra.mxu1 %v10312_v7 }
  0x72   :  { %898 = vmatmul.mubr.bf16.gmra.mxu0 %v9804_v57  ;;  %1187 = vmatmul.mubr.bf16.gmra.mxu1 %v9882_v60 }
  0x73   :  { %905 = vmatprep.mubr.bf16.mxu0 %v9805_v59  ;;  %8445 = vmatpush3.bf16.msra.mxu0 %v10326_v9  ;;  %v9947_v59 = vld [vmem:[%s12869_s0 + $0x380] ss:$8 sps:$4 sm:$0xff]  }
  0x74   :  { %8446 = vmatprep.subr.bf16.mxu0 %v10333_v10  ;;  %8508 = vmatprep.subr.bf16.mxu1 %v10319_v8 }
  0x75   :  { %1194 = vmatprep.mubr.bf16.mxu1 %v9886_v62  ;;  %8509 = vmatpush3.bf16.msra.mxu1 %v10326_v9 }
  0x76   :  { %8510 = vmatprep.subr.bf16.mxu1 %v10333_v10 }
  0x77   :  { %8447 = vmatpush3.bf16.msra.mxu0 %v10343_v12 }
  0x78   :  { %8448 = vmatprep.subr.bf16.mxu0 %v10349_v13 }
  0x79   :  { %8511 = vmatpush3.bf16.msra.mxu1 %v10343_v12 }
  0x7a   :  { %906 = vmatmul.mubr.bf16.gmra.mxu0 %v9807_v61  ;;  %1195 = vmatmul.mubr.bf16.gmra.mxu1 %v9888_v11  ;;  %v9879_v61 = vld [vmem:[%s12869_s0 + $0x310] ss:$8 sps:$4 sm:$0xff]   ;;  %v9951_v11 = vld [vmem:[%s12869_s0 + $0x394] ss:$8 sps:$4 sm:$0xff]  }
  0x7b   :  { %913 = vmatprep.mubr.bf16.mxu0 %v9808_v63  ;;  %8449 = vmatpush3.bf16.msra.mxu0 %v10357_v14  ;;  %v9883_v63 = vld [vmem:[%s12869_s0 + $0x324] ss:$8 sps:$4 sm:$0xff]  }
  0x7c   :  { %8450 = vmatprep.subr.bf16.mxu0 %v10363_v15  ;;  %8512 = vmatprep.subr.bf16.mxu1 %v10349_v13 }
  0x7d   :  { %1202 = vmatprep.mubr.bf16.mxu1 %v9892_v18  ;;  %8513 = vmatpush3.bf16.msra.mxu1 %v10357_v14 }
  0x7e   :  { %8514 = vmatprep.subr.bf16.mxu1 %v10363_v15 }
  0x7f   :  { %8451 = vmatpush3.bf16.msra.mxu0 %v10371_v16 }
  0x80   :  { %8564 = vmatprep.subr.bf16.mxu0 %v10266_v0 }
  0x81   :  { %8515 = vmatpush3.bf16.msra.mxu1 %v10371_v16 }
  0x82   :  { %914 = vmatmul.mubr.bf16.gmra.mxu0 %v9810_v17  ;;  %1203 = vmatmul.mubr.bf16.gmra.mxu1 %v9894_v20 }
  0x83   :  { %921 = vmatprep.mubr.bf16.mxu0 %v9811_v19  ;;  %8628 = vmatprep.subr.bf16.mxu1 %v10266_v0  ;;  %v9906_v0 = vld [vmem:[%s12869_s0 + $0x1e0] ss:$8 sps:$4 sm:$0xff]  }
  0x84   :  { %1210 = vmatprep.mubr.bf16.mxu1 %v9898_v22 }
  0x8a   :  { %922 = vmatmul.mubr.bf16.gmra.mxu0 %v9813_v21  ;;  %1211 = vmatmul.mubr.bf16.gmra.mxu1 %v9900_v24 }
  0x8b   :  { %929 = vmatprep.mubr.bf16.mxu0 %v9814_v23  ;;  %1218 = vmatprep.mubr.bf16.mxu1 %v9904_v26 }
  0x92   :  { %930 = vmatmul.mubr.bf16.gmra.mxu0 %v9816_v25  ;;  %1219 = vmatmul.mubr.bf16.gmra.mxu1 %v9906_v0 }
  0x93   :  { %937 = vmatprep.mubr.bf16.mxu0 %v9817_v27  ;;  %1226 = vmatprep.mubr.bf16.mxu1 %v9910_v29  ;;  %v9953_v29 = vld [vmem:[%s12869_s0 + $0x390] ss:$8 sps:$4 sm:$0xff]  }
  0x9a   :  { %938 = vmatmul.mubr.bf16.gmra.mxu0 %v9819_v28  ;;  %1227 = vmatmul.mubr.bf16.gmra.mxu1 %v9912_v31  ;;  %v9885_v31 = vld [vmem:[%s12869_s0 + $0x320] ss:$8 sps:$4 sm:$0xff]  }
  0x9b   :  { %1459 = vmatprep.mubr.bf16.mxu0 %v9825_v30  ;;  %1748 = vmatprep.mubr.bf16.mxu1 %v9919_v34 }
  0xa2   :  { %1460 = vmatmul.mubr.bf16.vlgmr.msra.gmra.mxu0 %v9823_v32  ;;  %1749 = vmatmul.mubr.bf16.vlgmr.msra.gmra.mxu1 %v9917_v35 }
  0xa3   :  { %1467 = vmatprep.mubr.bf16.mxu0 %v9829_v33  ;;  %8565 = vmatpush3.bf16.msra.mxu0 %v10271_v1  ;;  %v9954_v33 = vld [vmem:[%s12869_s0 + $0x3a4] ss:$8 sps:$4 sm:$0xff]  }
  0xa4   :  { %8566 = vmatprep.subr.bf16.mxu0 %v10277_v2  ;;  %8629 = vmatpush3.bf16.msra.mxu1 %v10271_v1  ;;  %v9841_v1 = vld [vmem:[%s12869_s0 + $0x234] ss:$8 sps:$4 sm:$0xff]  }
  0xa5   :  { %1756 = vmatprep.mubr.bf16.mxu1 %v9922_v38  ;;  %8630 = vmatprep.subr.bf16.mxu1 %v10277_v2  ;;  %v9928_v2 = vld [vmem:[%s12869_s0 + $0x2a0] ss:$8 sps:$4 sm:$0xff]  }
  0xa7   :  { %8567 = vmatpush3.bf16.msra.mxu0 %v10284_v3 }
  0xa8   :  { %8568 = vmatprep.subr.bf16.mxu0 %v10291_v4  ;;  %8631 = vmatpush3.bf16.msra.mxu1 %v10284_v3  ;;  %v9843_v3 = vld [vmem:[%s12869_s0 + $0x230] ss:$8 sps:$4 sm:$0xff]  }
  0xa9   :  { %8632 = vmatprep.subr.bf16.mxu1 %v10291_v4  ;;  %v9930_v4 = vld [vmem:[%s12869_s0 + $0x2b4] ss:$8 sps:$4 sm:$0xff]  }
  0xaa   :  { %1468 = vmatmul.mubr.bf16.gmra.mxu0 %v9831_v36  ;;  %1757 = vmatmul.mubr.bf16.gmra.mxu1 %v9924_v39  ;;  %v9889_v36 = vld [vmem:[%s12869_s0 + $0x334] ss:$8 sps:$4 sm:$0xff]  }
  0xab   :  { %1475 = vmatprep.mubr.bf16.mxu0 %v9835_v37  ;;  %8569 = vmatpush3.bf16.msra.mxu0 %v10298_v5 }
  0xac   :  { %8570 = vmatprep.subr.bf16.mxu0 %v10305_v6  ;;  %1764 = vmatprep.mubr.bf16.mxu1 %v9926_v41 }
  0xad   :  { %8633 = vmatpush3.bf16.msra.mxu1 %v10298_v5  ;;  %v9932_v5 = vld [vmem:[%s12869_s0 + $0x2b0] ss:$8 sps:$4 sm:$0xff]  }
  0xae   :  { %8634 = vmatprep.subr.bf16.mxu1 %v10305_v6  ;;  %v9849_v6 = vld [vmem:[%s12869_s0 + $0x240] ss:$8 sps:$4 sm:$0xff]  }
  0xaf   :  { %8571 = vmatpush3.bf16.msra.mxu0 %v10312_v7 }
  0xb0   :  { %8572 = vmatprep.subr.bf16.mxu0 %v10319_v8 }
  0xb1   :  { %8635 = vmatpush3.bf16.msra.mxu1 %v10312_v7  ;;  %v9933_v7 = vld [vmem:[%s12869_s0 + $0x2c4] ss:$8 sps:$4 sm:$0xff]  }
  0xb2   :  { %1476 = vmatmul.mubr.bf16.gmra.mxu0 %v9837_v40  ;;  %1765 = vmatmul.mubr.bf16.gmra.mxu1 %v9928_v2 }
  0xb3   :  { %1483 = vmatprep.mubr.bf16.mxu0 %v9841_v1  ;;  %8573 = vmatpush3.bf16.msra.mxu0 %v10326_v9 }
  0xb4   :  { %8574 = vmatprep.subr.bf16.mxu0 %v10333_v10  ;;  %8636 = vmatprep.subr.bf16.mxu1 %v10319_v8  ;;  %v9853_v8 = vld [vmem:[%s12869_s0 + $0x254] ss:$8 sps:$4 sm:$0xff]  }
  0xb5   :  { %1772 = vmatprep.mubr.bf16.mxu1 %v9930_v4  ;;  %8637 = vmatpush3.bf16.msra.mxu1 %v10326_v9  ;;  %v10200_v9 = vmov 0.0  }
  0xb6   :  { %8638 = vmatprep.subr.bf16.mxu1 %v10333_v10  ;;  %v9935_v10 = vld [vmem:[%s12869_s0 + $0x2c0] ss:$8 sps:$4 sm:$0xff]  }
  0xb7   :  { %8575 = vmatpush3.bf16.msra.mxu0 %v10343_v12 }
  0xb8   :  { %8576 = vmatprep.subr.bf16.mxu0 %v10349_v13 }
  0xb9   :  { %8639 = vmatpush3.bf16.msra.mxu1 %v10343_v12  ;;  %v9937_v12 = vld [vmem:[%s12869_s0 + $0x2d4] ss:$8 sps:$4 sm:$0xff]  }
  0xba   :  { %1484 = vmatmul.mubr.bf16.gmra.mxu0 %v9843_v3  ;;  %1773 = vmatmul.mubr.bf16.gmra.mxu1 %v9932_v5 }
  0xbb   :  { %1491 = vmatprep.mubr.bf16.mxu0 %v9847_v42  ;;  %8577 = vmatpush3.bf16.msra.mxu0 %v10357_v14 }
  0xbc   :  { %8578 = vmatprep.subr.bf16.mxu0 %v10363_v15  ;;  %8640 = vmatprep.subr.bf16.mxu1 %v10349_v13  ;;  %v9859_v13 = vld [vmem:[%s12869_s0 + $0x264] ss:$8 sps:$4 sm:$0xff]  }
  0xbd   :  { %1780 = vmatprep.mubr.bf16.mxu1 %v9933_v7  ;;  %8641 = vmatpush3.bf16.msra.mxu1 %v10357_v14  ;;  %v9939_v14 = vld [vmem:[%s12869_s0 + $0x2d0] ss:$8 sps:$4 sm:$0xff]  }
  0xbe   :  { %8642 = vmatprep.subr.bf16.mxu1 %v10363_v15  ;;  %v9861_v15 = vld [vmem:[%s12869_s0 + $0x260] ss:$8 sps:$4 sm:$0xff]  }
  0xbf   :  { %8579 = vmatpush3.bf16.msra.mxu0 %v10371_v16 }
  0xc0   :  { %9001 = vmatprep.subr.bf16.mxu0 %v10200_v9 }
  0xc1   :  { %8643 = vmatpush3.bf16.msra.mxu1 %v10371_v16  ;;  %v9865_v16 = vld [vmem:[%s12869_s0 + $0x274] ss:$8 sps:$4 sm:$0xff]  }
  0xc2   :  { %1492 = vmatmul.mubr.bf16.gmra.mxu0 %v9849_v6  ;;  %1781 = vmatmul.mubr.bf16.gmra.mxu1 %v9935_v10 }
  0xc3   :  { %1499 = vmatprep.mubr.bf16.mxu0 %v9853_v8  ;;  %9749 = vmatprep.subr.bf16.mxu1 %v10200_v9 }
  0xc4   :  { %1788 = vmatprep.mubr.bf16.mxu1 %v9937_v12 }
  0xca   :  { %1500 = vmatmul.mubr.bf16.gmra.mxu0 %v9855_v43  ;;  %1789 = vmatmul.mubr.bf16.gmra.mxu1 %v9939_v14 }
  0xcb   :  { %1507 = vmatprep.mubr.bf16.mxu0 %v9859_v13  ;;  %1796 = vmatprep.mubr.bf16.mxu1 %v9940_v44 }
  0xd2   :  { %1508 = vmatmul.mubr.bf16.gmra.mxu0 %v9861_v15  ;;  %1797 = vmatmul.mubr.bf16.gmra.mxu1 %v9942_v45  ;;  %v9956_v15 = vld [vmem:[%s12869_s0 + $0x3a0] ss:$8 sps:$4 sm:$0xff]  }
  0xd3   :  { %1515 = vmatprep.mubr.bf16.mxu0 %v9865_v16  ;;  %1804 = vmatprep.mubr.bf16.mxu1 %v9944_v47  ;;  %v9891_v16 = vld [vmem:[%s12869_s0 + $0x330] ss:$8 sps:$4 sm:$0xff]   ;;  %v9957_v47 = vld [vmem:[%s12869_s0 + $0x3b4] ss:$8 sps:$4 sm:$0xff]  }
  0xda   :  { %1516 = vmatmul.mubr.bf16.gmra.mxu0 %v9867_v46  ;;  %1805 = vmatmul.mubr.bf16.gmra.mxu1 %v9946_v49 }
  0xdb   :  { %2037 = vmatprep.mubr.bf16.mxu0 %v9873_v48  ;;  %2326 = vmatprep.mubr.bf16.mxu1 %v9949_v51 }
  0xe2   :  { %v8196_v54 = vpop.f32.mrf.mxu0  ;;  %2038 = vmatmul.mubr.bf16.vlgmr.msra.gmra.mxu0 %v9871_v50  ;;  %v8260_v20 = vpop.f32.mrf.mxu1  ;;  %2327 = vmatmul.mubr.bf16.vlgmr.msra.gmra.mxu1 %v9947_v59  ;;  %v9897_v50 = vld [vmem:[%s12869_s0 + $0x344] ss:$8 sps:$4 sm:$0xff]  }
  0xe3   :  { %2045 = vmatprep.mubr.bf16.mxu0 %v9877_v52  ;;  %9002 = vmatpush3.bf16.msra.mxu0 %v9916_v53 }
  0xe4   :  { %v8197_v57 = vpop.f32.mrf.mxu0  ;;  %9003 = vmatprep.subr.bf16.mxu0 %v10200_v9  ;;  %9751 = vmatpush3.bf16.msra.mxu1 %v9916_v53  ;;  %v8261_v24 = vpop.f32.mrf.mxu1 }
  0xe5   :  { %v8198_v58 = vadd.f32 %v8197_v57, %v8196_v54  ;;  %2334 = vmatprep.mubr.bf16.mxu1 %v9951_v11  ;;  %v8262_v26 = vadd.f32 %v8261_v24, %v8260_v20  ;;  %9750 = vmatprep.subr.bf16.mxu1 %v10200_v9 }
  0xe6   :  { %v8199_v60 = vpop.f32.mrf.mxu0  ;;  %v8263_v28 = vpop.f32.mrf.mxu1 }
  0xe7   :  { %v305_v62 = vadd.f32 %v8198_v58, %v10782_v56  ;;  %9004 = vmatpush3.bf16.msra.mxu0 %v9920_v55  ;;  %v595_v32 = vadd.f32 %v8262_v26, %v10782_v56 }
  0xe8   :  { %v8200_v17 = vpop.f32.mrf.mxu0  ;;  %9081 = vmatprep.subr.bf16.mxu0 %v10200_v9  ;;  %9752 = vmatpush3.bf16.msra.mxu1 %v9920_v55  ;;  %v8264_v37 = vpop.f32.mrf.mxu1 }
  0xe9   :  { %v367_v18 = vmax.f32 %v305_v62, 0.0  ;;  %v8201_v19 = vadd.f32 %v8200_v17, %v8199_v60  ;;  %9041 = vmatprep.subr.bf16.mxu1 %v10200_v9  ;;  %v657_v39 = vmax.f32 %v595_v32, 0.0  ;;  %v8265_v40 = vadd.f32 %v8264_v37, %v8263_v28 }
  0xea   :  { %v8202_v21 = vpop.f32.mrf.mxu0  ;;  %2046 = vmatmul.mubr.bf16.gmra.mxu0 %v9879_v61  ;;  %v8266_v2 = vpop.f32.mrf.mxu1  ;;  %2335 = vmatmul.mubr.bf16.gmra.mxu1 %v9953_v29 }
  0xeb   :  { %v8034_v22 = vpack.c.bf16 %v367_v18, %v367_v18  ;;  %v308_v23 = vadd.f32 %v8201_v19, %v10782_v56  ;;  %2053 = vmatprep.mubr.bf16.mxu0 %v9883_v63  ;;  %v8050_v4 = vpack.c.bf16 %v657_v39, %v657_v39  ;;  %v598_v42 = vadd.f32 %v8265_v40, %v10782_v56 }
  0xec   :  { %v8203_v25 = vpop.f32.mrf.mxu0  ;;  %2342 = vmatprep.mubr.bf16.mxu1 %v9954_v33  ;;  %v8267_v7 = vpop.f32.mrf.mxu1 }
  0xed   :  { %448 = vst.msk [vmem:[#allocation2] sm:$0xf] %vm447_vm0, %v8034_v22  ;;  %v368_v27 = vmax.f32 %v308_v23, 0.0  ;;  %v8204_v0 = vadd.f32 %v8203_v25, %v8202_v21  ;;  %737 = vst.msk [vmem:[#allocation2 + $0x40] sm:$0xf] %vm447_vm0, %v8050_v4  ;;  %v658_v10 = vmax.f32 %v598_v42, 0.0  ;;  %v8268_v43 = vadd.f32 %v8267_v7, %v8266_v2 }
  0xee   :  { %v8205_v30 = vpop.f32.mrf.mxu0  ;;  %v8269_v14 = vpop.f32.mrf.mxu1  ;;  %v9959_v23 = vld [vmem:[%s12869_s0 + $0x3b0] ss:$8 sps:$4 sm:$0xff]   ;;  %v9895_v25 = vld [vmem:[%s12869_s0 + $0x340] ss:$8 sps:$4 sm:$0xff]  }
  0xef   :  { %v8035_v34 = vpack.c.bf16 %v368_v27, %v368_v27  ;;  %v313_v35 = vadd.f32 %v8204_v0, %v10782_v56  ;;  %v8051_v45 = vpack.c.bf16 %v658_v10, %v658_v10  ;;  %v603_v46 = vadd.f32 %v8268_v43, %v10782_v56  ;;  %v9962_v0 = vld [vmem:[%s12869_s0 + $0x3c4] ss:$8 sps:$4 sm:$0xff]   ;;  %v9901_v43 = vld [vmem:[%s12869_s0 + $0x350] ss:$8 sps:$4 sm:$0xff]  }
  0xf0   :  { %v8206_v38 = vpop.f32.mrf.mxu0  ;;  %v8270_v51 = vpop.f32.mrf.mxu1 }
  0xf1   :  { %449 = vst.msk [vmem:[#allocation2 + $0x4] sm:$0xf] %vm447_vm0, %v8035_v34  ;;  %v369_v41 = vmax.f32 %v313_v35, 0.0  ;;  %v8207_v1 = vadd.f32 %v8206_v38, %v8205_v30  ;;  %738 = vst.msk [vmem:[#allocation2 + $0x44] sm:$0xf] %vm447_vm0, %v8051_v45  ;;  %v659_v53 = vmax.f32 %v603_v46, 0.0  ;;  %v8271_v54 = vadd.f32 %v8270_v51, %v8269_v14 }
  0xf2   :  { %v8208_v3 = vpop.f32.mrf.mxu0  ;;  %2054 = vmatmul.mubr.bf16.gmra.mxu0 %v9885_v31  ;;  %v8272_v58 = vpop.f32.mrf.mxu1  ;;  %2343 = vmatmul.mubr.bf16.gmra.mxu1 %v9956_v15  ;;  %v9903_v30 = vld [vmem:[%s12869_s0 + $0x354] ss:$8 sps:$4 sm:$0xff]  }
  0xf3   :  { %v8036_v5 = vpack.c.bf16 %v369_v41, %v369_v41  ;;  %v316_v6 = vadd.f32 %v8207_v1, %v10782_v56  ;;  %2061 = vmatprep.mubr.bf16.mxu0 %v9889_v36  ;;  %v8052_v60 = vpack.c.bf16 %v659_v53, %v659_v53  ;;  %v606_v61 = vadd.f32 %v8271_v54, %v10782_v56  ;;  %v9966_v14 = vld [vmem:[%s12869_s0 + $0x3d4] ss:$8 sps:$4 sm:$0xff]  }
  0xf4   :  { %v8209_v8 = vpop.f32.mrf.mxu0  ;;  %2350 = vmatprep.mubr.bf16.mxu1 %v9957_v47  ;;  %v8273_v11 = vpop.f32.mrf.mxu1 }
  0xf5   :  { %450 = vst.msk [vmem:[#allocation2 + $0x8] sm:$0xf] %vm447_vm0, %v8036_v5  ;;  %v370_v12 = vmax.f32 %v316_v6, 0.0  ;;  %v8210_v13 = vadd.f32 %v8209_v8, %v8208_v3  ;;  %739 = vst.msk [vmem:[#allocation2 + $0x48] sm:$0xf] %vm447_vm0, %v8052_v60  ;;  %v660_v18 = vmax.f32 %v606_v61, 0.0  ;;  %v8274_v19 = vadd.f32 %v8273_v11, %v8272_v58 }
  0xf6   :  { %v8211_v44 = vpop.f32.mrf.mxu0  ;;  %v8275_v22 = vpop.f32.mrf.mxu1  ;;  %v9960_v8 = vld [vmem:[%s12869_s0 + $0x3c0] ss:$8 sps:$4 sm:$0xff]  }
  0xf7   :  { %v8037_v48 = vpack.c.bf16 %v370_v12, %v370_v12  ;;  %v321_v49 = vadd.f32 %v8210_v13, %v10782_v56  ;;  %v8053_v26 = vpack.c.bf16 %v660_v18, %v660_v18  ;;  %v611_v27 = vadd.f32 %v8274_v19, %v10782_v56  ;;  %v9907_v19 = vld [vmem:[%s12869_s0 + $0x360] ss:$8 sps:$4 sm:$0xff]  }
  0xf8   :  { %v8212_v52 = vpop.f32.mrf.mxu0  ;;  %v8276_v31 = vpop.f32.mrf.mxu1 }
  0xf9   :  { %451 = vst.msk [vmem:[#allocation2 + $0xc] sm:$0xf] %vm447_vm0, %v8037_v48  ;;  %v371_v55 = vmax.f32 %v321_v49, 0.0  ;;  %v8213_v57 = vadd.f32 %v8212_v52, %v8211_v44  ;;  %740 = vst.msk [vmem:[#allocation2 + $0x4c] sm:$0xf] %vm447_vm0, %v8053_v26  ;;  %v661_v33 = vmax.f32 %v611_v27, 0.0  ;;  %v8277_v34 = vadd.f32 %v8276_v31, %v8275_v22 }
  0xfa   :  { %v8214_v59 = vpop.f32.mrf.mxu0  ;;  %2062 = vmatmul.mubr.bf16.gmra.mxu0 %v9891_v16  ;;  %v8278_v37 = vpop.f32.mrf.mxu1  ;;  %2351 = vmatmul.mubr.bf16.gmra.mxu1 %v9959_v23  ;;  %v9909_v16 = vld [vmem:[%s12869_s0 + $0x364] ss:$8 sps:$4 sm:$0xff]  }
  0xfb   :  { %v8038_v62 = vpack.c.bf16 %v371_v55, %v371_v55  ;;  %v324_v63 = vadd.f32 %v8213_v57, %v10782_v56  ;;  %2069 = vmatprep.mubr.bf16.mxu0 %v9897_v50  ;;  %v8054_v39 = vpack.c.bf16 %v661_v33, %v661_v33  ;;  %v614_v40 = vadd.f32 %v8277_v34, %v10782_v56  ;;  %v9969_v22 = vld [vmem:[%s12869_s0 + $0x3e4] ss:$8 sps:$4 sm:$0xff]  }
  0xfc   :  { %v8215_v17 = vpop.f32.mrf.mxu0  ;;  %2358 = vmatprep.mubr.bf16.mxu1 %v9962_v0  ;;  %v8279_v2 = vpop.f32.mrf.mxu1 }
  0xfd   :  { %452 = vst.msk [vmem:[#allocation2 + $0x10] sm:$0xf] %vm447_vm0, %v8038_v62  ;;  %v372_v20 = vmax.f32 %v324_v63, 0.0  ;;  %v8216_v21 = vadd.f32 %v8215_v17, %v8214_v59  ;;  %741 = vst.msk [vmem:[#allocation2 + $0x50] sm:$0xf] %vm447_vm0, %v8054_v39  ;;  %v662_v4 = vmax.f32 %v614_v40, 0.0  ;;  %v8280_v42 = vadd.f32 %v8279_v2, %v8278_v37 }
  0xfe   :  { %v8217_v24 = vpop.f32.mrf.mxu0  ;;  %v8281_v7 = vpop.f32.mrf.mxu1  ;;  %v9964_v17 = vld [vmem:[%s12869_s0 + $0x3d0] ss:$8 sps:$4 sm:$0xff]  }
  0xff   :  { %v8039_v28 = vpack.c.bf16 %v372_v20, %v372_v20  ;;  %v329_v29 = vadd.f32 %v8216_v21, %v10782_v56  ;;  %v8055_v12 = vpack.c.bf16 %v662_v4, %v662_v4  ;;  %v619_v13 = vadd.f32 %v8280_v42, %v10782_v56  ;;  %v9913_v42 = vld [vmem:[%s12869_s0 + $0x370] ss:$8 sps:$4 sm:$0xff]  }
 0x100   :  { %v8218_v32 = vpop.f32.mrf.mxu0  ;;  %v8282_v45 = vpop.f32.mrf.mxu1 }
 0x101   :  { %453 = vst.msk [vmem:[#allocation2 + $0x14] sm:$0xf] %vm447_vm0, %v8039_v28  ;;  %v373_v35 = vmax.f32 %v329_v29, 0.0  ;;  %v8219_v36 = vadd.f32 %v8218_v32, %v8217_v24  ;;  %742 = vst.msk [vmem:[#allocation2 + $0x54] sm:$0xf] %vm447_vm0, %v8055_v12  ;;  %v663_v47 = vmax.f32 %v619_v13, 0.0  ;;  %v8283_v48 = vadd.f32 %v8282_v45, %v8281_v7 }
 0x102   :  { %v8220_v38 = vpop.f32.mrf.mxu0  ;;  %2070 = vmatmul.mubr.bf16.gmra.mxu0 %v9895_v25  ;;  %v8284_v51 = vpop.f32.mrf.mxu1  ;;  %2359 = vmatmul.mubr.bf16.gmra.mxu1 %v9960_v8  ;;  %v9915_v25 = vld [vmem:[%s12869_s0 + $0x374] ss:$8 sps:$4 sm:$0xff]  }
 0x103   :  { %v8040_v41 = vpack.c.bf16 %v373_v35, %v373_v35  ;;  %v332_v1 = vadd.f32 %v8219_v36, %v10782_v56  ;;  %2077 = vmatprep.mubr.bf16.mxu0 %v9903_v30  ;;  %v8056_v53 = vpack.c.bf16 %v663_v47, %v663_v47  ;;  %v622_v54 = vadd.f32 %v8283_v48, %v10782_v56  ;;  %v9974_v7 = vld [vmem:[%s12869_s0 + $0x3f4] ss:$8 sps:$4 sm:$0xff]  }
 0x104   :  { %v8221_v3 = vpop.f32.mrf.mxu0  ;;  %2366 = vmatprep.mubr.bf16.mxu1 %v9966_v14  ;;  %v8285_v58 = vpop.f32.mrf.mxu1 }
 0x105   :  { %454 = vst.msk [vmem:[#allocation2 + $0x18] sm:$0xf] %vm447_vm0, %v8040_v41  ;;  %v374_v5 = vmax.f32 %v332_v1, 0.0  ;;  %v8222_v6 = vadd.f32 %v8221_v3, %v8220_v38  ;;  %743 = vst.msk [vmem:[#allocation2 + $0x58] sm:$0xf] %vm447_vm0, %v8056_v53  ;;  %v664_v60 = vmax.f32 %v622_v54, 0.0  ;;  %v8286_v61 = vadd.f32 %v8285_v58, %v8284_v51 }
 0x106   :  { %v8223_v10 = vpop.f32.mrf.mxu0  ;;  %v8287_v11 = vpop.f32.mrf.mxu1  ;;  %v9967_v3 = vld [vmem:[%s12869_s0 + $0x3e0] ss:$8 sps:$4 sm:$0xff]   ;;  %v9972_v58 = vld [vmem:[%s12869_s0 + $0x3f0] ss:$8 sps:$4 sm:$0xff]  }
 0x107   :  { %v8041_v15 = vpack.c.bf16 %v374_v5, %v374_v5  ;;  %v337_v44 = vadd.f32 %v8222_v6, %v10782_v56  ;;  %v8057_v20 = vpack.c.bf16 %v664_v60, %v664_v60  ;;  %v627_v21 = vadd.f32 %v8286_v61, %v10782_v56 }
 0x108   :  { %v8224_v46 = vpop.f32.mrf.mxu0  ;;  %v8288_v26 = vpop.f32.mrf.mxu1 }
 0x109   :  { %455 = vst.msk [vmem:[#allocation2 + $0x1c] sm:$0xf] %vm447_vm0, %v8041_v15  ;;  %v375_v49 = vmax.f32 %v337_v44, 0.0  ;;  %v8225_v50 = vadd.f32 %v8224_v46, %v8223_v10  ;;  %744 = vst.msk [vmem:[#allocation2 + $0x5c] sm:$0xf] %vm447_vm0, %v8057_v20  ;;  %v665_v0 = vmax.f32 %v627_v21, 0.0  ;;  %v8289_v28 = vadd.f32 %v8288_v26, %v8287_v11 }
 0x10a   :  { %v8226_v52 = vpop.f32.mrf.mxu0  ;;  %2078 = vmatmul.mubr.bf16.gmra.mxu0 %v9901_v43  ;;  %v8290_v31 = vpop.f32.mrf.mxu1  ;;  %2367 = vmatmul.mubr.bf16.gmra.mxu1 %v9964_v17  ;;  %v9971_v17 = vld [vmem:[%s12870_s3 + $0x28] sm:$0xff]  }
 0x10b   :  { %v8042_v55 = vpack.c.bf16 %v375_v49, %v375_v49  ;;  %v340_v57 = vadd.f32 %v8225_v50, %v10782_v56  ;;  %2085 = vmatprep.mubr.bf16.mxu0 %v9909_v16  ;;  %v8058_v33 = vpack.c.bf16 %v665_v0, %v665_v0  ;;  %v630_v34 = vadd.f32 %v8289_v28, %v10782_v56 }
 0x10c   :  { %v8227_v59 = vpop.f32.mrf.mxu0  ;;  %2374 = vmatprep.mubr.bf16.mxu1 %v9969_v22  ;;  %v8291_v37 = vpop.f32.mrf.mxu1 }
 0x10d   :  { %456 = vst.msk [vmem:[#allocation2 + $0x20] sm:$0xf] %vm447_vm0, %v8042_v55  ;;  %v376_v62 = vmax.f32 %v340_v57, 0.0  ;;  %v8228_v63 = vadd.f32 %v8227_v59, %v8226_v52  ;;  %745 = vst.msk [vmem:[#allocation2 + $0x60] sm:$0xf] %vm447_vm0, %v8058_v33  ;;  %v666_v39 = vmax.f32 %v630_v34, 0.0  ;;  %v8292_v40 = vadd.f32 %v8291_v37, %v8290_v31 }
 0x10e   :  { %v8229_v18 = vpop.f32.mrf.mxu0  ;;  %v8293_v2 = vpop.f32.mrf.mxu1 }
 0x10f   :  { %v8043_v23 = vpack.c.bf16 %v376_v62, %v376_v62  ;;  %v345_v24 = vadd.f32 %v8228_v63, %v10782_v56  ;;  %v8059_v5 = vpack.c.bf16 %v666_v39, %v666_v39  ;;  %v635_v6 = vadd.f32 %v8292_v40, %v10782_v56 }
 0x110   :  { %v8230_v27 = vpop.f32.mrf.mxu0  ;;  %v8294_v43 = vpop.f32.mrf.mxu1 }
 0x111   :  { %457 = vst.msk [vmem:[#allocation2 + $0x24] sm:$0xf] %vm447_vm0, %v8043_v23  ;;  %v377_v29 = vmax.f32 %v345_v24, 0.0  ;;  %v8231_v30 = vadd.f32 %v8230_v27, %v8229_v18  ;;  %746 = vst.msk [vmem:[#allocation2 + $0x64] sm:$0xf] %vm447_vm0, %v8059_v5  ;;  %v667_v13 = vmax.f32 %v635_v6, 0.0  ;;  %v8295_v14 = vadd.f32 %v8294_v43, %v8293_v2 }
 0x112   :  { %v8232_v32 = vpop.f32.mrf.mxu0  ;;  %2086 = vmatmul.mubr.bf16.gmra.mxu0 %v9907_v19  ;;  %v8296_v16 = vpop.f32.mrf.mxu1  ;;  %2375 = vmatmul.mubr.bf16.gmra.mxu1 %v9967_v3  ;;  %v9921_v19 = vld [vmem:[#allocation2 + $0x8] sm:$0xff]   ;;  %v9925_v3 = vld [vmem:[#allocation2 + $0x18] sm:$0xff]  }
 0x113   :  { %v8044_v35 = vpack.c.bf16 %v377_v29, %v377_v29  ;;  %v348_v36 = vadd.f32 %v8231_v30, %v10782_v56  ;;  %2093 = vmatprep.mubr.bf16.mxu0 %v9915_v25  ;;  %v8060_v46 = vpack.c.bf16 %v667_v13, %v667_v13  ;;  %v638_v47 = vadd.f32 %v8295_v14, %v10782_v56  ;;  %v9975_v30 = vld [vmem:[%s12870_s3 + $0x20] sm:$0xff]  }
 0x114   :  { %v8233_v38 = vpop.f32.mrf.mxu0  ;;  %2382 = vmatprep.mubr.bf16.mxu1 %v9974_v7  ;;  %v8297_v50 = vpop.f32.mrf.mxu1 }
 0x115   :  { %458 = vst.msk [vmem:[#allocation2 + $0x28] sm:$0xf] %vm447_vm0, %v8044_v35  ;;  %v378_v41 = vmax.f32 %v348_v36, 0.0  ;;  %v8234_v1 = vadd.f32 %v8233_v38, %v8232_v32  ;;  %747 = vst.msk [vmem:[#allocation2 + $0x68] sm:$0xf] %vm447_vm0, %v8060_v46  ;;  %v668_v52 = vmax.f32 %v638_v47, 0.0  ;;  %v8298_v53 = vadd.f32 %v8297_v50, %v8296_v16 }
 0x116   :  { %v8235_v4 = vpop.f32.mrf.mxu0  ;;  %v8299_v57 = vpop.f32.mrf.mxu1 }
 0x117   :  { %v8045_v8 = vpack.c.bf16 %v378_v41, %v378_v41  ;;  %v353_v10 = vadd.f32 %v8234_v1, %v10782_v56  ;;  %v8061_v60 = vpack.c.bf16 %v668_v52, %v668_v52  ;;  %v643_v61 = vadd.f32 %v8298_v53, %v10782_v56 }
 0x118   :  { %v8236_v12 = vpop.f32.mrf.mxu0  ;;  %v8300_v11 = vpop.f32.mrf.mxu1 }
 0x119   :  { %459 = vst.msk [vmem:[#allocation2 + $0x2c] sm:$0xf] %vm447_vm0, %v8045_v8  ;;  %v379_v15 = vmax.f32 %v353_v10, 0.0  ;;  %v8237_v44 = vadd.f32 %v8236_v12, %v8235_v4  ;;  %748 = vst.msk [vmem:[#allocation2 + $0x6c] sm:$0xf] %vm447_vm0, %v8061_v60  ;;  %v669_v20 = vmax.f32 %v643_v61, 0.0  ;;  %v8301_v21 = vadd.f32 %v8300_v11, %v8299_v57 }
 0x11a   :  { %v8238_v45 = vpop.f32.mrf.mxu0  ;;  %2094 = vmatmul.mubr.bf16.gmra.mxu0 %v9913_v42  ;;  %v8302_v24 = vpop.f32.mrf.mxu1  ;;  %2383 = vmatmul.mubr.bf16.gmra.mxu1 %v9972_v58 }
 0x11b   :  { %v8046_v48 = vpack.c.bf16 %v379_v15, %v379_v15  ;;  %v356_v49 = vadd.f32 %v8237_v44, %v10782_v56  ;;  %9005 = vmatprep.mubr.msk.bf16.mxu0 %vm10201_vm1, %v10200_v9  ;;  %v8062_v26 = vpack.c.bf16 %v669_v20, %v669_v20  ;;  %v646_v27 = vadd.f32 %v8301_v21, %v10782_v56 }
 0x11c   :  { %v8239_v51 = vpop.f32.mrf.mxu0  ;;  %9037 = vmatprep.mubr.msk.bf16.mxu1 %vm10201_vm1, %v10200_v9  ;;  %v8303_v29 = vpop.f32.mrf.mxu1 }
 0x11d   :  { %460 = vst.msk [vmem:[#allocation2 + $0x30] sm:$0xf] %vm447_vm0, %v8046_v48  ;;  %v380_v54 = vmax.f32 %v356_v49, 0.0  ;;  %v8240_v55 = vadd.f32 %v8239_v51, %v8238_v45  ;;  %749 = vst.msk [vmem:[#allocation2 + $0x70] sm:$0xf] %vm447_vm0, %v8062_v26  ;;  %v670_v32 = vmax.f32 %v646_v27, 0.0  ;;  %v8304_v33 = vadd.f32 %v8303_v29, %v8302_v24 }
 0x11e   :  { %v8241_v59 = vpop.f32.mrf.mxu0  ;;  %v8305_v36 = vpop.f32.mrf.mxu1 }
 0x11f   :  { %v8047_v62 = vpack.c.bf16 %v380_v54, %v380_v54  ;;  %v361_v63 = vadd.f32 %v8240_v55, %v10782_v56  ;;  %v8063_v38 = vpack.c.bf16 %v670_v32, %v670_v32  ;;  %v651_v39 = vadd.f32 %v8304_v33, %v10782_v56 }
 0x120   :  { %v8242_v18 = vpop.f32.mrf.mxu0  ;;  %v8306_v1 = vpop.f32.mrf.mxu1  ;;  %v9929_v55 = vld [vmem:[#allocation2 + $0x28] sm:$0xff]  }
 0x121   :  { %461 = vst.msk [vmem:[#allocation2 + $0x34] sm:$0xf] %vm447_vm0, %v8047_v62  ;;  %v381_v22 = vmax.f32 %v361_v63, 0.0  ;;  %v8243_v23 = vadd.f32 %v8242_v18, %v8241_v59  ;;  %750 = vst.msk [vmem:[#allocation2 + $0x74] sm:$0xf] %vm447_vm0, %v8063_v38  ;;  %v671_v4 = vmax.f32 %v651_v39, 0.0  ;;  %v8307_v42 = vadd.f32 %v8306_v1, %v8305_v36 }
 0x122   :  { %v8324_v25 = vpop.f32.mrf.mxu0  ;;  %9006 = vmatmul.mubr.msk.bf16.vlgmr.msra.gmra.mxu0 %vm2633_vm2, %v9921_v19  ;;  %v8388_v7 = vpop.f32.mrf.mxu1 }
 0x123   :  { %v8048_v0 = vpack.c.bf16 %v381_v22, %v381_v22  ;;  %v364_v28 = vadd.f32 %v8243_v23, %v10782_v56  ;;  %9009 = vmatprep.mubr.msk.bf16.mxu0 %vm10201_vm1, %v10200_v9  ;;  %9082 = vmatpush3.bf16.msra.mxu0 %v9971_v17  ;;  %v8064_v10 = vpack.c.bf16 %v671_v4, %v671_v4 }
 0x124   :  { %v8325_v31 = vpop.f32.mrf.mxu0  ;;  %9083 = vmatprep.subr.bf16.mxu0 %v10200_v9  ;;  %v654_v43 = vadd.f32 %v8307_v42, %v10782_v56  ;;  %v8389_v14 = vpop.f32.mrf.mxu1 }
 0x125   :  { %462 = vst.msk [vmem:[#allocation2 + $0x38] sm:$0xf] %vm447_vm0, %v8048_v0  ;;  %v382_v34 = vmax.f32 %v364_v28, 0.0  ;;  %v8326_v35 = vadd.f32 %v8325_v31, %v8324_v25  ;;  %751 = vst.msk [vmem:[#allocation2 + $0x78] sm:$0xf] %vm447_vm0, %v8064_v10  ;;  %v8390_v16 = vadd.f32 %v8389_v14, %v8388_v7 }
 0x126   :  { %v8327_v37 = vpop.f32.mrf.mxu0  ;;  %v672_v44 = vmax.f32 %v654_v43, 0.0  ;;  %v8391_v47 = vpop.f32.mrf.mxu1 }
 0x127   :  { %v8049_v40 = vpack.c.bf16 %v382_v34, %v382_v34  ;;  %v884_v41 = vadd.f32 %v8326_v35, %v10782_v56  ;;  %9084 = vmatpush3.bf16.msra.mxu0 %v9975_v30  ;;  %v1173_v50 = vadd.f32 %v8390_v16, %v10782_v56 }
 0x128   :  { %v8328_v2 = vpop.f32.mrf.mxu0  ;;  %9161 = vmatprep.subr.bf16.mxu0 %v10200_v9  ;;  %v8065_v49 = vpack.c.bf16 %v672_v44, %v672_v44  ;;  %v8392_v53 = vpop.f32.mrf.mxu1 }
 0x129   :  { %463 = vst.msk [vmem:[#allocation2 + $0x3c] sm:$0xf] %vm447_vm0, %v8049_v40  ;;  %v946_v5 = vmax.f32 %v884_v41, 0.0  ;;  %v8329_v6 = vadd.f32 %v8328_v2, %v8327_v37  ;;  %v1235_v57 = vmax.f32 %v1173_v50, 0.0  ;;  %v8393_v58 = vadd.f32 %v8392_v53, %v8391_v47 }
 0x12a   :  { %v8330_v8 = vpop.f32.mrf.mxu0  ;;  %9010 = vmatmul.mubr.msk.bf16.gmra.mxu0 %vm2633_vm2, %v9925_v3  ;;  %752 = vst.msk [vmem:[#allocation2 + $0x7c] sm:$0xf] %vm447_vm0, %v8065_v49  ;;  %v8394_v61 = vpop.f32.mrf.mxu1 }
 0x12b   :  { %v8066_v12 = vpack.c.bf16 %v946_v5, %v946_v5  ;;  %v887_v13 = vadd.f32 %v8329_v6, %v10782_v56  ;;  %9013 = vmatprep.mubr.msk.bf16.mxu0 %vm10201_vm1, %v10200_v9  ;;  %v8082_v63 = vpack.c.bf16 %v1235_v57, %v1235_v57  ;;  %v1176_v11 = vadd.f32 %v8393_v58, %v10782_v56 }
 0x12c   :  { %v8331_v15 = vpop.f32.mrf.mxu0  ;;  %v8395_v19 = vpop.f32.mrf.mxu1 }
 0x12d   :  { %1026 = vst.msk [vmem:[#allocation2 + $0x80] sm:$0xf] %vm447_vm0, %v8066_v12  ;;  %v947_v45 = vmax.f32 %v887_v13, 0.0  ;;  %v8332_v46 = vadd.f32 %v8331_v15, %v8330_v8  ;;  %1315 = vst.msk [vmem:[#allocation2 + $0xc0] sm:$0xf] %vm447_vm0, %v8082_v63  ;;  %v1236_v21 = vmax.f32 %v1176_v11, 0.0  ;;  %v8396_v22 = vadd.f32 %v8395_v19, %v8394_v61 }
 0x12e   :  { %v8333_v48 = vpop.f32.mrf.mxu0  ;;  %v8397_v25 = vpop.f32.mrf.mxu1 }
 0x12f   :  { %v8067_v51 = vpack.c.bf16 %v947_v45, %v947_v45  ;;  %v892_v52 = vadd.f32 %v8332_v46, %v10782_v56  ;;  %v8083_v27 = vpack.c.bf16 %v1236_v21, %v1236_v21  ;;  %v1181_v0 = vadd.f32 %v8396_v22, %v10782_v56 }
 0x130   :  { %v8334_v54 = vpop.f32.mrf.mxu0  ;;  %v8398_v30 = vpop.f32.mrf.mxu1 }
 0x131   :  { %1027 = vst.msk [vmem:[#allocation2 + $0x84] sm:$0xf] %vm447_vm0, %v8067_v51  ;;  %v948_v59 = vmax.f32 %v892_v52, 0.0  ;;  %v8335_v60 = vadd.f32 %v8334_v54, %v8333_v48  ;;  %1316 = vst.msk [vmem:[#allocation2 + $0xc4] sm:$0xf] %vm447_vm0, %v8083_v27  ;;  %v1237_v32 = vmax.f32 %v1181_v0, 0.0  ;;  %v8399_v33 = vadd.f32 %v8398_v30, %v8397_v25 }
 0x132   :  { %v8336_v62 = vpop.f32.mrf.mxu0  ;;  %9014 = vmatmul.mubr.msk.bf16.gmra.mxu0 %vm2633_vm2, %v9929_v55  ;;  %v8400_v36 = vpop.f32.mrf.mxu1 }
 0x133   :  { %v8068_v17 = vpack.c.bf16 %v948_v59, %v948_v59  ;;  %v895_v18 = vadd.f32 %v8335_v60, %v10782_v56  ;;  %9017 = vmatprep.mubr.msk.bf16.mxu0 %vm10201_vm1, %v10200_v9  ;;  %v8084_v38 = vpack.c.bf16 %v1237_v32, %v1237_v32  ;;  %v1184_v39 = vadd.f32 %v8399_v33, %v10782_v56 }
 0x134   :  { %v8337_v20 = vpop.f32.mrf.mxu0  ;;  %v8401_v1 = vpop.f32.mrf.mxu1 }
 0x135   :  { %1028 = vst.msk [vmem:[#allocation2 + $0x88] sm:$0xf] %vm447_vm0, %v8068_v17  ;;  %v949_v23 = vmax.f32 %v895_v18, 0.0  ;;  %v8338_v24 = vadd.f32 %v8337_v20, %v8336_v62  ;;  %1317 = vst.msk [vmem:[#allocation2 + $0xc8] sm:$0xf] %vm447_vm0, %v8084_v38  ;;  %v1238_v3 = vmax.f32 %v1184_v39, 0.0  ;;  %v8402_v4 = vadd.f32 %v8401_v1, %v8400_v36 }
 0x136   :  { %v8339_v26 = vpop.f32.mrf.mxu0  ;;  %v8403_v6 = vpop.f32.mrf.mxu1 }
 0x137   :  { %v8069_v28 = vpack.c.bf16 %v949_v23, %v949_v23  ;;  %v900_v29 = vadd.f32 %v8338_v24, %v10782_v56  ;;  %v8085_v8 = vpack.c.bf16 %v1238_v3, %v1238_v3  ;;  %v1189_v10 = vadd.f32 %v8402_v4, %v10782_v56 }
 0x138   :  { %v8340_v31 = vpop.f32.mrf.mxu0  ;;  %v8404_v13 = vpop.f32.mrf.mxu1 }
 0x139   :  { %1029 = vst.msk [vmem:[#allocation2 + $0x8c] sm:$0xf] %vm447_vm0, %v8069_v28  ;;  %v950_v34 = vmax.f32 %v900_v29, 0.0  ;;  %v8341_v35 = vadd.f32 %v8340_v31, %v8339_v26  ;;  %1318 = vst.msk [vmem:[#allocation2 + $0xcc] sm:$0xf] %vm447_vm0, %v8085_v8  ;;  %v1239_v44 = vmax.f32 %v1189_v10, 0.0  ;;  %v8405_v16 = vadd.f32 %v8404_v13, %v8403_v6 }
 0x13a   :  { %v8342_v37 = vpop.f32.mrf.mxu0  ;;  %v8406_v47 = vpop.f32.mrf.mxu1 }
 0x13b   :  { %v8070_v40 = vpack.c.bf16 %v950_v34, %v950_v34  ;;  %v903_v41 = vadd.f32 %v8341_v35, %v10782_v56  ;;  %v8086_v49 = vpack.c.bf16 %v1239_v44, %v1239_v44  ;;  %v1192_v50 = vadd.f32 %v8405_v16, %v10782_v56 }
 0x13c   :  { %v8343_v2 = vpop.f32.mrf.mxu0  ;;  %v8407_v53 = vpop.f32.mrf.mxu1 }
 0x13d   :  { %1030 = vst.msk [vmem:[#allocation2 + $0x90] sm:$0xf] %vm447_vm0, %v8070_v40  ;;  %v951_v42 = vmax.f32 %v903_v41, 0.0  ;;  %v8344_v5 = vadd.f32 %v8343_v2, %v8342_v37  ;;  %1319 = vst.msk [vmem:[#allocation2 + $0xd0] sm:$0xf] %vm447_vm0, %v8086_v49  ;;  %v1240_v55 = vmax.f32 %v1192_v50, 0.0  ;;  %v8408_v57 = vadd.f32 %v8407_v53, %v8406_v47 }
 0x13e   :  { %v8345_v7 = vpop.f32.mrf.mxu0  ;;  %v8409_v60 = vpop.f32.mrf.mxu1 }
 0x13f   :  { %v8071_v43 = vpack.c.bf16 %v951_v42, %v951_v42  ;;  %v908_v12 = vadd.f32 %v8344_v5, %v10782_v56  ;;  %v8087_v62 = vpack.c.bf16 %v1240_v55, %v1240_v55  ;;  %v1197_v63 = vadd.f32 %v8408_v57, %v10782_v56 }
 0x140   :  { %v8346_v14 = vpop.f32.mrf.mxu0  ;;  %v9936_v15 = vld [vmem:[#allocation2 + $0x88] sm:$0xff]   ;;  %v8410_v18 = vpop.f32.mrf.mxu1 }
 0x141   :  { %1031 = vst.msk [vmem:[#allocation2 + $0x94] sm:$0xf] %vm447_vm0, %v8071_v43  ;;  %v952_v45 = vmax.f32 %v908_v12, 0.0  ;;  %v8347_v46 = vadd.f32 %v8346_v14, %v8345_v7  ;;  %9018 = vmatmul.mubr.msk.bf16.gmra.mxu0 %vm2633_vm2, %v9936_v15  ;;  %1320 = vst.msk [vmem:[#allocation2 + $0xd4] sm:$0xf] %vm447_vm0, %v8087_v62  ;;  %v1241_v20 = vmax.f32 %v1197_v63, 0.0  ;;  %v8411_v21 = vadd.f32 %v8410_v18, %v8409_v60 }
 0x142   :  { %v8348_v48 = vpop.f32.mrf.mxu0  ;;  %9021 = vmatprep.mubr.msk.bf16.mxu0 %vm10201_vm1, %v10200_v9  ;;  %v8412_v24 = vpop.f32.mrf.mxu1 }
 0x143   :  { %v8072_v51 = vpack.c.bf16 %v952_v45, %v952_v45  ;;  %v911_v52 = vadd.f32 %v8347_v46, %v10782_v56  ;;  %v8088_v26 = vpack.c.bf16 %v1241_v20, %v1241_v20  ;;  %v1200_v27 = vadd.f32 %v8411_v21, %v10782_v56 }
 0x144   :  { %v8349_v54 = vpop.f32.mrf.mxu0  ;;  %v8413_v29 = vpop.f32.mrf.mxu1 }
 0x145   :  { %1032 = vst.msk [vmem:[#allocation2 + $0x98] sm:$0xf] %vm447_vm0, %v8072_v51  ;;  %v953_v58 = vmax.f32 %v911_v52, 0.0  ;;  %v8350_v59 = vadd.f32 %v8349_v54, %v8348_v48  ;;  %1321 = vst.msk [vmem:[#allocation2 + $0xd8] sm:$0xf] %vm447_vm0, %v8088_v26  ;;  %v1242_v31 = vmax.f32 %v1200_v27, 0.0  ;;  %v8414_v32 = vadd.f32 %v8413_v29, %v8412_v24 }
 0x146   :  { %v8351_v61 = vpop.f32.mrf.mxu0  ;;  %v8415_v35 = vpop.f32.mrf.mxu1 }
 0x147   :  { %v8073_v11 = vpack.c.bf16 %v953_v58, %v953_v58  ;;  %v916_v17 = vadd.f32 %v8350_v59, %v10782_v56  ;;  %v8089_v37 = vpack.c.bf16 %v1242_v31, %v1242_v31  ;;  %v1205_v38 = vadd.f32 %v8414_v32, %v10782_v56 }
 0x148   :  { %v8352_v19 = vpop.f32.mrf.mxu0  ;;  %v8416_v41 = vpop.f32.mrf.mxu1 }
 0x149   :  { %1033 = vst.msk [vmem:[#allocation2 + $0x9c] sm:$0xf] %vm447_vm0, %v8073_v11  ;;  %v954_v22 = vmax.f32 %v916_v17, 0.0  ;;  %v8353_v23 = vadd.f32 %v8352_v19, %v8351_v61  ;;  %1322 = vst.msk [vmem:[#allocation2 + $0xdc] sm:$0xf] %vm447_vm0, %v8089_v37  ;;  %v1243_v3 = vmax.f32 %v1205_v38, 0.0  ;;  %v8417_v4 = vadd.f32 %v8416_v41, %v8415_v35 }
 0x14a   :  { %v8354_v25 = vpop.f32.mrf.mxu0  ;;  %v8418_v6 = vpop.f32.mrf.mxu1 }
 0x14b   :  { %v8074_v0 = vpack.c.bf16 %v954_v22, %v954_v22  ;;  %v919_v28 = vadd.f32 %v8353_v23, %v10782_v56  ;;  %v8090_v8 = vpack.c.bf16 %v1243_v3, %v1243_v3  ;;  %v1208_v10 = vadd.f32 %v8417_v4, %v10782_v56 }
 0x14c   :  { %v8355_v30 = vpop.f32.mrf.mxu0  ;;  %v8419_v13 = vpop.f32.mrf.mxu1 }
 0x14d   :  { %1034 = vst.msk [vmem:[#allocation2 + $0xa0] sm:$0xf] %vm447_vm0, %v8074_v0  ;;  %v955_v33 = vmax.f32 %v919_v28, 0.0  ;;  %v8356_v34 = vadd.f32 %v8355_v30, %v8354_v25  ;;  %1323 = vst.msk [vmem:[#allocation2 + $0xe0] sm:$0xf] %vm447_vm0, %v8090_v8  ;;  %v1244_v15 = vmax.f32 %v1208_v10, 0.0  ;;  %v8420_v44 = vadd.f32 %v8419_v13, %v8418_v6 }
 0x14e   :  { %v8357_v36 = vpop.f32.mrf.mxu0  ;;  %v8421_v46 = vpop.f32.mrf.mxu1 }
 0x14f   :  { %v8075_v39 = vpack.c.bf16 %v955_v33, %v955_v33  ;;  %v924_v40 = vadd.f32 %v8356_v34, %v10782_v56  ;;  %v8091_v48 = vpack.c.bf16 %v1244_v15, %v1244_v15 }
 0x150   :  { %v8358_v1 = vpop.f32.mrf.mxu0  ;;  %v9943_v2 = vld [vmem:[#allocation2 + $0x98] sm:$0xff]   ;;  %v8422_v52 = vpop.f32.mrf.mxu1 }
 0x151   :  { %1035 = vst.msk [vmem:[#allocation2 + $0xa4] sm:$0xf] %vm447_vm0, %v8075_v39  ;;  %v956_v42 = vmax.f32 %v924_v40, 0.0  ;;  %v8359_v5 = vadd.f32 %v8358_v1, %v8357_v36  ;;  %9022 = vmatmul.mubr.msk.bf16.gmra.mxu0 %vm2633_vm2, %v9943_v2  ;;  %1324 = vst.msk [vmem:[#allocation2 + $0xe4] sm:$0xf] %vm447_vm0, %v8091_v48  ;;  %v8423_v55 = vadd.f32 %v8422_v52, %v8421_v46 }
 0x152   :  { %v8360_v7 = vpop.f32.mrf.mxu0  ;;  %9025 = vmatprep.mubr.msk.bf16.mxu0 %vm10201_vm1, %v10200_v9  ;;  %v8424_v59 = vpop.f32.mrf.mxu1 }
 0x153   :  { %v8076_v43 = vpack.c.bf16 %v956_v42, %v956_v42  ;;  %v927_v12 = vadd.f32 %v8359_v5, %v10782_v56  ;;  %v11008_v56 = vld [vmem:[%s12871_s2] ss:$0 sm:$0xff] }
 0x154   :  { %v8361_v14 = vpop.f32.mrf.mxu0  ;;  %v1213_v49 = vadd.f32 %v11008_v56, %v8420_v44  ;;  %v1216_v62 = vadd.f32 %v11008_v56, %v8423_v55  ;;  %v8425_v17 = vpop.f32.mrf.mxu1 }
 0x155   :  { %1036 = vst.msk [vmem:[#allocation2 + $0xa8] sm:$0xf] %vm447_vm0, %v8076_v43  ;;  %v957_v16 = vmax.f32 %v927_v12, 0.0  ;;  %v8362_v45 = vadd.f32 %v8361_v14, %v8360_v7  ;;  %v8426_v20 = vadd.f32 %v8425_v17, %v8424_v59 }
 0x156   :  { %v8363_v47 = vpop.f32.mrf.mxu0  ;;  %v1245_v54 = vmax.f32 %v1213_v49, 0.0  ;;  %v1246_v19 = vmax.f32 %v1216_v62, 0.0  ;;  %v8427_v23 = vpop.f32.mrf.mxu1 }
 0x157   :  { %v8077_v50 = vpack.c.bf16 %v957_v16, %v957_v16  ;;  %v932_v51 = vadd.f32 %v11008_v56, %v8362_v45  ;;  %v1221_v26 = vadd.f32 %v11008_v56, %v8426_v20 }
 0x158   :  { %v8364_v53 = vpop.f32.mrf.mxu0  ;;  %v8092_v61 = vpack.c.bf16 %v1245_v54, %v1245_v54  ;;  %v8093_v25 = vpack.c.bf16 %v1246_v19, %v1246_v19  ;;  %v8428_v28 = vpop.f32.mrf.mxu1 }
 0x159   :  { %1037 = vst.msk [vmem:[#allocation2 + $0xac] sm:$0xf] %vm447_vm0, %v8077_v50  ;;  %v958_v57 = vmax.f32 %v932_v51, 0.0  ;;  %v8365_v58 = vadd.f32 %v8364_v53, %v8363_v47  ;;  %v1247_v31 = vmax.f32 %v1221_v26, 0.0  ;;  %v8429_v32 = vadd.f32 %v8428_v28, %v8427_v23 }
 0x15a   :  { %v8366_v60 = vpop.f32.mrf.mxu0  ;;  %1325 = vst.msk [vmem:[#allocation2 + $0xe8] sm:$0xf] %vm447_vm0, %v8092_v61  ;;  %1326 = vst.msk [vmem:[#allocation2 + $0xec] sm:$0xf] %vm447_vm0, %v8093_v25  ;;  %v8430_v35 = vpop.f32.mrf.mxu1 }
 0x15b   :  { %v8078_v63 = vpack.c.bf16 %v958_v57, %v958_v57  ;;  %v935_v11 = vadd.f32 %v11008_v56, %v8365_v58  ;;  %v8094_v37 = vpack.c.bf16 %v1247_v31, %v1247_v31  ;;  %v1224_v38 = vadd.f32 %v11008_v56, %v8429_v32 }
 0x15c   :  { %v8367_v18 = vpop.f32.mrf.mxu0  ;;  %v8431_v41 = vpop.f32.mrf.mxu1 }
 0x15d   :  { %1038 = vst.msk [vmem:[#allocation2 + $0xb0] sm:$0xf] %vm447_vm0, %v8078_v63  ;;  %v959_v21 = vmax.f32 %v935_v11, 0.0  ;;  %v8368_v22 = vadd.f32 %v8367_v18, %v8366_v60  ;;  %1327 = vst.msk [vmem:[#allocation2 + $0xf0] sm:$0xf] %vm447_vm0, %v8094_v37  ;;  %v1248_v2 = vmax.f32 %v1224_v38, 0.0  ;;  %v8432_v3 = vadd.f32 %v8431_v41, %v8430_v35 }
 0x15e   :  { %v8369_v24 = vpop.f32.mrf.mxu0  ;;  %v8433_v5 = vpop.f32.mrf.mxu1 }
 0x15f   :  { %v8079_v27 = vpack.c.bf16 %v959_v21, %v959_v21  ;;  %v940_v0 = vadd.f32 %v11008_v56, %v8368_v22  ;;  %v8095_v7 = vpack.c.bf16 %v1248_v2, %v1248_v2  ;;  %v1229_v8 = vadd.f32 %v11008_v56, %v8432_v3 }
 0x160   :  { %v8370_v29 = vpop.f32.mrf.mxu0  ;;  %v9950_v30 = vld [vmem:[#allocation2 + $0xa8] sm:$0xff]   ;;  %v8434_v12 = vpop.f32.mrf.mxu1 }
 0x161   :  { %1039 = vst.msk [vmem:[#allocation2 + $0xb4] sm:$0xf] %vm447_vm0, %v8079_v27  ;;  %v960_v33 = vmax.f32 %v940_v0, 0.0  ;;  %v8371_v34 = vadd.f32 %v8370_v29, %v8369_v24  ;;  %9026 = vmatmul.mubr.msk.bf16.gmra.mxu0 %vm2633_vm2, %v9950_v30  ;;  %1328 = vst.msk [vmem:[#allocation2 + $0xf4] sm:$0xf] %vm447_vm0, %v8095_v7  ;;  %v1249_v14 = vmax.f32 %v1229_v8, 0.0  ;;  %v8435_v15 = vadd.f32 %v8434_v12, %v8433_v5 }
 0x162   :  { %v8452_v36 = vpop.f32.mrf.mxu0  ;;  %9029 = vmatprep.mubr.msk.bf16.mxu0 %vm10201_vm1, %v10200_v9  ;;  %v8516_v45 = vpop.f32.mrf.mxu1 }
 0x163   :  { %v8080_v39 = vpack.c.bf16 %v960_v33, %v960_v33  ;;  %v943_v40 = vadd.f32 %v11008_v56, %v8371_v34  ;;  %v8096_v47 = vpack.c.bf16 %v1249_v14, %v1249_v14  ;;  %v1232_v48 = vadd.f32 %v11008_v56, %v8435_v15 }
 0x164   :  { %v8453_v1 = vpop.f32.mrf.mxu0  ;;  %v8517_v51 = vpop.f32.mrf.mxu1 }
 0x165   :  { %1040 = vst.msk [vmem:[#allocation2 + $0xb8] sm:$0xf] %vm447_vm0, %v8080_v39  ;;  %v961_v4 = vmax.f32 %v943_v40, 0.0  ;;  %v8454_v42 = vadd.f32 %v8453_v1, %v8452_v36  ;;  %1329 = vst.msk [vmem:[#allocation2 + $0xf8] sm:$0xf] %vm447_vm0, %v8096_v47  ;;  %v1250_v53 = vmax.f32 %v1232_v48, 0.0  ;;  %v8518_v54 = vadd.f32 %v8517_v51, %v8516_v45 }
 0x166   :  { %v8455_v6 = vpop.f32.mrf.mxu0  ;;  %v8519_v58 = vpop.f32.mrf.mxu1 }
 0x167   :  { %v8081_v10 = vpack.c.bf16 %v961_v4, %v961_v4  ;;  %v1462_v43 = vadd.f32 %v11008_v56, %v8454_v42  ;;  %v8097_v60 = vpack.c.bf16 %v1250_v53, %v1250_v53  ;;  %v1751_v61 = vadd.f32 %v11008_v56, %v8518_v54 }
 0x168   :  { %v8456_v13 = vpop.f32.mrf.mxu0  ;;  %v8520_v11 = vpop.f32.mrf.mxu1 }
 0x169   :  { %1041 = vst.msk [vmem:[#allocation2 + $0xbc] sm:$0xf] %vm447_vm0, %v8081_v10  ;;  %v1524_v44 = vmax.f32 %v1462_v43, 0.0  ;;  %v8457_v16 = vadd.f32 %v8456_v13, %v8455_v6  ;;  %1330 = vst.msk [vmem:[#allocation2 + $0xfc] sm:$0xf] %vm447_vm0, %v8097_v60  ;;  %v1813_v18 = vmax.f32 %v1751_v61, 0.0  ;;  %v8521_v19 = vadd.f32 %v8520_v11, %v8519_v58 }
 0x16a   :  { %v8458_v46 = vpop.f32.mrf.mxu0  ;;  %v8522_v22 = vpop.f32.mrf.mxu1 }
 0x16b   :  { %v8098_v49 = vpack.c.bf16 %v1524_v44, %v1524_v44  ;;  %v1465_v50 = vadd.f32 %v11008_v56, %v8457_v16  ;;  %v8114_v24 = vpack.c.bf16 %v1813_v18, %v1813_v18  ;;  %v1754_v25 = vadd.f32 %v11008_v56, %v8521_v19 }
 0x16c   :  { %v8459_v52 = vpop.f32.mrf.mxu0  ;;  %v8523_v0 = vpop.f32.mrf.mxu1 }
 0x16d   :  { %1604 = vst.msk [vmem:[#allocation2 + $0x100] sm:$0xf] %vm447_vm0, %v8098_v49  ;;  %v1525_v55 = vmax.f32 %v1465_v50, 0.0  ;;  %v8460_v57 = vadd.f32 %v8459_v52, %v8458_v46  ;;  %1893 = vst.msk [vmem:[#allocation2 + $0x140] sm:$0xf] %vm447_vm0, %v8114_v24  ;;  %v1814_v29 = vmax.f32 %v1754_v25, 0.0  ;;  %v8524_v30 = vadd.f32 %v8523_v0, %v8522_v22 }
 0x16e   :  { %v8461_v59 = vpop.f32.mrf.mxu0  ;;  %v8525_v33 = vpop.f32.mrf.mxu1 }
 0x16f   :  { %v8099_v62 = vpack.c.bf16 %v1525_v55, %v1525_v55  ;;  %v1470_v63 = vadd.f32 %v11008_v56, %v8460_v57  ;;  %v8115_v35 = vpack.c.bf16 %v1814_v29, %v1814_v29  ;;  %v1759_v36 = vadd.f32 %v11008_v56, %v8524_v30 }
 0x170   :  { %v8462_v17 = vpop.f32.mrf.mxu0  ;;  %v8526_v39 = vpop.f32.mrf.mxu1 }
 0x171   :  { %1605 = vst.msk [vmem:[#allocation2 + $0x104] sm:$0xf] %vm447_vm0, %v8099_v62  ;;  %v1526_v20 = vmax.f32 %v1470_v63, 0.0  ;;  %v8463_v21 = vadd.f32 %v8462_v17, %v8461_v59  ;;  %1894 = vst.msk [vmem:[#allocation2 + $0x144] sm:$0xf] %vm447_vm0, %v8115_v35  ;;  %v1815_v41 = vmax.f32 %v1759_v36, 0.0  ;;  %v8527_v1 = vadd.f32 %v8526_v39, %v8525_v33 }
 0x172   :  { %v8464_v23 = vpop.f32.mrf.mxu0  ;;  %v8528_v4 = vpop.f32.mrf.mxu1 }
 0x173   :  { %v8100_v26 = vpack.c.bf16 %v1526_v20, %v1526_v20  ;;  %v1473_v27 = vadd.f32 %v11008_v56, %v8463_v21  ;;  %v8116_v5 = vpack.c.bf16 %v1815_v41, %v1815_v41  ;;  %v1762_v6 = vadd.f32 %v11008_v56, %v8527_v1 }
 0x174   :  { %v8465_v28 = vpop.f32.mrf.mxu0  ;;  %v8529_v10 = vpop.f32.mrf.mxu1 }
 0x175   :  { %1606 = vst.msk [vmem:[#allocation2 + $0x108] sm:$0xf] %vm447_vm0, %v8100_v26  ;;  %v1527_v31 = vmax.f32 %v1473_v27, 0.0  ;;  %v8466_v32 = vadd.f32 %v8465_v28, %v8464_v23  ;;  %1895 = vst.msk [vmem:[#allocation2 + $0x148] sm:$0xf] %vm447_vm0, %v8116_v5  ;;  %v1816_v12 = vmax.f32 %v1762_v6, 0.0  ;;  %v8530_v13 = vadd.f32 %v8529_v10, %v8528_v4 }
 0x176   :  { %v8467_v34 = vpop.f32.mrf.mxu0  ;;  %v8531_v44 = vpop.f32.mrf.mxu1 }
 0x177   :  { %v8101_v37 = vpack.c.bf16 %v1527_v31, %v1527_v31  ;;  %v1478_v38 = vadd.f32 %v11008_v56, %v8466_v32  ;;  %v8117_v45 = vpack.c.bf16 %v1816_v12, %v1816_v12  ;;  %v1767_v46 = vadd.f32 %v11008_v56, %v8530_v13 }
 0x178   :  { %v8468_v40 = vpop.f32.mrf.mxu0  ;;  %v8532_v49 = vpop.f32.mrf.mxu1 }
 0x179   :  { %1607 = vst.msk [vmem:[#allocation2 + $0x10c] sm:$0xf] %vm447_vm0, %v8101_v37  ;;  %v1528_v2 = vmax.f32 %v1478_v38, 0.0  ;;  %v8469_v3 = vadd.f32 %v8468_v40, %v8467_v34  ;;  %1896 = vst.msk [vmem:[#allocation2 + $0x14c] sm:$0xf] %vm447_vm0, %v8117_v45  ;;  %v1817_v52 = vmax.f32 %v1767_v46, 0.0  ;;  %v8533_v53 = vadd.f32 %v8532_v49, %v8531_v44 }
 0x17a   :  { %v8470_v42 = vpop.f32.mrf.mxu0  ;;  %v8534_v57 = vpop.f32.mrf.mxu1 }
 0x17b   :  { %v8102_v7 = vpack.c.bf16 %v1528_v2, %v1528_v2  ;;  %v1481_v8 = vadd.f32 %v11008_v56, %v8469_v3  ;;  %v8118_v59 = vpack.c.bf16 %v1817_v52, %v1817_v52  ;;  %v1770_v60 = vadd.f32 %v11008_v56, %v8533_v53 }
 0x17c   :  { %v8471_v43 = vpop.f32.mrf.mxu0  ;;  %v8535_v63 = vpop.f32.mrf.mxu1 }
 0x17d   :  { %1608 = vst.msk [vmem:[#allocation2 + $0x110] sm:$0xf] %vm447_vm0, %v8102_v7  ;;  %v1529_v14 = vmax.f32 %v1481_v8, 0.0  ;;  %v8472_v15 = vadd.f32 %v8471_v43, %v8470_v42  ;;  %1897 = vst.msk [vmem:[#allocation2 + $0x150] sm:$0xf] %vm447_vm0, %v8118_v59  ;;  %v1818_v17 = vmax.f32 %v1770_v60, 0.0  ;;  %v8536_v18 = vadd.f32 %v8535_v63, %v8534_v57 }
 0x17e   :  { %v8473_v16 = vpop.f32.mrf.mxu0  ;;  %v8537_v21 = vpop.f32.mrf.mxu1 }
 0x17f   :  { %v8103_v47 = vpack.c.bf16 %v1529_v14, %v1529_v14  ;;  %v1486_v48 = vadd.f32 %v11008_v56, %v8472_v15  ;;  %v8119_v23 = vpack.c.bf16 %v1818_v17, %v1818_v17  ;;  %v1775_v24 = vadd.f32 %v11008_v56, %v8536_v18  ;;  %v11091_v17 = vld [vmem:[#allocation2 + $0x10] sm:$0xff]  }
 0x180   :  { %v8474_v50 = vpop.f32.mrf.mxu0  ;;  %v9963_v51 = vld [vmem:[#allocation2 + $0x108] sm:$0xff]   ;;  %v8538_v27 = vpop.f32.mrf.mxu1 }
 0x181   :  { %1609 = vst.msk [vmem:[#allocation2 + $0x114] sm:$0xf] %vm447_vm0, %v8103_v47  ;;  %v1530_v54 = vmax.f32 %v1486_v48, 0.0  ;;  %v8475_v55 = vadd.f32 %v8474_v50, %v8473_v16  ;;  %9030 = vmatmul.mubr.msk.bf16.gmra.mxu0 %vm2633_vm2, %v9963_v51  ;;  %1898 = vst.msk [vmem:[#allocation2 + $0x154] sm:$0xf] %vm447_vm0, %v8119_v23  ;;  %v1819_v28 = vmax.f32 %v1775_v24, 0.0  ;;  %v8539_v29 = vadd.f32 %v8538_v27, %v8537_v21 }
 0x182   :  { %v8476_v58 = vpop.f32.mrf.mxu0  ;;  %9033 = vmatprep.mubr.msk.bf16.mxu0 %vm10201_vm1, %v10200_v9  ;;  %v8540_v32 = vpop.f32.mrf.mxu1 }
 0x183   :  { %v8104_v61 = vpack.c.bf16 %v1530_v54, %v1530_v54  ;;  %v1489_v62 = vadd.f32 %v11008_v56, %v8475_v55  ;;  %v8120_v34 = vpack.c.bf16 %v1819_v28, %v1819_v28  ;;  %v1778_v35 = vadd.f32 %v11008_v56, %v8539_v29 }
 0x184   :  { %v8477_v11 = vpop.f32.mrf.mxu0  ;;  %v8541_v38 = vpop.f32.mrf.mxu1 }
 0x185   :  { %1610 = vst.msk [vmem:[#allocation2 + $0x118] sm:$0xf] %vm447_vm0, %v8104_v61  ;;  %v1531_v19 = vmax.f32 %v1489_v62, 0.0  ;;  %v8478_v20 = vadd.f32 %v8477_v11, %v8476_v58  ;;  %1899 = vst.msk [vmem:[#allocation2 + $0x158] sm:$0xf] %vm447_vm0, %v8120_v34  ;;  %v1820_v40 = vmax.f32 %v1778_v35, 0.0  ;;  %v8542_v41 = vadd.f32 %v8541_v38, %v8540_v32 }
 0x186   :  { %v8479_v22 = vpop.f32.mrf.mxu0  ;;  %v8543_v3 = vpop.f32.mrf.mxu1  ;;  %v9993_v62 = vld [vmem:[%s12870_s3 + $0x48] sm:$0xff]  }
 0x187   :  { %v8105_v25 = vpack.c.bf16 %v1531_v19, %v1531_v19  ;;  %v1494_v26 = vadd.f32 %v11008_v56, %v8478_v20  ;;  %v8121_v42 = vpack.c.bf16 %v1820_v40, %v1820_v40  ;;  %v1783_v5 = vadd.f32 %v11008_v56, %v8542_v41  ;;  %v9979_v40 = vld [vmem:[%s12870_s3 + $0x8] sm:$0xff]  }
 0x188   :  { %v8480_v0 = vpop.f32.mrf.mxu0  ;;  %v8544_v8 = vpop.f32.mrf.mxu1 }
 0x189   :  { %1611 = vst.msk [vmem:[#allocation2 + $0x11c] sm:$0xf] %vm447_vm0, %v8105_v25  ;;  %v1532_v30 = vmax.f32 %v1494_v26, 0.0  ;;  %v8481_v31 = vadd.f32 %v8480_v0, %v8479_v22  ;;  %1900 = vst.msk [vmem:[#allocation2 + $0x15c] sm:$0xf] %vm447_vm0, %v8121_v42  ;;  %v1821_v12 = vmax.f32 %v1783_v5, 0.0  ;;  %v8545_v13 = vadd.f32 %v8544_v8, %v8543_v3 }
 0x18a   :  { %v8482_v33 = vpop.f32.mrf.mxu0  ;;  %v8546_v44 = vpop.f32.mrf.mxu1  ;;  %v9994_v0 = vld [vmem:[%s12870_s3 + $0x40] sm:$0xff]  }
 0x18b   :  { %v8106_v36 = vpack.c.bf16 %v1532_v30, %v1532_v30  ;;  %v1497_v37 = vadd.f32 %v11008_v56, %v8481_v31  ;;  %v8122_v45 = vpack.c.bf16 %v1821_v12, %v1821_v12  ;;  %v1786_v46 = vadd.f32 %v11008_v56, %v8545_v13  ;;  %v11114_v3 = vld [vmem:[#allocation2 + $0x20] sm:$0xff]  }
 0x18c   :  { %v8483_v39 = vpop.f32.mrf.mxu0  ;;  %v8547_v49 = vpop.f32.mrf.mxu1 }
 0x18d   :  { %1612 = vst.msk [vmem:[#allocation2 + $0x120] sm:$0xf] %vm447_vm0, %v8106_v36  ;;  %v1533_v1 = vmax.f32 %v1497_v37, 0.0  ;;  %v8484_v2 = vadd.f32 %v8483_v39, %v8482_v33  ;;  %1901 = vst.msk [vmem:[#allocation2 + $0x160] sm:$0xf] %vm447_vm0, %v8122_v45  ;;  %v1822_v51 = vmax.f32 %v1786_v46, 0.0  ;;  %v8548_v52 = vadd.f32 %v8547_v49, %v8546_v44 }
 0x18e   :  { %v8485_v4 = vpop.f32.mrf.mxu0  ;;  %v8549_v55 = vpop.f32.mrf.mxu1 }
 0x18f   :  { %v8107_v6 = vpack.c.bf16 %v1533_v1, %v1533_v1  ;;  %v1502_v7 = vadd.f32 %v11008_v56, %v8484_v2  ;;  %v8123_v58 = vpack.c.bf16 %v1822_v51, %v1822_v51  ;;  %v1791_v59 = vadd.f32 %v11008_v56, %v8548_v52 }
 0x190   :  { %v8486_v10 = vpop.f32.mrf.mxu0  ;;  %v11074_v43 = vld [vmem:[#allocation2 + $0x118] sm:$0xff]   ;;  %v8550_v63 = vpop.f32.mrf.mxu1 }
 0x191   :  { %1613 = vst.msk [vmem:[#allocation2 + $0x124] sm:$0xf] %vm447_vm0, %v8107_v6  ;;  %v1534_v14 = vmax.f32 %v1502_v7, 0.0  ;;  %v8487_v15 = vadd.f32 %v8486_v10, %v8485_v4  ;;  %9034 = vmatmul.mubr.msk.bf16.gmra.mxu0 %vm2633_vm2, %v11074_v43  ;;  %1902 = vst.msk [vmem:[#allocation2 + $0x164] sm:$0xf] %vm447_vm0, %v8123_v58  ;;  %v1823_v18 = vmax.f32 %v1791_v59, 0.0  ;;  %v8551_v19 = vadd.f32 %v8550_v63, %v8549_v55 }
 0x192   :  { %v8488_v16 = vpop.f32.mrf.mxu0  ;;  %9085 = vmatprep.mubr.msk.bf16.mxu0 %vm10201_vm1, %v10200_v9  ;;  %v8552_v22 = vpop.f32.mrf.mxu1  ;;  %v9983_v55 = vld [vmem:[%s12870_s3 + $0x38] sm:$0xff]   ;;  %v9981_v59 = vld [vmem:[#allocation2] sm:$0xff]  }
 0x193   :  { %v8108_v47 = vpack.c.bf16 %v1534_v14, %v1534_v14  ;;  %v1505_v48 = vadd.f32 %v11008_v56, %v8487_v15  ;;  %v8124_v24 = vpack.c.bf16 %v1823_v18, %v1823_v18  ;;  %v1794_v25 = vadd.f32 %v11008_v56, %v8551_v19  ;;  %v9980_v15 = vld [vmem:[%s12870_s3] sm:$0xff]  }
 0x194   :  { %v8489_v50 = vpop.f32.mrf.mxu0  ;;  %v8553_v28 = vpop.f32.mrf.mxu1 }
 0x195   :  { %1614 = vst.msk [vmem:[#allocation2 + $0x128] sm:$0xf] %vm447_vm0, %v8108_v47  ;;  %v1535_v53 = vmax.f32 %v1505_v48, 0.0  ;;  %v8490_v54 = vadd.f32 %v8489_v50, %v8488_v16  ;;  %1903 = vst.msk [vmem:[#allocation2 + $0x168] sm:$0xf] %vm447_vm0, %v8124_v24  ;;  %v1824_v30 = vmax.f32 %v1794_v25, 0.0  ;;  %v8554_v31 = vadd.f32 %v8553_v28, %v8552_v22 }
 0x196   :  { %v8491_v57 = vpop.f32.mrf.mxu0  ;;  %v8555_v34 = vpop.f32.mrf.mxu1  ;;  %v9989_v24 = vld [vmem:[%s12870_s3 + $0x30] sm:$0xff]  }
 0x197   :  { %v8109_v60 = vpack.c.bf16 %v1535_v53, %v1535_v53  ;;  %v1510_v61 = vadd.f32 %v11008_v56, %v8490_v54  ;;  %v8125_v36 = vpack.c.bf16 %v1824_v30, %v1824_v30  ;;  %v1799_v37 = vadd.f32 %v11008_v56, %v8554_v31 }
 0x198   :  { %v8492_v11 = vpop.f32.mrf.mxu0  ;;  %v8556_v41 = vpop.f32.mrf.mxu1 }
 0x199   :  { %1615 = vst.msk [vmem:[#allocation2 + $0x12c] sm:$0xf] %vm447_vm0, %v8109_v60  ;;  %v1536_v20 = vmax.f32 %v1510_v61, 0.0  ;;  %v8493_v21 = vadd.f32 %v8492_v11, %v8491_v57  ;;  %9086 = vmatmul.mubr.msk.bf16.vlgmr.msra.gmra.mxu0 %vm2633_vm2, %v11091_v17  ;;  %1904 = vst.msk [vmem:[#allocation2 + $0x16c] sm:$0xf] %vm447_vm0, %v8125_v36  ;;  %v1825_v4 = vmax.f32 %v1799_v37, 0.0  ;;  %v8557_v42 = vadd.f32 %v8556_v41, %v8555_v34 }
 0x19a   :  { %v8494_v23 = vpop.f32.mrf.mxu0  ;;  %9089 = vmatprep.mubr.msk.bf16.mxu0 %vm10201_vm1, %v10200_v9  ;;  %9162 = vmatpush3.bf16.msra.mxu0 %v9993_v62  ;;  %v8558_v7 = vpop.f32.mrf.mxu1  ;;  %v9982_v60 = vld [vmem:[#allocation2 + $0x30] sm:$0xff]  }
 0x19b   :  { %v8110_v26 = vpack.c.bf16 %v1536_v20, %v1536_v20  ;;  %v1513_v27 = vadd.f32 %v11008_v56, %v8493_v21  ;;  %9163 = vmatprep.subr.bf16.mxu0 %v10200_v9  ;;  %v8126_v10 = vpack.c.bf16 %v1825_v4, %v1825_v4  ;;  %v1802_v12 = vadd.f32 %v11008_v56, %v8557_v42 }
 0x19c   :  { %v8495_v29 = vpop.f32.mrf.mxu0  ;;  %v8559_v44 = vpop.f32.mrf.mxu1 }
 0x19d   :  { %1616 = vst.msk [vmem:[#allocation2 + $0x130] sm:$0xf] %vm447_vm0, %v8110_v26  ;;  %v1537_v32 = vmax.f32 %v1513_v27, 0.0  ;;  %v8496_v33 = vadd.f32 %v8495_v29, %v8494_v23  ;;  %1905 = vst.msk [vmem:[#allocation2 + $0x170] sm:$0xf] %vm447_vm0, %v8126_v10  ;;  %v1826_v45 = vmax.f32 %v1802_v12, 0.0  ;;  %v8560_v46 = vadd.f32 %v8559_v44, %v8558_v7 }
 0x19e   :  { %v8497_v35 = vpop.f32.mrf.mxu0  ;;  %9164 = vmatpush3.bf16.msra.mxu0 %v9994_v0  ;;  %v8561_v49 = vpop.f32.mrf.mxu1 }
 0x19f   :  { %v8111_v38 = vpack.c.bf16 %v1537_v32, %v1537_v32  ;;  %v1518_v39 = vadd.f32 %v11008_v56, %v8496_v33  ;;  %9241 = vmatprep.subr.bf16.mxu0 %v10200_v9  ;;  %v8127_v51 = vpack.c.bf16 %v1826_v45, %v1826_v45  ;;  %v1807_v52 = vadd.f32 %v11008_v56, %v8560_v46 }
 0x1a0   :  { %v8498_v1 = vpop.f32.mrf.mxu0  ;;  %v11112_v2 = vld [vmem:[#allocation2 + $0x128] sm:$0xff]   ;;  %v8562_v57 = vpop.f32.mrf.mxu1 }
 0x1a1   :  { %1617 = vst.msk [vmem:[#allocation2 + $0x134] sm:$0xf] %vm447_vm0, %v8111_v38  ;;  %v1538_v5 = vmax.f32 %v1518_v39, 0.0  ;;  %v8499_v6 = vadd.f32 %v8498_v1, %v8497_v35  ;;  %9038 = vmatmul.mubr.msk.bf16.vlgmr.msra.gmra.mxu1 %vm2633_vm2, %v11112_v2  ;;  %9090 = vmatmul.mubr.msk.bf16.gmra.mxu0 %vm2633_vm2, %v11114_v3  ;;  %1906 = vst.msk [vmem:[#allocation2 + $0x174] sm:$0xf] %vm447_vm0, %v8127_v51  ;;  %v1827_v61 = vmax.f32 %v1807_v52, 0.0 }
 0x1a2   :  { %v8580_v8 = vpop.f32.mrf.mxu0  ;;  %9042 = vmatpush3.bf16.msra.mxu1 %v9979_v40  ;;  %9045 = vmatprep.mubr.msk.bf16.mxu1 %vm10201_vm1, %v10200_v9  ;;  %v8563_v62 = vadd.f32 %v8562_v57, %v8561_v49  ;;  %v8644_v18 = vpop.f32.mrf.mxu1  ;;  %v11159_v38 = vld [vmem:[#allocation2 + $0x90] sm:$0xff]   ;;  %v11178_v51 = vld [vmem:[#allocation2 + $0xa0] sm:$0xff]  }
 0x1a3   :  { %v8112_v13 = vpack.c.bf16 %v1538_v5, %v1538_v5  ;;  %v1521_v14 = vadd.f32 %v11008_v56, %v8499_v6  ;;  %9043 = vmatprep.subr.bf16.mxu1 %v10200_v9  ;;  %9093 = vmatprep.mubr.msk.bf16.mxu0 %vm10201_vm1, %v10200_v9  ;;  %v8128_v20 = vpack.c.bf16 %v1827_v61, %v1827_v61 }
 0x1a4   :  { %v8581_v16 = vpop.f32.mrf.mxu0  ;;  %v1810_v21 = vadd.f32 %v11008_v56, %v8563_v62  ;;  %v8645_v25 = vpop.f32.mrf.mxu1 }
 0x1a5   :  { %1618 = vst.msk [vmem:[#allocation2 + $0x138] sm:$0xf] %vm447_vm0, %v8112_v13  ;;  %v1539_v47 = vmax.f32 %v1521_v14, 0.0  ;;  %v8582_v48 = vadd.f32 %v8581_v16, %v8580_v8  ;;  %1907 = vst.msk [vmem:[#allocation2 + $0x178] sm:$0xf] %vm447_vm0, %v8128_v20  ;;  %v8646_v0 = vadd.f32 %v8645_v25, %v8644_v18 }
 0x1a6   :  { %v8583_v50 = vpop.f32.mrf.mxu0  ;;  %9044 = vmatpush3.bf16.msra.mxu1 %v9980_v15  ;;  %v1828_v27 = vmax.f32 %v1810_v21, 0.0  ;;  %v8647_v30 = vpop.f32.mrf.mxu1 }
 0x1a7   :  { %v8113_v53 = vpack.c.bf16 %v1539_v47, %v1539_v47  ;;  %v2040_v54 = vadd.f32 %v11008_v56, %v8582_v48  ;;  %9121 = vmatprep.subr.bf16.mxu1 %v10200_v9  ;;  %v2329_v33 = vadd.f32 %v11008_v56, %v8646_v0 }
 0x1a8   :  { %v8584_v58 = vpop.f32.mrf.mxu0  ;;  %v8129_v32 = vpack.c.bf16 %v1828_v27, %v1828_v27  ;;  %v8648_v36 = vpop.f32.mrf.mxu1 }
 0x1a9   :  { %1619 = vst.msk [vmem:[#allocation2 + $0x13c] sm:$0xf] %vm447_vm0, %v8113_v53  ;;  %v2102_v63 = vmax.f32 %v2040_v54, 0.0  ;;  %v8585_v11 = vadd.f32 %v8584_v58, %v8583_v50  ;;  %9046 = vmatmul.mubr.msk.bf16.vlgmr.msra.gmra.mxu1 %vm2633_vm2, %v9981_v59  ;;  %9094 = vmatmul.mubr.msk.bf16.gmra.mxu0 %vm2633_vm2, %v9982_v60  ;;  %v2391_v39 = vmax.f32 %v2329_v33, 0.0  ;;  %v8649_v40 = vadd.f32 %v8648_v36, %v8647_v30 }
 0x1aa   :  { %v8586_v19 = vpop.f32.mrf.mxu0  ;;  %9122 = vmatpush3.bf16.msra.mxu1 %v9983_v55  ;;  %9049 = vmatprep.mubr.msk.bf16.mxu1 %vm10201_vm1, %v10200_v9  ;;  %1908 = vst.msk [vmem:[#allocation2 + $0x17c] sm:$0xf] %vm447_vm0, %v8129_v32  ;;  %v8650_v4 = vpop.f32.mrf.mxu1 }
 0x1ab   :  { %v8130_v22 = vpack.c.bf16 %v2102_v63, %v2102_v63  ;;  %v2043_v23 = vadd.f32 %v11008_v56, %v8585_v11  ;;  %9097 = vmatprep.mubr.msk.bf16.mxu0 %vm10201_vm1, %v10200_v9  ;;  %9123 = vmatprep.subr.bf16.mxu1 %v10200_v9  ;;  %v8146_v5 = vpack.c.bf16 %v2391_v39, %v2391_v39 }
 0x1ac   :  { %v8587_v26 = vpop.f32.mrf.mxu0  ;;  %v2332_v6 = vadd.f32 %v11008_v56, %v8649_v40  ;;  %v8651_v10 = vpop.f32.mrf.mxu1 }
 0x1ad   :  { %2182 = vst.msk [vmem:[#allocation2 + $0x180] sm:$0xf] %vm447_vm0, %v8130_v22  ;;  %v2103_v28 = vmax.f32 %v2043_v23, 0.0  ;;  %v8588_v29 = vadd.f32 %v8587_v26, %v8586_v19  ;;  %2471 = vst.msk [vmem:[#allocation2 + $0x1c0] sm:$0xf] %vm447_vm0, %v8146_v5  ;;  %v8652_v13 = vadd.f32 %v8651_v10, %v8650_v4 }
 0x1ae   :  { %v8589_v31 = vpop.f32.mrf.mxu0  ;;  %9124 = vmatpush3.bf16.msra.mxu1 %v9989_v24  ;;  %v8653_v44 = vpop.f32.mrf.mxu1 }
 0x1af   :  { %v8131_v34 = vpack.c.bf16 %v2103_v28, %v2103_v28  ;;  %v2048_v35 = vadd.f32 %v11008_v56, %v8588_v29  ;;  %9201 = vmatprep.subr.bf16.mxu1 %v10200_v9  ;;  %v2337_v46 = vadd.f32 %v11008_v56, %v8652_v13  ;;  %v11196_v28 = vld [vmem:[#allocation2 + $0x80] sm:$0xff]   ;;  %v9987_v29 = vld [vmem:[#allocation2 + $0xb0] sm:$0xff]  }
 0x1b0   :  { %v8590_v37 = vpop.f32.mrf.mxu0  ;;  %v8654_v49 = vpop.f32.mrf.mxu1 }
 0x1b1   :  { %2183 = vst.msk [vmem:[#allocation2 + $0x184] sm:$0xf] %vm447_vm0, %v8131_v34  ;;  %v2104_v41 = vmax.f32 %v2048_v35, 0.0  ;;  %v8591_v1 = vadd.f32 %v8590_v37, %v8589_v31  ;;  %9050 = vmatmul.mubr.msk.bf16.gmra.mxu1 %vm2633_vm2, %v11091_v17  ;;  %9098 = vmatmul.mubr.msk.bf16.gmra.mxu0 %vm2633_vm2, %v11159_v38  ;;  %v2392_v17 = vmax.f32 %v2332_v6, 0.0  ;;  %v2393_v52 = vmax.f32 %v2337_v46, 0.0 }
 0x1b2   :  { %v8592_v42 = vpop.f32.mrf.mxu0  ;;  %9053 = vmatprep.mubr.msk.bf16.mxu1 %vm10201_vm1, %v10200_v9  ;;  %9101 = vmatprep.mubr.msk.bf16.mxu0 %vm10201_vm1, %v10200_v9  ;;  %v8655_v53 = vadd.f32 %v8654_v49, %v8653_v44  ;;  %v8656_v57 = vpop.f32.mrf.mxu1  ;;  %v11213_v44 = vld [vmem:[#allocation2 + $0x110] sm:$0xff]  }
 0x1b3   :  { %v8132_v7 = vpack.c.bf16 %v2104_v41, %v2104_v41  ;;  %v2051_v8 = vadd.f32 %v11008_v56, %v8591_v1  ;;  %v8147_v45 = vpack.c.bf16 %v2392_v17, %v2392_v17  ;;  %v8148_v59 = vpack.c.bf16 %v2393_v52, %v2393_v52 }
 0x1b4   :  { %v8593_v12 = vpop.f32.mrf.mxu0  ;;  %v2340_v60 = vadd.f32 %v11008_v56, %v8655_v53  ;;  %v8657_v63 = vpop.f32.mrf.mxu1 }
 0x1b5   :  { %2184 = vst.msk [vmem:[#allocation2 + $0x188] sm:$0xf] %vm447_vm0, %v8132_v7  ;;  %v2105_v14 = vmax.f32 %v2051_v8, 0.0  ;;  %v8594_v15 = vadd.f32 %v8593_v12, %v8592_v42  ;;  %2472 = vst.msk [vmem:[#allocation2 + $0x1c4] sm:$0xf] %vm447_vm0, %v8147_v45  ;;  %v8658_v18 = vadd.f32 %v8657_v63, %v8656_v57 }
 0x1b6   :  { %v8595_v16 = vpop.f32.mrf.mxu0  ;;  %2473 = vst.msk [vmem:[#allocation2 + $0x1c8] sm:$0xf] %vm447_vm0, %v8148_v59  ;;  %v8659_v21 = vpop.f32.mrf.mxu1 }
 0x1b7   :  { %v8133_v47 = vpack.c.bf16 %v2105_v14, %v2105_v14  ;;  %v2056_v48 = vadd.f32 %v11008_v56, %v8594_v15  ;;  %v2345_v24 = vadd.f32 %v11008_v56, %v8658_v18 }
 0x1b8   :  { %v8596_v50 = vpop.f32.mrf.mxu0  ;;  %v8660_v27 = vpop.f32.mrf.mxu1 }
 0x1b9   :  { %2185 = vst.msk [vmem:[#allocation2 + $0x18c] sm:$0xf] %vm447_vm0, %v8133_v47  ;;  %v2106_v54 = vmax.f32 %v2056_v48, 0.0  ;;  %v8597_v55 = vadd.f32 %v8596_v50, %v8595_v16  ;;  %9054 = vmatmul.mubr.msk.bf16.gmra.mxu1 %vm2633_vm2, %v11114_v3  ;;  %9102 = vmatmul.mubr.msk.bf16.gmra.mxu0 %vm2633_vm2, %v11178_v51  ;;  %v2394_v3 = vmax.f32 %v2340_v60, 0.0  ;;  %v2395_v30 = vmax.f32 %v2345_v24, 0.0 }
 0x1ba   :  { %v8598_v58 = vpop.f32.mrf.mxu0  ;;  %9057 = vmatprep.mubr.msk.bf16.mxu1 %vm10201_vm1, %v10200_v9  ;;  %9105 = vmatprep.mubr.msk.bf16.mxu0 %vm10201_vm1, %v10200_v9  ;;  %v8661_v31 = vadd.f32 %v8660_v27, %v8659_v21  ;;  %v8662_v34 = vpop.f32.mrf.mxu1  ;;  %v11224_v50 = vld [vmem:[%s12871_s2] ss:$0 sm:$0xff] }
 0x1bb   :  { %v8134_v61 = vpack.c.bf16 %v2106_v54, %v2106_v54  ;;  %v2059_v62 = vadd.f32 %v11008_v56, %v8597_v55  ;;  %v8149_v23 = vpack.c.bf16 %v2394_v3, %v2394_v3  ;;  %v8150_v36 = vpack.c.bf16 %v2395_v30, %v2395_v30 }
 0x1bc   :  { %v8599_v11 = vpop.f32.mrf.mxu0  ;;  %v2348_v37 = vadd.f32 %v11008_v56, %v8661_v31  ;;  %v8663_v41 = vpop.f32.mrf.mxu1 }
 0x1bd   :  { %2186 = vst.msk [vmem:[#allocation2 + $0x190] sm:$0xf] %vm447_vm0, %v8134_v61  ;;  %v2107_v19 = vmax.f32 %v2059_v62, 0.0  ;;  %v8600_v20 = vadd.f32 %v8599_v11, %v8598_v58  ;;  %2474 = vst.msk [vmem:[#allocation2 + $0x1cc] sm:$0xf] %vm447_vm0, %v8149_v23  ;;  %v8664_v42 = vadd.f32 %v8663_v41, %v8662_v34 }
 0x1be   :  { %v8601_v22 = vpop.f32.mrf.mxu0  ;;  %2475 = vst.msk [vmem:[#allocation2 + $0x1d0] sm:$0xf] %vm447_vm0, %v8150_v36  ;;  %v2396_v4 = vmax.f32 %v2348_v37, 0.0  ;;  %v8665_v7 = vpop.f32.mrf.mxu1 }
 0x1bf   :  { %v8135_v25 = vpack.c.bf16 %v2107_v19, %v2107_v19  ;;  %v2064_v26 = vadd.f32 %v11008_v56, %v8600_v20  ;;  %v2353_v12 = vadd.f32 %v11008_v56, %v8664_v42 }
 0x1c0   :  { %v8602_v0 = vpop.f32.mrf.mxu0  ;;  %v8151_v10 = vpack.c.bf16 %v2396_v4, %v2396_v4  ;;  %v8666_v14 = vpop.f32.mrf.mxu1 }
 0x1c1   :  { %2187 = vst.msk [vmem:[#allocation2 + $0x194] sm:$0xf] %vm447_vm0, %v8135_v25  ;;  %v2108_v32 = vmax.f32 %v2064_v26, 0.0  ;;  %v8603_v33 = vadd.f32 %v8602_v0, %v8601_v22  ;;  %9058 = vmatmul.mubr.msk.bf16.gmra.mxu1 %vm2633_vm2, %v11196_v28  ;;  %9106 = vmatmul.mubr.msk.bf16.gmra.mxu0 %vm2633_vm2, %v9987_v29  ;;  %v2397_v16 = vmax.f32 %v2353_v12, 0.0  ;;  %v8667_v45 = vadd.f32 %v8666_v14, %v8665_v7  ;;  %v11236_v22 = vld [vmem:[#allocation2 + $0x120] sm:$0xff]  }
 0x1c2   :  { %v8604_v35 = vpop.f32.mrf.mxu0  ;;  %9061 = vmatprep.mubr.msk.bf16.mxu1 %vm10201_vm1, %v10200_v9  ;;  %9109 = vmatprep.mubr.msk.bf16.mxu0 %vm10201_vm1, %v10200_v9  ;;  %2476 = vst.msk [vmem:[#allocation2 + $0x1d4] sm:$0xf] %vm447_vm0, %v8151_v10  ;;  %v8668_v48 = vpop.f32.mrf.mxu1  ;;  %v11254_v10 = vld [vmem:[#allocation2 + $0x100] sm:$0xff]  }
 0x1c3   :  { %v8136_v39 = vpack.c.bf16 %v2108_v32, %v2108_v32  ;;  %v2067_v40 = vadd.f32 %v11008_v56, %v8603_v33  ;;  %v2356_v52 = vadd.f32 %v11224_v50, %v8667_v45 }
 0x1c4   :  { %v8605_v1 = vpop.f32.mrf.mxu0  ;;  %v8669_v55 = vpop.f32.mrf.mxu1 }
 0x1c5   :  { %2188 = vst.msk [vmem:[#allocation2 + $0x198] sm:$0xf] %vm447_vm0, %v8136_v39  ;;  %v2109_v5 = vmax.f32 %v2067_v40, 0.0  ;;  %v8606_v6 = vadd.f32 %v8605_v1, %v8604_v35  ;;  %v2398_v58 = vmax.f32 %v2356_v52, 0.0  ;;  %v8670_v59 = vadd.f32 %v8669_v55, %v8668_v48  ;;  %v9992_v1 = vld [vmem:[#allocation2 + $0x130] sm:$0xff]  }
 0x1c6   :  { %v8607_v8 = vpop.f32.mrf.mxu0  ;;  %v8671_v62 = vpop.f32.mrf.mxu1 }
 0x1c7   :  { %v8137_v17 = vpack.c.bf16 %v2109_v5, %v2109_v5  ;;  %v2072_v13 = vadd.f32 %v11008_v56, %v8606_v6  ;;  %v8152_v56 = vpack.c.bf16 %v2397_v16, %v2397_v16  ;;  %v8153_v11 = vpack.c.bf16 %v2398_v58, %v2398_v58 }
 0x1c8   :  { %v8608_v15 = vpop.f32.mrf.mxu0  ;;  %v2361_v3 = vadd.f32 %v11224_v50, %v8670_v59  ;;  %v8672_v20 = vpop.f32.mrf.mxu1 }
 0x1c9   :  { %2189 = vst.msk [vmem:[#allocation2 + $0x19c] sm:$0xf] %vm447_vm0, %v8137_v17  ;;  %v2110_v46 = vmax.f32 %v2072_v13, 0.0  ;;  %v8609_v47 = vadd.f32 %v8608_v15, %v8607_v8  ;;  %9062 = vmatmul.mubr.msk.bf16.gmra.mxu1 %vm2633_vm2, %v11159_v38  ;;  %9110 = vmatmul.mubr.msk.bf16.gmra.mxu0 %vm2633_vm2, %v11213_v44  ;;  %2477 = vst.msk [vmem:[#allocation2 + $0x1d8] sm:$0xf] %vm447_vm0, %v8152_v56  ;;  %v8673_v24 = vadd.f32 %v8672_v20, %v8671_v62 }
 0x1ca   :  { %v8610_v49 = vpop.f32.mrf.mxu0  ;;  %9065 = vmatprep.mubr.msk.bf16.mxu1 %vm10201_vm1, %v10200_v9  ;;  %9113 = vmatprep.mubr.msk.bf16.mxu0 %vm10201_vm1, %v10200_v9  ;;  %2478 = vst.msk [vmem:[#allocation2 + $0x1dc] sm:$0xf] %vm447_vm0, %v8153_v11  ;;  %v2399_v23 = vmax.f32 %v2361_v3, 0.0  ;;  %v8674_v27 = vpop.f32.mrf.mxu1  ;;  %v9995_v3 = vld [vmem:[#allocation2 + $0x40] sm:$0xff]  }
 0x1cb   :  { %v8138_v53 = vpack.c.bf16 %v2110_v46, %v2110_v46  ;;  %v2075_v54 = vadd.f32 %v11224_v50, %v8609_v47  ;;  %v2364_v30 = vadd.f32 %v11224_v50, %v8673_v24 }
 0x1cc   :  { %v8611_v57 = vpop.f32.mrf.mxu0  ;;  %v8154_v29 = vpack.c.bf16 %v2399_v23, %v2399_v23  ;;  %v8675_v33 = vpop.f32.mrf.mxu1 }
 0x1cd   :  { %2190 = vst.msk [vmem:[#allocation2 + $0x1a0] sm:$0xf] %vm447_vm0, %v8138_v53  ;;  %v2111_v60 = vmax.f32 %v2075_v54, 0.0  ;;  %v8612_v61 = vadd.f32 %v8611_v57, %v8610_v49  ;;  %v2400_v35 = vmax.f32 %v2364_v30, 0.0  ;;  %v8676_v36 = vadd.f32 %v8675_v33, %v8674_v27 }
 0x1ce   :  { %v8613_v63 = vpop.f32.mrf.mxu0  ;;  %2479 = vst.msk [vmem:[#allocation2 + $0x1e0] sm:$0xf] %vm447_vm0, %v8154_v29  ;;  %v8677_v40 = vpop.f32.mrf.mxu1 }
 0x1cf   :  { %v8139_v18 = vpack.c.bf16 %v2111_v60, %v2111_v60  ;;  %v2080_v19 = vadd.f32 %v11224_v50, %v8612_v61  ;;  %v8155_v4 = vpack.c.bf16 %v2400_v35, %v2400_v35  ;;  %v2369_v42 = vadd.f32 %v11224_v50, %v8676_v36 }
 0x1d0   :  { %v8614_v21 = vpop.f32.mrf.mxu0  ;;  %v8678_v7 = vpop.f32.mrf.mxu1 }
 0x1d1   :  { %2191 = vst.msk [vmem:[#allocation2 + $0x1a4] sm:$0xf] %vm447_vm0, %v8139_v18  ;;  %v2112_v25 = vmax.f32 %v2080_v19, 0.0  ;;  %v8615_v26 = vadd.f32 %v8614_v21, %v8613_v63  ;;  %9066 = vmatmul.mubr.msk.bf16.gmra.mxu1 %vm2633_vm2, %v11178_v51  ;;  %9114 = vmatmul.mubr.msk.bf16.gmra.mxu0 %vm2633_vm2, %v11236_v22  ;;  %2480 = vst.msk [vmem:[#allocation2 + $0x1e4] sm:$0xf] %vm447_vm0, %v8155_v4  ;;  %v2401_v12 = vmax.f32 %v2369_v42, 0.0 }
 0x1d2   :  { %v8616_v0 = vpop.f32.mrf.mxu0  ;;  %9069 = vmatprep.mubr.msk.bf16.mxu1 %vm10201_vm1, %v10200_v9  ;;  %9117 = vmatprep.mubr.msk.bf16.mxu0 %vm10201_vm1, %v10200_v9  ;;  %v8679_v17 = vadd.f32 %v8678_v7, %v8677_v40  ;;  %v8680_v15 = vpop.f32.mrf.mxu1  ;;  %v10008_v18 = vld [vmem:[%s12870_s3 + $0x68] sm:$0xff]   ;;  %v11296_v42 = vld [vmem:[#allocation2 + $0x50] sm:$0xff]  }
 0x1d3   :  { %v8140_v31 = vpack.c.bf16 %v2112_v25, %v2112_v25  ;;  %v2083_v32 = vadd.f32 %v11224_v50, %v8615_v26  ;;  %v8156_v45 = vpack.c.bf16 %v2401_v12, %v2401_v12 }
 0x1d4   :  { %v8617_v34 = vpop.f32.mrf.mxu0  ;;  %v2372_v46 = vadd.f32 %v11224_v50, %v8679_v17  ;;  %v8681_v49 = vpop.f32.mrf.mxu1 }
 0x1d5   :  { %2192 = vst.msk [vmem:[#allocation2 + $0x1a8] sm:$0xf] %vm447_vm0, %v8140_v31  ;;  %v2113_v37 = vmax.f32 %v2083_v32, 0.0  ;;  %v8618_v39 = vadd.f32 %v8617_v34, %v8616_v0  ;;  %2481 = vst.msk [vmem:[#allocation2 + $0x1e8] sm:$0xf] %vm447_vm0, %v8156_v45  ;;  %v8682_v53 = vadd.f32 %v8681_v49, %v8680_v15  ;;  %v10009_v32 = vld [vmem:[%s12870_s3 + $0x60] sm:$0xff]  }
 0x1d6   :  { %v8619_v41 = vpop.f32.mrf.mxu0  ;;  %v2402_v52 = vmax.f32 %v2372_v46, 0.0  ;;  %v8683_v57 = vpop.f32.mrf.mxu1  ;;  %v11318_v46 = vld [vmem:[#allocation2 + $0x60] sm:$0xff]  }
 0x1d7   :  { %v8141_v5 = vpack.c.bf16 %v2113_v37, %v2113_v37  ;;  %v2088_v6 = vadd.f32 %v11224_v50, %v8618_v39  ;;  %v2377_v60 = vadd.f32 %v11224_v50, %v8682_v53  ;;  %v11336_v53 = vld [vmem:[#allocation2 + $0xc0] sm:$0xff]  }
 0x1d8   :  { %v8620_v8 = vpop.f32.mrf.mxu0  ;;  %v8157_v59 = vpack.c.bf16 %v2402_v52, %v2402_v52  ;;  %v8684_v63 = vpop.f32.mrf.mxu1 }
 0x1d9   :  { %2193 = vst.msk [vmem:[#allocation2 + $0x1ac] sm:$0xf] %vm447_vm0, %v8141_v5  ;;  %v2114_v13 = vmax.f32 %v2088_v6, 0.0  ;;  %v8621_v14 = vadd.f32 %v8620_v8, %v8619_v41  ;;  %9070 = vmatmul.mubr.msk.bf16.gmra.mxu1 %vm2633_vm2, %v11254_v10  ;;  %9118 = vmatmul.mubr.msk.bf16.gmra.mxu0 %vm2633_vm2, %v9992_v1  ;;  %v2403_v19 = vmax.f32 %v2377_v60, 0.0  ;;  %v8685_v20 = vadd.f32 %v8684_v63, %v8683_v57  ;;  %v11346_v57 = vld [vmem:[#allocation2 + $0xd0] sm:$0xff]   ;;  %v11361_v63 = vld [vmem:[#allocation2 + $0x98] sm:$0xff]  }
 0x1da   :  { %v8622_v16 = vpop.f32.mrf.mxu0  ;;  %9073 = vmatprep.mubr.msk.bf16.mxu1 %vm10201_vm1, %v10200_v9  ;;  %9165 = vmatprep.mubr.msk.bf16.mxu0 %vm10201_vm1, %v10200_v9  ;;  %2482 = vst.msk [vmem:[#allocation2 + $0x1ec] sm:$0xf] %vm447_vm0, %v8157_v59  ;;  %v8686_v24 = vpop.f32.mrf.mxu1 }
 0x1db   :  { %v8142_v47 = vpack.c.bf16 %v2114_v13, %v2114_v13  ;;  %v2091_v48 = vadd.f32 %v11224_v50, %v8621_v14  ;;  %v8158_v26 = vpack.c.bf16 %v2403_v19, %v2403_v19  ;;  %v2380_v27 = vadd.f32 %v11224_v50, %v8685_v20 }
 0x1dc   :  { %v8623_v56 = vpop.f32.mrf.mxu0  ;;  %v8687_v30 = vpop.f32.mrf.mxu1 }
 0x1dd   :  { %2194 = vst.msk [vmem:[#allocation2 + $0x1b0] sm:$0xf] %vm447_vm0, %v8142_v47  ;;  %v2115_v54 = vmax.f32 %v2091_v48, 0.0  ;;  %v8624_v55 = vadd.f32 %v8623_v56, %v8622_v16  ;;  %2483 = vst.msk [vmem:[#allocation2 + $0x1f0] sm:$0xf] %vm447_vm0, %v8158_v26  ;;  %v2404_v33 = vmax.f32 %v2380_v27, 0.0  ;;  %v8688_v34 = vadd.f32 %v8687_v30, %v8686_v24 }
 0x1de   :  { %v8625_v58 = vpop.f32.mrf.mxu0  ;;  %v8689_v36 = vpop.f32.mrf.mxu1  ;;  %v9998_v16 = vld [vmem:[%s12870_s3 + $0x58] sm:$0xff]   ;;  %v10004_v48 = vld [vmem:[%s12870_s3 + $0x50] sm:$0xff]   ;;  %v11399_v26 = vld [vmem:[#allocation2 + $0x160] sm:$0xff]  }
 0x1df   :  { %v8143_v61 = vpack.c.bf16 %v2115_v54, %v2115_v54  ;;  %v2096_v62 = vadd.f32 %v11224_v50, %v8624_v55  ;;  %v8159_v39 = vpack.c.bf16 %v2404_v33, %v2404_v33  ;;  %v2385_v40 = vadd.f32 %v11224_v50, %v8688_v34  ;;  %v10171_v47 = vld [vmem:[#allocation2 + $0x18] sm:$0xff]   ;;  %v10172_v54 = vld [vmem:[#allocation2 + $0x28] sm:$0xff]   ;;  %v11389_v24 = vld [vmem:[#allocation2 + $0x150] sm:$0xff]  }
 0x1e0   :  { %v8626_v11 = vpop.f32.mrf.mxu0  ;;  %v8690_v1 = vpop.f32.mrf.mxu1  ;;  %v10000_v55 = vld [vmem:[#allocation2 + $0x38] sm:$0xff]   ;;  %v10011_v33 = vld [vmem:[#allocation2 + $0x48] sm:$0xff]   ;;  %v10012_v34 = vld [vmem:[#allocation2 + $0x70] sm:$0xff]  }
 0x1e1   :  { %2195 = vst.msk [vmem:[#allocation2 + $0x1b4] sm:$0xf] %vm447_vm0, %v8143_v61  ;;  %v2116_v21 = vmax.f32 %v2096_v62, 0.0  ;;  %v8627_v23 = vadd.f32 %v8626_v11, %v8625_v58  ;;  %9074 = vmatmul.mubr.msk.bf16.gmra.mxu1 %vm2633_vm2, %v11213_v44  ;;  %9166 = vmatmul.mubr.msk.bf16.vlgmr.msra.gmra.mxu0 %vm2633_vm2, %v9995_v3  ;;  %2484 = vst.msk [vmem:[#allocation2 + $0x1f4] sm:$0xf] %vm447_vm0, %v8159_v39  ;;  %v2405_v5 = vmax.f32 %v2385_v40, 0.0 }
 0x1e2   :  { %v11276_v25 = vpop.f32.mrf.mxu0  ;;  %9077 = vmatprep.mubr.msk.bf16.mxu1 %vm10201_vm1, %v10200_v9  ;;  %9169 = vmatprep.mubr.msk.bf16.mxu0 %vm10201_vm1, %v10200_v9  ;;  %v8691_v6 = vadd.f32 %v8690_v1, %v8689_v36  ;;  %v11359_v62 = vld [vmem:[#allocation2 + $0xe0] sm:$0xff]   ;;  %v11449_v36 = vld [vmem:[#allocation2 + $0x58] sm:$0xff]  }
 0x1e3   :  { %v8144_v0 = vpack.c.bf16 %v2116_v21, %v2116_v21  ;;  %v2099_v29 = vadd.f32 %v11224_v50, %v8627_v23  ;;  %9242 = vmatpush3.bf16.msra.mxu0 %v10008_v18  ;;  %v8160_v8 = vpack.c.bf16 %v2405_v5, %v2405_v5  ;;  %v11371_v11 = vld [vmem:[#allocation2 + $0x140] sm:$0xff]   ;;  %v11375_v18 = vld [vmem:[#allocation2 + $0xa8] sm:$0xff]   ;;  %v11387_v23 = vld [vmem:[#allocation2 + $0xb8] sm:$0xff]  }
 0x1e4   :  { %v9007_v31 = vpop.f32.mrf.mxu0  ;;  %9243 = vmatprep.subr.bf16.mxu0 %v10200_v9  ;;  %v2388_v12 = vadd.f32 %v11224_v50, %v8691_v6  ;;  %v10017_v5 = vld [vmem:[#allocation2 + $0xf0] sm:$0xff]  }
 0x1e5   :  { %2196 = vst.msk [vmem:[#allocation2 + $0x1b8] sm:$0xf] %vm447_vm0, %v8144_v0  ;;  %v2117_v35 = vmax.f32 %v2099_v29, 0.0  ;;  %2485 = vst.msk [vmem:[#allocation2 + $0x1f8] sm:$0xf] %vm447_vm0, %v8160_v8  ;;  %v10023_v31 = vld [vmem:[%s12870_s3 + $0x88] sm:$0xff]  }
 0x1e6   :  { %v11293_v37 = vpop.f32.mrf.mxu0  ;;  %v2406_v13 = vmax.f32 %v2388_v12, 0.0 }
 0x1e7   :  { %v8145_v41 = vpack.c.bf16 %v2117_v35, %v2117_v35  ;;  %9244 = vmatpush3.bf16.msra.mxu0 %v10009_v32  ;;  %v10010_v32 = vld [vmem:[#allocation2 + $0x138] sm:$0xff]   ;;  %v10019_v35 = vld [vmem:[%s12870_s3 + $0x70] sm:$0xff]  }
 0x1e8   :  { %v9008_v4 = vpop.f32.mrf.mxu0  ;;  %9321 = vmatprep.subr.bf16.mxu0 %v10200_v9  ;;  %v8161_v15 = vpack.c.bf16 %v2406_v13, %v2406_v13  ;;  %v11484_v13 = vld [vmem:[#allocation2 + $0xd8] sm:$0xff]  }
 0x1e9   :  { %2197 = vst.msk [vmem:[#allocation2 + $0x1bc] sm:$0xf] %vm447_vm0, %v8145_v41  ;;  %9078 = vmatmul.mubr.msk.bf16.gmra.mxu1 %vm2633_vm2, %v11236_v22  ;;  %9170 = vmatmul.mubr.msk.bf16.gmra.mxu0 %vm2633_vm2, %v11296_v42  ;;  %v11464_v4 = vld [vmem:[#allocation2 + $0x68] sm:$0xff]  }
 0x1ea   :  { %v11301_v7 = vpop.f32.mrf.mxu0  ;;  %9125 = vmatprep.mubr.msk.bf16.mxu1 %vm10201_vm1, %v10200_v9  ;;  %9173 = vmatprep.mubr.msk.bf16.mxu0 %vm10201_vm1, %v10200_v9  ;;  %2486 = vst.msk [vmem:[#allocation2 + $0x1fc] sm:$0xf] %vm447_vm0, %v8161_v15 }
 0x1ec   :  { %v9011_v17 = vpop.f32.mrf.mxu0 }
 0x1ee   :  { %v11313_v14 = vpop.f32.mrf.mxu0 }
 0x1f0   :  { %v9012_v45 = vpop.f32.mrf.mxu0 }
 0x1f1   :  { %9126 = vmatmul.mubr.msk.bf16.vlgmr.msra.gmra.mxu1 %vm2633_vm2, %v10171_v47  ;;  %9174 = vmatmul.mubr.msk.bf16.gmra.mxu0 %vm2633_vm2, %v11318_v46  ;;  %v11494_v47 = vld [vmem:[#allocation2 + $0xe8] sm:$0xff]  }
 0x1f2   :  { %v11321_v50 = vpop.f32.mrf.mxu0  ;;  %9202 = vmatpush3.bf16.msra.mxu1 %v9998_v16  ;;  %9129 = vmatprep.mubr.msk.bf16.mxu1 %vm10201_vm1, %v10200_v9 }
 0x1f3   :  { %9177 = vmatprep.mubr.msk.bf16.mxu0 %vm10201_vm1, %v10200_v9  ;;  %9203 = vmatprep.subr.bf16.mxu1 %v10200_v9 }
 0x1f4   :  { %v9015_v49 = vpop.f32.mrf.mxu0 }
 0x1f6   :  { %v11334_v56 = vpop.f32.mrf.mxu0  ;;  %9204 = vmatpush3.bf16.msra.mxu1 %v10004_v48 }
 0x1f7   :  { %9281 = vmatprep.subr.bf16.mxu1 %v10200_v9 }
 0x1f8   :  { %v9016_v52 = vpop.f32.mrf.mxu0 }
 0x1f9   :  { %9130 = vmatmul.mubr.msk.bf16.gmra.mxu1 %vm2633_vm2, %v10172_v54  ;;  %9178 = vmatmul.mubr.msk.bf16.gmra.mxu0 %vm2633_vm2, %v11336_v53 }
 0x1fa   :  { %9133 = vmatprep.mubr.msk.bf16.mxu1 %vm10201_vm1, %v10200_v9  ;;  %9181 = vmatprep.mubr.msk.bf16.mxu0 %vm10201_vm1, %v10200_v9 }
 0x201   :  { %v11348_v58 = vpop.f32.mrf.mxu0  ;;  %9134 = vmatmul.mubr.msk.bf16.gmra.mxu1 %vm2633_vm2, %v10000_v55  ;;  %9182 = vmatmul.mubr.msk.bf16.gmra.mxu0 %vm2633_vm2, %v11346_v57 }
 0x202   :  { %9137 = vmatprep.mubr.msk.bf16.mxu1 %vm10201_vm1, %v10200_v9  ;;  %9185 = vmatprep.mubr.msk.bf16.mxu0 %vm10201_vm1, %v10200_v9 }
 0x203   :  { %v9019_v59 = vpop.f32.mrf.mxu0 }
 0x205   :  { %v11357_v60 = vpop.f32.mrf.mxu0 }
 0x207   :  { %v9020_v61 = vpop.f32.mrf.mxu0 }
 0x209   :  { %9138 = vmatmul.mubr.msk.bf16.gmra.mxu1 %vm2633_vm2, %v11361_v63  ;;  %9186 = vmatmul.mubr.msk.bf16.gmra.mxu0 %vm2633_vm2, %v11359_v62 }
 0x20a   :  { %9141 = vmatprep.mubr.msk.bf16.mxu1 %vm10201_vm1, %v10200_v9  ;;  %9189 = vmatprep.mubr.msk.bf16.mxu0 %vm10201_vm1, %v10200_v9 }
 0x211   :  { %v11373_v3 = vpop.f32.mrf.mxu0  ;;  %9142 = vmatmul.mubr.msk.bf16.gmra.mxu1 %vm2633_vm2, %v11375_v18  ;;  %9190 = vmatmul.mubr.msk.bf16.gmra.mxu0 %vm2633_vm2, %v11371_v11 }
 0x212   :  { %9145 = vmatprep.mubr.msk.bf16.mxu1 %vm10201_vm1, %v10200_v9  ;;  %9193 = vmatprep.mubr.msk.bf16.mxu0 %vm10201_vm1, %v10200_v9 }
 0x213   :  { %v9023_v19 = vpop.f32.mrf.mxu0 }
 0x215   :  { %v11385_v20 = vpop.f32.mrf.mxu0 }
 0x217   :  { %v9024_v21 = vpop.f32.mrf.mxu0 }
 0x218   :  { %v10021_v21 = vld [vmem:[#allocation2 + $0x148] sm:$0xff]  }
 0x219   :  { %9146 = vmatmul.mubr.msk.bf16.gmra.mxu1 %vm2633_vm2, %v11387_v23  ;;  %9194 = vmatmul.mubr.msk.bf16.gmra.mxu0 %vm2633_vm2, %v11389_v24 }
 0x21a   :  { %9149 = vmatprep.mubr.msk.bf16.mxu1 %vm10201_vm1, %v10200_v9  ;;  %9197 = vmatprep.mubr.msk.bf16.mxu0 %vm10201_vm1, %v10200_v9 }
 0x221   :  { %v11401_v27 = vpop.f32.mrf.mxu0  ;;  %9150 = vmatmul.mubr.msk.bf16.gmra.mxu1 %vm2633_vm2, %v11074_v43  ;;  %9198 = vmatmul.mubr.msk.bf16.gmra.mxu0 %vm2633_vm2, %v11399_v26  ;;  %v10024_v43 = vld [vmem:[%s12870_s3 + $0x80] sm:$0xff]  }
 0x222   :  { %9153 = vmatprep.mubr.msk.bf16.mxu1 %vm10201_vm1, %v10200_v9  ;;  %9245 = vmatprep.mubr.msk.bf16.mxu0 %vm10201_vm1, %v10200_v9 }
 0x223   :  { %v9027_v0 = vpop.f32.mrf.mxu0 }
 0x224   :  { %v10022_v0 = vld [vmem:[#allocation2 + $0x170] sm:$0xff]  }
 0x225   :  { %v11411_v29 = vpop.f32.mrf.mxu0 }
 0x227   :  { %v9028_v30 = vpop.f32.mrf.mxu0 }
 0x229   :  { %9154 = vmatmul.mubr.msk.bf16.gmra.mxu1 %vm2633_vm2, %v11112_v2  ;;  %9246 = vmatmul.mubr.msk.bf16.vlgmr.msra.gmra.mxu0 %vm2633_vm2, %v11296_v42  ;;  %v10013_v2 = vld [vmem:[%s12870_s3 + $0x78] sm:$0xff]   ;;  %v10016_v42 = vld [vmem:[#allocation2 + $0xc8] sm:$0xff]  }
 0x22a   :  { %9157 = vmatprep.mubr.msk.bf16.mxu1 %vm10201_vm1, %v10200_v9  ;;  %9249 = vmatprep.mubr.msk.bf16.mxu0 %vm10201_vm1, %v10200_v9 }
 0x22b   :  { %9322 = vmatpush3.bf16.msra.mxu0 %v10023_v31 }
 0x22c   :  { %9323 = vmatprep.subr.bf16.mxu0 %v10200_v9 }
 0x22f   :  { %9324 = vmatpush3.bf16.msra.mxu0 %v10024_v43 }
 0x230   :  { %9401 = vmatprep.subr.bf16.mxu0 %v10200_v9 }
 0x231   :  { %9158 = vmatmul.mubr.msk.bf16.gmra.mxu1 %vm2633_vm2, %v10010_v32  ;;  %9250 = vmatmul.mubr.msk.bf16.gmra.mxu0 %vm2633_vm2, %v11318_v46 }
 0x232   :  { %9205 = vmatprep.mubr.msk.bf16.mxu1 %vm10201_vm1, %v10200_v9  ;;  %9253 = vmatprep.mubr.msk.bf16.mxu0 %vm10201_vm1, %v10200_v9 }
 0x239   :  { %9206 = vmatmul.mubr.msk.bf16.vlgmr.msra.gmra.mxu1 %vm2633_vm2, %v10011_v33  ;;  %9254 = vmatmul.mubr.msk.bf16.gmra.mxu0 %vm2633_vm2, %v10012_v34 }
 0x23a   :  { %9282 = vmatpush3.bf16.msra.mxu1 %v10013_v2  ;;  %9209 = vmatprep.mubr.msk.bf16.mxu1 %vm10201_vm1, %v10200_v9 }
 0x23b   :  { %9257 = vmatprep.mubr.msk.bf16.mxu0 %vm10201_vm1, %v10200_v9  ;;  %9283 = vmatprep.subr.bf16.mxu1 %v10200_v9 }
 0x23e   :  { %9284 = vmatpush3.bf16.msra.mxu1 %v10019_v35 }
 0x23f   :  { %9361 = vmatprep.subr.bf16.mxu1 %v10200_v9 }
 0x241   :  { %v11452_v39 = vpop.f32.mrf.mxu0  ;;  %9210 = vmatmul.mubr.msk.bf16.gmra.mxu1 %vm2633_vm2, %v11449_v36  ;;  %9258 = vmatmul.mubr.msk.bf16.gmra.mxu0 %vm2633_vm2, %v11346_v57 }
 0x242   :  { %9213 = vmatprep.mubr.msk.bf16.mxu1 %vm10201_vm1, %v10200_v9  ;;  %9261 = vmatprep.mubr.msk.bf16.mxu0 %vm10201_vm1, %v10200_v9 }
 0x243   :  { %v9031_v40 = vpop.f32.mrf.mxu0 }
 0x245   :  { %v11462_v41 = vpop.f32.mrf.mxu0 }
 0x247   :  { %v9032_v1 = vpop.f32.mrf.mxu0 }
 0x249   :  { %9214 = vmatmul.mubr.msk.bf16.gmra.mxu1 %vm2633_vm2, %v11464_v4  ;;  %9262 = vmatmul.mubr.msk.bf16.gmra.mxu0 %vm2633_vm2, %v11359_v62 }
 0x24a   :  { %9217 = vmatprep.mubr.msk.bf16.mxu1 %vm10201_vm1, %v10200_v9  ;;  %9265 = vmatprep.mubr.msk.bf16.mxu0 %vm10201_vm1, %v10200_v9 }
 0x251   :  { %v11474_v6 = vpop.f32.mrf.mxu0  ;;  %9218 = vmatmul.mubr.msk.bf16.gmra.mxu1 %vm2633_vm2, %v10016_v42  ;;  %9266 = vmatmul.mubr.msk.bf16.gmra.mxu0 %vm2633_vm2, %v10017_v5  ;;  %v11518_v42 = vld [vmem:[#allocation2 + $0x158] sm:$0xff]  }
 0x252   :  { %9221 = vmatprep.mubr.msk.bf16.mxu1 %vm10201_vm1, %v10200_v9  ;;  %9269 = vmatprep.mubr.msk.bf16.mxu0 %vm10201_vm1, %v10200_v9 }
 0x253   :  { %v9035_v8 = vpop.f32.mrf.mxu0 }
 0x255   :  { %v11482_v12 = vpop.f32.mrf.mxu0 }
 0x257   :  { %v9036_v17 = vpop.f32.mrf.mxu0 }
 0x259   :  { %v2990_v15 = vpop.f32.mrf.mxu0  ;;  %9222 = vmatmul.mubr.msk.bf16.gmra.mxu1 %vm2633_vm2, %v11484_v13  ;;  %9270 = vmatmul.mubr.msk.bf16.gmra.mxu0 %vm2633_vm2, %v11389_v24 }
 0x25a   :  { %9225 = vmatprep.mubr.msk.bf16.mxu1 %vm10201_vm1, %v10200_v9  ;;  %9273 = vmatprep.mubr.msk.bf16.mxu0 %vm10201_vm1, %v10200_v9 }
 0x25b   :  { %v9087_v16 = vpop.f32.mrf.mxu0 }
 0x25d   :  { %v2993_v45 = vpop.f32.mrf.mxu0 }
 0x25f   :  { %v9088_v46 = vpop.f32.mrf.mxu0 }
 0x261   :  { %v11496_v48 = vpop.f32.mrf.mxu1  ;;  %v2998_v49 = vpop.f32.mrf.mxu0  ;;  %9226 = vmatmul.mubr.msk.bf16.gmra.mxu1 %vm2633_vm2, %v11494_v47  ;;  %9274 = vmatmul.mubr.msk.bf16.gmra.mxu0 %vm2633_vm2, %v11399_v26 }
 0x262   :  { %9229 = vmatprep.mubr.msk.bf16.mxu1 %vm10201_vm1, %v10200_v9  ;;  %9277 = vmatprep.mubr.msk.bf16.mxu0 %vm10201_vm1, %v10200_v9 }
 0x263   :  { %v9039_v52 = vpop.f32.mrf.mxu1  ;;  %v9091_v54 = vpop.f32.mrf.mxu0 }
 0x265   :  { %v11506_v55 = vpop.f32.mrf.mxu1  ;;  %v3001_v59 = vpop.f32.mrf.mxu0 }
 0x267   :  { %v9040_v61 = vpop.f32.mrf.mxu1  ;;  %v9092_v19 = vpop.f32.mrf.mxu0 }
 0x268   :  { %v11541_v19 = vld [vmem:[#allocation2 + $0x168] sm:$0xff]  }
 0x269   :  { %v2839_v30 = vpop.f32.mrf.mxu1  ;;  %v3006_v31 = vpop.f32.mrf.mxu0  ;;  %9230 = vmatmul.mubr.msk.bf16.gmra.mxu1 %vm2633_vm2, %v10021_v21  ;;  %9278 = vmatmul.mubr.msk.bf16.gmra.mxu0 %vm2633_vm2, %v10022_v0 }
 0x26a   :  { %v2840_v26 = vadd.f32 %v2839_v30, %v11276_v25  ;;  %9233 = vmatprep.mubr.msk.bf16.mxu1 %vm10201_vm1, %v10200_v9  ;;  %9325 = vmatprep.mubr.msk.bf16.mxu0 %vm10201_vm1, %v10200_v9  ;;  %v10034_v25 = vld [vmem:[%s12870_s3 + $0xa8] sm:$0xff]  }
 0x26b   :  { %v9047_v43 = vpop.f32.mrf.mxu1  ;;  %v9095_v32 = vpop.f32.mrf.mxu0 }
 0x26c   :  { %v11515_v2 = vadd.f32 %v2990_v15, %v2840_v26 }
 0x26d   :  { %v2842_v33 = vpop.f32.mrf.mxu1  ;;  %v3009_v34 = vpop.f32.mrf.mxu0 }
 0x26e   :  { %v2843_v35 = vadd.f32 %v2842_v33, %v11293_v37 }
 0x26f   :  { %v9048_v40 = vpop.f32.mrf.mxu1  ;;  %v9096_v1 = vpop.f32.mrf.mxu0 }
 0x270   :  { %v11523_v5 = vadd.f32 %v2993_v45, %v2843_v35  ;;  %v10035_v45 = vld [vmem:[%s12870_s3 + $0xa0] sm:$0xff]  }
 0x271   :  { %v2847_v8 = vpop.f32.mrf.mxu1  ;;  %v3014_v17 = vpop.f32.mrf.mxu0  ;;  %9234 = vmatmul.mubr.msk.bf16.gmra.mxu1 %vm2633_vm2, %v11518_v42  ;;  %9326 = vmatmul.mubr.msk.bf16.vlgmr.msra.gmra.mxu0 %vm2633_vm2, %v11196_v28 }
 0x272   :  { %v2848_v37 = vadd.f32 %v2847_v8, %v11301_v7  ;;  %9237 = vmatprep.mubr.msk.bf16.mxu1 %vm10201_vm1, %v10200_v9  ;;  %9329 = vmatprep.mubr.msk.bf16.mxu0 %vm10201_vm1, %v10200_v9 }
 0x273   :  { %v9051_v15 = vpop.f32.mrf.mxu1  ;;  %v9099_v16 = vpop.f32.mrf.mxu0  ;;  %9402 = vmatpush3.bf16.msra.mxu0 %v10034_v25 }
 0x274   :  { %9403 = vmatprep.subr.bf16.mxu0 %v10200_v9  ;;  %v11538_v46 = vadd.f32 %v2998_v49, %v2848_v37 }
 0x275   :  { %v2850_v28 = vpop.f32.mrf.mxu1  ;;  %v3017_v52 = vpop.f32.mrf.mxu0 }
 0x276   :  { %v2851_v7 = vadd.f32 %v2850_v28, %v11313_v14 }
 0x277   :  { %v9052_v54 = vpop.f32.mrf.mxu1  ;;  %v9100_v61 = vpop.f32.mrf.mxu0  ;;  %9404 = vmatpush3.bf16.msra.mxu0 %v10035_v45 }
 0x278   :  { %v11543_v21 = vadd.f32 %v3001_v59, %v2851_v7  ;;  %9481 = vmatprep.subr.bf16.mxu0 %v10200_v9 }
 0x279   :  { %v2855_v0 = vpop.f32.mrf.mxu1  ;;  %v3022_v30 = vpop.f32.mrf.mxu0  ;;  %9238 = vmatmul.mubr.msk.bf16.gmra.mxu1 %vm2633_vm2, %v11541_v19  ;;  %9330 = vmatmul.mubr.msk.bf16.gmra.mxu0 %vm2633_vm2, %v11159_v38  ;;  %v10027_v38 = vld [vmem:[%s12870_s3 + $0x98] sm:$0xff]  }
 0x27a   :  { %v2856_v49 = vadd.f32 %v2855_v0, %v11321_v50  ;;  %9285 = vmatprep.mubr.msk.bf16.mxu1 %vm10201_vm1, %v10200_v9  ;;  %9333 = vmatprep.mubr.msk.bf16.mxu0 %vm10201_vm1, %v10200_v9 }
 0x27b   :  { %v9055_v14 = vpop.f32.mrf.mxu1  ;;  %v9103_v59 = vpop.f32.mrf.mxu0 }
 0x27c   :  { %v11555_v26 = vadd.f32 %v3006_v31, %v2856_v49  ;;  %v10028_v59 = vld [vmem:[#allocation2 + $0x78] sm:$0xff]  }
 0x27d   :  { %v2858_v43 = vpop.f32.mrf.mxu1  ;;  %v3025_v32 = vpop.f32.mrf.mxu0 }
 0x27e   :  { %v2859_v33 = vadd.f32 %v2858_v43, %v11334_v56  ;;  %v10030_v56 = vld [vmem:[%s12870_s3 + $0x90] sm:$0xff]  }
 0x27f   :  { %v9056_v35 = vpop.f32.mrf.mxu1  ;;  %v9104_v50 = vpop.f32.mrf.mxu0 }
 0x280   :  { %v11561_v40 = vadd.f32 %v3009_v34, %v2859_v33 }
 0x281   :  { %v2863_v1 = vpop.f32.mrf.mxu1  ;;  %v3030_v25 = vpop.f32.mrf.mxu0  ;;  %9286 = vmatmul.mubr.msk.bf16.vlgmr.msra.gmra.mxu1 %vm2633_vm2, %v11449_v36  ;;  %9334 = vmatmul.mubr.msk.bf16.gmra.mxu0 %vm2633_vm2, %v11178_v51 }
 0x282   :  { %v2864_v31 = vadd.f32 %v2863_v1, %v11348_v58  ;;  %9362 = vmatpush3.bf16.msra.mxu1 %v10027_v38  ;;  %9289 = vmatprep.mubr.msk.bf16.mxu1 %vm10201_vm1, %v10200_v9 }
 0x283   :  { %v9059_v34 = vpop.f32.mrf.mxu1  ;;  %v9107_v8 = vpop.f32.mrf.mxu0  ;;  %9337 = vmatprep.mubr.msk.bf16.mxu0 %vm10201_vm1, %v10200_v9  ;;  %9363 = vmatprep.subr.bf16.mxu1 %v10200_v9 }
 0x284   :  { %v11576_v36 = vadd.f32 %v3014_v17, %v2864_v31 }
 0x285   :  { %v2866_v51 = vpop.f32.mrf.mxu1  ;;  %v3033_v37 = vpop.f32.mrf.mxu0 }
 0x286   :  { %v2867_v58 = vadd.f32 %v2866_v51, %v11357_v60  ;;  %9364 = vmatpush3.bf16.msra.mxu1 %v10030_v56 }
 0x287   :  { %v9060_v15 = vpop.f32.mrf.mxu1  ;;  %v9108_v16 = vpop.f32.mrf.mxu0  ;;  %9441 = vmatprep.subr.bf16.mxu1 %v10200_v9 }
 0x288   :  { %v11580_v45 = vadd.f32 %v3017_v52, %v2867_v58  ;;  %v10029_v16 = vld [vmem:[#allocation2 + $0x180] sm:$0xff]  }
 0x289   :  { %v2871_v28 = vpop.f32.mrf.mxu1  ;;  %v3038_v7 = vpop.f32.mrf.mxu0  ;;  %9290 = vmatmul.mubr.msk.bf16.gmra.mxu1 %vm2633_vm2, %v11464_v4  ;;  %9338 = vmatmul.mubr.msk.bf16.gmra.mxu0 %vm2633_vm2, %v11254_v10 }
 0x28a   :  { %v2872_v17 = vadd.f32 %v2871_v28, %v11373_v3  ;;  %9293 = vmatprep.mubr.msk.bf16.mxu1 %vm10201_vm1, %v10200_v9  ;;  %9341 = vmatprep.mubr.msk.bf16.mxu0 %vm10201_vm1, %v10200_v9 }
 0x28b   :  { %v9063_v60 = vpop.f32.mrf.mxu1  ;;  %v9111_v54 = vpop.f32.mrf.mxu0 }
 0x28c   :  { %v11591_v52 = vadd.f32 %v3022_v30, %v2872_v17 }
 0x28d   :  { %v2874_v61 = vpop.f32.mrf.mxu1  ;;  %v3041_v0 = vpop.f32.mrf.mxu0 }
 0x28e   :  { %v2875_v49 = vadd.f32 %v2874_v61, %v11385_v20 }
 0x28f   :  { %v9064_v4 = vpop.f32.mrf.mxu1  ;;  %v9112_v14 = vpop.f32.mrf.mxu0 }
 0x290   :  { %v11594_v10 = vadd.f32 %v3025_v32, %v2875_v49  ;;  %v10031_v4 = vld [vmem:[#allocation2 + $0xf8] sm:$0xff]   ;;  %v11634_v14 = vld [vmem:[#allocation2 + $0x190] sm:$0xff]  }
 0x291   :  { %v2879_v3 = vpop.f32.mrf.mxu1  ;;  %v3046_v43 = vpop.f32.mrf.mxu0  ;;  %9294 = vmatmul.mubr.msk.bf16.gmra.mxu1 %vm2633_vm2, %v10028_v59  ;;  %9342 = vmatmul.mubr.msk.bf16.gmra.mxu0 %vm2633_vm2, %v11213_v44 }
 0x292   :  { %v2880_v33 = vadd.f32 %v2879_v3, %v11401_v27  ;;  %9297 = vmatprep.mubr.msk.bf16.mxu1 %vm10201_vm1, %v10200_v9  ;;  %9345 = vmatprep.mubr.msk.bf16.mxu0 %vm10201_vm1, %v10200_v9 }
 0x293   :  { %v9067_v20 = vpop.f32.mrf.mxu1  ;;  %v9115_v30 = vpop.f32.mrf.mxu0 }
 0x294   :  { %v11604_v38 = vadd.f32 %v3030_v25, %v2880_v33 }
 0x295   :  { %v2882_v32 = vpop.f32.mrf.mxu1  ;;  %v3049_v35 = vpop.f32.mrf.mxu0 }
 0x296   :  { %v2883_v50 = vadd.f32 %v2882_v32, %v11411_v29 }
 0x297   :  { %v9068_v1 = vpop.f32.mrf.mxu1  ;;  %v9116_v31 = vpop.f32.mrf.mxu0 }
 0x298   :  { %v11607_v56 = vadd.f32 %v3033_v37, %v2883_v50  ;;  %v11649_v31 = vld [vmem:[#allocation2 + $0x1a0] sm:$0xff]  }
 0x299   :  { %v2887_v44 = vpop.f32.mrf.mxu1  ;;  %v3054_v27 = vpop.f32.mrf.mxu0  ;;  %9298 = vmatmul.mubr.msk.bf16.gmra.mxu1 %vm2633_vm2, %v11484_v13  ;;  %9346 = vmatmul.mubr.msk.bf16.gmra.mxu0 %vm2633_vm2, %v11236_v22 }
 0x29a   :  { %v2888_v34 = vadd.f32 %v2887_v44, %v11452_v39  ;;  %9301 = vmatprep.mubr.msk.bf16.mxu1 %vm10201_vm1, %v10200_v9  ;;  %9349 = vmatprep.mubr.msk.bf16.mxu0 %vm10201_vm1, %v10200_v9 }
 0x29b   :  { %v9071_v29 = vpop.f32.mrf.mxu1  ;;  %v9119_v25 = vpop.f32.mrf.mxu0 }
 0x29c   :  { %v11618_v8 = vadd.f32 %v3038_v7, %v2888_v34 }
 0x29d   :  { %v2890_v51 = vpop.f32.mrf.mxu1  ;;  %v3057_v37 = vpop.f32.mrf.mxu0 }
 0x29e   :  { %v2891_v58 = vadd.f32 %v2890_v51, %v11462_v41 }
 0x29f   :  { %v9072_v13 = vpop.f32.mrf.mxu1  ;;  %v9120_v15 = vpop.f32.mrf.mxu0 }
 0x2a0   :  { %v11621_v22 = vadd.f32 %v3041_v0, %v2891_v58 }
 0x2a1   :  { %v2895_v39 = vpop.f32.mrf.mxu1  ;;  %v3388_v28 = vpop.f32.mrf.mxu0  ;;  %9302 = vmatmul.mubr.msk.bf16.gmra.mxu1 %vm2633_vm2, %v11494_v47  ;;  %9350 = vmatmul.mubr.msk.bf16.gmra.mxu0 %vm2633_vm2, %v10029_v16 }
 0x2a2   :  { %v2896_v17 = vadd.f32 %v2895_v39, %v11474_v6  ;;  %9305 = vmatprep.mubr.msk.bf16.mxu1 %vm10201_vm1, %v10200_v9  ;;  %9353 = vmatprep.mubr.msk.bf16.mxu0 %vm10201_vm1, %v10200_v9 }
 0x2a3   :  { %v9075_v41 = vpop.f32.mrf.mxu1  ;;  %v9167_v7 = vpop.f32.mrf.mxu0 }
 0x2a4   :  { %v11631_v60 = vadd.f32 %v3046_v43, %v2896_v17  ;;  %v10175_v17 = vld [vmem:[#allocation2 + $0x90] sm:$0xff]   ;;  %v10042_v7 = vld [vmem:[%s12870_s3 + $0xc0] sm:$0xff]  }
 0x2a5   :  { %v2898_v54 = vpop.f32.mrf.mxu1  ;;  %v3391_v61 = vpop.f32.mrf.mxu0 }
 0x2a6   :  { %v2899_v0 = vadd.f32 %v2898_v54, %v11482_v12 }
 0x2a7   :  { %v9076_v49 = vpop.f32.mrf.mxu1  ;;  %v9168_v47 = vpop.f32.mrf.mxu0 }
 0x2a8   :  { %v11636_v6 = vadd.f32 %v3049_v35, %v2899_v0  ;;  %v10036_v47 = vld [vmem:[#allocation2 + $0x178] sm:$0xff]  }
 0x2a9   :  { %v2903_v59 = vpop.f32.mrf.mxu1  ;;  %v3396_v3 = vpop.f32.mrf.mxu0  ;;  %9306 = vmatmul.mubr.msk.bf16.gmra.mxu1 %vm2633_vm2, %v10031_v4  ;;  %9354 = vmatmul.mubr.msk.bf16.gmra.mxu0 %vm2633_vm2, %v11634_v14 }
 0x2aa   :  { %v2904_v43 = vadd.f32 %v2903_v59, %v11496_v48  ;;  %9309 = vmatprep.mubr.msk.bf16.mxu1 %vm10201_vm1, %v10200_v9  ;;  %9357 = vmatprep.mubr.msk.bf16.mxu0 %vm10201_vm1, %v10200_v9 }
 0x2ab   :  { %v9079_v12 = vpop.f32.mrf.mxu1  ;;  %v9171_v33 = vpop.f32.mrf.mxu0 }
 0x2ac   :  { %v11646_v20 = vadd.f32 %v3054_v27, %v2904_v43  ;;  %v10176_v12 = vld [vmem:[#allocation2 + $0xa0] sm:$0xff]  }
 0x2ad   :  { %v2906_v30 = vpop.f32.mrf.mxu1  ;;  %v3399_v32 = vpop.f32.mrf.mxu0 }
 0x2ae   :  { %v2907_v35 = vadd.f32 %v2906_v30, %v11506_v55 }
 0x2af   :  { %v9080_v50 = vpop.f32.mrf.mxu1  ;;  %v9172_v1 = vpop.f32.mrf.mxu0 }
 0x2b0   :  { %v11651_v44 = vadd.f32 %v3057_v37, %v2907_v35  ;;  %v10037_v1 = vld [vmem:[%s12870_s3 + $0xb8] sm:$0xff]  }
 0x2b1   :  { %v3159_v48 = vpop.f32.mrf.mxu1  ;;  %v3404_v34 = vpop.f32.mrf.mxu0  ;;  %9310 = vmatmul.mubr.msk.bf16.gmra.mxu1 %vm2633_vm2, %v11518_v42  ;;  %9358 = vmatmul.mubr.msk.bf16.gmra.mxu0 %vm2633_vm2, %v11649_v31 }
 0x2b2   :  { %v3230_v27 = vadd.f32 %v3159_v48, %v11515_v2  ;;  %9313 = vmatprep.mubr.msk.bf16.mxu1 %vm10201_vm1, %v10200_v9  ;;  %9405 = vmatprep.mubr.msk.bf16.mxu0 %vm10201_vm1, %v10200_v9  ;;  %v10041_v2 = vld [vmem:[%s12870_s3 + $0xc8] sm:$0xff]  }
 0x2b3   :  { %v9127_v55 = vpop.f32.mrf.mxu1  ;;  %v9175_v29 = vpop.f32.mrf.mxu0 }
 0x2b4   :  { %v11662_v25 = vadd.f32 %v3388_v28, %v3230_v27 }
 0x2b5   :  { %v3162_v51 = vpop.f32.mrf.mxu1  ;;  %v3407_v37 = vpop.f32.mrf.mxu0 }
 0x2b6   :  { %v3231_v58 = vadd.f32 %v3162_v51, %v11523_v5  ;;  %v10177_v51 = vld [vmem:[#allocation2 + $0x88] sm:$0xff]  }
 0x2b7   :  { %v9128_v42 = vpop.f32.mrf.mxu1  ;;  %v9176_v13 = vpop.f32.mrf.mxu0 }
 0x2b8   :  { %v11668_v15 = vadd.f32 %v3391_v61, %v3231_v58  ;;  %v10178_v58 = vld [vmem:[#allocation2 + $0xb0] sm:$0xff]  }
 0x2b9   :  { %v3167_v16 = vpop.f32.mrf.mxu1  ;;  %v3412_v39 = vpop.f32.mrf.mxu0  ;;  %9314 = vmatmul.mubr.msk.bf16.gmra.mxu1 %vm2633_vm2, %v11541_v19  ;;  %9406 = vmatmul.mubr.msk.bf16.vlgmr.msra.gmra.mxu0 %vm2633_vm2, %v10175_v17 }
 0x2ba   :  { %v3232_v28 = vadd.f32 %v3167_v16, %v11538_v46  ;;  %9317 = vmatprep.mubr.msk.bf16.mxu1 %vm10201_vm1, %v10200_v9  ;;  %9409 = vmatprep.mubr.msk.bf16.mxu0 %vm10201_vm1, %v10200_v9 }
 0x2bb   :  { %v9131_v5 = vpop.f32.mrf.mxu1  ;;  %v9179_v41 = vpop.f32.mrf.mxu0  ;;  %9482 = vmatpush3.bf16.msra.mxu0 %v10041_v2 }
 0x2bc   :  { %9483 = vmatprep.subr.bf16.mxu0 %v10200_v9  ;;  %v11682_v19 = vadd.f32 %v3396_v3, %v3232_v28 }
 0x2bd   :  { %v3170_v54 = vpop.f32.mrf.mxu1  ;;  %v3415_v61 = vpop.f32.mrf.mxu0 }
 0x2be   :  { %v3233_v46 = vadd.f32 %v3170_v54, %v11543_v21  ;;  %v10179_v54 = vld [vmem:[#allocation2 + $0x110] sm:$0xff]  }
 0x2bf   :  { %v9132_v0 = vpop.f32.mrf.mxu1  ;;  %v9180_v49 = vpop.f32.mrf.mxu0  ;;  %9484 = vmatpush3.bf16.msra.mxu0 %v10042_v7 }
 0x2c0   :  { %v11685_v4 = vadd.f32 %v3399_v32, %v3233_v46  ;;  %9561 = vmatprep.subr.bf16.mxu0 %v10200_v9 }
 0x2c1   :  { %v3175_v59 = vpop.f32.mrf.mxu1  ;;  %v3420_v43 = vpop.f32.mrf.mxu0  ;;  %9318 = vmatmul.mubr.msk.bf16.gmra.mxu1 %vm2633_vm2, %v10036_v47  ;;  %9410 = vmatmul.mubr.msk.bf16.gmra.mxu0 %vm2633_vm2, %v10176_v12 }
 0x2c2   :  { %v3234_v3 = vadd.f32 %v3175_v59, %v11555_v26  ;;  %9365 = vmatprep.mubr.msk.bf16.mxu1 %vm10201_vm1, %v10200_v9  ;;  %9413 = vmatprep.mubr.msk.bf16.mxu0 %vm10201_vm1, %v10200_v9 }
 0x2c3   :  { %v9135_v21 = vpop.f32.mrf.mxu1  ;;  %v9183_v33 = vpop.f32.mrf.mxu0 }
 0x2c4   :  { %v11695_v30 = vadd.f32 %v3404_v34, %v3234_v3  ;;  %v10180_v33 = vld [vmem:[#allocation2 + $0x120] sm:$0xff]  }
 0x2c5   :  { %v3178_v32 = vpop.f32.mrf.mxu1  ;;  %v3423_v35 = vpop.f32.mrf.mxu0 }
 0x2c6   :  { %v3235_v50 = vadd.f32 %v3178_v32, %v11561_v40  ;;  %v10038_v40 = vld [vmem:[%s12870_s3 + $0xb0] sm:$0xff]  }
 0x2c7   :  { %v9136_v48 = vpop.f32.mrf.mxu1  ;;  %v9184_v26 = vpop.f32.mrf.mxu0 }
 0x2c8   :  { %v11701_v27 = vadd.f32 %v3407_v37, %v3235_v50 }
 0x2c9   :  { %v3183_v55 = vpop.f32.mrf.mxu1  ;;  %v3428_v29 = vpop.f32.mrf.mxu0  ;;  %9366 = vmatmul.mubr.msk.bf16.vlgmr.msra.gmra.mxu1 %vm2633_vm2, %v10177_v51  ;;  %9414 = vmatmul.mubr.msk.bf16.gmra.mxu0 %vm2633_vm2, %v10178_v58 }
 0x2ca   :  { %v3236_v34 = vadd.f32 %v3183_v55, %v11576_v36  ;;  %9442 = vmatpush3.bf16.msra.mxu1 %v10037_v1  ;;  %9369 = vmatprep.mubr.msk.bf16.mxu1 %vm10201_vm1, %v10200_v9 }
 0x2cb   :  { %v9139_v37 = vpop.f32.mrf.mxu1  ;;  %v9187_v42 = vpop.f32.mrf.mxu0  ;;  %9417 = vmatprep.mubr.msk.bf16.mxu0 %vm10201_vm1, %v10200_v9  ;;  %9443 = vmatprep.subr.bf16.mxu1 %v10200_v9 }
 0x2cc   :  { %v11714_v13 = vadd.f32 %v3412_v39, %v3236_v34  ;;  %v10181_v34 = vld [vmem:[#allocation2 + $0x108] sm:$0xff]  }
 0x2cd   :  { %v3186_v2 = vpop.f32.mrf.mxu1  ;;  %v3431_v16 = vpop.f32.mrf.mxu0 }
 0x2ce   :  { %v3237_v36 = vadd.f32 %v3186_v2, %v11580_v45  ;;  %9444 = vmatpush3.bf16.msra.mxu1 %v10038_v40  ;;  %v10182_v40 = vld [vmem:[#allocation2 + $0x130] sm:$0xff]  }
 0x2cf   :  { %v9140_v17 = vpop.f32.mrf.mxu1  ;;  %v9188_v28 = vpop.f32.mrf.mxu0  ;;  %9521 = vmatprep.subr.bf16.mxu1 %v10200_v9 }
 0x2d0   :  { %v11718_v5 = vadd.f32 %v3415_v61, %v3237_v36 }
 0x2d1   :  { %v3191_v41 = vpop.f32.mrf.mxu1  ;;  %v3436_v7 = vpop.f32.mrf.mxu0  ;;  %9370 = vmatmul.mubr.msk.bf16.gmra.mxu1 %vm2633_vm2, %v11361_v63  ;;  %9418 = vmatmul.mubr.msk.bf16.gmra.mxu0 %vm2633_vm2, %v10179_v54 }
 0x2d2   :  { %v3238_v39 = vadd.f32 %v3191_v41, %v11591_v52  ;;  %9373 = vmatprep.mubr.msk.bf16.mxu1 %vm10201_vm1, %v10200_v9  ;;  %9421 = vmatprep.mubr.msk.bf16.mxu0 %vm10201_vm1, %v10200_v9 }
 0x2d3   :  { %v9143_v45 = vpop.f32.mrf.mxu1  ;;  %v9191_v46 = vpop.f32.mrf.mxu0 }
 0x2d4   :  { %v11728_v61 = vadd.f32 %v3420_v43, %v3238_v39  ;;  %v11758_v39 = vld [vmem:[#allocation2 + $0x118] sm:$0xff]  }
 0x2d5   :  { %v3194_v0 = vpop.f32.mrf.mxu1  ;;  %v3439_v49 = vpop.f32.mrf.mxu0 }
 0x2d6   :  { %v3239_v47 = vadd.f32 %v3194_v0, %v11594_v10 }
 0x2d7   :  { %v9144_v59 = vpop.f32.mrf.mxu1  ;;  %v9192_v12 = vpop.f32.mrf.mxu0 }
 0x2d8   :  { %v11731_v3 = vadd.f32 %v3423_v35, %v3239_v47 }
 0x2d9   :  { %v3199_v21 = vpop.f32.mrf.mxu1  ;;  %v3444_v52 = vpop.f32.mrf.mxu0  ;;  %9374 = vmatmul.mubr.msk.bf16.gmra.mxu1 %vm2633_vm2, %v11375_v18  ;;  %9422 = vmatmul.mubr.msk.bf16.gmra.mxu0 %vm2633_vm2, %v10180_v33  ;;  %v11774_v33 = vld [vmem:[#allocation2 + $0x128] sm:$0xff]  }
 0x2da   :  { %v3240_v32 = vadd.f32 %v3199_v21, %v11604_v38  ;;  %9377 = vmatprep.mubr.msk.bf16.mxu1 %vm10201_vm1, %v10200_v9  ;;  %9425 = vmatprep.mubr.msk.bf16.mxu0 %vm10201_vm1, %v10200_v9 }
 0x2db   :  { %v9147_v10 = vpop.f32.mrf.mxu1  ;;  %v9195_v43 = vpop.f32.mrf.mxu0 }
 0x2dc   :  { %v11741_v35 = vadd.f32 %v3428_v29, %v3240_v32 }
 0x2dd   :  { %v3202_v50 = vpop.f32.mrf.mxu1  ;;  %v3447_v1 = vpop.f32.mrf.mxu0 }
 0x2de   :  { %v3241_v48 = vadd.f32 %v3202_v50, %v11607_v56 }
 0x2df   :  { %v9148_v26 = vpop.f32.mrf.mxu1  ;;  %v9196_v55 = vpop.f32.mrf.mxu0 }
 0x2e0   :  { %v11744_v51 = vadd.f32 %v3431_v16, %v3241_v48  ;;  %v10039_v55 = vld [vmem:[#allocation2 + $0x188] sm:$0xff]  }
 0x2e1   :  { %v3207_v58 = vpop.f32.mrf.mxu1  ;;  %v3452_v38 = vpop.f32.mrf.mxu0  ;;  %9378 = vmatmul.mubr.msk.bf16.gmra.mxu1 %vm2633_vm2, %v10181_v34  ;;  %9426 = vmatmul.mubr.msk.bf16.gmra.mxu0 %vm2633_vm2, %v10182_v40 }
 0x2e2   :  { %v3242_v37 = vadd.f32 %v3207_v58, %v11618_v8  ;;  %9381 = vmatprep.mubr.msk.bf16.mxu1 %vm10201_vm1, %v10200_v9  ;;  %9429 = vmatprep.mubr.msk.bf16.mxu0 %vm10201_vm1, %v10200_v9 }
 0x2e3   :  { %v9151_v56 = vpop.f32.mrf.mxu1  ;;  %v9199_v29 = vpop.f32.mrf.mxu0 }
 0x2e4   :  { %v11753_v42 = vadd.f32 %v3436_v7, %v3242_v37 }
 0x2e5   :  { %v3210_v2 = vpop.f32.mrf.mxu1  ;;  %v3455_v16 = vpop.f32.mrf.mxu0 }
 0x2e6   :  { %v3243_v36 = vadd.f32 %v3210_v2, %v11621_v22 }
 0x2e7   :  { %v9152_v17 = vpop.f32.mrf.mxu1  ;;  %v9200_v28 = vpop.f32.mrf.mxu0 }
 0x2e8   :  { %v11756_v41 = vadd.f32 %v3439_v49, %v3243_v36  ;;  %v11800_v17 = vld [vmem:[#allocation2 + $0x198] sm:$0xff]  }
 0x2e9   :  { %v3215_v54 = vpop.f32.mrf.mxu1  ;;  %v3786_v8 = vpop.f32.mrf.mxu0  ;;  %9382 = vmatmul.mubr.msk.bf16.gmra.mxu1 %vm2633_vm2, %v11758_v39  ;;  %9430 = vmatmul.mubr.msk.bf16.gmra.mxu0 %vm2633_vm2, %v11634_v14 }
 0x2ea   :  { %v3244_v7 = vadd.f32 %v3215_v54, %v11631_v60  ;;  %9385 = vmatprep.mubr.msk.bf16.mxu1 %vm10201_vm1, %v10200_v9  ;;  %9433 = vmatprep.mubr.msk.bf16.mxu0 %vm10201_vm1, %v10200_v9 }
 0x2eb   :  { %v9155_v22 = vpop.f32.mrf.mxu1  ;;  %v9247_v45 = vpop.f32.mrf.mxu0 }
 0x2ec   :  { %v11769_v46 = vadd.f32 %v3444_v52, %v3244_v7  ;;  %v10051_v45 = vld [vmem:[%s12870_s3 + $0xe0] sm:$0xff]  }
 0x2ed   :  { %v3218_v0 = vpop.f32.mrf.mxu1  ;;  %v3789_v49 = vpop.f32.mrf.mxu0 }
 0x2ee   :  { %v3245_v47 = vadd.f32 %v3218_v0, %v11636_v6 }
 0x2ef   :  { %v9156_v59 = vpop.f32.mrf.mxu1  ;;  %v9248_v12 = vpop.f32.mrf.mxu0 }
 0x2f0   :  { %v11772_v21 = vadd.f32 %v3447_v1, %v3245_v47  ;;  %v11823_v12 = vld [vmem:[#allocation2 + $0x1a8] sm:$0xff]  }
 0x2f1   :  { %v3223_v14 = vpop.f32.mrf.mxu1  ;;  %v3794_v60 = vpop.f32.mrf.mxu0  ;;  %9386 = vmatmul.mubr.msk.bf16.gmra.mxu1 %vm2633_vm2, %v11774_v33  ;;  %9434 = vmatmul.mubr.msk.bf16.gmra.mxu0 %vm2633_vm2, %v11649_v31  ;;  %v10040_v31 = vld [vmem:[#allocation2 + $0x1b0] sm:$0xff]  }
 0x2f2   :  { %v3246_v52 = vadd.f32 %v3223_v14, %v11646_v20  ;;  %9389 = vmatprep.mubr.msk.bf16.mxu1 %vm10201_vm1, %v10200_v9  ;;  %9437 = vmatprep.mubr.msk.bf16.mxu0 %vm10201_vm1, %v10200_v9 }
 0x2f3   :  { %v9159_v6 = vpop.f32.mrf.mxu1  ;;  %v9251_v32 = vpop.f32.mrf.mxu0 }
 0x2f4   :  { %v11785_v10 = vadd.f32 %v3452_v38, %v3246_v52 }
 0x2f5   :  { %v3226_v43 = vpop.f32.mrf.mxu1  ;;  %v3797_v50 = vpop.f32.mrf.mxu0 }
 0x2f6   :  { %v3247_v1 = vadd.f32 %v3226_v43, %v11651_v44 }
 0x2f7   :  { %v9160_v48 = vpop.f32.mrf.mxu1  ;;  %v9252_v26 = vpop.f32.mrf.mxu0 }
 0x2f8   :  { %v11788_v58 = vadd.f32 %v3455_v16, %v3247_v1 }
 0x2f9   :  { %v3617_v20 = vpop.f32.mrf.mxu1  ;;  %v3802_v34 = vpop.f32.mrf.mxu0  ;;  %9390 = vmatmul.mubr.msk.bf16.gmra.mxu1 %vm2633_vm2, %v10039_v55  ;;  %9438 = vmatmul.mubr.msk.bf16.gmra.mxu0 %vm2633_vm2, %v10040_v31 }
 0x2fa   :  { %v3688_v40 = vadd.f32 %v3617_v20, %v11662_v25  ;;  %9393 = vmatprep.mubr.msk.bf16.mxu1 %vm10201_vm1, %v10200_v9  ;;  %9485 = vmatprep.mubr.msk.bf16.mxu0 %vm10201_vm1, %v10200_v9  ;;  %v10050_v25 = vld [vmem:[%s12870_s3 + $0xe8] sm:$0xff]  }
 0x2fb   :  { %v9207_v44 = vpop.f32.mrf.mxu1  ;;  %v9255_v38 = vpop.f32.mrf.mxu0 }
 0x2fc   :  { %v11797_v37 = vadd.f32 %v3786_v8, %v3688_v40 }
 0x2fd   :  { %v3620_v56 = vpop.f32.mrf.mxu1  ;;  %v3805_v29 = vpop.f32.mrf.mxu0 }
 0x2fe   :  { %v3689_v2 = vadd.f32 %v3620_v56, %v11668_v15 }
 0x2ff   :  { %v9208_v16 = vpop.f32.mrf.mxu1  ;;  %v9256_v36 = vpop.f32.mrf.mxu0 }
 0x300   :  { %v11805_v28 = vadd.f32 %v3789_v49, %v3689_v2 }
 0x301   :  { %v3625_v54 = vpop.f32.mrf.mxu1  ;;  %v3810_v7 = vpop.f32.mrf.mxu0  ;;  %9394 = vmatmul.mubr.msk.bf16.gmra.mxu1 %vm2633_vm2, %v11800_v17  ;;  %9486 = vmatmul.mubr.msk.bf16.vlgmr.msra.gmra.mxu0 %vm2633_vm2, %v11336_v53 }
 0x302   :  { %v3690_v15 = vadd.f32 %v3625_v54, %v11682_v19  ;;  %9397 = vmatprep.mubr.msk.bf16.mxu1 %vm10201_vm1, %v10200_v9  ;;  %9489 = vmatprep.mubr.msk.bf16.mxu0 %vm10201_vm1, %v10200_v9 }
 0x303   :  { %v9211_v8 = vpop.f32.mrf.mxu1  ;;  %v9259_v22 = vpop.f32.mrf.mxu0  ;;  %9562 = vmatpush3.bf16.msra.mxu0 %v10050_v25 }
 0x304   :  { %9563 = vmatprep.subr.bf16.mxu0 %v10200_v9  ;;  %v11820_v0 = vadd.f32 %v3794_v60, %v3690_v15 }
 0x305   :  { %v3628_v53 = vpop.f32.mrf.mxu1  ;;  %v3813_v49 = vpop.f32.mrf.mxu0 }
 0x306   :  { %v3691_v19 = vadd.f32 %v3628_v53, %v11685_v4 }
 0x307   :  { %v9212_v47 = vpop.f32.mrf.mxu1  ;;  %v9260_v59 = vpop.f32.mrf.mxu0  ;;  %9564 = vmatpush3.bf16.msra.mxu0 %v10051_v45 }
 0x308   :  { %v11825_v14 = vadd.f32 %v3797_v50, %v3691_v19  ;;  %9641 = vmatprep.subr.bf16.mxu0 %v10200_v9 }
 0x309   :  { %v3633_v52 = vpop.f32.mrf.mxu1  ;;  %v3818_v6 = vpop.f32.mrf.mxu0  ;;  %9398 = vmatmul.mubr.msk.bf16.gmra.mxu1 %vm2633_vm2, %v11823_v12  ;;  %9490 = vmatmul.mubr.msk.bf16.gmra.mxu0 %vm2633_vm2, %v11346_v57  ;;  %v10045_v57 = vld [vmem:[%s12870_s3 + $0xd8] sm:$0xff]  }
 0x30a   :  { %v3692_v60 = vadd.f32 %v3633_v52, %v11695_v30  ;;  %9445 = vmatprep.mubr.msk.bf16.mxu1 %vm10201_vm1, %v10200_v9  ;;  %9493 = vmatprep.mubr.msk.bf16.mxu0 %vm10201_vm1, %v10200_v9 }
 0x30b   :  { %v9215_v4 = vpop.f32.mrf.mxu1  ;;  %v9263_v32 = vpop.f32.mrf.mxu0 }
 0x30c   :  { %v11837_v43 = vadd.f32 %v3802_v34, %v3692_v60  ;;  %v11894_v32 = vld [vmem:[#allocation2 + $0x160] sm:$0xff]  }
 0x30d   :  { %v3636_v50 = vpop.f32.mrf.mxu1  ;;  %v3821_v1 = vpop.f32.mrf.mxu0 }
 0x30e   :  { %v3693_v48 = vadd.f32 %v3636_v50, %v11701_v27  ;;  %v10047_v27 = vld [vmem:[%s12870_s3 + $0xd0] sm:$0xff]  }
 0x30f   :  { %v9216_v26 = vpop.f32.mrf.mxu1  ;;  %v9264_v30 = vpop.f32.mrf.mxu0 }
 0x310   :  { %v11843_v55 = vadd.f32 %v3805_v29, %v3693_v48 }
 0x311   :  { %v3641_v31 = vpop.f32.mrf.mxu1  ;;  %v3826_v20 = vpop.f32.mrf.mxu0  ;;  %9446 = vmatmul.mubr.msk.bf16.vlgmr.msra.gmra.mxu1 %vm2633_vm2, %v11361_v63  ;;  %9494 = vmatmul.mubr.msk.bf16.gmra.mxu0 %vm2633_vm2, %v11359_v62 }
 0x312   :  { %v3694_v34 = vadd.f32 %v3641_v31, %v11714_v13  ;;  %9522 = vmatpush3.bf16.msra.mxu1 %v10045_v57  ;;  %9449 = vmatprep.mubr.msk.bf16.mxu1 %vm10201_vm1, %v10200_v9 }
 0x313   :  { %v9219_v40 = vpop.f32.mrf.mxu1  ;;  %v9267_v44 = vpop.f32.mrf.mxu0  ;;  %9497 = vmatprep.mubr.msk.bf16.mxu0 %vm10201_vm1, %v10200_v9  ;;  %9523 = vmatprep.subr.bf16.mxu1 %v10200_v9 }
 0x314   :  { %v11858_v63 = vadd.f32 %v3810_v7, %v3694_v34 }
 0x315   :  { %v3644_v62 = vpop.f32.mrf.mxu1  ;;  %v3829_v38 = vpop.f32.mrf.mxu0 }
 0x316   :  { %v3695_v13 = vadd.f32 %v3644_v62, %v11718_v5  ;;  %9524 = vmatpush3.bf16.msra.mxu1 %v10047_v27 }
 0x317   :  { %v9220_v56 = vpop.f32.mrf.mxu1  ;;  %v9268_v29 = vpop.f32.mrf.mxu0  ;;  %9601 = vmatprep.subr.bf16.mxu1 %v10200_v9 }
 0x318   :  { %v11862_v2 = vadd.f32 %v3813_v49, %v3695_v13 }
 0x319   :  { %v3649_v16 = vpop.f32.mrf.mxu1  ;;  %v3834_v36 = vpop.f32.mrf.mxu0  ;;  %9450 = vmatmul.mubr.msk.bf16.gmra.mxu1 %vm2633_vm2, %v11375_v18  ;;  %9498 = vmatmul.mubr.msk.bf16.gmra.mxu0 %vm2633_vm2, %v11371_v11 }
 0x31a   :  { %v3696_v25 = vadd.f32 %v3649_v16, %v11728_v61  ;;  %9453 = vmatprep.mubr.msk.bf16.mxu1 %vm10201_vm1, %v10200_v9  ;;  %9501 = vmatprep.mubr.msk.bf16.mxu0 %vm10201_vm1, %v10200_v9  ;;  %v11919_v16 = vld [vmem:[#allocation2 + $0x1d0] sm:$0xff]  }
 0x31b   :  { %v9223_v5 = vpop.f32.mrf.mxu1  ;;  %v9271_v54 = vpop.f32.mrf.mxu0 }
 0x31c   :  { %v11873_v7 = vadd.f32 %v3818_v6, %v3696_v25  ;;  %v10186_v5 = vld [vmem:[#allocation2 + $0x138] sm:$0xff]  }
 0x31d   :  { %v3652_v15 = vpop.f32.mrf.mxu1  ;;  %v3837_v8 = vpop.f32.mrf.mxu0 }
 0x31e   :  { %v3697_v22 = vadd.f32 %v3652_v15, %v11731_v3 }
 0x31f   :  { %v9224_v18 = vpop.f32.mrf.mxu1  ;;  %v9272_v45 = vpop.f32.mrf.mxu0 }
 0x320   :  { %v11876_v53 = vadd.f32 %v3821_v1, %v3697_v22 }
 0x321   :  { %v3657_v11 = vpop.f32.mrf.mxu1  ;;  %v3842_v61 = vpop.f32.mrf.mxu0  ;;  %9454 = vmatmul.mubr.msk.bf16.gmra.mxu1 %vm2633_vm2, %v11387_v23  ;;  %9502 = vmatmul.mubr.msk.bf16.gmra.mxu0 %vm2633_vm2, %v11389_v24 }
 0x322   :  { %v3698_v49 = vadd.f32 %v3657_v11, %v11741_v35  ;;  %9457 = vmatprep.mubr.msk.bf16.mxu1 %vm10201_vm1, %v10200_v9  ;;  %9505 = vmatprep.mubr.msk.bf16.mxu0 %vm10201_vm1, %v10200_v9 }
 0x323   :  { %v9227_v3 = vpop.f32.mrf.mxu1  ;;  %v9275_v19 = vpop.f32.mrf.mxu0 }
 0x324   :  { %v11887_v47 = vadd.f32 %v3826_v20, %v3698_v49  ;;  %v10046_v20 = vld [vmem:[#allocation2 + $0x1c0] sm:$0xff]  }
 0x325   :  { %v3660_v59 = vpop.f32.mrf.mxu1  ;;  %v3845_v52 = vpop.f32.mrf.mxu0  ;;  %v11934_v49 = vld [vmem:[#allocation2 + $0x1e0] sm:$0xff]  }
 0x326   :  { %v3699_v6 = vadd.f32 %v3660_v59, %v11744_v51 }
 0x327   :  { %v9228_v23 = vpop.f32.mrf.mxu1  ;;  %v9276_v60 = vpop.f32.mrf.mxu0 }
 0x328   :  { %v11890_v4 = vadd.f32 %v3829_v38, %v3699_v6 }
 0x329   :  { %v3665_v24 = vpop.f32.mrf.mxu1  ;;  %v3850_v35 = vpop.f32.mrf.mxu0  ;;  %9458 = vmatmul.mubr.msk.bf16.gmra.mxu1 %vm2633_vm2, %v11758_v39  ;;  %9506 = vmatmul.mubr.msk.bf16.gmra.mxu0 %vm2633_vm2, %v11894_v32 }
 0x32a   :  { %v3700_v50 = vadd.f32 %v3665_v24, %v11753_v42  ;;  %9461 = vmatprep.mubr.msk.bf16.mxu1 %vm10201_vm1, %v10200_v9  ;;  %9509 = vmatprep.mubr.msk.bf16.mxu0 %vm10201_vm1, %v10200_v9 }
 0x32b   :  { %v9231_v51 = vpop.f32.mrf.mxu1  ;;  %v9279_v1 = vpop.f32.mrf.mxu0 }
 0x32c   :  { %v11903_v48 = vadd.f32 %v3834_v36, %v3700_v50  ;;  %v10187_v1 = vld [vmem:[#allocation2 + $0xd0] sm:$0xff]  }
 0x32d   :  { %v3668_v57 = vpop.f32.mrf.mxu1  ;;  %v3853_v26 = vpop.f32.mrf.mxu0 }
 0x32e   :  { %v3701_v39 = vadd.f32 %v3668_v57, %v11756_v41 }
 0x32f   :  { %v9232_v30 = vpop.f32.mrf.mxu1  ;;  %v9280_v31 = vpop.f32.mrf.mxu0 }
 0x330   :  { %v11906_v34 = vadd.f32 %v3837_v8, %v3701_v39 }
 0x331   :  { %v3673_v42 = vpop.f32.mrf.mxu1  ;;  %v4124_v27 = vpop.f32.mrf.mxu0  ;;  %9462 = vmatmul.mubr.msk.bf16.gmra.mxu1 %vm2633_vm2, %v11774_v33  ;;  %9510 = vmatmul.mubr.msk.bf16.gmra.mxu0 %vm2633_vm2, %v10046_v20 }
 0x332   :  { %v3702_v40 = vadd.f32 %v3673_v42, %v11769_v46  ;;  %9465 = vmatprep.mubr.msk.bf16.mxu1 %vm10201_vm1, %v10200_v9  ;;  %9513 = vmatprep.mubr.msk.bf16.mxu0 %vm10201_vm1, %v10200_v9 }
 0x333   :  { %v9235_v41 = vpop.f32.mrf.mxu1  ;;  %v9327_v44 = vpop.f32.mrf.mxu0 }
 0x334   :  { %v11916_v62 = vadd.f32 %v3842_v61, %v3702_v40  ;;  %v10188_v44 = vld [vmem:[#allocation2 + $0xe0] sm:$0xff]  }
 0x335   :  { %v3676_v38 = vpop.f32.mrf.mxu1  ;;  %v4127_v13 = vpop.f32.mrf.mxu0 }
 0x336   :  { %v3703_v56 = vadd.f32 %v3676_v38, %v11772_v21 }
 0x337   :  { %v9236_v29 = vpop.f32.mrf.mxu1  ;;  %v9328_v33 = vpop.f32.mrf.mxu0 }
 0x338   :  { %v11921_v36 = vadd.f32 %v3845_v52, %v3703_v56 }
 0x339   :  { %v3681_v46 = vpop.f32.mrf.mxu1  ;;  %v4132_v25 = vpop.f32.mrf.mxu0  ;;  %9466 = vmatmul.mubr.msk.bf16.gmra.mxu1 %vm2633_vm2, %v10186_v5  ;;  %9514 = vmatmul.mubr.msk.bf16.gmra.mxu0 %vm2633_vm2, %v11919_v16 }
 0x33a   :  { %v3704_v54 = vadd.f32 %v3681_v46, %v11785_v10  ;;  %9469 = vmatprep.mubr.msk.bf16.mxu1 %vm10201_vm1, %v10200_v9  ;;  %9517 = vmatprep.mubr.msk.bf16.mxu0 %vm10201_vm1, %v10200_v9 }
 0x33b   :  { %v9239_v21 = vpop.f32.mrf.mxu1  ;;  %v9331_v15 = vpop.f32.mrf.mxu0 }
 0x33c   :  { %v11931_v8 = vadd.f32 %v3850_v35, %v3704_v54 }
 0x33d   :  { %v3684_v22 = vpop.f32.mrf.mxu1  ;;  %v4135_v18 = vpop.f32.mrf.mxu0 }
 0x33e   :  { %v3705_v45 = vadd.f32 %v3684_v22, %v11788_v58  ;;  %v10189_v22 = vld [vmem:[#allocation2 + $0xc8] sm:$0xff]  }
 0x33f   :  { %v9240_v11 = vpop.f32.mrf.mxu1  ;;  %v9332_v61 = vpop.f32.mrf.mxu0 }
 0x340   :  { %v11936_v3 = vadd.f32 %v3853_v26, %v3705_v45 }
 0x341   :  { %v3955_v10 = vpop.f32.mrf.mxu1  ;;  %v4140_v19 = vpop.f32.mrf.mxu0  ;;  %9470 = vmatmul.mubr.msk.bf16.gmra.mxu1 %vm2633_vm2, %v11800_v17  ;;  %9518 = vmatmul.mubr.msk.bf16.gmra.mxu0 %vm2633_vm2, %v11934_v49 }
 0x342   :  { %v4026_v59 = vadd.f32 %v3955_v10, %v11797_v37  ;;  %9473 = vmatprep.mubr.msk.bf16.mxu1 %vm10201_vm1, %v10200_v9  ;;  %9565 = vmatprep.mubr.msk.bf16.mxu0 %vm10201_vm1, %v10200_v9 }
 0x343   :  { %v9287_v58 = vpop.f32.mrf.mxu1  ;;  %v9335_v52 = vpop.f32.mrf.mxu0 }
 0x344   :  { %v11947_v6 = vadd.f32 %v4124_v27, %v4026_v59  ;;  %v10052_v27 = vld [vmem:[#allocation2 + $0x1b8] sm:$0xff]  }
 0x345   :  { %v3958_v23 = vpop.f32.mrf.mxu1  ;;  %v4143_v60 = vpop.f32.mrf.mxu0 }
 0x346   :  { %v4027_v24 = vadd.f32 %v3958_v23, %v11805_v28 }
 0x347   :  { %v9288_v17 = vpop.f32.mrf.mxu1  ;;  %v9336_v35 = vpop.f32.mrf.mxu0 }
 0x348   :  { %v11950_v50 = vadd.f32 %v4127_v13, %v4027_v24  ;;  %v11997_v17 = vld [vmem:[#allocation2 + $0xd8] sm:$0xff]   ;;  %v10192_v35 = vld [vmem:[#allocation2 + $0x150] sm:$0xff]  }
 0x349   :  { %v3963_v51 = vpop.f32.mrf.mxu1  ;;  %v4148_v37 = vpop.f32.mrf.mxu0  ;;  %9474 = vmatmul.mubr.msk.bf16.gmra.mxu1 %vm2633_vm2, %v11823_v12  ;;  %9566 = vmatmul.mubr.msk.bf16.vlgmr.msra.gmra.mxu0 %vm2633_vm2, %v10187_v1 }
 0x34a   :  { %v4028_v57 = vadd.f32 %v3963_v51, %v11820_v0  ;;  %9477 = vmatprep.mubr.msk.bf16.mxu1 %vm10201_vm1, %v10200_v9  ;;  %9569 = vmatprep.mubr.msk.bf16.mxu0 %vm10201_vm1, %v10200_v9 }
 0x34b   :  { %v9291_v28 = vpop.f32.mrf.mxu1  ;;  %v9339_v26 = vpop.f32.mrf.mxu0 }
 0x34c   :  { %v11960_v39 = vadd.f32 %v4132_v25, %v4028_v57  ;;  %v10053_v25 = vld [vmem:[%s12870_s3 + $0xf8] sm:$0xff]  }
 0x34d   :  { %v3966_v30 = vpop.f32.mrf.mxu1  ;;  %v4151_v31 = vpop.f32.mrf.mxu0 }
 0x34e   :  { %v4029_v20 = vadd.f32 %v3966_v30, %v11825_v14 }
 0x34f   :  { %v9292_v12 = vpop.f32.mrf.mxu1  ;;  %v9340_v42 = vpop.f32.mrf.mxu0 }
 0x350   :  { %v11963_v40 = vadd.f32 %v4135_v18, %v4029_v20  ;;  %v10190_v18 = vld [vmem:[#allocation2 + $0xf0] sm:$0xff]   ;;  %v12012_v42 = vld [vmem:[#allocation2 + $0xe8] sm:$0xff]  }
 0x351   :  { %v3971_v0 = vpop.f32.mrf.mxu1  ;;  %v4156_v41 = vpop.f32.mrf.mxu0  ;;  %9478 = vmatmul.mubr.msk.bf16.gmra.mxu1 %vm2633_vm2, %v10052_v27  ;;  %9570 = vmatmul.mubr.msk.bf16.gmra.mxu0 %vm2633_vm2, %v10188_v44 }
 0x352   :  { %v4030_v38 = vadd.f32 %v3971_v0, %v11837_v43  ;;  %9525 = vmatprep.mubr.msk.bf16.mxu1 %vm10201_vm1, %v10200_v9  ;;  %9573 = vmatprep.mubr.msk.bf16.mxu0 %vm10201_vm1, %v10200_v9 }
 0x353   :  { %v9295_v14 = vpop.f32.mrf.mxu1  ;;  %v9343_v13 = vpop.f32.mrf.mxu0 }
 0x354   :  { %v11972_v56 = vadd.f32 %v4140_v19, %v4030_v38 }
 0x355   :  { %v3974_v29 = vpop.f32.mrf.mxu1  ;;  %v4159_v33 = vpop.f32.mrf.mxu0 }
 0x356   :  { %v4031_v46 = vadd.f32 %v3974_v29, %v11843_v55  ;;  %v10054_v55 = vld [vmem:[%s12870_s3 + $0xf0] sm:$0xff]  }
 0x357   :  { %v9296_v5 = vpop.f32.mrf.mxu1  ;;  %v9344_v43 = vpop.f32.mrf.mxu0 }
 0x358   :  { %v11978_v54 = vadd.f32 %v4143_v60, %v4031_v46  ;;  %v10194_v46 = vld [vmem:[#allocation2 + $0x148] sm:$0xff]  }
 0x359   :  { %v3979_v21 = vpop.f32.mrf.mxu1  ;;  %v4164_v15 = vpop.f32.mrf.mxu0  ;;  %9526 = vmatmul.mubr.msk.bf16.vlgmr.msra.gmra.mxu1 %vm2633_vm2, %v10189_v22  ;;  %9574 = vmatmul.mubr.msk.bf16.gmra.mxu0 %vm2633_vm2, %v10190_v18 }
 0x35a   :  { %v4032_v45 = vadd.f32 %v3979_v21, %v11858_v63  ;;  %9602 = vmatpush3.bf16.msra.mxu1 %v10053_v25  ;;  %9529 = vmatprep.mubr.msk.bf16.mxu1 %vm10201_vm1, %v10200_v9  ;;  %v10195_v25 = vld [vmem:[#allocation2 + $0x170] sm:$0xff]  }
 0x35b   :  { %v9299_v11 = vpop.f32.mrf.mxu1  ;;  %v9347_v61 = vpop.f32.mrf.mxu0  ;;  %9577 = vmatprep.mubr.msk.bf16.mxu0 %vm10201_vm1, %v10200_v9  ;;  %9603 = vmatprep.subr.bf16.mxu1 %v10200_v9 }
 0x35c   :  { %v11991_v10 = vadd.f32 %v4148_v37, %v4032_v45 }
 0x35d   :  { %v3982_v19 = vpop.f32.mrf.mxu1  ;;  %v4167_v59 = vpop.f32.mrf.mxu0 }
 0x35e   :  { %v4033_v63 = vadd.f32 %v3982_v19, %v11862_v2  ;;  %9604 = vmatpush3.bf16.msra.mxu1 %v10054_v55  ;;  %v12040_v19 = vld [vmem:[#allocation2 + $0x158] sm:$0xff]  }
 0x35f   :  { %v9300_v58 = vpop.f32.mrf.mxu1  ;;  %v9348_v52 = vpop.f32.mrf.mxu0  ;;  %9653 = vmatprep.subr.bf16.mxu1 %v10200_v9 }
 0x360   :  { %v11995_v23 = vadd.f32 %v4151_v31, %v4033_v63 }
 0x361   :  { %v3987_v60 = vpop.f32.mrf.mxu1  ;;  %v4172_v24 = vpop.f32.mrf.mxu0  ;;  %9530 = vmatmul.mubr.msk.bf16.gmra.mxu1 %vm2633_vm2, %v11997_v17  ;;  %9578 = vmatmul.mubr.msk.bf16.gmra.mxu0 %vm2633_vm2, %v10192_v35 }
 0x362   :  { %v4034_v51 = vadd.f32 %v3987_v60, %v11873_v7  ;;  %9533 = vmatprep.mubr.msk.bf16.mxu1 %vm10201_vm1, %v10200_v9  ;;  %9581 = vmatprep.mubr.msk.bf16.mxu0 %vm10201_vm1, %v10200_v9 }
 0x363   :  { %v9303_v2 = vpop.f32.mrf.mxu1  ;;  %v9351_v37 = vpop.f32.mrf.mxu0 }
 0x364   :  { %v12007_v1 = vadd.f32 %v4156_v41, %v4034_v51  ;;  %v12056_v37 = vld [vmem:[#allocation2 + $0x168] sm:$0xff]  }
 0x365   :  { %v3990_v57 = vpop.f32.mrf.mxu1  ;;  %v4175_v28 = vpop.f32.mrf.mxu0 }
 0x366   :  { %v4035_v26 = vadd.f32 %v3990_v57, %v11876_v53 }
 0x367   :  { %v9304_v30 = vpop.f32.mrf.mxu1  ;;  %v9352_v31 = vpop.f32.mrf.mxu0 }
 0x368   :  { %v12010_v20 = vadd.f32 %v4159_v33, %v4035_v26 }
 0x369   :  { %v3995_v12 = vpop.f32.mrf.mxu1  ;;  %v4180_v7 = vpop.f32.mrf.mxu0  ;;  %9534 = vmatmul.mubr.msk.bf16.gmra.mxu1 %vm2633_vm2, %v12012_v42  ;;  %9582 = vmatmul.mubr.msk.bf16.gmra.mxu0 %vm2633_vm2, %v11894_v32 }
 0x36a   :  { %v4036_v27 = vadd.f32 %v3995_v12, %v11887_v47  ;;  %9537 = vmatprep.mubr.msk.bf16.mxu1 %vm10201_vm1, %v10200_v9  ;;  %9585 = vmatprep.mubr.msk.bf16.mxu0 %vm10201_vm1, %v10200_v9 }
 0x36b   :  { %v9307_v53 = vpop.f32.mrf.mxu1  ;;  %v9355_v0 = vpop.f32.mrf.mxu0 }
 0x36c   :  { %v12023_v41 = vadd.f32 %v4164_v15, %v4036_v27  ;;  %v10055_v53 = vld [vmem:[#allocation2 + $0x1c8] sm:$0xff]  }
 0x36d   :  { %v3998_v44 = vpop.f32.mrf.mxu1  ;;  %v4183_v38 = vpop.f32.mrf.mxu0 }
 0x36e   :  { %v4037_v14 = vadd.f32 %v3998_v44, %v11890_v4 }
 0x36f   :  { %v9308_v13 = vpop.f32.mrf.mxu1  ;;  %v9356_v29 = vpop.f32.mrf.mxu0 }
 0x370   :  { %v12026_v33 = vadd.f32 %v4167_v59, %v4037_v14 }
 0x371   :  { %v4003_v32 = vpop.f32.mrf.mxu1  ;;  %v4188_v47 = vpop.f32.mrf.mxu0  ;;  %9538 = vmatmul.mubr.msk.bf16.gmra.mxu1 %vm2633_vm2, %v10194_v46  ;;  %9586 = vmatmul.mubr.msk.bf16.gmra.mxu0 %vm2633_vm2, %v10195_v25 }
 0x372   :  { %v4038_v5 = vadd.f32 %v4003_v32, %v11903_v48  ;;  %9541 = vmatprep.mubr.msk.bf16.mxu1 %vm10201_vm1, %v10200_v9  ;;  %9589 = vmatprep.mubr.msk.bf16.mxu0 %vm10201_vm1, %v10200_v9 }
 0x373   :  { %v9311_v4 = vpop.f32.mrf.mxu1  ;;  %v9359_v43 = vpop.f32.mrf.mxu0 }
 0x374   :  { %v12035_v21 = vadd.f32 %v4172_v24, %v4038_v5  ;;  %v12082_v5 = vld [vmem:[#allocation2 + $0x1d8] sm:$0xff]  }
 0x375   :  { %v4006_v15 = vpop.f32.mrf.mxu1  ;;  %v4191_v22 = vpop.f32.mrf.mxu0 }
 0x376   :  { %v4039_v18 = vadd.f32 %v4006_v15, %v11906_v34 }
 0x377   :  { %v9312_v45 = vpop.f32.mrf.mxu1  ;;  %v9360_v55 = vpop.f32.mrf.mxu0 }
 0x378   :  { %v12038_v11 = vadd.f32 %v4175_v28, %v4039_v18 }
 0x379   :  { %v4011_v61 = vpop.f32.mrf.mxu1  ;;  %v4442_v48 = vpop.f32.mrf.mxu0  ;;  %9542 = vmatmul.mubr.msk.bf16.gmra.mxu1 %vm2633_vm2, %v12040_v19  ;;  %9590 = vmatmul.mubr.msk.bf16.gmra.mxu0 %vm2633_vm2, %v11919_v16 }
 0x37a   :  { %v4040_v59 = vadd.f32 %v4011_v61, %v11916_v62  ;;  %9545 = vmatprep.mubr.msk.bf16.mxu1 %vm10201_vm1, %v10200_v9  ;;  %9593 = vmatprep.mubr.msk.bf16.mxu0 %vm10201_vm1, %v10200_v9 }
 0x37b   :  { %v9315_v34 = vpop.f32.mrf.mxu1  ;;  %v9407_v63 = vpop.f32.mrf.mxu0 }
 0x37c   :  { %v12051_v58 = vadd.f32 %v4180_v7, %v4040_v59  ;;  %v12094_v34 = vld [vmem:[#allocation2 + $0x1e8] sm:$0xff]  }
 0x37d   :  { %v4014_v52 = vpop.f32.mrf.mxu1  ;;  %v4445_v60 = vpop.f32.mrf.mxu0 }
 0x37e   :  { %v4041_v24 = vadd.f32 %v4014_v52, %v11921_v36 }
 0x37f   :  { %v9316_v35 = vpop.f32.mrf.mxu1  ;;  %v9408_v51 = vpop.f32.mrf.mxu0 }
 0x380   :  { %v12054_v2 = vadd.f32 %v4183_v38, %v4041_v24 }
 0x381   :  { %v4019_v16 = vpop.f32.mrf.mxu1  ;;  %v4450_v62 = vpop.f32.mrf.mxu0  ;;  %9546 = vmatmul.mubr.msk.bf16.gmra.mxu1 %vm2633_vm2, %v12056_v37  ;;  %9594 = vmatmul.mubr.msk.bf16.gmra.mxu0 %vm2633_vm2, %v11934_v49  ;;  %v10056_v49 = vld [vmem:[#allocation2 + $0x1f0] sm:$0xff]  }
 0x382   :  { %v4042_v57 = vadd.f32 %v4019_v16, %v11931_v8  ;;  %9549 = vmatprep.mubr.msk.bf16.mxu1 %vm10201_vm1, %v10200_v9  ;;  %9597 = vmatprep.mubr.msk.bf16.mxu0 %vm10201_vm1, %v10200_v9 }
 0x383   :  { %v9319_v36 = vpop.f32.mrf.mxu1  ;;  %v9411_v28 = vpop.f32.mrf.mxu0 }
 0x384   :  { %v12067_v26 = vadd.f32 %v4188_v47, %v4042_v57 }
 0x385   :  { %v4022_v30 = vpop.f32.mrf.mxu1  ;;  %v4453_v31 = vpop.f32.mrf.mxu0 }
 0x386   :  { %v4043_v12 = vadd.f32 %v4022_v30, %v11936_v3 }
 0x387   :  { %v9320_v7 = vpop.f32.mrf.mxu1  ;;  %v9412_v27 = vpop.f32.mrf.mxu0 }
 0x388   :  { %v12070_v0 = vadd.f32 %v4191_v22, %v4043_v12 }
 0x389   :  { %v4293_v8 = vpop.f32.mrf.mxu1  ;;  %v4458_v44 = vpop.f32.mrf.mxu0  ;;  %9550 = vmatmul.mubr.msk.bf16.gmra.mxu1 %vm2633_vm2, %v10055_v53  ;;  %9598 = vmatmul.mubr.msk.bf16.gmra.mxu0 %vm2633_vm2, %v10056_v49 }
 0x38a   :  { %v4364_v38 = vadd.f32 %v4293_v8, %v11947_v6  ;;  %9553 = vmatprep.mubr.msk.bf16.mxu1 %vm10201_vm1, %v10200_v9  ;;  %9649 = vmatprep.mubr.msk.bf16.mxu0 %vm10201_vm1, %v10200_v9 }
 0x38b   :  { %v9367_v3 = vpop.f32.mrf.mxu1  ;;  %v9415_v14 = vpop.f32.mrf.mxu0 }
 0x38c   :  { %v12079_v13 = vadd.f32 %v4442_v48, %v4364_v38 }
 0x38d   :  { %v4296_v29 = vpop.f32.mrf.mxu1  ;;  %v4461_v32 = vpop.f32.mrf.mxu0 }
 0x38e   :  { %v4365_v47 = vadd.f32 %v4296_v29, %v11950_v50 }
 0x38f   :  { %v9368_v46 = vpop.f32.mrf.mxu1  ;;  %v9416_v25 = vpop.f32.mrf.mxu0 }
 0x390   :  { %v12084_v4 = vadd.f32 %v4445_v60, %v4365_v47 }
 0x391   :  { %v4301_v6 = vpop.f32.mrf.mxu1  ;;  %v4466_v43 = vpop.f32.mrf.mxu0  ;;  %9554 = vmatmul.mubr.msk.bf16.gmra.mxu1 %vm2633_vm2, %v12082_v5 }
 0x392   :  { %v4366_v15 = vadd.f32 %v4301_v6, %v11960_v39  ;;  %9557 = vmatprep.mubr.msk.bf16.mxu1 %vm10201_vm1, %v10200_v9 }
 0x393   :  { %v9371_v22 = vpop.f32.mrf.mxu1  ;;  %v9419_v18 = vpop.f32.mrf.mxu0 }
 0x394   :  { %v12091_v45 = vadd.f32 %v4450_v62, %v4366_v15 }
 0x395   :  { %v4304_v50 = vpop.f32.mrf.mxu1  ;;  %v4469_v55 = vpop.f32.mrf.mxu0 }
 0x396   :  { %v4367_v61 = vadd.f32 %v4304_v50, %v11963_v40 }
 0x397   :  { %v9372_v48 = vpop.f32.mrf.mxu1  ;;  %v9420_v59 = vpop.f32.mrf.mxu0 }
 0x398   :  { %v12096_v63 = vadd.f32 %v4453_v31, %v4367_v61 }
 0x399   :  { %v4309_v52 = vpop.f32.mrf.mxu1  ;;  %v4474_v60 = vpop.f32.mrf.mxu0  ;;  %9558 = vmatmul.mubr.msk.bf16.gmra.mxu1 %vm2633_vm2, %v12094_v34 }
 0x39a   :  { %v4368_v39 = vadd.f32 %v4309_v52, %v11972_v56  ;;  %9605 = vmatprep.mubr.msk.bf16.mxu1 %vm10201_vm1, %v10200_v9 }
 0x39b   :  { %v9375_v24 = vpop.f32.mrf.mxu1  ;;  %v9423_v35 = vpop.f32.mrf.mxu0 }
 0x39c   :  { %v12103_v51 = vadd.f32 %v4458_v44, %v4368_v39 }
 0x39d   :  { %v4312_v40 = vpop.f32.mrf.mxu1  ;;  %v4477_v16 = vpop.f32.mrf.mxu0 }
 0x39e   :  { %v4369_v62 = vadd.f32 %v4312_v40, %v11978_v54 }
 0x39f   :  { %v9376_v57 = vpop.f32.mrf.mxu1  ;;  %v9424_v36 = vpop.f32.mrf.mxu0 }
 0x3a0   :  { %v12106_v28 = vadd.f32 %v4461_v32, %v4369_v62 }
 0x3a1   :  { %v4317_v30 = vpop.f32.mrf.mxu1  ;;  %v4482_v31 = vpop.f32.mrf.mxu0  ;;  %9606 = vmatmul.mubr.msk.bf16.vlgmr.msra.gmra.mxu1 %vm2633_vm2, %v11997_v17 }
 0x3a2   :  { %v4370_v56 = vadd.f32 %v4317_v30, %v11991_v10  ;;  %9609 = vmatprep.mubr.msk.bf16.mxu1 %vm10201_vm1, %v10200_v9 }
 0x3a3   :  { %v9379_v12 = vpop.f32.mrf.mxu1  ;;  %v9427_v7 = vpop.f32.mrf.mxu0 }
 0x3a4   :  { %v12113_v27 = vadd.f32 %v4466_v43, %v4370_v56 }
 0x3a5   :  { %v4320_v53 = vpop.f32.mrf.mxu1  ;;  %v4485_v54 = vpop.f32.mrf.mxu0 }
 0x3a6   :  { %v4371_v49 = vadd.f32 %v4320_v53, %v11995_v23 }
 0x3a7   :  { %v9380_v8 = vpop.f32.mrf.mxu1  ;;  %v9428_v44 = vpop.f32.mrf.mxu0 }
 0x3a8   :  { %v12116_v38 = vadd.f32 %v4469_v55, %v4371_v49 }
 0x3a9   :  { %v4325_v3 = vpop.f32.mrf.mxu1  ;;  %v4490_v14 = vpop.f32.mrf.mxu0  ;;  %9610 = vmatmul.mubr.msk.bf16.gmra.mxu1 %vm2633_vm2, %v12012_v42  ;;  %v10198_v42 = vld [vmem:[#allocation2 + $0xf8] sm:$0xff]  }
 0x3aa   :  { %v4372_v10 = vadd.f32 %v4325_v3, %v12007_v1  ;;  %9613 = vmatprep.mubr.msk.bf16.mxu1 %vm10201_vm1, %v10200_v9 }
 0x3ab   :  { %v9383_v17 = vpop.f32.mrf.mxu1  ;;  %v9431_v29 = vpop.f32.mrf.mxu0 }
 0x3ac   :  { %v12123_v32 = vadd.f32 %v4474_v60, %v4372_v10  ;;  %v10199_v17 = vld [vmem:[#allocation2 + $0x178] sm:$0xff]  }
 0x3ad   :  { %v4328_v47 = vpop.f32.mrf.mxu1  ;;  %v4493_v23 = vpop.f32.mrf.mxu0 }
 0x3ae   :  { %v4373_v46 = vadd.f32 %v4328_v47, %v12010_v20 }
 0x3af   :  { %v9384_v25 = vpop.f32.mrf.mxu1  ;;  %v9432_v6 = vpop.f32.mrf.mxu0 }
 0x3b0   :  { %v12126_v43 = vadd.f32 %v4477_v16, %v4373_v46 }
 0x3b1   :  { %v4333_v15 = vpop.f32.mrf.mxu1  ;;  %v4498_v22 = vpop.f32.mrf.mxu0  ;;  %9614 = vmatmul.mubr.msk.bf16.gmra.mxu1 %vm2633_vm2, %v10198_v42 }
 0x3b2   :  { %v4374_v1 = vadd.f32 %v4333_v15, %v12023_v41  ;;  %9617 = vmatprep.mubr.msk.bf16.mxu1 %vm10201_vm1, %v10200_v9 }
 0x3b3   :  { %v9387_v18 = vpop.f32.mrf.mxu1  ;;  %v9435_v50 = vpop.f32.mrf.mxu0 }
 0x3b4   :  { %v12132_v55 = vadd.f32 %v4482_v31, %v4374_v1 }
 0x3b5   :  { %v4336_v61 = vpop.f32.mrf.mxu1  ;;  %v4501_v20 = vpop.f32.mrf.mxu0 }
 0x3b6   :  { %v4375_v48 = vadd.f32 %v4336_v61, %v12026_v33  ;;  %v10060_v33 = vld [vmem:[%s12872_s5 + $0x38] sm:$0xff]  }
 0x3b7   :  { %v9388_v59 = vpop.f32.mrf.mxu1  ;;  %v9436_v52 = vpop.f32.mrf.mxu0  ;;  %9642 = vmatpush3.bf16.msra.mxu0 %v10060_v33 }
 0x3b8   :  { %v12135_v60 = vadd.f32 %v4485_v54, %v4375_v48  ;;  %9643 = vmatprep.subr.bf16.mxu0 %v10200_v9 }
 0x3b9   :  { %v4341_v39 = vpop.f32.mrf.mxu1  ;;  %v4506_v24 = vpop.f32.mrf.mxu0  ;;  %9618 = vmatmul.mubr.msk.bf16.gmra.mxu1 %vm2633_vm2, %v12040_v19 }
 0x3ba   :  { %v4376_v41 = vadd.f32 %v4341_v39, %v12035_v21  ;;  %9621 = vmatprep.mubr.msk.bf16.mxu1 %vm10201_vm1, %v10200_v9 }
 0x3bb   :  { %v9391_v35 = vpop.f32.mrf.mxu1  ;;  %v9439_v40 = vpop.f32.mrf.mxu0 }
 0x3bc   :  { %v12145_v16 = vadd.f32 %v4490_v14, %v4376_v41  ;;  %v10061_v14 = vld [vmem:[%s12872_s5 + $0x18] sm:$0xff]  }
 0x3bd   :  { %v4344_v62 = vpop.f32.mrf.mxu1  ;;  %v4509_v57 = vpop.f32.mrf.mxu0  ;;  %9654 = vmatpush3.bf16.msra.mxu1 %v10061_v14 }
 0x3be   :  { %v4377_v36 = vadd.f32 %v4344_v62, %v12038_v11  ;;  %9655 = vmatprep.subr.bf16.mxu1 %v10200_v9 }
 0x3bf   :  { %v9392_v19 = vpop.f32.mrf.mxu1  ;;  %v9440_v21 = vpop.f32.mrf.mxu0 }
 0x3c0   :  { %v12149_v30 = vadd.f32 %v4493_v23, %v4377_v36  ;;  %v10062_v23 = vld [vmem:[%s12872_s5 + $0x30] sm:$0xff]  }
 0x3c1   :  { %v4349_v31 = vpop.f32.mrf.mxu1  ;;  %v4760_v56 = vpop.f32.mrf.mxu0  ;;  %9622 = vmatmul.mubr.msk.bf16.gmra.mxu1 %vm2633_vm2, %v12056_v37  ;;  %9644 = vmatpush3.bf16.msra.mxu0 %v10062_v23 }
 0x3c2   :  { %v4378_v12 = vadd.f32 %v4349_v31, %v12051_v58  ;;  %9625 = vmatprep.mubr.msk.bf16.mxu1 %vm10201_vm1, %v10200_v9  ;;  %9645 = vmatprep.subr.bf16.mxu0 %v10200_v9  ;;  %v10059_v31 = vld [vmem:[#allocation2 + $0x1f8] sm:$0xff]  }
 0x3c3   :  { %v9395_v7 = vpop.f32.mrf.mxu1  ;;  %v9487_v53 = vpop.f32.mrf.mxu0 }
 0x3c4   :  { %v12156_v54 = vadd.f32 %v4498_v22, %v4378_v12 }
 0x3c5   :  { %v4352_v11 = vpop.f32.mrf.mxu1  ;;  %v4763_v49 = vpop.f32.mrf.mxu0 }
 0x3c6   :  { %v4379_v8 = vadd.f32 %v4352_v11, %v12054_v2 }
 0x3c7   :  { %v9396_v44 = vpop.f32.mrf.mxu1  ;;  %v9488_v3 = vpop.f32.mrf.mxu0 }
 0x3c8   :  { %v12162_v37 = vadd.f32 %v4501_v20, %v4379_v8 }
 0x3c9   :  { %v4357_v58 = vpop.f32.mrf.mxu1  ;;  %v4768_v10 = vpop.f32.mrf.mxu0  ;;  %9626 = vmatmul.mubr.msk.bf16.gmra.mxu1 %vm2633_vm2, %v10199_v17 }
 0x3ca   :  { %v4380_v29 = vadd.f32 %v4357_v58, %v12067_v26  ;;  %9629 = vmatprep.mubr.msk.bf16.mxu1 %vm10201_vm1, %v10200_v9 }
 0x3cb   :  { %v9399_v2 = vpop.f32.mrf.mxu1  ;;  %v9491_v47 = vpop.f32.mrf.mxu0 }
 0x3cc   :  { %v12172_v46 = vadd.f32 %v4506_v24, %v4380_v29 }
 0x3cd   :  { %v4360_v25 = vpop.f32.mrf.mxu1  ;;  %v4771_v6 = vpop.f32.mrf.mxu0 }
 0x3ce   :  { %v4381_v15 = vadd.f32 %v4360_v25, %v12070_v0 }
 0x3cf   :  { %v9400_v26 = vpop.f32.mrf.mxu1  ;;  %v9492_v22 = vpop.f32.mrf.mxu0 }
 0x3d0   :  { %v12176_v42 = vadd.f32 %v4509_v57, %v4381_v15 }
 0x3d1   :  { %v4591_v1 = vpop.f32.mrf.mxu1  ;;  %v4776_v18 = vpop.f32.mrf.mxu0  ;;  %9630 = vmatmul.mubr.msk.bf16.gmra.mxu1 %vm2633_vm2, %v12082_v5  ;;  %v10063_v5 = vld [vmem:[%s12872_s5 + $0x10] sm:$0xff]  }
 0x3d2   :  { %v4662_v50 = vadd.f32 %v4591_v1, %v12079_v13  ;;  %9633 = vmatprep.mubr.msk.bf16.mxu1 %vm10201_vm1, %v10200_v9  ;;  %9656 = vmatpush3.bf16.msra.mxu1 %v10063_v5 }
 0x3d3   :  { %v9447_v61 = vpop.f32.mrf.mxu1  ;;  %v9495_v20 = vpop.f32.mrf.mxu0  ;;  %9657 = vmatprep.subr.bf16.mxu1 %v10200_v9 }
 0x3d4   :  { %v12183_v48 = vadd.f32 %v4760_v56, %v4662_v50  ;;  %v10067_v61 = vld [vmem:[%s12872_s5] sm:$0xff]  }
 0x3d5   :  { %v4594_v0 = vpop.f32.mrf.mxu1  ;;  %v4779_v59 = vpop.f32.mrf.mxu0 }
 0x3d6   :  { %v4663_v52 = vadd.f32 %v4594_v0, %v12084_v4 }
 0x3d7   :  { %v9448_v39 = vpop.f32.mrf.mxu1  ;;  %v9496_v24 = vpop.f32.mrf.mxu0 }
 0x3d8   :  { %v12186_v41 = vadd.f32 %v4763_v49, %v4663_v52  ;;  %v10066_v24 = vld [vmem:[%s12872_s5 + $0x20] sm:$0xff]  }
 0x3d9   :  { %v4599_v35 = vpop.f32.mrf.mxu1  ;;  %v4784_v40 = vpop.f32.mrf.mxu0  ;;  %9634 = vmatmul.mubr.msk.bf16.gmra.mxu1 %vm2633_vm2, %v12094_v34 }
 0x3da   :  { %v4664_v13 = vadd.f32 %v4599_v35, %v12091_v45  ;;  %9637 = vmatprep.mubr.msk.bf16.mxu1 %vm10201_vm1, %v10200_v9  ;;  %v10064_v45 = vld [vmem:[%s12872_s5 + $0x28] sm:$0xff]  }
 0x3db   :  { %v9451_v33 = vpop.f32.mrf.mxu1  ;;  %v9499_v4 = vpop.f32.mrf.mxu0  ;;  %9646 = vmatpush3.bf16.msra.mxu0 %v10064_v45 }
 0x3dc   :  { %v12196_v62 = vadd.f32 %v4768_v10, %v4664_v13  ;;  %9647 = vmatprep.subr.bf16.mxu0 %v10200_v9 }
 0x3dd   :  { %v4602_v57 = vpop.f32.mrf.mxu1  ;;  %v4787_v36 = vpop.f32.mrf.mxu0 }
 0x3de   :  { %v4665_v34 = vadd.f32 %v4602_v57, %v12096_v63 }
 0x3df   :  { %v9452_v19 = vpop.f32.mrf.mxu1  ;;  %v9500_v21 = vpop.f32.mrf.mxu0  ;;  %9648 = vmatpush3.bf16.msra.mxu0 %v10066_v24 }
 0x3e0   :  { %v12203_v56 = vadd.f32 %v4771_v6, %v4665_v34  ;;  %9665 = vmatprep.subr.bf16.mxu0 %v10200_v9 }
 0x3e1   :  { %v4607_v12 = vpop.f32.mrf.mxu1  ;;  %v4792_v7 = vpop.f32.mrf.mxu0  ;;  %9638 = vmatmul.mubr.msk.bf16.gmra.mxu1 %vm2633_vm2, %v10059_v31 }
 0x3e2   :  { %v4666_v53 = vadd.f32 %v4607_v12, %v12103_v51  ;;  %9661 = vmatprep.mubr.msk.bf16.mxu1 %vm10201_vm1, %v10200_v9 }
 0x3e3   :  { %v9455_v63 = vpop.f32.mrf.mxu1  ;;  %v9503_v11 = vpop.f32.mrf.mxu0 }
 0x3e4   :  { %v12210_v49 = vadd.f32 %v4776_v18, %v4666_v53 }
 0x3e5   :  { %v4610_v8 = vpop.f32.mrf.mxu1  ;;  %v4795_v44 = vpop.f32.mrf.mxu0 }
 0x3e6   :  { %v4667_v3 = vadd.f32 %v4610_v8, %v12106_v28  ;;  %v10065_v28 = vld [vmem:[%s12872_s5 + $0x8] sm:$0xff]  }
 0x3e7   :  { %v9456_v14 = vpop.f32.mrf.mxu1  ;;  %v9504_v58 = vpop.f32.mrf.mxu0  ;;  %9658 = vmatpush3.bf16.msra.mxu1 %v10065_v28 }
 0x3e8   :  { %v12213_v10 = vadd.f32 %v4779_v59, %v4667_v3  ;;  %9659 = vmatprep.subr.bf16.mxu1 %v10200_v9 }
 0x3e9   :  { %v4615_v17 = vpop.f32.mrf.mxu1  ;;  %v4800_v29 = vpop.f32.mrf.mxu0 }
 0x3ea   :  { %v4668_v2 = vadd.f32 %v4615_v17, %v12113_v27 }
 0x3eb   :  { %v9459_v51 = vpop.f32.mrf.mxu1  ;;  %v9507_v47 = vpop.f32.mrf.mxu0  ;;  %9660 = vmatpush3.bf16.msra.mxu1 %v10067_v61 }
 0x3ec   :  { %v12216_v23 = vadd.f32 %v4784_v40, %v4668_v2  ;;  %9677 = vmatprep.subr.bf16.mxu1 %v10200_v9 }
 0x3ed   :  { %v4618_v25 = vpop.f32.mrf.mxu1  ;;  %v4803_v6 = vpop.f32.mrf.mxu0 }
 0x3ee   :  { %v4669_v15 = vadd.f32 %v4618_v25, %v12116_v38 }
 0x3ef   :  { %v9460_v26 = vpop.f32.mrf.mxu1  ;;  %v9508_v22 = vpop.f32.mrf.mxu0 }
 0x3f0   :  { %v12222_v1 = vadd.f32 %v4787_v36, %v4669_v15 }
 0x3f1   :  { %v4623_v18 = vpop.f32.mrf.mxu1  ;;  %v4808_v50 = vpop.f32.mrf.mxu0 }
 0x3f2   :  { %v4670_v27 = vadd.f32 %v4623_v18, %v12123_v32 }
 0x3f3   :  { %v9463_v38 = vpop.f32.mrf.mxu1  ;;  %v9511_v20 = vpop.f32.mrf.mxu0 }
 0x3f4   :  { %v12229_v0 = vadd.f32 %v4792_v7, %v4670_v27 }
 0x3f5   :  { %v4626_v59 = vpop.f32.mrf.mxu1  ;;  %v4811_v52 = vpop.f32.mrf.mxu0 }
 0x3f6   :  { %v4671_v39 = vadd.f32 %v4626_v59, %v12126_v43 }
 0x3f7   :  { %v9464_v32 = vpop.f32.mrf.mxu1  ;;  %v9512_v35 = vpop.f32.mrf.mxu0 }
 0x3f8   :  { %v12236_v40 = vadd.f32 %v4795_v44, %v4671_v39 }
 0x3f9   :  { %v4631_v13 = vpop.f32.mrf.mxu1  ;;  %v4816_v5 = vpop.f32.mrf.mxu0 }
 0x3fa   :  { %v4672_v33 = vadd.f32 %v4631_v13, %v12132_v55 }
 0x3fb   :  { %v9467_v4 = vpop.f32.mrf.mxu1  ;;  %v9515_v57 = vpop.f32.mrf.mxu0 }
 0x3fc   :  { %v12240_v36 = vadd.f32 %v4800_v29, %v4672_v33 }
 0x3fd   :  { %v4634_v43 = vpop.f32.mrf.mxu1  ;;  %v4819_v34 = vpop.f32.mrf.mxu0 }
 0x3fe   :  { %v4673_v45 = vadd.f32 %v4634_v43, %v12135_v60 }
 0x3ff   :  { %v9468_v19 = vpop.f32.mrf.mxu1  ;;  %v9516_v21 = vpop.f32.mrf.mxu0 }
 0x400   :  { %v12243_v31 = vadd.f32 %v4803_v6, %v4673_v45 }
 0x401   :  { %v4639_v12 = vpop.f32.mrf.mxu1  ;;  %v4824_v7 = vpop.f32.mrf.mxu0 }
 0x402   :  { %v4674_v53 = vadd.f32 %v4639_v12, %v12145_v16 }
 0x403   :  { %v9471_v63 = vpop.f32.mrf.mxu1  ;;  %v9519_v11 = vpop.f32.mrf.mxu0 }
 0x404   :  { %v12246_v8 = vadd.f32 %v4808_v50, %v4674_v53 }
 0x405   :  { %v4642_v55 = vpop.f32.mrf.mxu1  ;;  %v4827_v44 = vpop.f32.mrf.mxu0 }
 0x406   :  { %v4675_v3 = vadd.f32 %v4642_v55, %v12149_v30 }
 0x407   :  { %v9472_v14 = vpop.f32.mrf.mxu1  ;;  %v9520_v58 = vpop.f32.mrf.mxu0 }
 0x408   :  { %v12249_v17 = vadd.f32 %v4811_v52, %v4675_v3 }
 0x409   :  { %v4647_v60 = vpop.f32.mrf.mxu1  ;;  %v5078_v29 = vpop.f32.mrf.mxu0 }
 0x40a   :  { %v4676_v2 = vadd.f32 %v4647_v60, %v12156_v54 }
 0x40b   :  { %v9475_v51 = vpop.f32.mrf.mxu1  ;;  %v9567_v47 = vpop.f32.mrf.mxu0 }
 0x40c   :  { %v12252_v25 = vadd.f32 %v4816_v5, %v4676_v2 }
 0x40d   :  { %v4650_v16 = vpop.f32.mrf.mxu1  ;;  %v5081_v6 = vpop.f32.mrf.mxu0 }
 0x40e   :  { %v4677_v15 = vadd.f32 %v4650_v16, %v12162_v37 }
 0x40f   :  { %v9476_v28 = vpop.f32.mrf.mxu1  ;;  %v9568_v26 = vpop.f32.mrf.mxu0 }
 0x410   :  { %v12255_v22 = vadd.f32 %v4819_v34, %v4677_v15 }
 0x411   :  { %v4655_v30 = vpop.f32.mrf.mxu1  ;;  %v5086_v18 = vpop.f32.mrf.mxu0 }
 0x412   :  { %v4678_v50 = vadd.f32 %v4655_v30, %v12172_v46 }
 0x413   :  { %v9479_v27 = vpop.f32.mrf.mxu1  ;;  %v9571_v61 = vpop.f32.mrf.mxu0 }
 0x414   :  { %v12258_v38 = vadd.f32 %v4824_v7, %v4678_v50 }
 0x415   :  { %v4658_v54 = vpop.f32.mrf.mxu1  ;;  %v5089_v20 = vpop.f32.mrf.mxu0 }
 0x416   :  { %v4679_v59 = vadd.f32 %v4658_v54, %v12176_v42 }
 0x417   :  { %v9480_v52 = vpop.f32.mrf.mxu1  ;;  %v9572_v39 = vpop.f32.mrf.mxu0 }
 0x418   :  { %v12261_v24 = vadd.f32 %v4827_v44, %v4679_v59 }
 0x419   :  { %v4929_v37 = vpop.f32.mrf.mxu1  ;;  %v5094_v32 = vpop.f32.mrf.mxu0 }
 0x41a   :  { %v5000_v35 = vadd.f32 %v4929_v37, %v12183_v48 }
 0x41b   :  { %v9527_v13 = vpop.f32.mrf.mxu1  ;;  %v9575_v5 = vpop.f32.mrf.mxu0 }
 0x41c   :  { %v12264_v33 = vadd.f32 %v5078_v29, %v5000_v35 }
 0x41d   :  { %v4932_v46 = vpop.f32.mrf.mxu1  ;;  %v5097_v4 = vpop.f32.mrf.mxu0 }
 0x41e   :  { %v5001_v57 = vadd.f32 %v4932_v46, %v12186_v41 }
 0x41f   :  { %v9528_v43 = vpop.f32.mrf.mxu1  ;;  %v9576_v34 = vpop.f32.mrf.mxu0 }
 0x420   :  { %v12267_v45 = vadd.f32 %v5081_v6, %v5001_v57 }
 0x421   :  { %v4937_v42 = vpop.f32.mrf.mxu1  ;;  %v5102_v19 = vpop.f32.mrf.mxu0 }
 0x422   :  { %v5002_v21 = vadd.f32 %v4937_v42, %v12196_v62 }
 0x423   :  { %v9531_v12 = vpop.f32.mrf.mxu1  ;;  %v9579_v7 = vpop.f32.mrf.mxu0 }
 0x424   :  { %v12270_v53 = vadd.f32 %v5086_v18, %v5002_v21 }
 0x425   :  { %v4940_v48 = vpop.f32.mrf.mxu1  ;;  %v5105_v63 = vpop.f32.mrf.mxu0 }
 0x426   :  { %v5003_v11 = vadd.f32 %v4940_v48, %v12203_v56 }
 0x427   :  { %v9532_v55 = vpop.f32.mrf.mxu1  ;;  %v9580_v44 = vpop.f32.mrf.mxu0 }
 0x428   :  { %v12273_v3 = vadd.f32 %v5089_v20, %v5003_v11 }
 0x429   :  { %v4945_v41 = vpop.f32.mrf.mxu1  ;;  %v5110_v14 = vpop.f32.mrf.mxu0 }
 0x42a   :  { %v5004_v58 = vadd.f32 %v4945_v41, %v12210_v49 }
 0x42b   :  { %v9535_v60 = vpop.f32.mrf.mxu1  ;;  %v9583_v29 = vpop.f32.mrf.mxu0 }
 0x42c   :  { %v12276_v2 = vadd.f32 %v5094_v32, %v5004_v58 }
 0x42d   :  { %v4948_v62 = vpop.f32.mrf.mxu1  ;;  %v5113_v51 = vpop.f32.mrf.mxu0 }
 0x42e   :  { %v5005_v47 = vadd.f32 %v4948_v62, %v12213_v10 }
 0x42f   :  { %v9536_v16 = vpop.f32.mrf.mxu1  ;;  %v9584_v6 = vpop.f32.mrf.mxu0 }
 0x430   :  { %v12279_v15 = vadd.f32 %v5097_v4, %v5005_v47 }
 0x431   :  { %v4953_v56 = vpop.f32.mrf.mxu1  ;;  %v5118_v28 = vpop.f32.mrf.mxu0 }
 0x432   :  { %v5006_v26 = vadd.f32 %v4953_v56, %v12216_v23 }
 0x433   :  { %v9539_v30 = vpop.f32.mrf.mxu1  ;;  %v9587_v18 = vpop.f32.mrf.mxu0 }
 0x434   :  { %v12282_v50 = vadd.f32 %v5102_v19, %v5006_v26 }
 0x435   :  { %v4956_v49 = vpop.f32.mrf.mxu1  ;;  %v5121_v27 = vpop.f32.mrf.mxu0 }
 0x436   :  { %v5007_v61 = vadd.f32 %v4956_v49, %v12222_v1 }
 0x437   :  { %v9540_v54 = vpop.f32.mrf.mxu1  ;;  %v9588_v20 = vpop.f32.mrf.mxu0 }
 0x438   :  { %v12285_v59 = vadd.f32 %v5105_v63, %v5007_v61 }
 0x439   :  { %v4961_v10 = vpop.f32.mrf.mxu1  ;;  %v5126_v52 = vpop.f32.mrf.mxu0 }
 0x43a   :  { %v5008_v39 = vadd.f32 %v4961_v10, %v12229_v0 }
 0x43b   :  { %v9543_v37 = vpop.f32.mrf.mxu1  ;;  %v9591_v32 = vpop.f32.mrf.mxu0 }
 0x43c   :  { %v12288_v35 = vadd.f32 %v5110_v14, %v5008_v39 }
 0x43d   :  { %v4964_v23 = vpop.f32.mrf.mxu1  ;;  %v5129_v13 = vpop.f32.mrf.mxu0 }
 0x43e   :  { %v5009_v5 = vadd.f32 %v4964_v23, %v12236_v40 }
 0x43f   :  { %v9544_v46 = vpop.f32.mrf.mxu1  ;;  %v9592_v4 = vpop.f32.mrf.mxu0 }
 0x440   :  { %v12291_v57 = vadd.f32 %v5113_v51, %v5009_v5 }
 0x441   :  { %v4969_v1 = vpop.f32.mrf.mxu1  ;;  %v5134_v43 = vpop.f32.mrf.mxu0 }
 0x442   :  { %v5010_v34 = vadd.f32 %v4969_v1, %v12240_v36 }
 0x443   :  { %v9547_v42 = vpop.f32.mrf.mxu1  ;;  %v9595_v19 = vpop.f32.mrf.mxu0 }
 0x444   :  { %v12294_v21 = vadd.f32 %v5118_v28, %v5010_v34 }
 0x445   :  { %v4972_v0 = vpop.f32.mrf.mxu1  ;;  %v5137_v12 = vpop.f32.mrf.mxu0 }
 0x446   :  { %v5011_v7 = vadd.f32 %v4972_v0, %v12243_v31 }
 0x447   :  { %v9548_v48 = vpop.f32.mrf.mxu1  ;;  %v9596_v63 = vpop.f32.mrf.mxu0 }
 0x448   :  { %v12297_v11 = vadd.f32 %v5121_v27, %v5011_v7 }
 0x449   :  { %v4977_v40 = vpop.f32.mrf.mxu1  ;;  %v5142_v55 = vpop.f32.mrf.mxu0 }
 0x44a   :  { %v5012_v44 = vadd.f32 %v4977_v40, %v12246_v8 }
 0x44b   :  { %v9551_v41 = vpop.f32.mrf.mxu1  ;;  %v9599_v14 = vpop.f32.mrf.mxu0 }
 0x44c   :  { %v12300_v58 = vadd.f32 %v5126_v52, %v5012_v44  ;;  %v10071_v41 = vld [vmem:[%s12872_s5 + $0x78] sm:$0xff]  }
 0x44d   :  { %v4980_v36 = vpop.f32.mrf.mxu1  ;;  %v5145_v60 = vpop.f32.mrf.mxu0 }
 0x44e   :  { %v5013_v29 = vadd.f32 %v4980_v36, %v12249_v17 }
 0x44f   :  { %v9552_v62 = vpop.f32.mrf.mxu1  ;;  %v9600_v51 = vpop.f32.mrf.mxu0 }
 0x450   :  { %v12303_v47 = vadd.f32 %v5129_v13, %v5013_v29  ;;  %v10073_v51 = vld [vmem:[%s12872_s5 + $0x70] sm:$0xff]  }
 0x451   :  { %v4985_v31 = vpop.f32.mrf.mxu1 }
 0x452   :  { %v5014_v16 = vadd.f32 %v4985_v31, %v12252_v25 }
 0x453   :  { %v9555_v6 = vpop.f32.mrf.mxu1 }
 0x454   :  { %v12306_v56 = vadd.f32 %v5134_v43, %v5014_v16 }
 0x455   :  { %v4988_v28 = vpop.f32.mrf.mxu1 }
 0x456   :  { %v5015_v8 = vadd.f32 %v4988_v28, %v12255_v22  ;;  %v12320_v22 = vld [vmem:[%s12873_s4] ss:$0 sm:$0xff] }
 0x457   :  { %v9556_v26 = vpop.f32.mrf.mxu1 }
 0x458   :  { %v12309_v30 = vadd.f32 %v5137_v12, %v5015_v8  ;;  %v10070_v26 = vld [vmem:[%s12872_s5 + $0x58] sm:$0xff]  }
 0x459   :  { %v4993_v18 = vpop.f32.mrf.mxu1 }
 0x45a   :  { %v5016_v49 = vadd.f32 %v4993_v18, %v12258_v38  ;;  %v10075_v18 = vld [vmem:[%s12872_s5 + $0x68] sm:$0xff]  }
 0x45b   :  { %v9559_v17 = vpop.f32.mrf.mxu1 }
 0x45c   :  { %v12312_v27 = vadd.f32 %v5142_v55, %v5016_v49 }
 0x45d   :  { %v4996_v61 = vpop.f32.mrf.mxu1 }
 0x45e   :  { %v5017_v54 = vadd.f32 %v4996_v61, %v12261_v24 }
 0x45f   :  { %v9560_v20 = vpop.f32.mrf.mxu1 }
 0x460   :  { %v12315_v25 = vadd.f32 %v5145_v60, %v5017_v54 }
 0x461   :  { %v5227_v10 = vpop.f32.mrf.mxu1 }
 0x462   :  { %v5298_v52 = vadd.f32 %v5227_v10, %v12264_v33 }
 0x463   :  { %v9607_v39 = vpop.f32.mrf.mxu1 }
 0x464   :  { %v5323_v38 = vadd.f32 %v12320_v22, %v5298_v52  ;;  %v10072_v52 = vld [vmem:[%s12872_s5 + $0x50] sm:$0xff]   ;;  %v10077_v39 = vld [vmem:[%s12872_s5 + $0x60] sm:$0xff]  }
 0x465   :  { %v5230_v37 = vpop.f32.mrf.mxu1 }
 0x466   :  { %v5341_v32 = vmax.f32 %v5323_v38, 0.0  ;;  %v5299_v23 = vadd.f32 %v5230_v37, %v12267_v45 }
 0x467   :  { %v9608_v24 = vpop.f32.mrf.mxu1 }
 0x468   :  { %v8162_v13 = vpack.c.bf16 %v5341_v32, %v5341_v32  ;;  %v5324_v5 = vadd.f32 %v12320_v22, %v5299_v23 }
 0x469   :  { %v5235_v46 = vpop.f32.mrf.mxu1 }
 0x46a   :  { %5432 = vst.msk [vmem:[#allocation3] sm:$0xf] %vm5431_vm3, %v8162_v13  ;;  %v5342_v4 = vmax.f32 %v5324_v5, 0.0  ;;  %v5300_v1 = vadd.f32 %v5235_v46, %v12270_v53  ;;  %v10074_v13 = vld [vmem:[%s12872_s5 + $0x48] sm:$0xff]  }
 0x46b   :  { %v9611_v43 = vpop.f32.mrf.mxu1 }
 0x46c   :  { %v8163_v33 = vpack.c.bf16 %v5342_v4, %v5342_v4  ;;  %v5325_v34 = vadd.f32 %v12320_v22, %v5300_v1 }
 0x46d   :  { %v5238_v42 = vpop.f32.mrf.mxu1 }
 0x46e   :  { %5433 = vst.msk [vmem:[#allocation3 + $0x4] sm:$0xf] %vm5431_vm3, %v8163_v33  ;;  %v5343_v19 = vmax.f32 %v5325_v34, 0.0  ;;  %v5301_v45 = vadd.f32 %v5238_v42, %v12273_v3  ;;  %v10076_v33 = vld [vmem:[%s12872_s5 + $0x40] sm:$0xff]  }
 0x46f   :  { %v9612_v0 = vpop.f32.mrf.mxu1 }
 0x470   :  { %v8164_v12 = vpack.c.bf16 %v5343_v19, %v5343_v19  ;;  %v5326_v7 = vadd.f32 %v12320_v22, %v5301_v45 }
 0x471   :  { %v5243_v48 = vpop.f32.mrf.mxu1 }
 0x472   :  { %5434 = vst.msk [vmem:[#allocation3 + $0x8] sm:$0xf] %vm5431_vm3, %v8164_v12  ;;  %v5344_v63 = vmax.f32 %v5326_v7, 0.0  ;;  %v5302_v53 = vadd.f32 %v5243_v48, %v12276_v2  ;;  %v10080_v12 = vld [vmem:[%s12872_s5 + $0x98] sm:$0xff]  }
 0x473   :  { %v9615_v40 = vpop.f32.mrf.mxu1  ;;  %v10081_v7 = vld [vmem:[%s12872_s5 + $0xb8] sm:$0xff]  }
 0x474   :  { %v8165_v55 = vpack.c.bf16 %v5344_v63, %v5344_v63  ;;  %v5327_v44 = vadd.f32 %v12320_v22, %v5302_v53 }
 0x475   :  { %v5246_v3 = vpop.f32.mrf.mxu1  ;;  %v10068_v14 = vld [vmem:[#allocation3] sm:$0xff]  }
 0x476   :  { %5435 = vst.msk [vmem:[#allocation3 + $0xc] sm:$0xf] %vm5431_vm3, %v8165_v55  ;;  %v5345_v36 = vmax.f32 %v5327_v44, 0.0  ;;  %v5303_v60 = vadd.f32 %v5246_v3, %v12279_v15  ;;  %9662 = vmatmul.mubr.msk.bf16.vlgmr.msra.gmra.mxu1 %vm5499_vm4, %v10068_v14  ;;  %v10082_v3 = vld [vmem:[%s12872_s5 + $0x90] sm:$0xff]  }
 0x477   :  { %v9616_v29 = vpop.f32.mrf.mxu1  ;;  %9678 = vmatpush3.bf16.msra.mxu1 %v10071_v41  ;;  %9685 = vmatprep.mubr.msk.bf16.mxu1 %vm10201_vm1, %v10200_v9  ;;  %v10083_v14 = vld [vmem:[%s12872_s5 + $0xb0] sm:$0xff]  }
 0x478   :  { %v8166_v2 = vpack.c.bf16 %v5345_v36, %v5345_v36  ;;  %v5328_v62 = vadd.f32 %v12320_v22, %v5303_v60  ;;  %9679 = vmatprep.subr.bf16.mxu1 %v10200_v9 }
 0x479   :  { %v5251_v31 = vpop.f32.mrf.mxu1 }
 0x47a   :  { %5436 = vst.msk [vmem:[#allocation3 + $0x10] sm:$0xf] %vm5431_vm3, %v8166_v2  ;;  %v5346_v15 = vmax.f32 %v5328_v62, 0.0  ;;  %v5304_v16 = vadd.f32 %v5251_v31, %v12282_v50 }
 0x47b   :  { %v9619_v6 = vpop.f32.mrf.mxu1  ;;  %9680 = vmatpush3.bf16.msra.mxu1 %v10073_v51  ;;  %v10084_v51 = vld [vmem:[%s12872_s5 + $0x88] sm:$0xff]  }
 0x47c   :  { %v8167_v28 = vpack.c.bf16 %v5346_v15, %v5346_v15  ;;  %v5329_v8 = vadd.f32 %v12320_v22, %v5304_v16  ;;  %9681 = vmatprep.subr.bf16.mxu1 %v10200_v9 }
 0x47d   :  { %v5254_v49 = vpop.f32.mrf.mxu1  ;;  %v10069_v17 = vld [vmem:[#allocation3 + $0x8] sm:$0xff]  }
 0x47e   :  { %5437 = vst.msk [vmem:[#allocation3 + $0x14] sm:$0xf] %vm5431_vm3, %v8167_v28  ;;  %v5347_v50 = vmax.f32 %v5329_v8, 0.0  ;;  %v5305_v61 = vadd.f32 %v5254_v49, %v12285_v59  ;;  %9650 = vmatmul.mubr.msk.bf16.vlgmr.msra.gmra.mxu0 %vm5499_vm4, %v10069_v17 }
 0x47f   :  { %v9620_v54 = vpop.f32.mrf.mxu1  ;;  %9666 = vmatpush3.bf16.msra.mxu0 %v10070_v26  ;;  %9682 = vmatpush3.bf16.msra.mxu1 %v10075_v18  ;;  %v10086_v26 = vld [vmem:[%s12872_s5 + $0x80] sm:$0xff]  }
 0x480   :  { %v8168_v20 = vpack.c.bf16 %v5347_v50, %v5347_v50  ;;  %v5330_v10 = vadd.f32 %v12320_v22, %v5305_v61  ;;  %9667 = vmatprep.subr.bf16.mxu0 %v10200_v9  ;;  %9683 = vmatprep.subr.bf16.mxu1 %v10200_v9  ;;  %v10087_v18 = vld [vmem:[%s12872_s5 + $0xa0] sm:$0xff]  }
 0x481   :  { %v5259_v38 = vpop.f32.mrf.mxu1  ;;  %9673 = vmatprep.mubr.msk.bf16.mxu0 %vm10201_vm1, %v10200_v9 }
 0x482   :  { %5438 = vst.msk [vmem:[#allocation3 + $0x18] sm:$0xf] %vm5431_vm3, %v8168_v20  ;;  %v5348_v59 = vmax.f32 %v5330_v10, 0.0  ;;  %v5306_v37 = vadd.f32 %v5259_v38, %v12288_v35  ;;  %v10090_v20 = vld [vmem:[%s12872_s5 + $0xd8] sm:$0xff]  }
 0x483   :  { %v9623_v32 = vpop.f32.mrf.mxu1  ;;  %9668 = vmatpush3.bf16.msra.mxu0 %v10072_v52  ;;  %9684 = vmatpush3.bf16.msra.mxu1 %v10077_v39  ;;  %v10091_v10 = vld [vmem:[%s12872_s5 + $0xf8] sm:$0xff]  }
 0x484   :  { %v8169_v23 = vpack.c.bf16 %v5348_v59, %v5348_v59  ;;  %v5331_v24 = vadd.f32 %v12320_v22, %v5306_v37  ;;  %9669 = vmatprep.subr.bf16.mxu0 %v10200_v9  ;;  %9701 = vmatprep.subr.bf16.mxu1 %v10200_v9 }
 0x485   :  { %v5262_v5 = vpop.f32.mrf.mxu1  ;;  %v10078_v63 = vld [vmem:[#allocation3 + $0x10] sm:$0xff]  }
 0x486   :  { %5439 = vst.msk [vmem:[#allocation3 + $0x1c] sm:$0xf] %vm5431_vm3, %v8169_v23  ;;  %v5349_v35 = vmax.f32 %v5331_v24, 0.0  ;;  %v5307_v46 = vadd.f32 %v5262_v5, %v12291_v57  ;;  %v10092_v24 = vld [vmem:[%s12872_s5 + $0xd0] sm:$0xff]  }
 0x487   :  { %v9624_v4 = vpop.f32.mrf.mxu1  ;;  %9670 = vmatpush3.bf16.msra.mxu0 %v10074_v13  ;;  %v10093_v13 = vld [vmem:[%s12872_s5 + $0xf0] sm:$0xff]  }
 0x488   :  { %v8170_v1 = vpack.c.bf16 %v5349_v35, %v5349_v35  ;;  %v5332_v43 = vadd.f32 %v12320_v22, %v5307_v46  ;;  %9671 = vmatprep.subr.bf16.mxu0 %v10200_v9 }
 0x489   :  { %v5267_v34 = vpop.f32.mrf.mxu1 }
 0x48a   :  { %5440 = vst.msk [vmem:[#allocation3 + $0x20] sm:$0xf] %vm5431_vm3, %v8170_v1  ;;  %v5350_v42 = vmax.f32 %v5332_v43, 0.0  ;;  %v5308_v19 = vadd.f32 %v5267_v34, %v12294_v21  ;;  %v10094_v43 = vld [vmem:[%s12872_s5 + $0xc8] sm:$0xff]  }
 0x48b   :  { %v9627_v45 = vpop.f32.mrf.mxu1  ;;  %9672 = vmatpush3.bf16.msra.mxu0 %v10076_v33 }
 0x48c   :  { %v8171_v0 = vpack.c.bf16 %v5350_v42, %v5350_v42  ;;  %v5333_v57 = vadd.f32 %v12320_v22, %v5308_v19  ;;  %9689 = vmatprep.subr.bf16.mxu0 %v10200_v9 }
 0x48d   :  { %v5270_v48 = vpop.f32.mrf.mxu1  ;;  %v10079_v53 = vld [vmem:[#allocation3 + $0x18] sm:$0xff]  }
 0x48e   :  { %5441 = vst.msk [vmem:[#allocation3 + $0x24] sm:$0xf] %vm5431_vm3, %v8171_v0  ;;  %v5351_v21 = vmax.f32 %v5333_v57, 0.0  ;;  %v5309_v40 = vadd.f32 %v5270_v48, %v12297_v11  ;;  %9674 = vmatmul.mubr.msk.bf16.vlgmr.msra.gmra.mxu0 %vm5499_vm4, %v10078_v63  ;;  %9686 = vmatmul.mubr.msk.bf16.vlgmr.msra.gmra.mxu1 %vm5499_vm4, %v10079_v53  ;;  %v10096_v57 = vld [vmem:[%s12872_s5 + $0xc0] sm:$0xff]   ;;  %v10101_v53 = vld [vmem:[%s12872_s5 + $0x110] sm:$0xff]  }
 0x48f   :  { %v9628_v55 = vpop.f32.mrf.mxu1  ;;  %9690 = vmatpush3.bf16.msra.mxu0 %v10080_v12  ;;  %9702 = vmatpush3.bf16.msra.mxu1 %v10081_v7  ;;  %v10097_v12 = vld [vmem:[%s12872_s5 + $0xe0] sm:$0xff]  }
 0x490   :  { %v8172_v44 = vpack.c.bf16 %v5351_v21, %v5351_v21  ;;  %v5334_v41 = vadd.f32 %v12320_v22, %v5309_v40  ;;  %9691 = vmatprep.subr.bf16.mxu0 %v10200_v9  ;;  %9703 = vmatprep.subr.bf16.mxu1 %v10200_v9  ;;  %v10102_v21 = vld [vmem:[%s12872_s5 + $0x108] sm:$0xff]   ;;  %v10103_v40 = vld [vmem:[%s12872_s5 + $0x100] sm:$0xff]  }
 0x491   :  { %v5275_v36 = vpop.f32.mrf.mxu1  ;;  %9697 = vmatprep.mubr.msk.bf16.mxu0 %vm10201_vm1, %v10200_v9  ;;  %9709 = vmatprep.mubr.msk.bf16.mxu1 %vm10201_vm1, %v10200_v9 }
 0x492   :  { %5442 = vst.msk [vmem:[#allocation3 + $0x28] sm:$0xf] %vm5431_vm3, %v8172_v44  ;;  %v5352_v11 = vmax.f32 %v5334_v41, 0.0  ;;  %v5310_v60 = vadd.f32 %v5275_v36, %v12300_v58  ;;  %v10085_v58 = vld [vmem:[%s12872_s5 + $0xa8] sm:$0xff]   ;;  %v6248_v44 = vld [vmem:[%s12874_s7 + $0xc0] sm:$0xff] }
 0x493   :  { %v9631_v29 = vpop.f32.mrf.mxu1  ;;  %9692 = vmatpush3.bf16.msra.mxu0 %v10082_v3  ;;  %9704 = vmatpush3.bf16.msra.mxu1 %v10083_v14  ;;  %v6252_v41 = vld [vmem:[%s12874_s7 + $0xe0] sm:$0xff]  ;;  %v6249_v3 = vld [vmem:[%s12874_s7 + $0xc8] sm:$0xff] }
 0x494   :  { %v8173_v2 = vpack.c.bf16 %v5352_v11, %v5352_v11  ;;  %v5335_v62 = vadd.f32 %v12320_v22, %v5310_v60  ;;  %9693 = vmatprep.subr.bf16.mxu0 %v10200_v9  ;;  %9705 = vmatprep.subr.bf16.mxu1 %v10200_v9  ;;  %v7957_v14 = vcombine.low %v6248_v44, %v6252_v41  ;;  %v6240_v29 = vld [vmem:[%s12874_s7 + $0x80] sm:$0xff] }
 0x495   :  { %v5278_v31 = vpop.f32.mrf.mxu1  ;;  %v10088_v39 = vld [vmem:[#allocation3 + $0x20] sm:$0xff]   ;;  %v7958_v36 = vcombine.high %v6248_v44, %v6252_v41 }
 0x496   :  { %5443 = vst.msk [vmem:[#allocation3 + $0x2c] sm:$0xf] %vm5431_vm3, %v8173_v2  ;;  %v5353_v15 = vmax.f32 %v5335_v62, 0.0  ;;  %v5311_v16 = vadd.f32 %v5278_v31, %v12303_v47  ;;  %v6244_v2 = vld [vmem:[%s12874_s7 + $0xa0] sm:$0xff]  ;;  %v6241_v62 = vld [vmem:[%s12874_s7 + $0x88] sm:$0xff] }
 0x497   :  { %v9632_v6 = vpop.f32.mrf.mxu1  ;;  %9694 = vmatpush3.bf16.msra.mxu0 %v10084_v51  ;;  %9706 = vmatpush3.bf16.msra.mxu1 %v10085_v58  ;;  %v7950_v51 = vcombine.high %v6240_v29, %v6244_v2  ;;  %v6245_v58 = vld [vmem:[%s12874_s7 + $0xa8] sm:$0xff]  ;;  %v7949_v31 = vcombine.low %v6240_v29, %v6244_v2 }
 0x498   :  { %v8174_v28 = vpack.c.bf16 %v5353_v15, %v5353_v15  ;;  %v5336_v8 = vadd.f32 %v12320_v22, %v5311_v16  ;;  %9695 = vmatprep.subr.bf16.mxu0 %v10200_v9  ;;  %9707 = vmatprep.subr.bf16.mxu1 %v10200_v9  ;;  %v7951_v15 = vcombine.low %v6241_v62, %v6245_v58  ;;  %v6232_v6 = vld [vmem:[%s12874_s7 + $0x40] sm:$0xff] }
 0x499   :  { %v5283_v49 = vpop.f32.mrf.mxu1  ;;  %v7952_v16 = vcombine.high %v6241_v62, %v6245_v58 }
 0x49a   :  { %5444 = vst.msk [vmem:[#allocation3 + $0x30] sm:$0xf] %vm5431_vm3, %v8174_v28  ;;  %v5354_v47 = vmax.f32 %v5336_v8, 0.0  ;;  %v5312_v17 = vadd.f32 %v5283_v49, %v12306_v56  ;;  %v6236_v28 = vld [vmem:[%s12874_s7 + $0x60] sm:$0xff] }
 0x49b   :  { %v9635_v50 = vpop.f32.mrf.mxu1  ;;  %9696 = vmatpush3.bf16.msra.mxu0 %v10086_v26  ;;  %9708 = vmatpush3.bf16.msra.mxu1 %v10087_v18  ;;  %v7942_v8 = vcombine.high %v6232_v6, %v6236_v28  ;;  %v6233_v26 = vld [vmem:[%s12874_s7 + $0x48] sm:$0xff]  ;;  %v7941_v49 = vcombine.low %v6232_v6, %v6236_v28 }
 0x49c   :  { %v8175_v61 = vpack.c.bf16 %v5354_v47, %v5354_v47  ;;  %v5337_v54 = vadd.f32 %v12320_v22, %v5312_v17  ;;  %9713 = vmatprep.subr.bf16.mxu0 %v10200_v9  ;;  %9725 = vmatprep.subr.bf16.mxu1 %v10200_v9  ;;  %v6237_v18 = vld [vmem:[%s12874_s7 + $0x68] sm:$0xff]  ;;  %v6224_v50 = vld [vmem:[%s12874_s7] sm:$0xff] }
 0x49d   :  { %v5286_v52 = vpop.f32.mrf.mxu1  ;;  %v10089_v38 = vld [vmem:[#allocation3 + $0x28] sm:$0xff]   ;;  %v7943_v47 = vcombine.low %v6233_v26, %v6237_v18  ;;  %v7944_v17 = vcombine.high %v6233_v26, %v6237_v18 }
 0x49e   :  { %5445 = vst.msk [vmem:[#allocation3 + $0x34] sm:$0xf] %vm5431_vm3, %v8175_v61  ;;  %v5355_v56 = vmax.f32 %v5337_v54, 0.0  ;;  %v5313_v59 = vadd.f32 %v5286_v52, %v12309_v30  ;;  %9698 = vmatmul.mubr.msk.bf16.vlgmr.msra.gmra.mxu0 %vm5499_vm4, %v10088_v39  ;;  %9710 = vmatmul.mubr.msk.bf16.vlgmr.msra.gmra.mxu1 %vm5499_vm4, %v10089_v38  ;;  %v6228_v61 = vld [vmem:[%s12874_s7 + $0x20] sm:$0xff]  ;;  %v6225_v54 = vld [vmem:[%s12874_s7 + $0x8] sm:$0xff] }
 0x49f   :  { %v9636_v37 = vpop.f32.mrf.mxu1  ;;  %9714 = vmatpush3.bf16.msra.mxu0 %v10090_v20  ;;  %9726 = vmatpush3.bf16.msra.mxu1 %v10091_v10  ;;  %v7934_v20 = vcombine.high %v6224_v50, %v6228_v61  ;;  %v6229_v10 = vld [vmem:[%s12874_s7 + $0x28] sm:$0xff]  ;;  %v7933_v52 = vcombine.low %v6224_v50, %v6228_v61  ;;  %v7932_v50 = vld [vmem:[%s12876_s6] ss:$0 sm:$0xff] }
 0x4a0   :  { %v8176_v32 = vpack.c.bf16 %v5355_v56, %v5355_v56  ;;  %v5338_v23 = vadd.f32 %v12320_v22, %v5313_v59  ;;  %9715 = vmatprep.subr.bf16.mxu0 %v10200_v9  ;;  %9727 = vmatprep.subr.bf16.mxu1 %v10200_v9  ;;  %v7935_v39 = vcombine.low %v6225_v54, %v6229_v10  ;;  %v12560_v56 = vld [vmem:[%s12874_s7 + $0xd0] sm:$0xff]  ;;  %v12570_v37 = vld [vmem:[%s12874_s7 + $0xd8] sm:$0xff] }
 0x4a1   :  { %v5291_v5 = vpop.f32.mrf.mxu1  ;;  %9721 = vmatprep.mubr.msk.bf16.mxu0 %vm10201_vm1, %v10200_v9  ;;  %9733 = vmatprep.mubr.msk.bf16.mxu1 %vm10201_vm1, %v10200_v9  ;;  %v7936_v38 = vcombine.high %v6225_v54, %v6229_v10  ;;  %v12565_v59 = vld [vmem:[%s12874_s7 + $0xf0] sm:$0xff] }
 0x4a2   :  { %5446 = vst.msk [vmem:[#allocation3 + $0x38] sm:$0xf] %vm5431_vm3, %v8176_v32  ;;  %v5356_v30 = vmax.f32 %v5338_v23, 0.0  ;;  %v5314_v35 = vadd.f32 %v5291_v5, %v12312_v27  ;;  %v10095_v27 = vld [vmem:[%s12872_s5 + $0xe8] sm:$0xff]   ;;  %v7962_v32 = vcombine.high %v12560_v56, %v12565_v59  ;;  %v12577_v23 = vld [vmem:[%s12874_s7 + $0xf8] sm:$0xff] }
 0x4a3   :  { %v9639_v46 = vpop.f32.mrf.mxu1  ;;  %9716 = vmatpush3.bf16.msra.mxu0 %v10092_v24  ;;  %9728 = vmatpush3.bf16.msra.mxu1 %v10093_v13  ;;  %v7961_v24 = vcombine.low %v12560_v56, %v12565_v59  ;;  %v7963_v13 = vcombine.low %v12570_v37, %v12577_v23  ;;  %v7964_v5 = vcombine.high %v12570_v37, %v12577_v23  ;;  %v6227_v56 = vld [vmem:[%s12874_s7 + $0x18] sm:$0xff] }
 0x4a4   :  { %v8177_v4 = vpack.c.bf16 %v5356_v30, %v5356_v30  ;;  %v5339_v1 = vadd.f32 %v12320_v22, %v5314_v35  ;;  %9717 = vmatprep.subr.bf16.mxu0 %v10200_v9  ;;  %9729 = vmatprep.subr.bf16.mxu1 %v10200_v9  ;;  %v10202_v30 = vmov 0   ;;  %v6231_v59 = vld [vmem:[%s12874_s7 + $0x38] sm:$0xff] }
 0x4a5   :  { %v5294_v33 = vpop.f32.mrf.mxu1  ;;  %v10098_v48 = vld [vmem:[#allocation3 + $0x30] sm:$0xff]  }
 0x4a6   :  { %5447 = vst.msk [vmem:[#allocation3 + $0x3c] sm:$0xf] %vm5431_vm3, %v8177_v4  ;;  %v5357_v34 = vmax.f32 %v5339_v1, 0.0  ;;  %v5315_v42 = vadd.f32 %v5294_v33, %v12315_v25 }
 0x4a7   :  { %v9640_v19 = vpop.f32.mrf.mxu1  ;;  %9718 = vmatpush3.bf16.msra.mxu0 %v10094_v43  ;;  %9730 = vmatpush3.bf16.msra.mxu1 %v10095_v27 }
 0x4a8   :  { %v8178_v45 = vpack.c.bf16 %v5357_v34, %v5357_v34  ;;  %v5340_v0 = vadd.f32 %v12320_v22, %v5315_v42  ;;  %9719 = vmatprep.subr.bf16.mxu0 %v10200_v9  ;;  %9731 = vmatprep.subr.bf16.mxu1 %v10200_v9  ;;  %v10100_v22 = vld [vmem:[%s12872_s5 + $0x118] sm:$0xff]  }
 0x4aa   :  { %5448 = vst.msk [vmem:[#allocation3 + $0x40] sm:$0xf] %vm5431_vm3, %v8178_v45  ;;  %v5358_v25 = vmax.f32 %v5340_v0, 0.0 }
 0x4ab   :  { %9720 = vmatpush3.bf16.msra.mxu0 %v10096_v57  ;;  %9732 = vmatpush3.bf16.msra.mxu1 %v10097_v12 }
 0x4ac   :  { %v8179_v7 = vpack.c.bf16 %v5358_v25, %v5358_v25  ;;  %9737 = vmatprep.subr.bf16.mxu0 %v10200_v9  ;;  %6469 = vmatprep.subr.bf16.mxu1 %v7958_v36 }
 0x4ad   :  { %v10099_v63 = vld [vmem:[#allocation3 + $0x38] sm:$0xff]  }
 0x4ae   :  { %5449 = vst.msk [vmem:[#allocation3 + $0x44] sm:$0xf] %vm5431_vm3, %v8179_v7  ;;  %9722 = vmatmul.mubr.msk.bf16.vlgmr.msra.gmra.mxu0 %vm5499_vm4, %v10098_v48  ;;  %9734 = vmatmul.mubr.msk.bf16.vlgmr.msra.gmra.mxu1 %vm5499_vm4, %v10099_v63 }
 0x4af   :  { %9738 = vmatpush3.bf16.msra.mxu0 %v10100_v22  ;;  %9745 = vmatprep.mubr.msk.bf16.mxu0 %vm10201_vm1, %v10200_v9 }
 0x4b0   :  { %9739 = vmatprep.subr.bf16.mxu0 %v10200_v9  ;;  %6470 = vmatpush1.bf16.msra.mxu1 %v7957_v14 }
 0x4b1   :  { %6471 = vmatprep.subr.bf16.mxu1 %v7950_v51  ;;  %6493 = vmatprep.mubr.bf16.mxu1 %v10202_v30 }
 0x4b3   :  { %9740 = vmatpush3.bf16.msra.mxu0 %v10101_v53 }
 0x4b4   :  { %9741 = vmatprep.subr.bf16.mxu0 %v10200_v9  ;;  %6472 = vmatpush1.bf16.msra.mxu1 %v7949_v31 }
 0x4b5   :  { %v10104_v55 = vld [vmem:[#allocation3 + $0x40] sm:$0xff]   ;;  %6473 = vmatprep.subr.bf16.mxu1 %v7942_v8 }
 0x4b7   :  { %9742 = vmatpush3.bf16.msra.mxu0 %v10102_v21 }
 0x4b8   :  { %9743 = vmatprep.subr.bf16.mxu0 %v10200_v9  ;;  %v6253_v9 = vld [vmem:[%s12874_s7 + $0xe8] sm:$0xff]  ;;  %6474 = vmatpush1.bf16.msra.mxu1 %v7941_v49 }
 0x4b9   :  { %v7959_v11 = vcombine.low %v6249_v3, %v6253_v9  ;;  %v7960_v60 = vcombine.high %v6249_v3, %v6253_v9  ;;  %6475 = vmatprep.subr.bf16.mxu1 %v7934_v20 }
 0x4bb   :  { %9744 = vmatpush3.bf16.msra.mxu0 %v10103_v40 }
 0x4bc   :  { %6512 = vmatprep.subr.bf16.mxu0 %v7960_v60  ;;  %6476 = vmatpush1.bf16.msra.mxu1 %v7933_v52 }
 0x4bd   :  { %6555 = vmatprep.subr.bf16.mxu1 %v7962_v32  ;;  %v6242_v32 = vld [vmem:[%s12874_s7 + $0x90] sm:$0xff] }
 0x4be   :  { %9746 = vmatmul.mubr.msk.bf16.vlgmr.msra.gmra.mxu0 %vm5499_vm4, %v10104_v55 }
 0x4bf   :  { %6513 = vmatpush1.bf16.msra.mxu0 %v7959_v11  ;;  %6536 = vmatprep.mubr.bf16.mxu0 %v10202_v30 }
 0x4c0   :  { %6514 = vmatprep.subr.bf16.mxu0 %v7952_v16 }
 0x4c3   :  { %6515 = vmatpush1.bf16.msra.mxu0 %v7951_v15 }
 0x4c4   :  { %6516 = vmatprep.subr.bf16.mxu0 %v7944_v17 }
 0x4c7   :  { %6517 = vmatpush1.bf16.msra.mxu0 %v7943_v47 }
 0x4c8   :  { %6518 = vmatprep.subr.bf16.mxu0 %v7936_v38 }
 0x4cb   :  { %6519 = vmatpush1.bf16.msra.mxu0 %v7935_v39 }
 0x4cc   :  { %6598 = vmatprep.subr.bf16.mxu0 %v7964_v5  ;;  %v6246_v5 = vld [vmem:[%s12874_s7 + $0xb0] sm:$0xff] }
 0x536   :  { %v5610_v35 = vpop.f32.mrf.mxu1 }
 0x538   :  { %v9663_v46 = vpop.f32.mrf.mxu1 }
 0x539   :  { %v6247_v46 = vld [vmem:[%s12874_s7 + $0xb8] sm:$0xff] }
 0x53a   :  { %v5613_v4 = vpop.f32.mrf.mxu1 }
 0x53c   :  { %v9664_v1 = vpop.f32.mrf.mxu1 }
 0x53e   :  { %v5537_v43 = vpop.f32.mrf.mxu0 }
 0x53f   :  { %v5611_v41 = vadd.f32 %v5610_v35, %v5537_v43  ;;  %v6243_v35 = vld [vmem:[%s12874_s7 + $0x98] sm:$0xff] }
 0x540   :  { %v9651_v27 = vpop.f32.mrf.mxu0 }
 0x541   :  { %v7954_v27 = vcombine.high %v6242_v32, %v6246_v5 }
 0x542   :  { %v5540_v33 = vpop.f32.mrf.mxu0 }
 0x543   :  { %v5614_v9 = vadd.f32 %v5613_v4, %v5540_v33  ;;  %v7956_v33 = vcombine.high %v6243_v35, %v6247_v46 }
 0x544   :  { %v9652_v34 = vpop.f32.mrf.mxu0 }
 0x545   :  { %v6234_v34 = vld [vmem:[%s12874_s7 + $0x50] sm:$0xff] }
 0x54e   :  { %v5693_v42 = vpop.f32.mrf.mxu0  ;;  %v5778_v19 = vpop.f32.mrf.mxu1 }
 0x54f   :  { %v5700_v3 = vadd.f32 %v5693_v42, %v5611_v41  ;;  %v6238_v42 = vld [vmem:[%s12874_s7 + $0x70] sm:$0xff] }
 0x550   :  { %v9675_v45 = vpop.f32.mrf.mxu0  ;;  %v9687_v0 = vpop.f32.mrf.mxu1  ;;  %v7945_v37 = vcombine.low %v6234_v34, %v6238_v42  ;;  %v10111_v41 = vld [vmem:[%s12875_s9 + $0x30] sm:$0xff]  }
 0x551   :  { %v5785_v29 = vadd.f32 %v5778_v19, %v5700_v3  ;;  %v6235_v19 = vld [vmem:[%s12874_s7 + $0x58] sm:$0xff]  ;;  %v7953_v0 = vcombine.low %v6242_v32, %v6246_v5  ;;  %v10112_v3 = vld [vmem:[%s12875_s9 + $0xb0] sm:$0xff]  }
 0x552   :  { %v5696_v57 = vpop.f32.mrf.mxu0  ;;  %v5781_v12 = vpop.f32.mrf.mxu1  ;;  %v6239_v45 = vld [vmem:[%s12874_s7 + $0x78] sm:$0xff] }
 0x553   :  { %v5701_v2 = vadd.f32 %v5696_v57, %v5614_v9  ;;  %v7955_v57 = vcombine.low %v6243_v35, %v6247_v46  ;;  %v7947_v23 = vcombine.low %v6235_v19, %v6239_v45  ;;  %v10115_v9 = vld [vmem:[%s12875_s9 + $0x28] sm:$0xff]   ;;  %v12749_v46 = vld [vmem:[%s12877_s8] sm:$0xff] }
 0x554   :  { %v9676_v25 = vpop.f32.mrf.mxu0  ;;  %v9688_v7 = vpop.f32.mrf.mxu1 }
 0x555   :  { %v5786_v16 = vadd.f32 %v5781_v12, %v5701_v2  ;;  %v7946_v12 = vcombine.high %v6234_v34, %v6238_v42  ;;  %v7948_v25 = vcombine.high %v6235_v19, %v6239_v45  ;;  %v6226_v7 = vld [vmem:[%s12874_s7 + $0x10] sm:$0xff]  ;;  %v10119_v2 = vld [vmem:[%s12875_s9 + $0x20] sm:$0xff]  }
 0x55e   :  { %v5863_v22 = vpop.f32.mrf.mxu0  ;;  %v5948_v48 = vpop.f32.mrf.mxu1 }
 0x55f   :  { %v5870_v58 = vadd.f32 %v5863_v22, %v5785_v29  ;;  %v6230_v22 = vld [vmem:[%s12874_s7 + $0x30] sm:$0xff]  ;;  %v10118_v29 = vld [vmem:[%s12875_s9 + $0xe0] sm:$0xff]  }
 0x560   :  { %v9699_v63 = vpop.f32.mrf.mxu0  ;;  %v9711_v53 = vpop.f32.mrf.mxu1 }
 0x561   :  { %v5955_v6 = vadd.f32 %v5948_v48, %v5870_v58  ;;  %v7937_v48 = vcombine.low %v6226_v7, %v6230_v22  ;;  %v7939_v63 = vcombine.low %v6227_v56, %v6231_v59  ;;  %v10105_v53 = vld [vmem:[%s12875_s9 + $0x78] sm:$0xff]  }
 0x562   :  { %v5866_v21 = vpop.f32.mrf.mxu0  ;;  %v5951_v40 = vpop.f32.mrf.mxu1  ;;  %v10122_v58 = vld [vmem:[%s12875_s9 + $0xd8] sm:$0xff]  }
 0x563   :  { %v5871_v28 = vadd.f32 %v5866_v21, %v5786_v16  ;;  %v10107_v21 = vld [vmem:[%s12875_s9 + $0x38] sm:$0xff]   ;;  %v10125_v16 = vld [vmem:[%s12875_s9 + $0x50] sm:$0xff]  }
 0x564   :  { %v9700_v55 = vpop.f32.mrf.mxu0  ;;  %v9712_v44 = vpop.f32.mrf.mxu1 }
 0x565   :  { %v5956_v26 = vadd.f32 %v5951_v40, %v5871_v28  ;;  %v10108_v40 = vld [vmem:[%s12875_s9 + $0xb8] sm:$0xff]   ;;  %v10109_v55 = vld [vmem:[%s12875_s9 + $0x70] sm:$0xff]  }
 0x566   :  { %v10110_v44 = vld [vmem:[%s12875_s9 + $0xf0] sm:$0xff]  }
 0x567   :  { %v10127_v28 = vld [vmem:[%s12875_s9 + $0x10] sm:$0xff]  }
 0x56e   :  { %v6033_v14 = vpop.f32.mrf.mxu0  ;;  %v6118_v36 = vpop.f32.mrf.mxu1 }
 0x56f   :  { %v6040_v8 = vadd.f32 %v6033_v14, %v5955_v6  ;;  %v10113_v14 = vld [vmem:[%s12875_s9 + $0x68] sm:$0xff]   ;;  %v10126_v6 = vld [vmem:[%s12875_s9 + $0xd0] sm:$0xff]  }
 0x570   :  { %v9723_v11 = vpop.f32.mrf.mxu0  ;;  %v9735_v60 = vpop.f32.mrf.mxu1 }
 0x571   :  { %v6125_v18 = vadd.f32 %v6118_v36, %v6040_v8  ;;  %v10114_v36 = vld [vmem:[%s12875_s9 + $0xe8] sm:$0xff]   ;;  %v10117_v60 = vld [vmem:[%s12875_s9 + $0x60] sm:$0xff]   ;;  %v10128_v8 = vld [vmem:[%s12875_s9 + $0x90] sm:$0xff]  }
 0x572   :  { %v6036_v62 = vpop.f32.mrf.mxu0  ;;  %v6121_v51 = vpop.f32.mrf.mxu1  ;;  %v10116_v11 = vld [vmem:[%s12875_s9 + $0xa8] sm:$0xff]  }
 0x573   :  { %v6041_v49 = vadd.f32 %v6036_v62, %v5956_v26  ;;  %v10120_v62 = vld [vmem:[%s12875_s9 + $0xa0] sm:$0xff]   ;;  %v10129_v26 = vld [vmem:[%s12875_s9 + $0x48] sm:$0xff]  }
 0x574   :  { %v9724_v31 = vpop.f32.mrf.mxu0  ;;  %v9736_v15 = vpop.f32.mrf.mxu1 }
 0x575   :  { %v6126_v54 = vadd.f32 %v6121_v51, %v6041_v49  ;;  %v10121_v51 = vld [vmem:[%s12875_s9 + $0x58] sm:$0xff]   ;;  %v10131_v49 = vld [vmem:[%s12875_s9 + $0x8] sm:$0xff]  }
 0x576   :  { %v10123_v31 = vld [vmem:[%s12875_s9 + $0x18] sm:$0xff]  }
 0x577   :  { %v10124_v15 = vld [vmem:[%s12875_s9 + $0x98] sm:$0xff]  }
 0x57e   :  { %v6203_v47 = vpop.f32.mrf.mxu0 }
 0x57f   :  { %v6210_v17 = vadd.f32 %v6203_v47, %v6125_v18  ;;  %v10130_v18 = vld [vmem:[%s12875_s9 + $0xc8] sm:$0xff]  }
 0x580   :  { %v9747_v61 = vpop.f32.mrf.mxu0  ;;  %v10132_v47 = vld [vmem:[%s12875_s9 + $0x88] sm:$0xff]  }
 0x581   :  { %v6219_v10 = vadd.f32 %v7932_v50, %v6210_v17  ;;  %v10133_v17 = vld [vmem:[%s12875_s9 + $0x40] sm:$0xff]  }
 0x582   :  { %v6206_v20 = vpop.f32.mrf.mxu0  ;;  %v10135_v61 = vld [vmem:[%s12875_s9] sm:$0xff]  }
 0x583   :  { %v6211_v52 = vadd.f32 %v6206_v20, %v6126_v54  ;;  %v6221_v4 = vmax.f32 %v6219_v10, 0.0  ;;  %v10136_v54 = vld [vmem:[%s12875_s9 + $0x80] sm:$0xff]   ;;  %v10137_v20 = vld [vmem:[%s12875_s9 + $0x178] sm:$0xff]  }
 0x584   :  { %v9748_v39 = vpop.f32.mrf.mxu0  ;;  %v10138_v10 = vld [vmem:[%s12875_s9 + $0x1f8] sm:$0xff]  }
 0x585   :  { %v6220_v38 = vadd.f32 %v7932_v50, %v6211_v52  ;;  %v10134_v50 = vld [vmem:[%s12875_s9 + $0xc0] sm:$0xff]   ;;  %v6258_v52 = vlaneseq }
 0x587   :  { %v6222_v1 = vmax.f32 %v6220_v38, 0.0  ;;  %v12740_v39 = vshrl.u32 %v6258_v52, 7 }
 0x589   :  { %v6223_v43 = vpack.c.bf16 %v6222_v1, %v6221_v4  ;;  %v6264_v38 = vsub.s32 1, %v12740_v39  ;;  %v6272_v32 = vsub.s32 3, %v12740_v39  ;;  %v6260_v5 = vsub.s32 0, %v12740_v39 }
 0x58a   :  { %v6268_v35 = vsub.s32 2, %v12740_v39 }
 0x58b   :  { %7965 = vmatmul.mubr.msk.bf16.vlgmr.msra.gmra.mxu1 %vm5499_vm4, %v6223_v43  ;;  %7966 = vmatmul.mubr.msk.bf16.vlgmr.msra.gmra.mxu0 %vm5499_vm4, %v6223_v43 }
 0x58c   :  { %6556 = vmatpush1.bf16.msra.mxu1 %v7961_v24  ;;  %6599 = vmatpush1.bf16.msra.mxu0 %v7963_v13  ;;  %v7938_v24 = vcombine.high %v6226_v7, %v6230_v22  ;;  %v7940_v13 = vcombine.high %v6227_v56, %v6231_v59  ;;  %v6269_v34 = vrot.slane %v12749_v46, %v6268_v35  ;;  %v10152_v35 = vld [vmem:[%s12875_s9 + $0x1a0] sm:$0xff]  }
 0x58d   :  { %6557 = vmatprep.subr.bf16.mxu1 %v7954_v27  ;;  %6600 = vmatprep.subr.bf16.mxu0 %v7956_v33  ;;  %v6273_v27 = vrot.slane %v12749_v46, %v6272_v32  ;;  %v6261_v33 = vrot.slane %v12749_v46, %v6260_v5  ;;  %v10151_v5 = vld [vmem:[%s12875_s9 + $0x120] sm:$0xff]  }
 0x58e   :  { %6579 = vmatprep.mubr.bf16.mxu1 %v10202_v30  ;;  %6622 = vmatprep.mubr.bf16.mxu0 %v10202_v30  ;;  %v10106_v30 = vld [vmem:[%s12875_s9 + $0xf8] sm:$0xff]  }
 0x590   :  { %6558 = vmatpush1.bf16.msra.mxu1 %v7953_v0  ;;  %6601 = vmatpush1.bf16.msra.mxu0 %v7955_v57 }
 0x591   :  { %6559 = vmatprep.subr.bf16.mxu1 %v7946_v12  ;;  %6602 = vmatprep.subr.bf16.mxu0 %v7948_v25 }
 0x594   :  { %6560 = vmatpush1.bf16.msra.mxu1 %v7945_v37  ;;  %6603 = vmatpush1.bf16.msra.mxu0 %v7947_v23 }
 0x595   :  { %6561 = vmatprep.subr.bf16.mxu1 %v7938_v24  ;;  %6604 = vmatprep.subr.bf16.mxu0 %v7940_v13 }
 0x598   :  { %6562 = vmatpush1.bf16.msra.mxu1 %v7937_v48  ;;  %6605 = vmatpush1.bf16.msra.mxu0 %v7939_v63 }
 0x599   :  { %8913 = vmatprep.subr.bf16.mxu1 %v10105_v53  ;;  %8935 = vmatprep.subr.bf16.mxu0 %v10106_v30 }
 0x59b   :  { %7967 = vmatmul.mubr.msk.bf16.vlgmr.msra.gmra.mxu1 %vm5499_vm4, %v6223_v43  ;;  %7968 = vmatmul.mubr.msk.bf16.vlgmr.msra.gmra.mxu0 %vm5499_vm4, %v6223_v43  ;;  %v6265_v43 = vrot.slane %v12749_v46, %v6264_v38 }
 0x59c   :  { %8914 = vmatpush3.bf16.msra.mxu1 %v10107_v21  ;;  %8936 = vmatpush3.bf16.msra.mxu0 %v10108_v40 }
 0x59d   :  { %8915 = vmatprep.subr.bf16.mxu1 %v10109_v55  ;;  %8937 = vmatprep.subr.bf16.mxu0 %v10110_v44 }
 0x5a0   :  { %8916 = vmatpush3.bf16.msra.mxu1 %v10111_v41  ;;  %8938 = vmatpush3.bf16.msra.mxu0 %v10112_v3  ;;  %v10139_v3 = vld [vmem:[%s12875_s9 + $0x138] sm:$0xff]  }
 0x5a1   :  { %8917 = vmatprep.subr.bf16.mxu1 %v10113_v14  ;;  %8939 = vmatprep.subr.bf16.mxu0 %v10114_v36  ;;  %v10140_v14 = vld [vmem:[%s12875_s9 + $0x1b8] sm:$0xff]  }
 0x5a4   :  { %8918 = vmatpush3.bf16.msra.mxu1 %v10115_v9  ;;  %8940 = vmatpush3.bf16.msra.mxu0 %v10116_v11  ;;  %v10141_v11 = vld [vmem:[%s12875_s9 + $0x170] sm:$0xff]  }
 0x5a5   :  { %8919 = vmatprep.subr.bf16.mxu1 %v10117_v60  ;;  %8941 = vmatprep.subr.bf16.mxu0 %v10118_v29  ;;  %v10142_v60 = vld [vmem:[%s12875_s9 + $0x1f0] sm:$0xff]   ;;  %v6280_v29 = vsub.s32 5, %v12740_v39 }
 0x5a8   :  { %8920 = vmatpush3.bf16.msra.mxu1 %v10119_v2  ;;  %8942 = vmatpush3.bf16.msra.mxu0 %v10120_v62  ;;  %v6288_v2 = vsub.s32 7, %v12740_v39  ;;  %v10143_v62 = vld [vmem:[%s12875_s9 + $0x130] sm:$0xff]  }
 0x5a9   :  { %8921 = vmatprep.subr.bf16.mxu1 %v10121_v51  ;;  %8943 = vmatprep.subr.bf16.mxu0 %v10122_v58  ;;  %v10144_v51 = vld [vmem:[%s12875_s9 + $0x1b0] sm:$0xff]  }
 0x5ac   :  { %8922 = vmatpush3.bf16.msra.mxu1 %v10123_v31  ;;  %8944 = vmatpush3.bf16.msra.mxu0 %v10124_v15  ;;  %v10145_v15 = vld [vmem:[%s12875_s9 + $0x168] sm:$0xff]  }
 0x5ad   :  { %8923 = vmatprep.subr.bf16.mxu1 %v10125_v16  ;;  %8945 = vmatprep.subr.bf16.mxu0 %v10126_v6  ;;  %v10146_v16 = vld [vmem:[%s12875_s9 + $0x1e8] sm:$0xff]   ;;  %v6281_v6 = vrot.slane %v12749_v46, %v6280_v29 }
 0x5b0   :  { %8924 = vmatpush3.bf16.msra.mxu1 %v10127_v28  ;;  %8946 = vmatpush3.bf16.msra.mxu0 %v10128_v8  ;;  %v6289_v28 = vrot.slane %v12749_v46, %v6288_v2 }
 0x5b1   :  { %8925 = vmatprep.subr.bf16.mxu1 %v10129_v26  ;;  %8947 = vmatprep.subr.bf16.mxu0 %v10130_v18  ;;  %v10147_v18 = vld [vmem:[%s12875_s9 + $0x128] sm:$0xff]  }
 0x5b4   :  { %8926 = vmatpush3.bf16.msra.mxu1 %v10131_v49  ;;  %8948 = vmatpush3.bf16.msra.mxu0 %v10132_v47  ;;  %v10148_v49 = vld [vmem:[%s12875_s9 + $0x1a8] sm:$0xff]  }
 0x5b5   :  { %8927 = vmatprep.subr.bf16.mxu1 %v10133_v17  ;;  %8949 = vmatprep.subr.bf16.mxu0 %v10134_v50  ;;  %v10149_v50 = vld [vmem:[%s12875_s9 + $0x160] sm:$0xff]  }
 0x5b8   :  { %8928 = vmatpush3.bf16.msra.mxu1 %v10135_v61  ;;  %8950 = vmatpush3.bf16.msra.mxu0 %v10136_v54  ;;  %v10150_v61 = vld [vmem:[%s12875_s9 + $0x1e0] sm:$0xff]  }
 0x5b9   :  { %8957 = vmatprep.subr.bf16.mxu1 %v10137_v20  ;;  %8979 = vmatprep.subr.bf16.mxu0 %v10138_v10 }
 0x64b   :  { %v6495_v4 = vpop.f32.mrf.mxu1  ;;  %v6538_v1 = vpop.f32.mrf.mxu0 }
 0x64c   :  { %v6496_v22 = vadd.f32 %v6495_v4, %v6261_v33  ;;  %v6539_v56 = vadd.f32 %v6538_v1, %v6269_v34  ;;  %v10153_v4 = vld [vmem:[%s12875_s9 + $0x158] sm:$0xff]  }
 0x64d   :  { %v6497_v42 = vpop.f32.mrf.mxu1  ;;  %v6540_v19 = vpop.f32.mrf.mxu0  ;;  %v10154_v1 = vld [vmem:[%s12875_s9 + $0x1d8] sm:$0xff]  }
 0x64e   :  { %v6498_v57 = vadd.f32 %v6497_v42, %v6265_v43  ;;  %v6541_v12 = vadd.f32 %v6540_v19, %v6273_v27  ;;  %v6633_v40 = vmax.f32 %v6496_v22, 0.0  ;;  %v6635_v55 = vmax.f32 %v6539_v56, 0.0  ;;  %v10159_v22 = vld [vmem:[%s12875_s9 + $0x110] sm:$0xff]  }
 0x64f   :  { %v6499_v45 = vpop.f32.mrf.mxu1  ;;  %v6542_v0 = vpop.f32.mrf.mxu0  ;;  %v10160_v56 = vld [vmem:[%s12875_s9 + $0x190] sm:$0xff]  }
 0x650   :  { %v6500_v25 = vadd.f32 %v6499_v45, %v6261_v33  ;;  %v6543_v7 = vadd.f32 %v6542_v0, %v6269_v34  ;;  %v6634_v63 = vmax.f32 %v6498_v57, 0.0  ;;  %v6636_v53 = vmax.f32 %v6541_v12, 0.0  ;;  %v10155_v45 = vld [vmem:[%s12875_s9 + $0x118] sm:$0xff]   ;;  %v10157_v57 = vld [vmem:[%s12875_s9 + $0x150] sm:$0xff]  }
 0x651   :  { %v6501_v59 = vpop.f32.mrf.mxu1  ;;  %v6544_v37 = vpop.f32.mrf.mxu0  ;;  %v10156_v0 = vld [vmem:[%s12875_s9 + $0x198] sm:$0xff]   ;;  %v10158_v12 = vld [vmem:[%s12875_s9 + $0x1d0] sm:$0xff]  }
 0x652   :  { %v6502_v23 = vadd.f32 %v6501_v59, %v6265_v43  ;;  %v6545_v24 = vadd.f32 %v6544_v37, %v6273_v27  ;;  %v6641_v13 = vmax.f32 %v6500_v25, 0.0  ;;  %v6643_v48 = vmax.f32 %v6543_v7, 0.0  ;;  %v10161_v59 = vld [vmem:[%s12875_s9 + $0x148] sm:$0xff]  }
 0x653   :  { %v6276_v25 = vsub.s32 4, %v12740_v39  ;;  %v6284_v7 = vsub.s32 6, %v12740_v39  ;;  %v10162_v39 = vld [vmem:[%s12875_s9 + $0x1c8] sm:$0xff]  }
 0x654   :  { %v6642_v30 = vmax.f32 %v6502_v23, 0.0  ;;  %v6644_v21 = vmax.f32 %v6545_v24, 0.0  ;;  %v6649_v36 = vpack.c.bf16 %v6641_v13, %v6633_v40  ;;  %v6651_v9 = vpack.c.bf16 %v6643_v48, %v6635_v55  ;;  %v10163_v24 = vld [vmem:[%s12875_s9 + $0x108] sm:$0xff]   ;;  %v10167_v40 = vld [vmem:[%s12875_s9 + $0x100] sm:$0xff]  }
 0x655   :  { %v6277_v37 = vrot.slane %v12749_v46, %v6276_v25  ;;  %v6285_v23 = vrot.slane %v12749_v46, %v6284_v7  ;;  %v10164_v13 = vld [vmem:[%s12875_s9 + $0x188] sm:$0xff]   ;;  %v10166_v46 = vld [vmem:[%s12875_s9 + $0x1c0] sm:$0xff]  }
 0x656   :  { %v6650_v44 = vpack.c.bf16 %v6642_v30, %v6634_v63  ;;  %v6652_v41 = vpack.c.bf16 %v6644_v21, %v6636_v53  ;;  %v10165_v53 = vld [vmem:[%s12875_s9 + $0x140] sm:$0xff]  }
 0x657   :  { %v10168_v55 = vld [vmem:[%s12875_s9 + $0x180] sm:$0xff]  }
 0x658   :  { %7208 = vmatprep.mubr.bf16.mxu1 %v6650_v44  ;;  %7249 = vmatprep.mubr.bf16.mxu0 %v6652_v41 }
 0x659   :  { %7209 = vmatmul.mubr.bf16.vlgmr.msra.gmra.mxu1 %v6649_v36  ;;  %7250 = vmatmul.mubr.bf16.vlgmr.msra.gmra.mxu0 %v6651_v9 }
 0x65a   :  { %8958 = vmatpush3.bf16.msra.mxu1 %v10139_v3  ;;  %8980 = vmatpush3.bf16.msra.mxu0 %v10140_v14 }
 0x65b   :  { %v12775_v58 = vpop.f32.mrf.mxu1  ;;  %v12777_v31 = vpop.f32.mrf.mxu0  ;;  %8959 = vmatprep.subr.bf16.mxu1 %v10141_v11  ;;  %8981 = vmatprep.subr.bf16.mxu0 %v10142_v60 }
 0x65c   :  { %v6582_v30 = vadd.f32 %v12775_v58, %v6277_v37  ;;  %v6625_v21 = vadd.f32 %v12777_v31, %v6285_v23  ;;  %v7969_v31 = vld [vmem:[%s12878_s10] ss:$0 sm:$0xff] }
 0x65d   :  { %v6583_v8 = vpop.f32.mrf.mxu1  ;;  %v6626_v26 = vpop.f32.mrf.mxu0 }
 0x65e   :  { %8960 = vmatpush3.bf16.msra.mxu1 %v10143_v62  ;;  %8982 = vmatpush3.bf16.msra.mxu0 %v10144_v51  ;;  %v6584_v54 = vadd.f32 %v6583_v8, %v6281_v6  ;;  %v6627_v20 = vadd.f32 %v6626_v26, %v6289_v28  ;;  %v6637_v3 = vmax.f32 %v6582_v30, 0.0  ;;  %v6639_v14 = vmax.f32 %v6625_v21, 0.0 }
 0x65f   :  { %v6585_v47 = vpop.f32.mrf.mxu1  ;;  %v6628_v17 = vpop.f32.mrf.mxu0  ;;  %8961 = vmatprep.subr.bf16.mxu1 %v10145_v15  ;;  %8983 = vmatprep.subr.bf16.mxu0 %v10146_v16 }
 0x660   :  { %v6638_v43 = vmax.f32 %v6584_v54, 0.0  ;;  %v6640_v27 = vmax.f32 %v6627_v20, 0.0  ;;  %v6586_v48 = vadd.f32 %v6585_v47, %v6277_v37  ;;  %v6629_v63 = vadd.f32 %v6628_v17, %v6285_v23 }
 0x661   :  { %v6587_v10 = vpop.f32.mrf.mxu1  ;;  %v6630_v52 = vpop.f32.mrf.mxu0 }
 0x662   :  { %v6588_v38 = vadd.f32 %v6587_v10, %v6281_v6  ;;  %v6631_v32 = vadd.f32 %v6630_v52, %v6289_v28  ;;  %8962 = vmatpush3.bf16.msra.mxu1 %v10147_v18  ;;  %8984 = vmatpush3.bf16.msra.mxu0 %v10148_v49  ;;  %v6645_v44 = vmax.f32 %v6586_v48, 0.0  ;;  %v6647_v41 = vmax.f32 %v6629_v63, 0.0 }
 0x663   :  { %8963 = vmatprep.subr.bf16.mxu1 %v10149_v50  ;;  %8985 = vmatprep.subr.bf16.mxu0 %v10150_v61 }
 0x664   :  { %v6646_v33 = vmax.f32 %v6588_v38, 0.0  ;;  %v6648_v34 = vmax.f32 %v6631_v32, 0.0  ;;  %v6653_v36 = vpack.c.bf16 %v6645_v44, %v6637_v3  ;;  %v6655_v9 = vpack.c.bf16 %v6647_v41, %v6639_v14 }
 0x666   :  { %v6654_v42 = vpack.c.bf16 %v6646_v33, %v6638_v43  ;;  %v6656_v19 = vpack.c.bf16 %v6648_v34, %v6640_v27  ;;  %8964 = vmatpush3.bf16.msra.mxu1 %v10151_v5  ;;  %8986 = vmatpush3.bf16.msra.mxu0 %v10152_v35 }
 0x667   :  { %8965 = vmatprep.subr.bf16.mxu1 %v10153_v4  ;;  %8987 = vmatprep.subr.bf16.mxu0 %v10154_v1 }
 0x668   :  { %7290 = vmatprep.mubr.bf16.mxu1 %v6654_v42  ;;  %7331 = vmatprep.mubr.bf16.mxu0 %v6656_v19 }
 0x66a   :  { %8966 = vmatpush3.bf16.msra.mxu1 %v10155_v45  ;;  %8988 = vmatpush3.bf16.msra.mxu0 %v10156_v0 }
 0x66b   :  { %8967 = vmatprep.subr.bf16.mxu1 %v10157_v57  ;;  %8989 = vmatprep.subr.bf16.mxu0 %v10158_v12 }
 0x66e   :  { %8968 = vmatpush3.bf16.msra.mxu1 %v10159_v22  ;;  %8990 = vmatpush3.bf16.msra.mxu0 %v10160_v56 }
 0x66f   :  { %8969 = vmatprep.subr.bf16.mxu1 %v10161_v59  ;;  %8991 = vmatprep.subr.bf16.mxu0 %v10162_v39 }
 0x672   :  { %8970 = vmatpush3.bf16.msra.mxu1 %v10163_v24  ;;  %8992 = vmatpush3.bf16.msra.mxu0 %v10164_v13 }
 0x673   :  { %8971 = vmatprep.subr.bf16.mxu1 %v10165_v53  ;;  %8993 = vmatprep.subr.bf16.mxu0 %v10166_v46 }
 0x676   :  { %8972 = vmatpush3.bf16.msra.mxu1 %v10167_v40  ;;  %8994 = vmatpush3.bf16.msra.mxu0 %v10168_v55 }
 0x679   :  { %7291 = vmatmul.mubr.bf16.vlgmr.msra.gmra.mxu1 %v6653_v36  ;;  %7332 = vmatmul.mubr.bf16.vlgmr.msra.gmra.mxu0 %v6655_v9 }
 0x719   :  { %v8929_v11 = vpop.f32.mrf.mxu1  ;;  %v8951_v60 = vpop.f32.mrf.mxu0 }
 0x71b   :  { %v8930_v29 = vpop.f32.mrf.mxu1  ;;  %v8952_v2 = vpop.f32.mrf.mxu0 }
 0x71c   :  { %v8931_v58 = vadd.f32 %v8930_v29, %v8929_v11  ;;  %v8953_v18 = vadd.f32 %v8952_v2, %v8951_v60 }
 0x71d   :  { %v8932_v62 = vpop.f32.mrf.mxu1  ;;  %v8954_v51 = vpop.f32.mrf.mxu0 }
 0x71e   :  { %v7211_v6 = vadd.f32 %v8931_v58, %v7969_v31 }
 0x71f   :  { %v8933_v15 = vpop.f32.mrf.mxu1  ;;  %v8955_v16 = vpop.f32.mrf.mxu0 }
 0x720   :  { %v8934_v28 = vadd.f32 %v8933_v15, %v8932_v62  ;;  %v7252_v17 = vadd.f32 %v8953_v18, %v7211_v6  ;;  %v8956_v10 = vadd.f32 %v8955_v16, %v8954_v51 }
 0x722   :  { %v7214_v50 = vadd.f32 %v8934_v28, %v7969_v31 }
 0x724   :  { %v7255_v35 = vadd.f32 %v8956_v10, %v7214_v50 }
 0x739   :  { %v8973_v8 = vpop.f32.mrf.mxu1  ;;  %v8995_v26 = vpop.f32.mrf.mxu0 }
 0x73b   :  { %v8974_v49 = vpop.f32.mrf.mxu1  ;;  %v8996_v47 = vpop.f32.mrf.mxu0 }
 0x73c   :  { %v8975_v61 = vadd.f32 %v8974_v49, %v8973_v8  ;;  %v8997_v38 = vadd.f32 %v8996_v47, %v8995_v26 }
 0x73d   :  { %v8976_v54 = vpop.f32.mrf.mxu1  ;;  %v8998_v20 = vpop.f32.mrf.mxu0 }
 0x73e   :  { %v7293_v52 = vadd.f32 %v8975_v61, %v7252_v17 }
 0x73f   :  { %v8977_v32 = vpop.f32.mrf.mxu1  ;;  %v8999_v5 = vpop.f32.mrf.mxu0 }
 0x740   :  { %v7334_v4 = vadd.f32 %v8997_v38, %v7293_v52  ;;  %v8978_v1 = vadd.f32 %v8977_v32, %v8976_v54  ;;  %v9000_v27 = vadd.f32 %v8999_v5, %v8998_v20 }
 0x742   :  { %7340 = vst [vmem:[%s12879_s11] sm:$0xff] %v7334_v4  ;;  %v7296_v43 = vadd.f32 %v8978_v1, %v7255_v35 }
 0x744   :  { %v7337_v33 = vadd.f32 %v9000_v27, %v7296_v43 }
 0x746   :  { %7341 = vst [vmem:[%s12879_s11 + $0x8] sm:$0xff] %v7337_v33 }

</bundles_post_ra>
